<compile_context>
chip_gen: v6e
topology: v6e:2x2x1
jax: 0.10.0
libtpu: 0.0.40
codegen_flags: <defaults>
</compile_context>

<pallas_src>
import jax
import jax.numpy as jnp
from jax import lax
from jax.experimental import pallas as pl
from jax.experimental.pallas import tpu as pltpu

INPUT_SIZE = 46
HIDDEN_SIZE = 30
NUM_LAYERS = 3
GATE_PAD = 128   # per-gate lane width after padding (one full lane group)
DIN_PAD = 48     # layer-0 contraction dim padded 46 -> 48 (sublane multiple)

# Kernel gate order is i | f | o | g (three sigmoid gates lane-contiguous).
# PyTorch order is i | f | g | o; dest slot d takes source gate _GATE_PERM[d].
_GATE_PERM = (0, 1, 3, 2)


# ----------------------------------------------------------------------------
# Fused Pallas kernel: 3 LSTM layers + Linear epilogue, everything in VMEM.
# ----------------------------------------------------------------------------
def _fused_lstm_kernel(x_ref,
                       wih0_ref, whh0_ref, b0_ref,
                       wih1_ref, whh1_ref, b1_ref,
                       wih2_ref, whh2_ref, b2_ref,
                       wlin_ref, blin_ref,
                       out_ref,
                       hseq_ref):
    """Shapes (all f32, gate order i|f|o|g, each gate padded to 128 lanes):
      x_ref    : (BT, T, DIN_PAD)    batch tile, batch-first
      wihX_ref : (Din_layer, 4*128)  transposed, zero-padded
      whhX_ref : (128, 4*128)        transposed, zero-padded
      bX_ref   : (1, 4*128)          b_ih + b_hh, zero-padded
      wlin_ref : (128, 1)            transposed, zero-padded rows
      blin_ref : (1, 1)
      out_ref  : (T, BT, 1)          time-major output block
      hseq_ref : (T*BT, 128)         VMEM scratch: time-major hidden sequence
    """
    BT, T, _ = x_ref.shape
    HP = GATE_PAD

    def run_layer(gin_at, whh_ref):
        # Serial recurrence: per step only h @ W_hh (one MXU matmul), one
        # sigmoid over 3*HP lanes, one tanh over HP lanes, tanh(c), and a few
        # VPU ops sit on the critical chain.
        whh = whh_ref[...]                                   # (HP, 4*HP)
        h = jnp.zeros((BT, HP), jnp.float32)
        c = jnp.zeros((BT, HP), jnp.float32)
        for t in range(T):                                   # static unroll, T=8
            gates = gin_at(t) + jnp.dot(
                h, whh, preferred_element_type=jnp.float32)  # (BT, 4*HP)
            sig = jax.nn.sigmoid(gates[:, :3 * HP])          # i|f|o in one pass
            g = jnp.tanh(gates[:, 3 * HP:])
            i = sig[:, 0 * HP:1 * HP]
            f = sig[:, 1 * HP:2 * HP]
            o = sig[:, 2 * HP:3 * HP]
            c = f * c + i * g
            h = o * jnp.tanh(c)
            # Time-major VMEM scratch write (replaces hs list + jnp.stack):
            # bounds live ranges and feeds the next layer's hoisted matmul.
            hseq_ref[t * BT:(t + 1) * BT, :] = h

    # ---- Layer 0: hoisted input projection for ALL timesteps at once. ----
    x = x_ref[...]
    g0 = (jnp.dot(x.reshape(BT * T, x.shape[-1]), wih0_ref[...],
                  preferred_element_type=jnp.float32)
          + b0_ref[...]).reshape(BT, T, 4 * HP)              # (BT, T, 4*HP)
    run_layer(lambda t: g0[:, t, :], whh0_ref)

    # ---- Layers 1, 2: input is the time-major hidden sequence in VMEM. ----
    for wih_ref, whh_ref, b_ref in ((wih1_ref, whh1_ref, b1_ref),
                                    (wih2_ref, whh2_ref, b2_ref)):
        hprev = hseq_ref[...]                                # (T*BT, HP)
        gi = (jnp.dot(hprev, wih_ref[...],
                      preferred_element_type=jnp.float32)
              + b_ref[...])                                  # (T*BT, 4*HP)
        run_layer(lambda t, gi=gi: gi[t * BT:(t + 1) * BT, :], whh_ref)
        # dropout(p=0.2) between layers: identity in eval mode.

    # ---- Final Linear fused as an epilogue: (T*BT, HP) @ (HP, 1) + b. ----
    y = (jnp.dot(hseq_ref[...], wlin_ref[...],
                 preferred_element_type=jnp.float32)
         + blin_ref[...])                                    # (T*BT, 1) time-major
    out_ref[...] = y.reshape(T, BT, 1).astype(out_ref.dtype)


def fused_forward(params, x):
    """x: (B, T, INPUT_SIZE) batch-first f32 -> (B, T, 1)."""
    B, T, feat = x.shape
    # Pad the layer-0 contraction dim to a sublane multiple (46 -> 48).
    x = jnp.pad(x, ((0, 0), (0, 0), (0, DIN_PAD - feat)))

    # Batch tiling: split across grid steps / TensorCores when the batch
    # allows it; otherwise one whole-batch invocation.  The batch sits in the
    # second-to-last dim of the time-major output, so tiles must be 8-aligned
    # unless they cover the full batch.
    bt = 8 if (B % 8 == 0) else B
    grid = (B // bt,)

    w_args = (*params["lstm"][0], *params["lstm"][1], *params["lstm"][2],
              params["lin_w_t"], params["lin_b"])

    def bcast(a):
        nd = a.ndim
        return pl.BlockSpec(a.shape, lambda i: (0,) * nd)   # same block each step

    out_tm = pl.pallas_call(
        _fused_lstm_kernel,
        out_shape=jax.ShapeDtypeStruct((T, B, 1), jnp.float32),
        grid_spec=pltpu.PrefetchScalarGridSpec(
            num_scalar_prefetch=0,
            grid=grid,
            in_specs=[pl.BlockSpec((bt, T, DIN_PAD), lambda i: (i, 0, 0))]
                     + [bcast(a) for a in w_args],
            out_specs=pl.BlockSpec((T, bt, 1), lambda i: (0, i, 0)),
            scratch_shapes=[pltpu.VMEM((T * bt, GATE_PAD), jnp.float32)]),
        compiler_params=pltpu.CompilerParams(
            dimension_semantics=("parallel",)),
    )(x, *w_args)
    # Kernel emits time-major (T, B, 1); tiny relayout back to batch-first.
    return jnp.transpose(out_tm, (1, 0, 2))


model_forward = jax.jit(fused_forward)


# ----------------------------------------------------------------------------
# Parameter construction (PyTorch-style init) + packing into padded layout.
# ----------------------------------------------------------------------------
def init_raw_params(key, input_size=INPUT_SIZE, hidden_size=HIDDEN_SIZE,
                    num_layers=NUM_LAYERS):
    """Raw PyTorch-layout params, uniform(-1/sqrt(H), 1/sqrt(H))."""
    stdv = 1.0 / (hidden_size ** 0.5)
    keys = jax.random.split(key, num_layers * 4 + 2)
    lstm, ki = [], 0
    for layer in range(num_layers):
        d_in = input_size if layer == 0 else hidden_size
        w_ih = jax.random.uniform(keys[ki + 0], (4 * hidden_size, d_in),
                                  jnp.float32, -stdv, stdv)
        w_hh = jax.random.uniform(keys[ki + 1], (4 * hidden_size, hidden_size),
                                  jnp.float32, -stdv, stdv)
        b_ih = jax.random.uniform(keys[ki + 2], (4 * hidden_size,),
                                  jnp.float32, -stdv, stdv)
        b_hh = jax.random.uniform(keys[ki + 3], (4 * hidden_size,),
                                  jnp.float32, -stdv, stdv)
        ki += 4
        lstm.append((w_ih, w_hh, b_ih, b_hh))
    lin_w = jax.random.uniform(keys[ki + 0], (1, hidden_size),
                               jnp.float32, -stdv, stdv)
    lin_b = jax.random.uniform(keys[ki + 1], (1,), jnp.float32, -stdv, stdv)
    return {"lstm": lstm, "lin_w": lin_w, "lin_b": lin_b}


def _pad_gate_cols(w, h, hp=GATE_PAD):
    """(rows, 4*h) in PyTorch gate order i|f|g|o -> (rows, 4*hp) in kernel
    order i|f|o|g, each gate block moved to its own 128-lane slot."""
    rows = w.shape[0]
    out = jnp.zeros((rows, 4 * hp), w.dtype)
    for d, s in enumerate(_GATE_PERM):
        out = out.at[:, d * hp:d * hp + h].set(w[:, s * h:(s + 1) * h])
    return out


def _pad_rows(w, rows_p):
    out = jnp.zeros((rows_p,) + w.shape[1:], w.dtype)
    return out.at[:w.shape[0]].set(w)


def pack_params(raw, hidden_size=HIDDEN_SIZE):
    """Build the padded, transposed, gate-permuted kernel-side layout."""
    lstm = []
    for layer, (w_ih, w_hh, b_ih, b_hh) in enumerate(raw["lstm"]):
        wih_t = _pad_gate_cols(jnp.transpose(w_ih), hidden_size)   # (Din, 4*HP)
        rows_p = DIN_PAD if layer == 0 else GATE_PAD
        wih_t = _pad_rows(wih_t, rows_p)
        whh_t = _pad_rows(_pad_gate_cols(jnp.transpose(w_hh), hidden_size),
                          GATE_PAD)                                # (HP, 4*HP)
        b = _pad_gate_cols((b_ih + b_hh)[None, :], hidden_size)    # (1, 4*HP)
        lstm.append((wih_t, whh_t, b))
    lin_w_t = _pad_rows(jnp.transpose(raw["lin_w"]), GATE_PAD)     # (HP, 1)
    return {"lstm": lstm, "lin_w_t": lin_w_t, "lin_b": raw["lin_b"][None, :]}


# ----------------------------------------------------------------------------
# Pure-JAX reference (PyTorch eval semantics) for correctness checking.
# ----------------------------------------------------------------------------
def reference_forward(raw, x):
    hi = jax.lax.Precision.HIGHEST
    h_seq = x
    for (w_ih, w_hh, b_ih, b_hh) in raw["lstm"]:
        B, T, _ = h_seq.shape
        H = w_hh.shape[1]

        def step(carry, x_t):
            h, c = carry
            gates = (jnp.dot(x_t, w_ih.T, precision=hi)
                     + jnp.dot(h, w_hh.T, precision=hi) + b_ih + b_hh)
            i = jax.nn.sigmoid(gates[:, 0 * H:1 * H])
            f = jax.nn.sigmoid(gates[:, 1 * H:2 * H])
            g = jnp.tanh(gates[:, 2 * H:3 * H])
            o = jax.nn.sigmoid(gates[:, 3 * H:4 * H])
            c = f * c + i * g
            h = o * jnp.tanh(c)
            return (h, c), h

        x_tm = jnp.transpose(h_seq, (1, 0, 2))
        (_, _), hs = lax.scan(step, (jnp.zeros((B, H), jnp.float32),
                                     jnp.zeros((B, H), jnp.float32)), x_tm)
        h_seq = jnp.transpose(hs, (1, 0, 2))
    return jnp.dot(h_seq, raw["lin_w"].T, precision=hi) + raw["lin_b"]


if __name__ == "__main__":
    key = jax.random.PRNGKey(0)
    pkey, xkey = jax.random.split(key)
    raw = init_raw_params(pkey)
    params = pack_params(raw)

    B, T = 2, 8
    x = jax.random.normal(xkey, (B, T, INPUT_SIZE), jnp.float32)

    y = model_forward(params, x)
    jax.block_until_ready(y)
    assert y.shape == (B, T, 1), y.shape
    assert y.dtype == jnp.float32

    y_ref = reference_forward(raw, x)
    max_err = float(jnp.max(jnp.abs(y - y_ref)))
    assert max_err < 5e-3, f"mismatch vs reference: max_err={max_err}"

    print("KERNEL_OK")
</pallas_src>

<mosaic_0001>
module attributes {stable_mosaic.version = 11 : i64} {
  func.func @_fused_lstm_kernel(%arg0: i32, %arg1: memref<2x8x48xf32, #tpu.memory_space<vmem>>, %arg2: memref<48x512xf32, #tpu.memory_space<vmem>>, %arg3: memref<128x512xf32, #tpu.memory_space<vmem>>, %arg4: memref<1x512xf32, #tpu.memory_space<vmem>>, %arg5: memref<128x512xf32, #tpu.memory_space<vmem>>, %arg6: memref<128x512xf32, #tpu.memory_space<vmem>>, %arg7: memref<1x512xf32, #tpu.memory_space<vmem>>, %arg8: memref<128x512xf32, #tpu.memory_space<vmem>>, %arg9: memref<128x512xf32, #tpu.memory_space<vmem>>, %arg10: memref<1x512xf32, #tpu.memory_space<vmem>>, %arg11: memref<128x1xf32, #tpu.memory_space<vmem>>, %arg12: memref<1x1xf32, #tpu.memory_space<vmem>>, %arg13: memref<8x2x1xf32, #tpu.memory_space<vmem>>, %arg14: memref<16x128xf32, #tpu.memory_space<vmem>>) attributes {dimension_semantics = [#tpu.dimension_semantics<parallel>], iteration_bounds = array<i64: 1>, scalar_prefetch = 0 : i64, scratch_operands = 1 : i64, tpu.core_type = #tpu.core_type<tc>, window_params = [{transform_indices = @transform_0, window_bounds = array<i64: 2, 8, 48>}, {pipeline_mode = #tpu.pipeline_mode<synchronous>, transform_indices = @transform_1, window_bounds = array<i64: 48, 512>}, {pipeline_mode = #tpu.pipeline_mode<synchronous>, transform_indices = @transform_2, window_bounds = array<i64: 128, 512>}, {pipeline_mode = #tpu.pipeline_mode<synchronous>, transform_indices = @transform_3, window_bounds = array<i64: 1, 512>}, {pipeline_mode = #tpu.pipeline_mode<synchronous>, transform_indices = @transform_4, window_bounds = array<i64: 128, 512>}, {pipeline_mode = #tpu.pipeline_mode<synchronous>, transform_indices = @transform_5, window_bounds = array<i64: 128, 512>}, {pipeline_mode = #tpu.pipeline_mode<synchronous>, transform_indices = @transform_6, window_bounds = array<i64: 1, 512>}, {pipeline_mode = #tpu.pipeline_mode<synchronous>, transform_indices = @transform_7, window_bounds = array<i64: 128, 512>}, {pipeline_mode = #tpu.pipeline_mode<synchronous>, transform_indices = @transform_8, window_bounds = array<i64: 128, 512>}, {pipeline_mode = #tpu.pipeline_mode<synchronous>, transform_indices = @transform_9, window_bounds = array<i64: 1, 512>}, {pipeline_mode = #tpu.pipeline_mode<synchronous>, transform_indices = @transform_10, window_bounds = array<i64: 128, 1>}, {pipeline_mode = #tpu.pipeline_mode<synchronous>, transform_indices = @transform_11, window_bounds = array<i64: 1, 1>}, {transform_indices = @transform_12, window_bounds = array<i64: 8, 2, 1>}]} {
    %c0 = arith.constant 0 : index
    %c0_0 = arith.constant 0 : index
    %c0_1 = arith.constant 0 : index
    %0 = vector.load %arg1[%c0, %c0_0, %c0_1] : memref<2x8x48xf32, #tpu.memory_space<vmem>>, vector<2x8x48xf32>
    %1 = vector.shape_cast %0 : vector<2x8x48xf32> to vector<16x48xf32>
    %c0_2 = arith.constant 0 : index
    %c0_3 = arith.constant 0 : index
    %2 = vector.load %arg2[%c0_2, %c0_3] : memref<48x512xf32, #tpu.memory_space<vmem>>, vector<48x512xf32>
    %cst = arith.constant dense<0.000000e+00> : vector<16x512xf32>
    %3 = tpu.matmul %1, %2, %cst {dimension_numbers = #tpu.dot_dimension_numbers<[1], [0], [0], [1], [0, 0, 1, 1], [], []>} : vector<16x48xf32>, vector<48x512xf32>, vector<16x512xf32> -> vector<16x512xf32>
    %c0_4 = arith.constant 0 : index
    %c0_5 = arith.constant 0 : index
    %4 = vector.load %arg4[%c0_4, %c0_5] : memref<1x512xf32, #tpu.memory_space<vmem>>, vector<1x512xf32>
    %5 = vector.broadcast %4 : vector<1x512xf32> to vector<16x512xf32>
    %6 = arith.addf %3, %5 : vector<16x512xf32>
    %7 = vector.shape_cast %6 : vector<16x512xf32> to vector<2x8x512xf32>
    %c0_6 = arith.constant 0 : index
    %c0_7 = arith.constant 0 : index
    %8 = vector.load %arg3[%c0_6, %c0_7] : memref<128x512xf32, #tpu.memory_space<vmem>>, vector<128x512xf32>
    %cst_8 = arith.constant 0.000000e+00 : f32
    %9 = vector.broadcast %cst_8 : f32 to vector<2x128xf32>
    %cst_9 = arith.constant 0.000000e+00 : f32
    %10 = vector.broadcast %cst_9 : f32 to vector<2x128xf32>
    %11 = vector.extract_strided_slice %7 {offsets = [0, 0, 0], sizes = [2, 1, 512], strides = [1, 1, 1]} : vector<2x8x512xf32> to vector<2x1x512xf32>
    %12 = vector.shape_cast %11 : vector<2x1x512xf32> to vector<2x512xf32>
    %cst_10 = arith.constant dense<0.000000e+00> : vector<2x512xf32>
    %13 = tpu.matmul %9, %8, %cst_10 {dimension_numbers = #tpu.dot_dimension_numbers<[1], [0], [0], [1], [0, 0, 1, 1], [], []>} : vector<2x128xf32>, vector<128x512xf32>, vector<2x512xf32> -> vector<2x512xf32>
    %14 = arith.addf %12, %13 : vector<2x512xf32>
    %15 = vector.extract_strided_slice %14 {offsets = [0, 0], sizes = [2, 384], strides = [1, 1]} : vector<2x512xf32> to vector<2x384xf32>
    %16 = arith.negf %15 : vector<2x384xf32>
    %17 = math.exp %16 : vector<2x384xf32>
    %cst_11 = arith.constant 1.000000e+00 : f32
    %18 = vector.broadcast %cst_11 : f32 to vector<2x384xf32>
    %19 = arith.addf %18, %17 : vector<2x384xf32>
    %20 = arith.divf %18, %19 : vector<2x384xf32>
    %21 = vector.extract_strided_slice %14 {offsets = [0, 384], sizes = [2, 128], strides = [1, 1]} : vector<2x512xf32> to vector<2x128xf32>
    %22 = math.tanh %21 : vector<2x128xf32>
    %23 = vector.extract_strided_slice %20 {offsets = [0, 0], sizes = [2, 128], strides = [1, 1]} : vector<2x384xf32> to vector<2x128xf32>
    %24 = vector.extract_strided_slice %20 {offsets = [0, 128], sizes = [2, 128], strides = [1, 1]} : vector<2x384xf32> to vector<2x128xf32>
    %25 = vector.extract_strided_slice %20 {offsets = [0, 256], sizes = [2, 128], strides = [1, 1]} : vector<2x384xf32> to vector<2x128xf32>
    %26 = arith.mulf %24, %10 : vector<2x128xf32>
    %27 = arith.mulf %23, %22 : vector<2x128xf32>
    %28 = arith.addf %26, %27 : vector<2x128xf32>
    %29 = math.tanh %28 : vector<2x128xf32>
    %30 = arith.mulf %25, %29 : vector<2x128xf32>
    %c0_12 = arith.constant 0 : index
    %c0_13 = arith.constant 0 : index
    %31 = vector.load %arg14[%c0_12, %c0_13] : memref<16x128xf32, #tpu.memory_space<vmem>>, vector<2x128xf32>
    tpu.vector_store %arg14[%c0_12, %c0_13], %30 {strides = array<i32>} : memref<16x128xf32, #tpu.memory_space<vmem>>, vector<2x128xf32>,
    %32 = vector.extract_strided_slice %7 {offsets = [0, 1, 0], sizes = [2, 1, 512], strides = [1, 1, 1]} : vector<2x8x512xf32> to vector<2x1x512xf32>
    %33 = vector.shape_cast %32 : vector<2x1x512xf32> to vector<2x512xf32>
    %cst_14 = arith.constant dense<0.000000e+00> : vector<2x512xf32>
    %34 = tpu.matmul %30, %8, %cst_14 {dimension_numbers = #tpu.dot_dimension_numbers<[1], [0], [0], [1], [0, 0, 1, 1], [], []>} : vector<2x128xf32>, vector<128x512xf32>, vector<2x512xf32> -> vector<2x512xf32>
    %35 = arith.addf %33, %34 : vector<2x512xf32>
    %36 = vector.extract_strided_slice %35 {offsets = [0, 0], sizes = [2, 384], strides = [1, 1]} : vector<2x512xf32> to vector<2x384xf32>
    %37 = arith.negf %36 : vector<2x384xf32>
    %38 = math.exp %37 : vector<2x384xf32>
    %cst_15 = arith.constant 1.000000e+00 : f32
    %39 = vector.broadcast %cst_15 : f32 to vector<2x384xf32>
    %40 = arith.addf %39, %38 : vector<2x384xf32>
    %41 = arith.divf %39, %40 : vector<2x384xf32>
    %42 = vector.extract_strided_slice %35 {offsets = [0, 384], sizes = [2, 128], strides = [1, 1]} : vector<2x512xf32> to vector<2x128xf32>
    %43 = math.tanh %42 : vector<2x128xf32>
    %44 = vector.extract_strided_slice %41 {offsets = [0, 0], sizes = [2, 128], strides = [1, 1]} : vector<2x384xf32> to vector<2x128xf32>
    %45 = vector.extract_strided_slice %41 {offsets = [0, 128], sizes = [2, 128], strides = [1, 1]} : vector<2x384xf32> to vector<2x128xf32>
    %46 = vector.extract_strided_slice %41 {offsets = [0, 256], sizes = [2, 128], strides = [1, 1]} : vector<2x384xf32> to vector<2x128xf32>
    %47 = arith.mulf %45, %28 : vector<2x128xf32>
    %48 = arith.mulf %44, %43 : vector<2x128xf32>
    %49 = arith.addf %47, %48 : vector<2x128xf32>
    %50 = math.tanh %49 : vector<2x128xf32>
    %51 = arith.mulf %46, %50 : vector<2x128xf32>
    %c2 = arith.constant 2 : index
    %c0_16 = arith.constant 0 : index
    %52 = vector.load %arg14[%c2, %c0_16] : memref<16x128xf32, #tpu.memory_space<vmem>>, vector<2x128xf32>
    tpu.vector_store %arg14[%c2, %c0_16], %51 {strides = array<i32>} : memref<16x128xf32, #tpu.memory_space<vmem>>, vector<2x128xf32>,
    %53 = vector.extract_strided_slice %7 {offsets = [0, 2, 0], sizes = [2, 1, 512], strides = [1, 1, 1]} : vector<2x8x512xf32> to vector<2x1x512xf32>
    %54 = vector.shape_cast %53 : vector<2x1x512xf32> to vector<2x512xf32>
    %cst_17 = arith.constant dense<0.000000e+00> : vector<2x512xf32>
    %55 = tpu.matmul %51, %8, %cst_17 {dimension_numbers = #tpu.dot_dimension_numbers<[1], [0], [0], [1], [0, 0, 1, 1], [], []>} : vector<2x128xf32>, vector<128x512xf32>, vector<2x512xf32> -> vector<2x512xf32>
    %56 = arith.addf %54, %55 : vector<2x512xf32>
    %57 = vector.extract_strided_slice %56 {offsets = [0, 0], sizes = [2, 384], strides = [1, 1]} : vector<2x512xf32> to vector<2x384xf32>
    %58 = arith.negf %57 : vector<2x384xf32>
    %59 = math.exp %58 : vector<2x384xf32>
    %cst_18 = arith.constant 1.000000e+00 : f32
    %60 = vector.broadcast %cst_18 : f32 to vector<2x384xf32>
    %61 = arith.addf %60, %59 : vector<2x384xf32>
    %62 = arith.divf %60, %61 : vector<2x384xf32>
    %63 = vector.extract_strided_slice %56 {offsets = [0, 384], sizes = [2, 128], strides = [1, 1]} : vector<2x512xf32> to vector<2x128xf32>
    %64 = math.tanh %63 : vector<2x128xf32>
    %65 = vector.extract_strided_slice %62 {offsets = [0, 0], sizes = [2, 128], strides = [1, 1]} : vector<2x384xf32> to vector<2x128xf32>
    %66 = vector.extract_strided_slice %62 {offsets = [0, 128], sizes = [2, 128], strides = [1, 1]} : vector<2x384xf32> to vector<2x128xf32>
    %67 = vector.extract_strided_slice %62 {offsets = [0, 256], sizes = [2, 128], strides = [1, 1]} : vector<2x384xf32> to vector<2x128xf32>
    %68 = arith.mulf %66, %49 : vector<2x128xf32>
    %69 = arith.mulf %65, %64 : vector<2x128xf32>
    %70 = arith.addf %68, %69 : vector<2x128xf32>
    %71 = math.tanh %70 : vector<2x128xf32>
    %72 = arith.mulf %67, %71 : vector<2x128xf32>
    %c4 = arith.constant 4 : index
    %c0_19 = arith.constant 0 : index
    %73 = vector.load %arg14[%c4, %c0_19] : memref<16x128xf32, #tpu.memory_space<vmem>>, vector<2x128xf32>
    tpu.vector_store %arg14[%c4, %c0_19], %72 {strides = array<i32>} : memref<16x128xf32, #tpu.memory_space<vmem>>, vector<2x128xf32>,
    %74 = vector.extract_strided_slice %7 {offsets = [0, 3, 0], sizes = [2, 1, 512], strides = [1, 1, 1]} : vector<2x8x512xf32> to vector<2x1x512xf32>
    %75 = vector.shape_cast %74 : vector<2x1x512xf32> to vector<2x512xf32>
    %cst_20 = arith.constant dense<0.000000e+00> : vector<2x512xf32>
    %76 = tpu.matmul %72, %8, %cst_20 {dimension_numbers = #tpu.dot_dimension_numbers<[1], [0], [0], [1], [0, 0, 1, 1], [], []>} : vector<2x128xf32>, vector<128x512xf32>, vector<2x512xf32> -> vector<2x512xf32>
    %77 = arith.addf %75, %76 : vector<2x512xf32>
    %78 = vector.extract_strided_slice %77 {offsets = [0, 0], sizes = [2, 384], strides = [1, 1]} : vector<2x512xf32> to vector<2x384xf32>
    %79 = arith.negf %78 : vector<2x384xf32>
    %80 = math.exp %79 : vector<2x384xf32>
    %cst_21 = arith.constant 1.000000e+00 : f32
    %81 = vector.broadcast %cst_21 : f32 to vector<2x384xf32>
    %82 = arith.addf %81, %80 : vector<2x384xf32>
    %83 = arith.divf %81, %82 : vector<2x384xf32>
    %84 = vector.extract_strided_slice %77 {offsets = [0, 384], sizes = [2, 128], strides = [1, 1]} : vector<2x512xf32> to vector<2x128xf32>
    %85 = math.tanh %84 : vector<2x128xf32>
    %86 = vector.extract_strided_slice %83 {offsets = [0, 0], sizes = [2, 128], strides = [1, 1]} : vector<2x384xf32> to vector<2x128xf32>
    %87 = vector.extract_strided_slice %83 {offsets = [0, 128], sizes = [2, 128], strides = [1, 1]} : vector<2x384xf32> to vector<2x128xf32>
    %88 = vector.extract_strided_slice %83 {offsets = [0, 256], sizes = [2, 128], strides = [1, 1]} : vector<2x384xf32> to vector<2x128xf32>
    %89 = arith.mulf %87, %70 : vector<2x128xf32>
    %90 = arith.mulf %86, %85 : vector<2x128xf32>
    %91 = arith.addf %89, %90 : vector<2x128xf32>
    %92 = math.tanh %91 : vector<2x128xf32>
    %93 = arith.mulf %88, %92 : vector<2x128xf32>
    %c6 = arith.constant 6 : index
    %c0_22 = arith.constant 0 : index
    %94 = vector.load %arg14[%c6, %c0_22] : memref<16x128xf32, #tpu.memory_space<vmem>>, vector<2x128xf32>
    tpu.vector_store %arg14[%c6, %c0_22], %93 {strides = array<i32>} : memref<16x128xf32, #tpu.memory_space<vmem>>, vector<2x128xf32>,
    %95 = vector.extract_strided_slice %7 {offsets = [0, 4, 0], sizes = [2, 1, 512], strides = [1, 1, 1]} : vector<2x8x512xf32> to vector<2x1x512xf32>
    %96 = vector.shape_cast %95 : vector<2x1x512xf32> to vector<2x512xf32>
    %cst_23 = arith.constant dense<0.000000e+00> : vector<2x512xf32>
    %97 = tpu.matmul %93, %8, %cst_23 {dimension_numbers = #tpu.dot_dimension_numbers<[1], [0], [0], [1], [0, 0, 1, 1], [], []>} : vector<2x128xf32>, vector<128x512xf32>, vector<2x512xf32> -> vector<2x512xf32>
    %98 = arith.addf %96, %97 : vector<2x512xf32>
    %99 = vector.extract_strided_slice %98 {offsets = [0, 0], sizes = [2, 384], strides = [1, 1]} : vector<2x512xf32> to vector<2x384xf32>
    %100 = arith.negf %99 : vector<2x384xf32>
    %101 = math.exp %100 : vector<2x384xf32>
    %cst_24 = arith.constant 1.000000e+00 : f32
    %102 = vector.broadcast %cst_24 : f32 to vector<2x384xf32>
    %103 = arith.addf %102, %101 : vector<2x384xf32>
    %104 = arith.divf %102, %103 : vector<2x384xf32>
    %105 = vector.extract_strided_slice %98 {offsets = [0, 384], sizes = [2, 128], strides = [1, 1]} : vector<2x512xf32> to vector<2x128xf32>
    %106 = math.tanh %105 : vector<2x128xf32>
    %107 = vector.extract_strided_slice %104 {offsets = [0, 0], sizes = [2, 128], strides = [1, 1]} : vector<2x384xf32> to vector<2x128xf32>
    %108 = vector.extract_strided_slice %104 {offsets = [0, 128], sizes = [2, 128], strides = [1, 1]} : vector<2x384xf32> to vector<2x128xf32>
    %109 = vector.extract_strided_slice %104 {offsets = [0, 256], sizes = [2, 128], strides = [1, 1]} : vector<2x384xf32> to vector<2x128xf32>
    %110 = arith.mulf %108, %91 : vector<2x128xf32>
    %111 = arith.mulf %107, %106 : vector<2x128xf32>
    %112 = arith.addf %110, %111 : vector<2x128xf32>
    %113 = math.tanh %112 : vector<2x128xf32>
    %114 = arith.mulf %109, %113 : vector<2x128xf32>
    %c8 = arith.constant 8 : index
    %c0_25 = arith.constant 0 : index
    %115 = vector.load %arg14[%c8, %c0_25] : memref<16x128xf32, #tpu.memory_space<vmem>>, vector<2x128xf32>
    tpu.vector_store %arg14[%c8, %c0_25], %114 {strides = array<i32>} : memref<16x128xf32, #tpu.memory_space<vmem>>, vector<2x128xf32>,
    %116 = vector.extract_strided_slice %7 {offsets = [0, 5, 0], sizes = [2, 1, 512], strides = [1, 1, 1]} : vector<2x8x512xf32> to vector<2x1x512xf32>
    %117 = vector.shape_cast %116 : vector<2x1x512xf32> to vector<2x512xf32>
    %cst_26 = arith.constant dense<0.000000e+00> : vector<2x512xf32>
    %118 = tpu.matmul %114, %8, %cst_26 {dimension_numbers = #tpu.dot_dimension_numbers<[1], [0], [0], [1], [0, 0, 1, 1], [], []>} : vector<2x128xf32>, vector<128x512xf32>, vector<2x512xf32> -> vector<2x512xf32>
    %119 = arith.addf %117, %118 : vector<2x512xf32>
    %120 = vector.extract_strided_slice %119 {offsets = [0, 0], sizes = [2, 384], strides = [1, 1]} : vector<2x512xf32> to vector<2x384xf32>
    %121 = arith.negf %120 : vector<2x384xf32>
    %122 = math.exp %121 : vector<2x384xf32>
    %cst_27 = arith.constant 1.000000e+00 : f32
    %123 = vector.broadcast %cst_27 : f32 to vector<2x384xf32>
    %124 = arith.addf %123, %122 : vector<2x384xf32>
    %125 = arith.divf %123, %124 : vector<2x384xf32>
    %126 = vector.extract_strided_slice %119 {offsets = [0, 384], sizes = [2, 128], strides = [1, 1]} : vector<2x512xf32> to vector<2x128xf32>
    %127 = math.tanh %126 : vector<2x128xf32>
    %128 = vector.extract_strided_slice %125 {offsets = [0, 0], sizes = [2, 128], strides = [1, 1]} : vector<2x384xf32> to vector<2x128xf32>
    %129 = vector.extract_strided_slice %125 {offsets = [0, 128], sizes = [2, 128], strides = [1, 1]} : vector<2x384xf32> to vector<2x128xf32>
    %130 = vector.extract_strided_slice %125 {offsets = [0, 256], sizes = [2, 128], strides = [1, 1]} : vector<2x384xf32> to vector<2x128xf32>
    %131 = arith.mulf %129, %112 : vector<2x128xf32>
    %132 = arith.mulf %128, %127 : vector<2x128xf32>
    %133 = arith.addf %131, %132 : vector<2x128xf32>
    %134 = math.tanh %133 : vector<2x128xf32>
    %135 = arith.mulf %130, %134 : vector<2x128xf32>
    %c10 = arith.constant 10 : index
    %c0_28 = arith.constant 0 : index
    %136 = vector.load %arg14[%c10, %c0_28] : memref<16x128xf32, #tpu.memory_space<vmem>>, vector<2x128xf32>
    tpu.vector_store %arg14[%c10, %c0_28], %135 {strides = array<i32>} : memref<16x128xf32, #tpu.memory_space<vmem>>, vector<2x128xf32>,
    %137 = vector.extract_strided_slice %7 {offsets = [0, 6, 0], sizes = [2, 1, 512], strides = [1, 1, 1]} : vector<2x8x512xf32> to vector<2x1x512xf32>
    %138 = vector.shape_cast %137 : vector<2x1x512xf32> to vector<2x512xf32>
    %cst_29 = arith.constant dense<0.000000e+00> : vector<2x512xf32>
    %139 = tpu.matmul %135, %8, %cst_29 {dimension_numbers = #tpu.dot_dimension_numbers<[1], [0], [0], [1], [0, 0, 1, 1], [], []>} : vector<2x128xf32>, vector<128x512xf32>, vector<2x512xf32> -> vector<2x512xf32>
    %140 = arith.addf %138, %139 : vector<2x512xf32>
    %141 = vector.extract_strided_slice %140 {offsets = [0, 0], sizes = [2, 384], strides = [1, 1]} : vector<2x512xf32> to vector<2x384xf32>
    %142 = arith.negf %141 : vector<2x384xf32>
    %143 = math.exp %142 : vector<2x384xf32>
    %cst_30 = arith.constant 1.000000e+00 : f32
    %144 = vector.broadcast %cst_30 : f32 to vector<2x384xf32>
    %145 = arith.addf %144, %143 : vector<2x384xf32>
    %146 = arith.divf %144, %145 : vector<2x384xf32>
    %147 = vector.extract_strided_slice %140 {offsets = [0, 384], sizes = [2, 128], strides = [1, 1]} : vector<2x512xf32> to vector<2x128xf32>
    %148 = math.tanh %147 : vector<2x128xf32>
    %149 = vector.extract_strided_slice %146 {offsets = [0, 0], sizes = [2, 128], strides = [1, 1]} : vector<2x384xf32> to vector<2x128xf32>
    %150 = vector.extract_strided_slice %146 {offsets = [0, 128], sizes = [2, 128], strides = [1, 1]} : vector<2x384xf32> to vector<2x128xf32>
    %151 = vector.extract_strided_slice %146 {offsets = [0, 256], sizes = [2, 128], strides = [1, 1]} : vector<2x384xf32> to vector<2x128xf32>
    %152 = arith.mulf %150, %133 : vector<2x128xf32>
    %153 = arith.mulf %149, %148 : vector<2x128xf32>
    %154 = arith.addf %152, %153 : vector<2x128xf32>
    %155 = math.tanh %154 : vector<2x128xf32>
    %156 = arith.mulf %151, %155 : vector<2x128xf32>
    %c12 = arith.constant 12 : index
    %c0_31 = arith.constant 0 : index
    %157 = vector.load %arg14[%c12, %c0_31] : memref<16x128xf32, #tpu.memory_space<vmem>>, vector<2x128xf32>
    tpu.vector_store %arg14[%c12, %c0_31], %156 {strides = array<i32>} : memref<16x128xf32, #tpu.memory_space<vmem>>, vector<2x128xf32>,
    %158 = vector.extract_strided_slice %7 {offsets = [0, 7, 0], sizes = [2, 1, 512], strides = [1, 1, 1]} : vector<2x8x512xf32> to vector<2x1x512xf32>
    %159 = vector.shape_cast %158 : vector<2x1x512xf32> to vector<2x512xf32>
    %cst_32 = arith.constant dense<0.000000e+00> : vector<2x512xf32>
    %160 = tpu.matmul %156, %8, %cst_32 {dimension_numbers = #tpu.dot_dimension_numbers<[1], [0], [0], [1], [0, 0, 1, 1], [], []>} : vector<2x128xf32>, vector<128x512xf32>, vector<2x512xf32> -> vector<2x512xf32>
    %161 = arith.addf %159, %160 : vector<2x512xf32>
    %162 = vector.extract_strided_slice %161 {offsets = [0, 0], sizes = [2, 384], strides = [1, 1]} : vector<2x512xf32> to vector<2x384xf32>
    %163 = arith.negf %162 : vector<2x384xf32>
    %164 = math.exp %163 : vector<2x384xf32>
    %cst_33 = arith.constant 1.000000e+00 : f32
    %165 = vector.broadcast %cst_33 : f32 to vector<2x384xf32>
    %166 = arith.addf %165, %164 : vector<2x384xf32>
    %167 = arith.divf %165, %166 : vector<2x384xf32>
    %168 = vector.extract_strided_slice %161 {offsets = [0, 384], sizes = [2, 128], strides = [1, 1]} : vector<2x512xf32> to vector<2x128xf32>
    %169 = math.tanh %168 : vector<2x128xf32>
    %170 = vector.extract_strided_slice %167 {offsets = [0, 0], sizes = [2, 128], strides = [1, 1]} : vector<2x384xf32> to vector<2x128xf32>
    %171 = vector.extract_strided_slice %167 {offsets = [0, 128], sizes = [2, 128], strides = [1, 1]} : vector<2x384xf32> to vector<2x128xf32>
    %172 = vector.extract_strided_slice %167 {offsets = [0, 256], sizes = [2, 128], strides = [1, 1]} : vector<2x384xf32> to vector<2x128xf32>
    %173 = arith.mulf %171, %154 : vector<2x128xf32>
    %174 = arith.mulf %170, %169 : vector<2x128xf32>
    %175 = arith.addf %173, %174 : vector<2x128xf32>
    %176 = math.tanh %175 : vector<2x128xf32>
    %177 = arith.mulf %172, %176 : vector<2x128xf32>
    %c14 = arith.constant 14 : index
    %c0_34 = arith.constant 0 : index
    %178 = vector.load %arg14[%c14, %c0_34] : memref<16x128xf32, #tpu.memory_space<vmem>>, vector<2x128xf32>
    tpu.vector_store %arg14[%c14, %c0_34], %177 {strides = array<i32>} : memref<16x128xf32, #tpu.memory_space<vmem>>, vector<2x128xf32>,
    %c0_35 = arith.constant 0 : index
    %c0_36 = arith.constant 0 : index
    %179 = vector.load %arg14[%c0_35, %c0_36] : memref<16x128xf32, #tpu.memory_space<vmem>>, vector<16x128xf32>
    %c0_37 = arith.constant 0 : index
    %c0_38 = arith.constant 0 : index
    %180 = vector.load %arg5[%c0_37, %c0_38] : memref<128x512xf32, #tpu.memory_space<vmem>>, vector<128x512xf32>
    %cst_39 = arith.constant dense<0.000000e+00> : vector<16x512xf32>
    %181 = tpu.matmul %179, %180, %cst_39 {dimension_numbers = #tpu.dot_dimension_numbers<[1], [0], [0], [1], [0, 0, 1, 1], [], []>} : vector<16x128xf32>, vector<128x512xf32>, vector<16x512xf32> -> vector<16x512xf32>
    %c0_40 = arith.constant 0 : index
    %c0_41 = arith.constant 0 : index
    %182 = vector.load %arg7[%c0_40, %c0_41] : memref<1x512xf32, #tpu.memory_space<vmem>>, vector<1x512xf32>
    %183 = vector.broadcast %182 : vector<1x512xf32> to vector<16x512xf32>
    %184 = arith.addf %181, %183 : vector<16x512xf32>
    %c0_42 = arith.constant 0 : index
    %c0_43 = arith.constant 0 : index
    %185 = vector.load %arg6[%c0_42, %c0_43] : memref<128x512xf32, #tpu.memory_space<vmem>>, vector<128x512xf32>
    %cst_44 = arith.constant 0.000000e+00 : f32
    %186 = vector.broadcast %cst_44 : f32 to vector<2x128xf32>
    %cst_45 = arith.constant 0.000000e+00 : f32
    %187 = vector.broadcast %cst_45 : f32 to vector<2x128xf32>
    %188 = vector.extract_strided_slice %184 {offsets = [0, 0], sizes = [2, 512], strides = [1, 1]} : vector<16x512xf32> to vector<2x512xf32>
    %cst_46 = arith.constant dense<0.000000e+00> : vector<2x512xf32>
    %189 = tpu.matmul %186, %185, %cst_46 {dimension_numbers = #tpu.dot_dimension_numbers<[1], [0], [0], [1], [0, 0, 1, 1], [], []>} : vector<2x128xf32>, vector<128x512xf32>, vector<2x512xf32> -> vector<2x512xf32>
    %190 = arith.addf %188, %189 : vector<2x512xf32>
    %191 = vector.extract_strided_slice %190 {offsets = [0, 0], sizes = [2, 384], strides = [1, 1]} : vector<2x512xf32> to vector<2x384xf32>
    %192 = arith.negf %191 : vector<2x384xf32>
    %193 = math.exp %192 : vector<2x384xf32>
    %cst_47 = arith.constant 1.000000e+00 : f32
    %194 = vector.broadcast %cst_47 : f32 to vector<2x384xf32>
    %195 = arith.addf %194, %193 : vector<2x384xf32>
    %196 = arith.divf %194, %195 : vector<2x384xf32>
    %197 = vector.extract_strided_slice %190 {offsets = [0, 384], sizes = [2, 128], strides = [1, 1]} : vector<2x512xf32> to vector<2x128xf32>
    %198 = math.tanh %197 : vector<2x128xf32>
    %199 = vector.extract_strided_slice %196 {offsets = [0, 0], sizes = [2, 128], strides = [1, 1]} : vector<2x384xf32> to vector<2x128xf32>
    %200 = vector.extract_strided_slice %196 {offsets = [0, 128], sizes = [2, 128], strides = [1, 1]} : vector<2x384xf32> to vector<2x128xf32>
    %201 = vector.extract_strided_slice %196 {offsets = [0, 256], sizes = [2, 128], strides = [1, 1]} : vector<2x384xf32> to vector<2x128xf32>
    %202 = arith.mulf %200, %187 : vector<2x128xf32>
    %203 = arith.mulf %199, %198 : vector<2x128xf32>
    %204 = arith.addf %202, %203 : vector<2x128xf32>
    %205 = math.tanh %204 : vector<2x128xf32>
    %206 = arith.mulf %201, %205 : vector<2x128xf32>
    %c0_48 = arith.constant 0 : index
    %c0_49 = arith.constant 0 : index
    %207 = vector.load %arg14[%c0_48, %c0_49] : memref<16x128xf32, #tpu.memory_space<vmem>>, vector<2x128xf32>
    tpu.vector_store %arg14[%c0_48, %c0_49], %206 {strides = array<i32>} : memref<16x128xf32, #tpu.memory_space<vmem>>, vector<2x128xf32>,
    %208 = vector.extract_strided_slice %184 {offsets = [2, 0], sizes = [2, 512], strides = [1, 1]} : vector<16x512xf32> to vector<2x512xf32>
    %cst_50 = arith.constant dense<0.000000e+00> : vector<2x512xf32>
    %209 = tpu.matmul %206, %185, %cst_50 {dimension_numbers = #tpu.dot_dimension_numbers<[1], [0], [0], [1], [0, 0, 1, 1], [], []>} : vector<2x128xf32>, vector<128x512xf32>, vector<2x512xf32> -> vector<2x512xf32>
    %210 = arith.addf %208, %209 : vector<2x512xf32>
    %211 = vector.extract_strided_slice %210 {offsets = [0, 0], sizes = [2, 384], strides = [1, 1]} : vector<2x512xf32> to vector<2x384xf32>
    %212 = arith.negf %211 : vector<2x384xf32>
    %213 = math.exp %212 : vector<2x384xf32>
    %cst_51 = arith.constant 1.000000e+00 : f32
    %214 = vector.broadcast %cst_51 : f32 to vector<2x384xf32>
    %215 = arith.addf %214, %213 : vector<2x384xf32>
    %216 = arith.divf %214, %215 : vector<2x384xf32>
    %217 = vector.extract_strided_slice %210 {offsets = [0, 384], sizes = [2, 128], strides = [1, 1]} : vector<2x512xf32> to vector<2x128xf32>
    %218 = math.tanh %217 : vector<2x128xf32>
    %219 = vector.extract_strided_slice %216 {offsets = [0, 0], sizes = [2, 128], strides = [1, 1]} : vector<2x384xf32> to vector<2x128xf32>
    %220 = vector.extract_strided_slice %216 {offsets = [0, 128], sizes = [2, 128], strides = [1, 1]} : vector<2x384xf32> to vector<2x128xf32>
    %221 = vector.extract_strided_slice %216 {offsets = [0, 256], sizes = [2, 128], strides = [1, 1]} : vector<2x384xf32> to vector<2x128xf32>
    %222 = arith.mulf %220, %204 : vector<2x128xf32>
    %223 = arith.mulf %219, %218 : vector<2x128xf32>
    %224 = arith.addf %222, %223 : vector<2x128xf32>
    %225 = math.tanh %224 : vector<2x128xf32>
    %226 = arith.mulf %221, %225 : vector<2x128xf32>
    %c2_52 = arith.constant 2 : index
    %c0_53 = arith.constant 0 : index
    %227 = vector.load %arg14[%c2_52, %c0_53] : memref<16x128xf32, #tpu.memory_space<vmem>>, vector<2x128xf32>
    tpu.vector_store %arg14[%c2_52, %c0_53], %226 {strides = array<i32>} : memref<16x128xf32, #tpu.memory_space<vmem>>, vector<2x128xf32>,
    %228 = vector.extract_strided_slice %184 {offsets = [4, 0], sizes = [2, 512], strides = [1, 1]} : vector<16x512xf32> to vector<2x512xf32>
    %cst_54 = arith.constant dense<0.000000e+00> : vector<2x512xf32>
    %229 = tpu.matmul %226, %185, %cst_54 {dimension_numbers = #tpu.dot_dimension_numbers<[1], [0], [0], [1], [0, 0, 1, 1], [], []>} : vector<2x128xf32>, vector<128x512xf32>, vector<2x512xf32> -> vector<2x512xf32>
    %230 = arith.addf %228, %229 : vector<2x512xf32>
    %231 = vector.extract_strided_slice %230 {offsets = [0, 0], sizes = [2, 384], strides = [1, 1]} : vector<2x512xf32> to vector<2x384xf32>
    %232 = arith.negf %231 : vector<2x384xf32>
    %233 = math.exp %232 : vector<2x384xf32>
    %cst_55 = arith.constant 1.000000e+00 : f32
    %234 = vector.broadcast %cst_55 : f32 to vector<2x384xf32>
    %235 = arith.addf %234, %233 : vector<2x384xf32>
    %236 = arith.divf %234, %235 : vector<2x384xf32>
    %237 = vector.extract_strided_slice %230 {offsets = [0, 384], sizes = [2, 128], strides = [1, 1]} : vector<2x512xf32> to vector<2x128xf32>
    %238 = math.tanh %237 : vector<2x128xf32>
    %239 = vector.extract_strided_slice %236 {offsets = [0, 0], sizes = [2, 128], strides = [1, 1]} : vector<2x384xf32> to vector<2x128xf32>
    %240 = vector.extract_strided_slice %236 {offsets = [0, 128], sizes = [2, 128], strides = [1, 1]} : vector<2x384xf32> to vector<2x128xf32>
    %241 = vector.extract_strided_slice %236 {offsets = [0, 256], sizes = [2, 128], strides = [1, 1]} : vector<2x384xf32> to vector<2x128xf32>
    %242 = arith.mulf %240, %224 : vector<2x128xf32>
    %243 = arith.mulf %239, %238 : vector<2x128xf32>
    %244 = arith.addf %242, %243 : vector<2x128xf32>
    %245 = math.tanh %244 : vector<2x128xf32>
    %246 = arith.mulf %241, %245 : vector<2x128xf32>
    %c4_56 = arith.constant 4 : index
    %c0_57 = arith.constant 0 : index
    %247 = vector.load %arg14[%c4_56, %c0_57] : memref<16x128xf32, #tpu.memory_space<vmem>>, vector<2x128xf32>
    tpu.vector_store %arg14[%c4_56, %c0_57], %246 {strides = array<i32>} : memref<16x128xf32, #tpu.memory_space<vmem>>, vector<2x128xf32>,
    %248 = vector.extract_strided_slice %184 {offsets = [6, 0], sizes = [2, 512], strides = [1, 1]} : vector<16x512xf32> to vector<2x512xf32>
    %cst_58 = arith.constant dense<0.000000e+00> : vector<2x512xf32>
    %249 = tpu.matmul %246, %185, %cst_58 {dimension_numbers = #tpu.dot_dimension_numbers<[1], [0], [0], [1], [0, 0, 1, 1], [], []>} : vector<2x128xf32>, vector<128x512xf32>, vector<2x512xf32> -> vector<2x512xf32>
    %250 = arith.addf %248, %249 : vector<2x512xf32>
    %251 = vector.extract_strided_slice %250 {offsets = [0, 0], sizes = [2, 384], strides = [1, 1]} : vector<2x512xf32> to vector<2x384xf32>
    %252 = arith.negf %251 : vector<2x384xf32>
    %253 = math.exp %252 : vector<2x384xf32>
    %cst_59 = arith.constant 1.000000e+00 : f32
    %254 = vector.broadcast %cst_59 : f32 to vector<2x384xf32>
    %255 = arith.addf %254, %253 : vector<2x384xf32>
    %256 = arith.divf %254, %255 : vector<2x384xf32>
    %257 = vector.extract_strided_slice %250 {offsets = [0, 384], sizes = [2, 128], strides = [1, 1]} : vector<2x512xf32> to vector<2x128xf32>
    %258 = math.tanh %257 : vector<2x128xf32>
    %259 = vector.extract_strided_slice %256 {offsets = [0, 0], sizes = [2, 128], strides = [1, 1]} : vector<2x384xf32> to vector<2x128xf32>
    %260 = vector.extract_strided_slice %256 {offsets = [0, 128], sizes = [2, 128], strides = [1, 1]} : vector<2x384xf32> to vector<2x128xf32>
    %261 = vector.extract_strided_slice %256 {offsets = [0, 256], sizes = [2, 128], strides = [1, 1]} : vector<2x384xf32> to vector<2x128xf32>
    %262 = arith.mulf %260, %244 : vector<2x128xf32>
    %263 = arith.mulf %259, %258 : vector<2x128xf32>
    %264 = arith.addf %262, %263 : vector<2x128xf32>
    %265 = math.tanh %264 : vector<2x128xf32>
    %266 = arith.mulf %261, %265 : vector<2x128xf32>
    %c6_60 = arith.constant 6 : index
    %c0_61 = arith.constant 0 : index
    %267 = vector.load %arg14[%c6_60, %c0_61] : memref<16x128xf32, #tpu.memory_space<vmem>>, vector<2x128xf32>
    tpu.vector_store %arg14[%c6_60, %c0_61], %266 {strides = array<i32>} : memref<16x128xf32, #tpu.memory_space<vmem>>, vector<2x128xf32>,
    %268 = vector.extract_strided_slice %184 {offsets = [8, 0], sizes = [2, 512], strides = [1, 1]} : vector<16x512xf32> to vector<2x512xf32>
    %cst_62 = arith.constant dense<0.000000e+00> : vector<2x512xf32>
    %269 = tpu.matmul %266, %185, %cst_62 {dimension_numbers = #tpu.dot_dimension_numbers<[1], [0], [0], [1], [0, 0, 1, 1], [], []>} : vector<2x128xf32>, vector<128x512xf32>, vector<2x512xf32> -> vector<2x512xf32>
    %270 = arith.addf %268, %269 : vector<2x512xf32>
    %271 = vector.extract_strided_slice %270 {offsets = [0, 0], sizes = [2, 384], strides = [1, 1]} : vector<2x512xf32> to vector<2x384xf32>
    %272 = arith.negf %271 : vector<2x384xf32>
    %273 = math.exp %272 : vector<2x384xf32>
    %cst_63 = arith.constant 1.000000e+00 : f32
    %274 = vector.broadcast %cst_63 : f32 to vector<2x384xf32>
    %275 = arith.addf %274, %273 : vector<2x384xf32>
    %276 = arith.divf %274, %275 : vector<2x384xf32>
    %277 = vector.extract_strided_slice %270 {offsets = [0, 384], sizes = [2, 128], strides = [1, 1]} : vector<2x512xf32> to vector<2x128xf32>
    %278 = math.tanh %277 : vector<2x128xf32>
    %279 = vector.extract_strided_slice %276 {offsets = [0, 0], sizes = [2, 128], strides = [1, 1]} : vector<2x384xf32> to vector<2x128xf32>
    %280 = vector.extract_strided_slice %276 {offsets = [0, 128], sizes = [2, 128], strides = [1, 1]} : vector<2x384xf32> to vector<2x128xf32>
    %281 = vector.extract_strided_slice %276 {offsets = [0, 256], sizes = [2, 128], strides = [1, 1]} : vector<2x384xf32> to vector<2x128xf32>
    %282 = arith.mulf %280, %264 : vector<2x128xf32>
    %283 = arith.mulf %279, %278 : vector<2x128xf32>
    %284 = arith.addf %282, %283 : vector<2x128xf32>
    %285 = math.tanh %284 : vector<2x128xf32>
    %286 = arith.mulf %281, %285 : vector<2x128xf32>
    %c8_64 = arith.constant 8 : index
    %c0_65 = arith.constant 0 : index
    %287 = vector.load %arg14[%c8_64, %c0_65] : memref<16x128xf32, #tpu.memory_space<vmem>>, vector<2x128xf32>
    tpu.vector_store %arg14[%c8_64, %c0_65], %286 {strides = array<i32>} : memref<16x128xf32, #tpu.memory_space<vmem>>, vector<2x128xf32>,
    %288 = vector.extract_strided_slice %184 {offsets = [10, 0], sizes = [2, 512], strides = [1, 1]} : vector<16x512xf32> to vector<2x512xf32>
    %cst_66 = arith.constant dense<0.000000e+00> : vector<2x512xf32>
    %289 = tpu.matmul %286, %185, %cst_66 {dimension_numbers = #tpu.dot_dimension_numbers<[1], [0], [0], [1], [0, 0, 1, 1], [], []>} : vector<2x128xf32>, vector<128x512xf32>, vector<2x512xf32> -> vector<2x512xf32>
    %290 = arith.addf %288, %289 : vector<2x512xf32>
    %291 = vector.extract_strided_slice %290 {offsets = [0, 0], sizes = [2, 384], strides = [1, 1]} : vector<2x512xf32> to vector<2x384xf32>
    %292 = arith.negf %291 : vector<2x384xf32>
    %293 = math.exp %292 : vector<2x384xf32>
    %cst_67 = arith.constant 1.000000e+00 : f32
    %294 = vector.broadcast %cst_67 : f32 to vector<2x384xf32>
    %295 = arith.addf %294, %293 : vector<2x384xf32>
    %296 = arith.divf %294, %295 : vector<2x384xf32>
    %297 = vector.extract_strided_slice %290 {offsets = [0, 384], sizes = [2, 128], strides = [1, 1]} : vector<2x512xf32> to vector<2x128xf32>
    %298 = math.tanh %297 : vector<2x128xf32>
    %299 = vector.extract_strided_slice %296 {offsets = [0, 0], sizes = [2, 128], strides = [1, 1]} : vector<2x384xf32> to vector<2x128xf32>
    %300 = vector.extract_strided_slice %296 {offsets = [0, 128], sizes = [2, 128], strides = [1, 1]} : vector<2x384xf32> to vector<2x128xf32>
    %301 = vector.extract_strided_slice %296 {offsets = [0, 256], sizes = [2, 128], strides = [1, 1]} : vector<2x384xf32> to vector<2x128xf32>
    %302 = arith.mulf %300, %284 : vector<2x128xf32>
    %303 = arith.mulf %299, %298 : vector<2x128xf32>
    %304 = arith.addf %302, %303 : vector<2x128xf32>
    %305 = math.tanh %304 : vector<2x128xf32>
    %306 = arith.mulf %301, %305 : vector<2x128xf32>
    %c10_68 = arith.constant 10 : index
    %c0_69 = arith.constant 0 : index
    %307 = vector.load %arg14[%c10_68, %c0_69] : memref<16x128xf32, #tpu.memory_space<vmem>>, vector<2x128xf32>
    tpu.vector_store %arg14[%c10_68, %c0_69], %306 {strides = array<i32>} : memref<16x128xf32, #tpu.memory_space<vmem>>, vector<2x128xf32>,
    %308 = vector.extract_strided_slice %184 {offsets = [12, 0], sizes = [2, 512], strides = [1, 1]} : vector<16x512xf32> to vector<2x512xf32>
    %cst_70 = arith.constant dense<0.000000e+00> : vector<2x512xf32>
    %309 = tpu.matmul %306, %185, %cst_70 {dimension_numbers = #tpu.dot_dimension_numbers<[1], [0], [0], [1], [0, 0, 1, 1], [], []>} : vector<2x128xf32>, vector<128x512xf32>, vector<2x512xf32> -> vector<2x512xf32>
    %310 = arith.addf %308, %309 : vector<2x512xf32>
    %311 = vector.extract_strided_slice %310 {offsets = [0, 0], sizes = [2, 384], strides = [1, 1]} : vector<2x512xf32> to vector<2x384xf32>
    %312 = arith.negf %311 : vector<2x384xf32>
    %313 = math.exp %312 : vector<2x384xf32>
    %cst_71 = arith.constant 1.000000e+00 : f32
    %314 = vector.broadcast %cst_71 : f32 to vector<2x384xf32>
    %315 = arith.addf %314, %313 : vector<2x384xf32>
    %316 = arith.divf %314, %315 : vector<2x384xf32>
    %317 = vector.extract_strided_slice %310 {offsets = [0, 384], sizes = [2, 128], strides = [1, 1]} : vector<2x512xf32> to vector<2x128xf32>
    %318 = math.tanh %317 : vector<2x128xf32>
    %319 = vector.extract_strided_slice %316 {offsets = [0, 0], sizes = [2, 128], strides = [1, 1]} : vector<2x384xf32> to vector<2x128xf32>
    %320 = vector.extract_strided_slice %316 {offsets = [0, 128], sizes = [2, 128], strides = [1, 1]} : vector<2x384xf32> to vector<2x128xf32>
    %321 = vector.extract_strided_slice %316 {offsets = [0, 256], sizes = [2, 128], strides = [1, 1]} : vector<2x384xf32> to vector<2x128xf32>
    %322 = arith.mulf %320, %304 : vector<2x128xf32>
    %323 = arith.mulf %319, %318 : vector<2x128xf32>
    %324 = arith.addf %322, %323 : vector<2x128xf32>
    %325 = math.tanh %324 : vector<2x128xf32>
    %326 = arith.mulf %321, %325 : vector<2x128xf32>
    %c12_72 = arith.constant 12 : index
    %c0_73 = arith.constant 0 : index
    %327 = vector.load %arg14[%c12_72, %c0_73] : memref<16x128xf32, #tpu.memory_space<vmem>>, vector<2x128xf32>
    tpu.vector_store %arg14[%c12_72, %c0_73], %326 {strides = array<i32>} : memref<16x128xf32, #tpu.memory_space<vmem>>, vector<2x128xf32>,
    %328 = vector.extract_strided_slice %184 {offsets = [14, 0], sizes = [2, 512], strides = [1, 1]} : vector<16x512xf32> to vector<2x512xf32>
    %cst_74 = arith.constant dense<0.000000e+00> : vector<2x512xf32>
    %329 = tpu.matmul %326, %185, %cst_74 {dimension_numbers = #tpu.dot_dimension_numbers<[1], [0], [0], [1], [0, 0, 1, 1], [], []>} : vector<2x128xf32>, vector<128x512xf32>, vector<2x512xf32> -> vector<2x512xf32>
    %330 = arith.addf %328, %329 : vector<2x512xf32>
    %331 = vector.extract_strided_slice %330 {offsets = [0, 0], sizes = [2, 384], strides = [1, 1]} : vector<2x512xf32> to vector<2x384xf32>
    %332 = arith.negf %331 : vector<2x384xf32>
    %333 = math.exp %332 : vector<2x384xf32>
    %cst_75 = arith.constant 1.000000e+00 : f32
    %334 = vector.broadcast %cst_75 : f32 to vector<2x384xf32>
    %335 = arith.addf %334, %333 : vector<2x384xf32>
    %336 = arith.divf %334, %335 : vector<2x384xf32>
    %337 = vector.extract_strided_slice %330 {offsets = [0, 384], sizes = [2, 128], strides = [1, 1]} : vector<2x512xf32> to vector<2x128xf32>
    %338 = math.tanh %337 : vector<2x128xf32>
    %339 = vector.extract_strided_slice %336 {offsets = [0, 0], sizes = [2, 128], strides = [1, 1]} : vector<2x384xf32> to vector<2x128xf32>
    %340 = vector.extract_strided_slice %336 {offsets = [0, 128], sizes = [2, 128], strides = [1, 1]} : vector<2x384xf32> to vector<2x128xf32>
    %341 = vector.extract_strided_slice %336 {offsets = [0, 256], sizes = [2, 128], strides = [1, 1]} : vector<2x384xf32> to vector<2x128xf32>
    %342 = arith.mulf %340, %324 : vector<2x128xf32>
    %343 = arith.mulf %339, %338 : vector<2x128xf32>
    %344 = arith.addf %342, %343 : vector<2x128xf32>
    %345 = math.tanh %344 : vector<2x128xf32>
    %346 = arith.mulf %341, %345 : vector<2x128xf32>
    %c14_76 = arith.constant 14 : index
    %c0_77 = arith.constant 0 : index
    %347 = vector.load %arg14[%c14_76, %c0_77] : memref<16x128xf32, #tpu.memory_space<vmem>>, vector<2x128xf32>
    tpu.vector_store %arg14[%c14_76, %c0_77], %346 {strides = array<i32>} : memref<16x128xf32, #tpu.memory_space<vmem>>, vector<2x128xf32>,
    %c0_78 = arith.constant 0 : index
    %c0_79 = arith.constant 0 : index
    %348 = vector.load %arg14[%c0_78, %c0_79] : memref<16x128xf32, #tpu.memory_space<vmem>>, vector<16x128xf32>
    %c0_80 = arith.constant 0 : index
    %c0_81 = arith.constant 0 : index
    %349 = vector.load %arg8[%c0_80, %c0_81] : memref<128x512xf32, #tpu.memory_space<vmem>>, vector<128x512xf32>
    %cst_82 = arith.constant dense<0.000000e+00> : vector<16x512xf32>
    %350 = tpu.matmul %348, %349, %cst_82 {dimension_numbers = #tpu.dot_dimension_numbers<[1], [0], [0], [1], [0, 0, 1, 1], [], []>} : vector<16x128xf32>, vector<128x512xf32>, vector<16x512xf32> -> vector<16x512xf32>
    %c0_83 = arith.constant 0 : index
    %c0_84 = arith.constant 0 : index
    %351 = vector.load %arg10[%c0_83, %c0_84] : memref<1x512xf32, #tpu.memory_space<vmem>>, vector<1x512xf32>
    %352 = vector.broadcast %351 : vector<1x512xf32> to vector<16x512xf32>
    %353 = arith.addf %350, %352 : vector<16x512xf32>
    %c0_85 = arith.constant 0 : index
    %c0_86 = arith.constant 0 : index
    %354 = vector.load %arg9[%c0_85, %c0_86] : memref<128x512xf32, #tpu.memory_space<vmem>>, vector<128x512xf32>
    %cst_87 = arith.constant 0.000000e+00 : f32
    %355 = vector.broadcast %cst_87 : f32 to vector<2x128xf32>
    %cst_88 = arith.constant 0.000000e+00 : f32
    %356 = vector.broadcast %cst_88 : f32 to vector<2x128xf32>
    %357 = vector.extract_strided_slice %353 {offsets = [0, 0], sizes = [2, 512], strides = [1, 1]} : vector<16x512xf32> to vector<2x512xf32>
    %cst_89 = arith.constant dense<0.000000e+00> : vector<2x512xf32>
    %358 = tpu.matmul %355, %354, %cst_89 {dimension_numbers = #tpu.dot_dimension_numbers<[1], [0], [0], [1], [0, 0, 1, 1], [], []>} : vector<2x128xf32>, vector<128x512xf32>, vector<2x512xf32> -> vector<2x512xf32>
    %359 = arith.addf %357, %358 : vector<2x512xf32>
    %360 = vector.extract_strided_slice %359 {offsets = [0, 0], sizes = [2, 384], strides = [1, 1]} : vector<2x512xf32> to vector<2x384xf32>
    %361 = arith.negf %360 : vector<2x384xf32>
    %362 = math.exp %361 : vector<2x384xf32>
    %cst_90 = arith.constant 1.000000e+00 : f32
    %363 = vector.broadcast %cst_90 : f32 to vector<2x384xf32>
    %364 = arith.addf %363, %362 : vector<2x384xf32>
    %365 = arith.divf %363, %364 : vector<2x384xf32>
    %366 = vector.extract_strided_slice %359 {offsets = [0, 384], sizes = [2, 128], strides = [1, 1]} : vector<2x512xf32> to vector<2x128xf32>
    %367 = math.tanh %366 : vector<2x128xf32>
    %368 = vector.extract_strided_slice %365 {offsets = [0, 0], sizes = [2, 128], strides = [1, 1]} : vector<2x384xf32> to vector<2x128xf32>
    %369 = vector.extract_strided_slice %365 {offsets = [0, 128], sizes = [2, 128], strides = [1, 1]} : vector<2x384xf32> to vector<2x128xf32>
    %370 = vector.extract_strided_slice %365 {offsets = [0, 256], sizes = [2, 128], strides = [1, 1]} : vector<2x384xf32> to vector<2x128xf32>
    %371 = arith.mulf %369, %356 : vector<2x128xf32>
    %372 = arith.mulf %368, %367 : vector<2x128xf32>
    %373 = arith.addf %371, %372 : vector<2x128xf32>
    %374 = math.tanh %373 : vector<2x128xf32>
    %375 = arith.mulf %370, %374 : vector<2x128xf32>
    %c0_91 = arith.constant 0 : index
    %c0_92 = arith.constant 0 : index
    %376 = vector.load %arg14[%c0_91, %c0_92] : memref<16x128xf32, #tpu.memory_space<vmem>>, vector<2x128xf32>
    tpu.vector_store %arg14[%c0_91, %c0_92], %375 {strides = array<i32>} : memref<16x128xf32, #tpu.memory_space<vmem>>, vector<2x128xf32>,
    %377 = vector.extract_strided_slice %353 {offsets = [2, 0], sizes = [2, 512], strides = [1, 1]} : vector<16x512xf32> to vector<2x512xf32>
    %cst_93 = arith.constant dense<0.000000e+00> : vector<2x512xf32>
    %378 = tpu.matmul %375, %354, %cst_93 {dimension_numbers = #tpu.dot_dimension_numbers<[1], [0], [0], [1], [0, 0, 1, 1], [], []>} : vector<2x128xf32>, vector<128x512xf32>, vector<2x512xf32> -> vector<2x512xf32>
    %379 = arith.addf %377, %378 : vector<2x512xf32>
    %380 = vector.extract_strided_slice %379 {offsets = [0, 0], sizes = [2, 384], strides = [1, 1]} : vector<2x512xf32> to vector<2x384xf32>
    %381 = arith.negf %380 : vector<2x384xf32>
    %382 = math.exp %381 : vector<2x384xf32>
    %cst_94 = arith.constant 1.000000e+00 : f32
    %383 = vector.broadcast %cst_94 : f32 to vector<2x384xf32>
    %384 = arith.addf %383, %382 : vector<2x384xf32>
    %385 = arith.divf %383, %384 : vector<2x384xf32>
    %386 = vector.extract_strided_slice %379 {offsets = [0, 384], sizes = [2, 128], strides = [1, 1]} : vector<2x512xf32> to vector<2x128xf32>
    %387 = math.tanh %386 : vector<2x128xf32>
    %388 = vector.extract_strided_slice %385 {offsets = [0, 0], sizes = [2, 128], strides = [1, 1]} : vector<2x384xf32> to vector<2x128xf32>
    %389 = vector.extract_strided_slice %385 {offsets = [0, 128], sizes = [2, 128], strides = [1, 1]} : vector<2x384xf32> to vector<2x128xf32>
    %390 = vector.extract_strided_slice %385 {offsets = [0, 256], sizes = [2, 128], strides = [1, 1]} : vector<2x384xf32> to vector<2x128xf32>
    %391 = arith.mulf %389, %373 : vector<2x128xf32>
    %392 = arith.mulf %388, %387 : vector<2x128xf32>
    %393 = arith.addf %391, %392 : vector<2x128xf32>
    %394 = math.tanh %393 : vector<2x128xf32>
    %395 = arith.mulf %390, %394 : vector<2x128xf32>
    %c2_95 = arith.constant 2 : index
    %c0_96 = arith.constant 0 : index
    %396 = vector.load %arg14[%c2_95, %c0_96] : memref<16x128xf32, #tpu.memory_space<vmem>>, vector<2x128xf32>
    tpu.vector_store %arg14[%c2_95, %c0_96], %395 {strides = array<i32>} : memref<16x128xf32, #tpu.memory_space<vmem>>, vector<2x128xf32>,
    %397 = vector.extract_strided_slice %353 {offsets = [4, 0], sizes = [2, 512], strides = [1, 1]} : vector<16x512xf32> to vector<2x512xf32>
    %cst_97 = arith.constant dense<0.000000e+00> : vector<2x512xf32>
    %398 = tpu.matmul %395, %354, %cst_97 {dimension_numbers = #tpu.dot_dimension_numbers<[1], [0], [0], [1], [0, 0, 1, 1], [], []>} : vector<2x128xf32>, vector<128x512xf32>, vector<2x512xf32> -> vector<2x512xf32>
    %399 = arith.addf %397, %398 : vector<2x512xf32>
    %400 = vector.extract_strided_slice %399 {offsets = [0, 0], sizes = [2, 384], strides = [1, 1]} : vector<2x512xf32> to vector<2x384xf32>
    %401 = arith.negf %400 : vector<2x384xf32>
    %402 = math.exp %401 : vector<2x384xf32>
    %cst_98 = arith.constant 1.000000e+00 : f32
    %403 = vector.broadcast %cst_98 : f32 to vector<2x384xf32>
    %404 = arith.addf %403, %402 : vector<2x384xf32>
    %405 = arith.divf %403, %404 : vector<2x384xf32>
    %406 = vector.extract_strided_slice %399 {offsets = [0, 384], sizes = [2, 128], strides = [1, 1]} : vector<2x512xf32> to vector<2x128xf32>
    %407 = math.tanh %406 : vector<2x128xf32>
    %408 = vector.extract_strided_slice %405 {offsets = [0, 0], sizes = [2, 128], strides = [1, 1]} : vector<2x384xf32> to vector<2x128xf32>
    %409 = vector.extract_strided_slice %405 {offsets = [0, 128], sizes = [2, 128], strides = [1, 1]} : vector<2x384xf32> to vector<2x128xf32>
    %410 = vector.extract_strided_slice %405 {offsets = [0, 256], sizes = [2, 128], strides = [1, 1]} : vector<2x384xf32> to vector<2x128xf32>
    %411 = arith.mulf %409, %393 : vector<2x128xf32>
    %412 = arith.mulf %408, %407 : vector<2x128xf32>
    %413 = arith.addf %411, %412 : vector<2x128xf32>
    %414 = math.tanh %413 : vector<2x128xf32>
    %415 = arith.mulf %410, %414 : vector<2x128xf32>
    %c4_99 = arith.constant 4 : index
    %c0_100 = arith.constant 0 : index
    %416 = vector.load %arg14[%c4_99, %c0_100] : memref<16x128xf32, #tpu.memory_space<vmem>>, vector<2x128xf32>
    tpu.vector_store %arg14[%c4_99, %c0_100], %415 {strides = array<i32>} : memref<16x128xf32, #tpu.memory_space<vmem>>, vector<2x128xf32>,
    %417 = vector.extract_strided_slice %353 {offsets = [6, 0], sizes = [2, 512], strides = [1, 1]} : vector<16x512xf32> to vector<2x512xf32>
    %cst_101 = arith.constant dense<0.000000e+00> : vector<2x512xf32>
    %418 = tpu.matmul %415, %354, %cst_101 {dimension_numbers = #tpu.dot_dimension_numbers<[1], [0], [0], [1], [0, 0, 1, 1], [], []>} : vector<2x128xf32>, vector<128x512xf32>, vector<2x512xf32> -> vector<2x512xf32>
    %419 = arith.addf %417, %418 : vector<2x512xf32>
    %420 = vector.extract_strided_slice %419 {offsets = [0, 0], sizes = [2, 384], strides = [1, 1]} : vector<2x512xf32> to vector<2x384xf32>
    %421 = arith.negf %420 : vector<2x384xf32>
    %422 = math.exp %421 : vector<2x384xf32>
    %cst_102 = arith.constant 1.000000e+00 : f32
    %423 = vector.broadcast %cst_102 : f32 to vector<2x384xf32>
    %424 = arith.addf %423, %422 : vector<2x384xf32>
    %425 = arith.divf %423, %424 : vector<2x384xf32>
    %426 = vector.extract_strided_slice %419 {offsets = [0, 384], sizes = [2, 128], strides = [1, 1]} : vector<2x512xf32> to vector<2x128xf32>
    %427 = math.tanh %426 : vector<2x128xf32>
    %428 = vector.extract_strided_slice %425 {offsets = [0, 0], sizes = [2, 128], strides = [1, 1]} : vector<2x384xf32> to vector<2x128xf32>
    %429 = vector.extract_strided_slice %425 {offsets = [0, 128], sizes = [2, 128], strides = [1, 1]} : vector<2x384xf32> to vector<2x128xf32>
    %430 = vector.extract_strided_slice %425 {offsets = [0, 256], sizes = [2, 128], strides = [1, 1]} : vector<2x384xf32> to vector<2x128xf32>
    %431 = arith.mulf %429, %413 : vector<2x128xf32>
    %432 = arith.mulf %428, %427 : vector<2x128xf32>
    %433 = arith.addf %431, %432 : vector<2x128xf32>
    %434 = math.tanh %433 : vector<2x128xf32>
    %435 = arith.mulf %430, %434 : vector<2x128xf32>
    %c6_103 = arith.constant 6 : index
    %c0_104 = arith.constant 0 : index
    %436 = vector.load %arg14[%c6_103, %c0_104] : memref<16x128xf32, #tpu.memory_space<vmem>>, vector<2x128xf32>
    tpu.vector_store %arg14[%c6_103, %c0_104], %435 {strides = array<i32>} : memref<16x128xf32, #tpu.memory_space<vmem>>, vector<2x128xf32>,
    %437 = vector.extract_strided_slice %353 {offsets = [8, 0], sizes = [2, 512], strides = [1, 1]} : vector<16x512xf32> to vector<2x512xf32>
    %cst_105 = arith.constant dense<0.000000e+00> : vector<2x512xf32>
    %438 = tpu.matmul %435, %354, %cst_105 {dimension_numbers = #tpu.dot_dimension_numbers<[1], [0], [0], [1], [0, 0, 1, 1], [], []>} : vector<2x128xf32>, vector<128x512xf32>, vector<2x512xf32> -> vector<2x512xf32>
    %439 = arith.addf %437, %438 : vector<2x512xf32>
    %440 = vector.extract_strided_slice %439 {offsets = [0, 0], sizes = [2, 384], strides = [1, 1]} : vector<2x512xf32> to vector<2x384xf32>
    %441 = arith.negf %440 : vector<2x384xf32>
    %442 = math.exp %441 : vector<2x384xf32>
    %cst_106 = arith.constant 1.000000e+00 : f32
    %443 = vector.broadcast %cst_106 : f32 to vector<2x384xf32>
    %444 = arith.addf %443, %442 : vector<2x384xf32>
    %445 = arith.divf %443, %444 : vector<2x384xf32>
    %446 = vector.extract_strided_slice %439 {offsets = [0, 384], sizes = [2, 128], strides = [1, 1]} : vector<2x512xf32> to vector<2x128xf32>
    %447 = math.tanh %446 : vector<2x128xf32>
    %448 = vector.extract_strided_slice %445 {offsets = [0, 0], sizes = [2, 128], strides = [1, 1]} : vector<2x384xf32> to vector<2x128xf32>
    %449 = vector.extract_strided_slice %445 {offsets = [0, 128], sizes = [2, 128], strides = [1, 1]} : vector<2x384xf32> to vector<2x128xf32>
    %450 = vector.extract_strided_slice %445 {offsets = [0, 256], sizes = [2, 128], strides = [1, 1]} : vector<2x384xf32> to vector<2x128xf32>
    %451 = arith.mulf %449, %433 : vector<2x128xf32>
    %452 = arith.mulf %448, %447 : vector<2x128xf32>
    %453 = arith.addf %451, %452 : vector<2x128xf32>
    %454 = math.tanh %453 : vector<2x128xf32>
    %455 = arith.mulf %450, %454 : vector<2x128xf32>
    %c8_107 = arith.constant 8 : index
    %c0_108 = arith.constant 0 : index
    %456 = vector.load %arg14[%c8_107, %c0_108] : memref<16x128xf32, #tpu.memory_space<vmem>>, vector<2x128xf32>
    tpu.vector_store %arg14[%c8_107, %c0_108], %455 {strides = array<i32>} : memref<16x128xf32, #tpu.memory_space<vmem>>, vector<2x128xf32>,
    %457 = vector.extract_strided_slice %353 {offsets = [10, 0], sizes = [2, 512], strides = [1, 1]} : vector<16x512xf32> to vector<2x512xf32>
    %cst_109 = arith.constant dense<0.000000e+00> : vector<2x512xf32>
    %458 = tpu.matmul %455, %354, %cst_109 {dimension_numbers = #tpu.dot_dimension_numbers<[1], [0], [0], [1], [0, 0, 1, 1], [], []>} : vector<2x128xf32>, vector<128x512xf32>, vector<2x512xf32> -> vector<2x512xf32>
    %459 = arith.addf %457, %458 : vector<2x512xf32>
    %460 = vector.extract_strided_slice %459 {offsets = [0, 0], sizes = [2, 384], strides = [1, 1]} : vector<2x512xf32> to vector<2x384xf32>
    %461 = arith.negf %460 : vector<2x384xf32>
    %462 = math.exp %461 : vector<2x384xf32>
    %cst_110 = arith.constant 1.000000e+00 : f32
    %463 = vector.broadcast %cst_110 : f32 to vector<2x384xf32>
    %464 = arith.addf %463, %462 : vector<2x384xf32>
    %465 = arith.divf %463, %464 : vector<2x384xf32>
    %466 = vector.extract_strided_slice %459 {offsets = [0, 384], sizes = [2, 128], strides = [1, 1]} : vector<2x512xf32> to vector<2x128xf32>
    %467 = math.tanh %466 : vector<2x128xf32>
    %468 = vector.extract_strided_slice %465 {offsets = [0, 0], sizes = [2, 128], strides = [1, 1]} : vector<2x384xf32> to vector<2x128xf32>
    %469 = vector.extract_strided_slice %465 {offsets = [0, 128], sizes = [2, 128], strides = [1, 1]} : vector<2x384xf32> to vector<2x128xf32>
    %470 = vector.extract_strided_slice %465 {offsets = [0, 256], sizes = [2, 128], strides = [1, 1]} : vector<2x384xf32> to vector<2x128xf32>
    %471 = arith.mulf %469, %453 : vector<2x128xf32>
    %472 = arith.mulf %468, %467 : vector<2x128xf32>
    %473 = arith.addf %471, %472 : vector<2x128xf32>
    %474 = math.tanh %473 : vector<2x128xf32>
    %475 = arith.mulf %470, %474 : vector<2x128xf32>
    %c10_111 = arith.constant 10 : index
    %c0_112 = arith.constant 0 : index
    %476 = vector.load %arg14[%c10_111, %c0_112] : memref<16x128xf32, #tpu.memory_space<vmem>>, vector<2x128xf32>
    tpu.vector_store %arg14[%c10_111, %c0_112], %475 {strides = array<i32>} : memref<16x128xf32, #tpu.memory_space<vmem>>, vector<2x128xf32>,
    %477 = vector.extract_strided_slice %353 {offsets = [12, 0], sizes = [2, 512], strides = [1, 1]} : vector<16x512xf32> to vector<2x512xf32>
    %cst_113 = arith.constant dense<0.000000e+00> : vector<2x512xf32>
    %478 = tpu.matmul %475, %354, %cst_113 {dimension_numbers = #tpu.dot_dimension_numbers<[1], [0], [0], [1], [0, 0, 1, 1], [], []>} : vector<2x128xf32>, vector<128x512xf32>, vector<2x512xf32> -> vector<2x512xf32>
    %479 = arith.addf %477, %478 : vector<2x512xf32>
    %480 = vector.extract_strided_slice %479 {offsets = [0, 0], sizes = [2, 384], strides = [1, 1]} : vector<2x512xf32> to vector<2x384xf32>
    %481 = arith.negf %480 : vector<2x384xf32>
    %482 = math.exp %481 : vector<2x384xf32>
    %cst_114 = arith.constant 1.000000e+00 : f32
    %483 = vector.broadcast %cst_114 : f32 to vector<2x384xf32>
    %484 = arith.addf %483, %482 : vector<2x384xf32>
    %485 = arith.divf %483, %484 : vector<2x384xf32>
    %486 = vector.extract_strided_slice %479 {offsets = [0, 384], sizes = [2, 128], strides = [1, 1]} : vector<2x512xf32> to vector<2x128xf32>
    %487 = math.tanh %486 : vector<2x128xf32>
    %488 = vector.extract_strided_slice %485 {offsets = [0, 0], sizes = [2, 128], strides = [1, 1]} : vector<2x384xf32> to vector<2x128xf32>
    %489 = vector.extract_strided_slice %485 {offsets = [0, 128], sizes = [2, 128], strides = [1, 1]} : vector<2x384xf32> to vector<2x128xf32>
    %490 = vector.extract_strided_slice %485 {offsets = [0, 256], sizes = [2, 128], strides = [1, 1]} : vector<2x384xf32> to vector<2x128xf32>
    %491 = arith.mulf %489, %473 : vector<2x128xf32>
    %492 = arith.mulf %488, %487 : vector<2x128xf32>
    %493 = arith.addf %491, %492 : vector<2x128xf32>
    %494 = math.tanh %493 : vector<2x128xf32>
    %495 = arith.mulf %490, %494 : vector<2x128xf32>
    %c12_115 = arith.constant 12 : index
    %c0_116 = arith.constant 0 : index
    %496 = vector.load %arg14[%c12_115, %c0_116] : memref<16x128xf32, #tpu.memory_space<vmem>>, vector<2x128xf32>
    tpu.vector_store %arg14[%c12_115, %c0_116], %495 {strides = array<i32>} : memref<16x128xf32, #tpu.memory_space<vmem>>, vector<2x128xf32>,
    %497 = vector.extract_strided_slice %353 {offsets = [14, 0], sizes = [2, 512], strides = [1, 1]} : vector<16x512xf32> to vector<2x512xf32>
    %cst_117 = arith.constant dense<0.000000e+00> : vector<2x512xf32>
    %498 = tpu.matmul %495, %354, %cst_117 {dimension_numbers = #tpu.dot_dimension_numbers<[1], [0], [0], [1], [0, 0, 1, 1], [], []>} : vector<2x128xf32>, vector<128x512xf32>, vector<2x512xf32> -> vector<2x512xf32>
    %499 = arith.addf %497, %498 : vector<2x512xf32>
    %500 = vector.extract_strided_slice %499 {offsets = [0, 0], sizes = [2, 384], strides = [1, 1]} : vector<2x512xf32> to vector<2x384xf32>
    %501 = arith.negf %500 : vector<2x384xf32>
    %502 = math.exp %501 : vector<2x384xf32>
    %cst_118 = arith.constant 1.000000e+00 : f32
    %503 = vector.broadcast %cst_118 : f32 to vector<2x384xf32>
    %504 = arith.addf %503, %502 : vector<2x384xf32>
    %505 = arith.divf %503, %504 : vector<2x384xf32>
    %506 = vector.extract_strided_slice %499 {offsets = [0, 384], sizes = [2, 128], strides = [1, 1]} : vector<2x512xf32> to vector<2x128xf32>
    %507 = math.tanh %506 : vector<2x128xf32>
    %508 = vector.extract_strided_slice %505 {offsets = [0, 0], sizes = [2, 128], strides = [1, 1]} : vector<2x384xf32> to vector<2x128xf32>
    %509 = vector.extract_strided_slice %505 {offsets = [0, 128], sizes = [2, 128], strides = [1, 1]} : vector<2x384xf32> to vector<2x128xf32>
    %510 = vector.extract_strided_slice %505 {offsets = [0, 256], sizes = [2, 128], strides = [1, 1]} : vector<2x384xf32> to vector<2x128xf32>
    %511 = arith.mulf %509, %493 : vector<2x128xf32>
    %512 = arith.mulf %508, %507 : vector<2x128xf32>
    %513 = arith.addf %511, %512 : vector<2x128xf32>
    %514 = math.tanh %513 : vector<2x128xf32>
    %515 = arith.mulf %510, %514 : vector<2x128xf32>
    %c14_119 = arith.constant 14 : index
    %c0_120 = arith.constant 0 : index
    %516 = vector.load %arg14[%c14_119, %c0_120] : memref<16x128xf32, #tpu.memory_space<vmem>>, vector<2x128xf32>
    tpu.vector_store %arg14[%c14_119, %c0_120], %515 {strides = array<i32>} : memref<16x128xf32, #tpu.memory_space<vmem>>, vector<2x128xf32>,
    %c0_121 = arith.constant 0 : index
    %c0_122 = arith.constant 0 : index
    %517 = vector.load %arg14[%c0_121, %c0_122] : memref<16x128xf32, #tpu.memory_space<vmem>>, vector<16x128xf32>
    %c0_123 = arith.constant 0 : index
    %c0_124 = arith.constant 0 : index
    %518 = vector.load %arg11[%c0_123, %c0_124] : memref<128x1xf32, #tpu.memory_space<vmem>>, vector<128x1xf32>
    %cst_125 = arith.constant dense<0.000000e+00> : vector<16x1xf32>
    %519 = tpu.matmul %517, %518, %cst_125 {dimension_numbers = #tpu.dot_dimension_numbers<[1], [0], [0], [1], [0, 0, 1, 1], [], []>} : vector<16x128xf32>, vector<128x1xf32>, vector<16x1xf32> -> vector<16x1xf32>
    %c0_126 = arith.constant 0 : index
    %c0_127 = arith.constant 0 : index
    %520 = vector.load %arg12[%c0_126, %c0_127] : memref<1x1xf32, #tpu.memory_space<vmem>>, vector<1x1xf32>
    %521 = vector.broadcast %520 : vector<1x1xf32> to vector<16x1xf32>
    %522 = arith.addf %519, %521 : vector<16x1xf32>
    %523 = vector.shape_cast %522 : vector<16x1xf32> to vector<8x2x1xf32>
    %c0_128 = arith.constant 0 : index
    %c0_129 = arith.constant 0 : index
    %c0_130 = arith.constant 0 : index
    %524 = vector.load %arg13[%c0_128, %c0_129, %c0_130] : memref<8x2x1xf32, #tpu.memory_space<vmem>>, vector<8x2x1xf32>
    tpu.vector_store %arg13[%c0_128, %c0_129, %c0_130], %523 {strides = array<i32>} : memref<8x2x1xf32, #tpu.memory_space<vmem>>, vector<8x2x1xf32>,
    return
  }
  func.func @transform_0(%arg0: i32) -> (i32, i32, i32) {
    %c0_i32 = arith.constant 0 : i32
    %c0_i32_0 = arith.constant 0 : i32
    %c0_i32_1 = arith.constant 0 : i32
    return %arg0, %c0_i32, %c0_i32_0 : i32, i32, i32
  }
  func.func @transform_1(%arg0: i32) -> (i32, i32) {
    %c0_i32 = arith.constant 0 : i32
    %c0_i32_0 = arith.constant 0 : i32
    %c0_i32_1 = arith.constant 0 : i32
    return %c0_i32, %c0_i32_0 : i32, i32
  }
  func.func @transform_2(%arg0: i32) -> (i32, i32) {
    %c0_i32 = arith.constant 0 : i32
    %c0_i32_0 = arith.constant 0 : i32
    %c0_i32_1 = arith.constant 0 : i32
    return %c0_i32, %c0_i32_0 : i32, i32
  }
  func.func @transform_3(%arg0: i32) -> (i32, i32) {
    %c0_i32 = arith.constant 0 : i32
    %c0_i32_0 = arith.constant 0 : i32
    %c0_i32_1 = arith.constant 0 : i32
    return %c0_i32, %c0_i32_0 : i32, i32
  }
  func.func @transform_4(%arg0: i32) -> (i32, i32) {
    %c0_i32 = arith.constant 0 : i32
    %c0_i32_0 = arith.constant 0 : i32
    %c0_i32_1 = arith.constant 0 : i32
    return %c0_i32, %c0_i32_0 : i32, i32
  }
  func.func @transform_5(%arg0: i32) -> (i32, i32) {
    %c0_i32 = arith.constant 0 : i32
    %c0_i32_0 = arith.constant 0 : i32
    %c0_i32_1 = arith.constant 0 : i32
    return %c0_i32, %c0_i32_0 : i32, i32
  }
  func.func @transform_6(%arg0: i32) -> (i32, i32) {
    %c0_i32 = arith.constant 0 : i32
    %c0_i32_0 = arith.constant 0 : i32
    %c0_i32_1 = arith.constant 0 : i32
    return %c0_i32, %c0_i32_0 : i32, i32
  }
  func.func @transform_7(%arg0: i32) -> (i32, i32) {
    %c0_i32 = arith.constant 0 : i32
    %c0_i32_0 = arith.constant 0 : i32
    %c0_i32_1 = arith.constant 0 : i32
    return %c0_i32, %c0_i32_0 : i32, i32
  }
  func.func @transform_8(%arg0: i32) -> (i32, i32) {
    %c0_i32 = arith.constant 0 : i32
    %c0_i32_0 = arith.constant 0 : i32
    %c0_i32_1 = arith.constant 0 : i32
    return %c0_i32, %c0_i32_0 : i32, i32
  }
  func.func @transform_9(%arg0: i32) -> (i32, i32) {
    %c0_i32 = arith.constant 0 : i32
    %c0_i32_0 = arith.constant 0 : i32
    %c0_i32_1 = arith.constant 0 : i32
    return %c0_i32, %c0_i32_0 : i32, i32
  }
  func.func @transform_10(%arg0: i32) -> (i32, i32) {
    %c0_i32 = arith.constant 0 : i32
    %c0_i32_0 = arith.constant 0 : i32
    %c0_i32_1 = arith.constant 0 : i32
    return %c0_i32, %c0_i32_0 : i32, i32
  }
  func.func @transform_11(%arg0: i32) -> (i32, i32) {
    %c0_i32 = arith.constant 0 : i32
    %c0_i32_0 = arith.constant 0 : i32
    %c0_i32_1 = arith.constant 0 : i32
    return %c0_i32, %c0_i32_0 : i32, i32
  }
  func.func @transform_12(%arg0: i32) -> (i32, i32, i32) {
    %c0_i32 = arith.constant 0 : i32
    %c0_i32_0 = arith.constant 0 : i32
    %c0_i32_1 = arith.constant 0 : i32
    return %c0_i32, %arg0, %c0_i32_0 : i32, i32, i32
  }
}

</mosaic_0001>

<bundles_post_ra>
// kernel: fused_forward.1
= control target key start
LH: loop header
LB: loop body
LE: loop exit
PB: predicated region body
PF: predicated region fallthrough
CT: control target
= control target key end

     0   :  { %s9945_s0 = inlined_call_operand.vmem [shape: f32[2,8,48], index: 0, kind: input, shape index: {}]   ;;  %s9946_s1 = inlined_call_operand.hbm [shape: f32[48,512], index: 1, kind: input, shape index: {}]   ;;  %s9947_s2 = inlined_call_operand.hbm [shape: f32[128,512], index: 2, kind: input, shape index: {}]   ;;  %s9948_s3 = inlined_call_operand.vmem [shape: f32[1,512], index: 3, kind: input, shape index: {}]   ;;  %s9949_s4 = inlined_call_operand.hbm [shape: f32[128,512], index: 4, kind: input, shape index: {}]   ;;  %s9950_s5 = inlined_call_operand.hbm [shape: f32[128,512], index: 5, kind: input, shape index: {}]   ;;  %s9951_s6 = inlined_call_operand.vmem [shape: f32[1,512], index: 6, kind: input, shape index: {}]   ;;  %s9952_s7 = inlined_call_operand.hbm [shape: f32[128,512], index: 7, kind: input, shape index: {}]   ;;  %s9953_s8 = inlined_call_operand.hbm [shape: f32[128,512], index: 8, kind: input, shape index: {}]   ;;  %s9954_s9 = inlined_call_operand.vmem [shape: f32[1,512], index: 9, kind: input, shape index: {}]   ;;  %s9955_s10 = inlined_call_operand.vmem [shape: f32[128,1], index: 10, kind: input, shape index: {}]   ;;  %s9956_s11 = inlined_call_operand.<no memory space> [shape: f32[1,1], index: 11, kind: input, shape index: {}]   ;;  %s9957_s12 = inlined_call_operand.vmem [shape: f32[8,2,1], index: 12, kind: output, shape index: {}]  }
   0x1   :  { %v17_v0 = vstv %s9956_s11 }
   0x2   :  { %18 = vst [vmem:[#allocation3] sm:$0x1] %v17_v0 }
   0x3   :  { %19 = vsyncpa [#allocation5], 0 }
   0x4   :  { %20 = vsyncpa [#allocation7], 0 }
   0x5   :  { %21 = vsyncpa [#allocation10], 0 }
   0x6   :  { %22 = vsyncpa [#allocation13], 0  ;;  %s6976_s23 = smov [#allocation6]   ;;  %s6977_s25 = smov [#allocation9]  }
   0x7   :  { %s42_s24 = sshll.u32 %s6976_s23, 4  ;;  %s68_s26 = sshll.u32 %s6977_s25, 4  ;;  %s43_s24 = int_to_ptr.vmem [resolvable:$true] %s42_s24  ;;  %s69_s26 = int_to_ptr.vmem [resolvable:$true] %s68_s26 }
   0x8   :  { %s6856_s27 = scalar_lea.vmem %s43_s24, 8192  ;;  %p6861_p1 = scmp.lt.s32.totalorder %s43_s24, %s43_s24 }
   0x9   :  { %p6857_p0 = scmp.ne.s32.totalorder %s43_s24, %s6856_s27  ;;  %p6862_p2 = scmp.lt.s32.totalorder %s6856_s27, %s6856_s27 }
   0xb   :  { %p6863_p3 = por %p6862_p2, %p6861_p1 }
   0xd   :  { %p6864_p4 = pnand %p6863_p3, %p6857_p0 }
   0xf   :  { %6867 = shalt.err (!%p6864_p4)
}
  0x10   :  { %s6978_s28 = smov 512   ;;  %s6979_s11 = smov 32  }
  0x11   :  { %48 = dma.hbm_to_vmem [thread:$0]  %s9947_s2, 8192, %s43_s24, [#allocation7], %s6978_s28, %s6978_s28, %s6979_s11  }
  0x12   :  { %s6876_s13 = scalar_lea.vmem %s69_s26, 8192  ;;  %p6881_p6 = scmp.lt.s32.totalorder %s69_s26, %s69_s26 }
  0x13   :  { %p6877_p5 = scmp.ne.s32.totalorder %s69_s26, %s6876_s13  ;;  %p6882_p7 = scmp.lt.s32.totalorder %s6876_s13, %s6876_s13 }
  0x15   :  { %p6883_p8 = por %p6882_p7, %p6881_p6 }
  0x17   :  { %p6884_p9 = pnand %p6883_p8, %p6877_p5 }
  0x19   :  { %6887 = shalt.err (!%p6884_p9)
}
  0x1a   :  { %74 = dma.hbm_to_vmem [thread:$0]  %s9950_s5, 8192, %s69_s26, [#allocation10], %s6978_s28, %s6978_s28, %s6979_s11  }
  0x1b   :  { %s6980_s16 = smov [#allocation4]   ;;  %s6981_s18 = smov [#allocation8]  }
  0x1c   :  { %s30_s17 = sshll.u32 %s6980_s16, 4  ;;  %s56_s19 = sshll.u32 %s6981_s18, 4  ;;  %s31_s17 = int_to_ptr.vmem [resolvable:$true] %s30_s17  ;;  %s57_s19 = int_to_ptr.vmem [resolvable:$true] %s56_s19 }
  0x1d   :  { %s6896_s2 = scalar_lea.vmem %s31_s17, 3072  ;;  %p6901_p11 = scmp.lt.s32.totalorder %s31_s17, %s31_s17 }
  0x1e   :  { %p6897_p10 = scmp.ne.s32.totalorder %s31_s17, %s6896_s2  ;;  %p6902_p12 = scmp.lt.s32.totalorder %s6896_s2, %s6896_s2 }
  0x20   :  { %p6903_p13 = por %p6902_p12, %p6901_p11 }
  0x22   :  { %p6904_p0 = pnand %p6903_p13, %p6897_p10 }
  0x24   :  { %6907 = shalt.err (!%p6904_p0)
}
  0x25   :  { %36 = dma.hbm_to_vmem [thread:$0]  %s9946_s1, 3072, %s31_s17, [#allocation5], %s6978_s28, %s6978_s28, %s6979_s11  }
  0x26   :  { %s6916_s5 = scalar_lea.vmem %s57_s19, 8192  ;;  %p6921_p2 = scmp.lt.s32.totalorder %s57_s19, %s57_s19 }
  0x27   :  { %p6917_p1 = scmp.ne.s32.totalorder %s57_s19, %s6916_s5  ;;  %p6922_p3 = scmp.lt.s32.totalorder %s6916_s5, %s6916_s5 }
  0x29   :  { %p6923_p4 = por %p6922_p3, %p6921_p2 }
  0x2b   :  { %p6924_p5 = pnand %p6923_p4, %p6917_p1 }
  0x2d   :  { %6927 = shalt.err (!%p6924_p5)
}
  0x2e   :  { %62 = dma.hbm_to_vmem [thread:$0]  %s9949_s4, 8192, %s57_s19, [#allocation7], %s6978_s28, %s6978_s28, %s6979_s11  }
  0x2f   :  { %s6982_s24 = smov [#allocation11]   ;;  %s6983_s26 = smov [#allocation12]  }
  0x30   :  { %s82_s25 = sshll.u32 %s6982_s24, 4  ;;  %s94_s27 = sshll.u32 %s6983_s26, 4  ;;  %s83_s25 = int_to_ptr.vmem [resolvable:$true] %s82_s25  ;;  %s95_s27 = int_to_ptr.vmem [resolvable:$true] %s94_s27 }
  0x31   :  { %s6936_s1 = scalar_lea.vmem %s83_s25, 8192  ;;  %p6941_p7 = scmp.lt.s32.totalorder %s83_s25, %s83_s25 }
  0x32   :  { %p6937_p6 = scmp.ne.s32.totalorder %s83_s25, %s6936_s1  ;;  %p6942_p8 = scmp.lt.s32.totalorder %s6936_s1, %s6936_s1 }
  0x34   :  { %p6943_p9 = por %p6942_p8, %p6941_p7 }
  0x36   :  { %p6944_p10 = pnand %p6943_p9, %p6937_p6 }
  0x38   :  { %6947 = shalt.err (!%p6944_p10)
}
  0x39   :  { %88 = dma.hbm_to_vmem [thread:$0]  %s9952_s7, 8192, %s83_s25, [#allocation10], %s6978_s28, %s6978_s28, %s6979_s11  }
  0x3a   :  { %s6956_s4 = scalar_lea.vmem %s95_s27, 8192  ;;  %p6961_p12 = scmp.lt.s32.totalorder %s95_s27, %s95_s27 }
  0x3b   :  { %p6957_p11 = scmp.ne.s32.totalorder %s95_s27, %s6956_s4  ;;  %p6962_p13 = scmp.lt.s32.totalorder %s6956_s4, %s6956_s4 }
  0x3d   :  { %p6963_p0 = por %p6962_p13, %p6961_p12 }
  0x3f   :  { %p6964_p1 = pnand %p6963_p0, %p6957_p11 }
  0x41   :  { %6967 = shalt.err (!%p6964_p1)
}
  0x42   :  { %100 = dma.hbm_to_vmem [thread:$0]  %s9953_s8, 8192, %s95_s27, [#allocation13], %s6978_s28, %s6978_s28, %s6979_s11  }
  0x43   :  { %6968 = dma.done.wait [#allocation5], 3072  }
  0x44   :  { %6969 = vsyncadd [#allocation5], 4294964224 }
  0x45   :  { %6970 = dma.done.wait [#allocation7], 16384  }
  0x46   :  { %6971 = vsyncadd [#allocation7], 4294950912 }
  0x47   :  { %6972 = dma.done.wait [#allocation10], 16384  }
  0x48   :  { %6973 = vsyncadd [#allocation10], 4294950912 }
  0x49   :  { %6974 = dma.done.wait [#allocation13], 8192  }
  0x4a   :  { %6975 = vsyncadd [#allocation13], 4294959104  ;;  %v9958_v1 = vmov 0.0   ;;  %v148_v2 = vld [vmem:[#allocation4 + $0xa8] sm:$0xff]  ;;  %v147_v4 = vld [vmem:[#allocation4 + $0xa0] sm:$0xff]  ;;  %vm173_vm0 = vcmask 392192  }
  0x4b   :  { %244 = vmatprep.mubr.f32.mxu1 %v9958_v1  ;;  %462 = vmatprep.mubr.f32.mxu0 %v9958_v1  ;;  %v7092_v3 = vld [vmem:[#allocation6 + $0x1e8] sm:$0xff]  ;;  %v7095_v5 = vld [vmem:[#allocation6 + $0x1e0] sm:$0xff]  ;;  %v150_v27 = vld [vmem:[#allocation4 + $0xb8] sm:$0xff]  ;;  %vm615_vm1 = vcmask 1041409   ;;  %vm842_vm2 = vcmask 1042434   ;;  %vm1076_vm3 = vcmask 1043459  }
  0x4c   :  { %10328 = vst [vmem:[#allocation18_spill] sm:$0xff] %v7092_v3  ;;  %200 = vmatprep.subr.mxu1 %v148_v2  ;;  %398 = vmatprep.subr.mxu0 %v7092_v3  ;;  %v144_v6 = vld [vmem:[#allocation4 + $0x88] sm:$0xff]  ;;  %v143_v8 = vld [vmem:[#allocation4 + $0x80] sm:$0xff]  ;;  %v149_v29 = vld [vmem:[#allocation4 + $0xb0] sm:$0xff]  ;;  %vm1311_vm4 = vcmask 1044484   ;;  %vm1546_vm5 = vcmask 1045509  }
  0x4d   :  { %v7097_v7 = vld [vmem:[#allocation6 + $0x1c8] sm:$0xff]  ;;  %201 = vmatpush1.msra.mxu1 %v147_v4  ;;  %399 = vmatpush1.msra.mxu0 %v7095_v5  ;;  %v7100_v9 = vld [vmem:[#allocation6 + $0x1c0] sm:$0xff]  ;;  %v146_v31 = vld [vmem:[#allocation4 + $0x98] sm:$0xff]  ;;  %vm1781_vm6 = vcmask 1046534   ;;  %vm2016_vm7 = vcmask 1047559   ;;  %vm5963_vm8 = vcmask 1024  }
  0x4e   :  { %v140_v10 = vld [vmem:[#allocation4 + $0x68] sm:$0xff]  ;;  %202 = vmatprep.subr.mxu1 %v144_v6  ;;  %400 = vmatprep.subr.mxu0 %v7097_v7  ;;  %v139_v12 = vld [vmem:[#allocation4 + $0x60] sm:$0xff]  ;;  %v145_v33 = vld [vmem:[#allocation4 + $0x90] sm:$0xff] }
  0x4f   :  { %v7103_v11 = vld [vmem:[#allocation6 + $0x1a8] sm:$0xff]  ;;  %v7105_v13 = vld [vmem:[#allocation6 + $0x1a0] sm:$0xff]  ;;  %203 = vmatpush1.msra.mxu1 %v143_v8  ;;  %401 = vmatpush1.msra.mxu0 %v7100_v9  ;;  %v142_v35 = vld [vmem:[#allocation4 + $0x78] sm:$0xff] }
  0x50   :  { %v136_v14 = vld [vmem:[#allocation4 + $0x48] sm:$0xff]  ;;  %204 = vmatprep.subr.mxu1 %v140_v10  ;;  %402 = vmatprep.subr.mxu0 %v7103_v11  ;;  %v135_v16 = vld [vmem:[#allocation4 + $0x40] sm:$0xff]  ;;  %v141_v37 = vld [vmem:[#allocation4 + $0x70] sm:$0xff] }
  0x51   :  { %v7108_v15 = vld [vmem:[#allocation6 + $0x188] sm:$0xff]  ;;  %v7111_v17 = vld [vmem:[#allocation6 + $0x180] sm:$0xff]  ;;  %205 = vmatpush1.msra.mxu1 %v139_v12  ;;  %403 = vmatpush1.msra.mxu0 %v7105_v13  ;;  %v138_v39 = vld [vmem:[#allocation4 + $0x58] sm:$0xff] }
  0x52   :  { %v132_v18 = vld [vmem:[#allocation4 + $0x28] sm:$0xff]  ;;  %206 = vmatprep.subr.mxu1 %v136_v14  ;;  %404 = vmatprep.subr.mxu0 %v7108_v15  ;;  %v131_v20 = vld [vmem:[#allocation4 + $0x20] sm:$0xff]  ;;  %v7157_v41 = vld [vmem:[%s9945_s0 + $0x8] sm:$0xff] }
  0x53   :  { %v7114_v19 = vld [vmem:[#allocation6 + $0x168] sm:$0xff]  ;;  %v7117_v21 = vld [vmem:[#allocation6 + $0x160] sm:$0xff]  ;;  %207 = vmatpush1.msra.mxu1 %v135_v16  ;;  %405 = vmatpush1.msra.mxu0 %v7111_v17  ;;  %v137_v43 = vld [vmem:[#allocation4 + $0x50] sm:$0xff] }
  0x54   :  { %v128_v22 = vld [vmem:[#allocation4 + $0x8] sm:$0xff]  ;;  %208 = vmatprep.subr.mxu1 %v132_v18  ;;  %406 = vmatprep.subr.mxu0 %v7114_v19  ;;  %v127_v24 = vld [vmem:[#allocation4] sm:$0xff]  ;;  %v134_v45 = vld [vmem:[#allocation4 + $0x38] sm:$0xff] }
  0x55   :  { %v7120_v23 = vld [vmem:[#allocation6 + $0x148] sm:$0xff]  ;;  %v7123_v25 = vld [vmem:[#allocation6 + $0x140] sm:$0xff]  ;;  %209 = vmatpush1.msra.mxu1 %v131_v20  ;;  %407 = vmatpush1.msra.mxu0 %v7117_v21  ;;  %v133_v47 = vld [vmem:[#allocation4 + $0x30] sm:$0xff] }
  0x56   :  { %v7129_v26 = vld [vmem:[%s9945_s0] sm:$0xff]  ;;  %210 = vmatprep.subr.mxu1 %v128_v22  ;;  %408 = vmatprep.subr.mxu0 %v7120_v23  ;;  %v7135_v30 = vld [vmem:[#allocation6 + $0x120] sm:$0xff]  ;;  %v130_v49 = vld [vmem:[#allocation4 + $0x18] sm:$0xff] }
  0x57   :  { %v7132_v28 = vld [vmem:[#allocation6 + $0x128] sm:$0xff]  ;;  %211 = vmatpush1.msra.mxu1 %v127_v24  ;;  %409 = vmatpush1.msra.mxu0 %v7123_v25  ;;  %v7142_v34 = vld [vmem:[#allocation6 + $0x100] sm:$0xff]  ;;  %v129_v50 = vld [vmem:[#allocation4 + $0x10] sm:$0xff] }
  0x58   :  { %5980 = vmatmul.mubr.msk.f32.vlgmr.msra.gmra.mxu1 %vm173_vm0, %v7129_v26  ;;  %277 = vmatprep.subr.mxu1 %v150_v27  ;;  %v7139_v32 = vld [vmem:[#allocation6 + $0x108] sm:$0xff]  ;;  %10329 = vst [vmem:[#allocation19_spill] sm:$0xff] %v7142_v34  ;;  %v7148_v38 = vld [vmem:[#allocation6 + $0xe0] sm:$0xff]  ;;  %v7181_v53 = vld [vmem:[#allocation6 + $0x1f8] sm:$0xff] }
  0x59   :  { %410 = vmatprep.subr.mxu0 %v7132_v28  ;;  %278 = vmatpush1.msra.mxu1 %v149_v29  ;;  %v7145_v36 = vld [vmem:[#allocation6 + $0xe8] sm:$0xff]  ;;  %v7159_v42 = vld [vmem:[#allocation6 + $0xc0] sm:$0xff]  ;;  %10334 = vst [vmem:[#allocation24_spill] sm:$0xff] %v7181_v53  ;;  %v7186_v55 = vld [vmem:[#allocation6 + $0x1f0] sm:$0xff] }
  0x5a   :  { %411 = vmatpush1.msra.mxu0 %v7135_v30  ;;  %279 = vmatprep.subr.mxu1 %v146_v31  ;;  %v7151_v40 = vld [vmem:[#allocation6 + $0xc8] sm:$0xff]  ;;  %v7166_v46 = vld [vmem:[#allocation6 + $0xa0] sm:$0xff]  ;;  %v7193_v57 = vld [vmem:[#allocation6 + $0x1d8] sm:$0xff] }
  0x5b   :  { %412 = vmatprep.subr.mxu0 %v7139_v32  ;;  %280 = vmatpush1.msra.mxu1 %v145_v33  ;;  %v7163_v44 = vld [vmem:[#allocation6 + $0xa8] sm:$0xff]  ;;  %10330 = vst [vmem:[#allocation20_spill] sm:$0xff] %v7166_v46  ;;  %v7175_v51 = vld [vmem:[#allocation6 + $0x80] sm:$0xff]  ;;  %v7199_v59 = vld [vmem:[#allocation6 + $0x1d0] sm:$0xff] }
  0x5c   :  { %413 = vmatpush1.msra.mxu0 %v7142_v34  ;;  %281 = vmatprep.subr.mxu1 %v142_v35  ;;  %v7171_v48 = vld [vmem:[#allocation6 + $0x88] sm:$0xff]  ;;  %10332 = vst [vmem:[#allocation22_spill] sm:$0xff] %v7175_v51  ;;  %v7183_v54 = vld [vmem:[#allocation6 + $0x60] sm:$0xff]  ;;  %v7205_v61 = vld [vmem:[#allocation6 + $0x1b8] sm:$0xff] }
  0x5d   :  { %414 = vmatprep.subr.mxu0 %v7145_v36  ;;  %282 = vmatpush1.msra.mxu1 %v141_v37  ;;  %10331 = vst [vmem:[#allocation21_spill] sm:$0xff] %v7171_v48  ;;  %v7178_v52 = vld [vmem:[#allocation6 + $0x68] sm:$0xff]  ;;  %10335 = vst [vmem:[#allocation25_spill] sm:$0xff] %v7183_v54  ;;  %v7195_v58 = vld [vmem:[#allocation6 + $0x40] sm:$0xff] }
  0x5e   :  { %415 = vmatpush1.msra.mxu0 %v7148_v38  ;;  %250 = vmatprep.mubr.f32.mxu1 %v9958_v1  ;;  %10333 = vst [vmem:[#allocation23_spill] sm:$0xff] %v7178_v52  ;;  %v7188_v56 = vld [vmem:[#allocation6 + $0x48] sm:$0xff]  ;;  %10337 = vst [vmem:[#allocation27_spill] sm:$0xff] %v7195_v58  ;;  %v7207_v62 = vld [vmem:[#allocation6 + $0x20] sm:$0xff] }
  0x5f   :  { %283 = vmatprep.subr.mxu1 %v138_v39  ;;  %416 = vmatprep.subr.mxu0 %v7151_v40  ;;  %10336 = vst [vmem:[#allocation26_spill] sm:$0xff] %v7188_v56  ;;  %v7201_v60 = vld [vmem:[#allocation6 + $0x28] sm:$0xff]  ;;  %10339 = vst [vmem:[#allocation29_spill] sm:$0xff] %v7207_v62  ;;  %v7211_v63 = vld [vmem:[#allocation6 + $0x1b0] sm:$0xff] }
  0x60   :  { %5981 = vmatmul.mubr.msk.f32.gmra.mxu1 %vm173_vm0, %v7157_v41  ;;  %417 = vmatpush1.msra.mxu0 %v7159_v42  ;;  %10338 = vst [vmem:[#allocation28_spill] sm:$0xff] %v7201_v60  ;;  %v7213_v0 = vld [vmem:[#allocation6 + $0x8] sm:$0xff]  ;;  %v7217_v2 = vld [vmem:[#allocation6 + $0x198] sm:$0xff]  ;;  %v7219_v4 = vld [vmem:[#allocation6] sm:$0xff] }
  0x61   :  { %284 = vmatpush1.msra.mxu1 %v137_v43  ;;  %418 = vmatprep.subr.mxu0 %v7163_v44  ;;  %10340 = vst [vmem:[#allocation30_spill] sm:$0xff] %v7213_v0  ;;  %10341 = vst [vmem:[#allocation31_spill] sm:$0xff] %v7219_v4  ;;  %v7223_v6 = vld [vmem:[#allocation6 + $0x190] sm:$0xff]  ;;  %v7227_v8 = vld [vmem:[#allocation6 + $0x178] sm:$0xff] }
  0x62   :  { %285 = vmatprep.subr.mxu1 %v134_v45  ;;  %419 = vmatpush1.msra.mxu0 %v7166_v46  ;;  %v7231_v10 = vld [vmem:[#allocation6 + $0x170] sm:$0xff]  ;;  %v7235_v12 = vld [vmem:[#allocation6 + $0x158] sm:$0xff] }
  0x63   :  { %286 = vmatpush1.msra.mxu1 %v133_v47  ;;  %420 = vmatprep.subr.mxu0 %v7171_v48  ;;  %v7238_v14 = vld [vmem:[#allocation6 + $0x150] sm:$0xff]  ;;  %v7242_v16 = vld [vmem:[#allocation6 + $0x138] sm:$0xff] }
  0x64   :  { %287 = vmatprep.subr.mxu1 %v130_v49  ;;  %321 = vmatprep.mubr.f32.mxu1 %v9958_v1  ;;  %v7246_v18 = vld [vmem:[#allocation6 + $0x130] sm:$0xff]  ;;  %v7251_v20 = vld [vmem:[#allocation6 + $0x118] sm:$0xff] }
  0x65   :  { %288 = vmatpush1.msra.mxu1 %v129_v50  ;;  %421 = vmatpush1.msra.mxu0 %v7175_v51  ;;  %v7255_v22 = vld [vmem:[#allocation6 + $0x110] sm:$0xff]  ;;  %v7259_v24 = vld [vmem:[#allocation6 + $0xf8] sm:$0xff] }
  0x66   :  { %5982 = vmatmul.mubr.msk.f32.vlgmr.msra.gmra.mxu1 %vm173_vm0, %v7129_v26  ;;  %422 = vmatprep.subr.mxu0 %v7178_v52  ;;  %v7263_v26 = vld [vmem:[#allocation6 + $0xf0] sm:$0xff]  ;;  %v7267_v27 = vld [vmem:[#allocation6 + $0xd8] sm:$0xff] }
  0x67   :  { %469 = vmatprep.subr.mxu1 %v7181_v53  ;;  %423 = vmatpush1.msra.mxu0 %v7183_v54  ;;  %v7271_v29 = vld [vmem:[#allocation6 + $0xd0] sm:$0xff]  ;;  %v7275_v31 = vld [vmem:[#allocation6 + $0xb8] sm:$0xff] }
  0x68   :  { %470 = vmatpush1.msra.mxu1 %v7186_v55  ;;  %424 = vmatprep.subr.mxu0 %v7188_v56  ;;  %10342 = vst [vmem:[#allocation32_spill] sm:$0xff] %v7275_v31  ;;  %v7279_v33 = vld [vmem:[#allocation6 + $0xb0] sm:$0xff]  ;;  %v7283_v35 = vld [vmem:[#allocation6 + $0x98] sm:$0xff] }
  0x69   :  { %471 = vmatprep.subr.mxu1 %v7193_v57  ;;  %425 = vmatpush1.msra.mxu0 %v7195_v58  ;;  %10343 = vst [vmem:[#allocation33_spill] sm:$0xff] %v7279_v33  ;;  %10344 = vst [vmem:[#allocation34_spill] sm:$0xff] %v7283_v35  ;;  %v7287_v37 = vld [vmem:[#allocation6 + $0x90] sm:$0xff]  ;;  %v7291_v39 = vld [vmem:[#allocation6 + $0x78] sm:$0xff] }
  0x6a   :  { %472 = vmatpush1.msra.mxu1 %v7199_v59  ;;  %426 = vmatprep.subr.mxu0 %v7201_v60  ;;  %10345 = vst [vmem:[#allocation35_spill] sm:$0xff] %v7287_v37  ;;  %10346 = vst [vmem:[#allocation36_spill] sm:$0xff] %v7291_v39  ;;  %v7299_v43 = vld [vmem:[#allocation6 + $0x58] sm:$0xff]  ;;  %v7303_v45 = vld [vmem:[#allocation6 + $0x50] sm:$0xff] }
  0x6b   :  { %473 = vmatprep.subr.mxu1 %v7205_v61  ;;  %427 = vmatpush1.msra.mxu0 %v7207_v62  ;;  %10348 = vst [vmem:[#allocation38_spill] sm:$0xff] %v7299_v43  ;;  %10349 = vst [vmem:[#allocation39_spill] sm:$0xff] %v7303_v45  ;;  %v7307_v47 = vld [vmem:[#allocation6 + $0x38] sm:$0xff]  ;;  %v7311_v49 = vld [vmem:[#allocation6 + $0x30] sm:$0xff] }
  0x6c   :  { %474 = vmatpush1.msra.mxu1 %v7211_v63  ;;  %428 = vmatprep.subr.mxu0 %v7213_v0  ;;  %10350 = vst [vmem:[#allocation40_spill] sm:$0xff] %v7307_v47  ;;  %10351 = vst [vmem:[#allocation41_spill] sm:$0xff] %v7311_v49  ;;  %v7315_v50 = vld [vmem:[#allocation6 + $0x18] sm:$0xff] }
  0x6d   :  { %475 = vmatprep.subr.mxu1 %v7217_v2  ;;  %429 = vmatpush1.msra.mxu0 %v7219_v4  ;;  %10352 = vst [vmem:[#allocation42_spill] sm:$0xff] %v7315_v50 }
  0x6e   :  { %476 = vmatpush1.msra.mxu1 %v7223_v6  ;;  %463 = vmatmul.mubr.f32.vlgmr.msra.gmra.mxu0 %v9958_v1 }
  0x6f   :  { %477 = vmatprep.subr.mxu1 %v7227_v8  ;;  %327 = vmatprep.mubr.f32.mxu1 %v9958_v1 }
  0x70   :  { %478 = vmatpush1.msra.mxu1 %v7231_v10  ;;  %619 = vmatprep.subr.mxu0 %v7092_v3 }
  0x71   :  { %479 = vmatprep.subr.mxu1 %v7235_v12  ;;  %5983 = vmatmul.mubr.msk.f32.gmra.mxu1 %vm173_vm0, %v7157_v41  ;;  %v7295_v41 = vld [vmem:[#allocation6 + $0x70] sm:$0xff] }
  0x72   :  { %480 = vmatpush1.msra.mxu1 %v7238_v14  ;;  %533 = vmatprep.mubr.f32.mxu1 %v9958_v1  ;;  %10347 = vst [vmem:[#allocation37_spill] sm:$0xff] %v7295_v41  ;;  %v7319_v1 = vld [vmem:[#allocation6 + $0x10] sm:$0xff] }
  0x73   :  { %481 = vmatprep.subr.mxu1 %v7242_v16  ;;  %620 = vmatpush1.msra.mxu0 %v7095_v5  ;;  %10353 = vst [vmem:[#allocation43_spill] sm:$0xff] %v7319_v1 }
  0x74   :  { %482 = vmatpush1.msra.mxu1 %v7246_v18  ;;  %621 = vmatprep.subr.mxu0 %v7097_v7 }
  0x75   :  { %483 = vmatprep.subr.mxu1 %v7251_v20  ;;  %622 = vmatpush1.msra.mxu0 %v7100_v9 }
  0x76   :  { %484 = vmatpush1.msra.mxu1 %v7255_v22  ;;  %623 = vmatprep.subr.mxu0 %v7103_v11 }
  0x77   :  { %485 = vmatprep.subr.mxu1 %v7259_v24  ;;  %624 = vmatpush1.msra.mxu0 %v7105_v13 }
  0x78   :  { %486 = vmatpush1.msra.mxu1 %v7263_v26  ;;  %625 = vmatprep.subr.mxu0 %v7108_v15 }
  0x79   :  { %487 = vmatprep.subr.mxu1 %v7267_v27  ;;  %626 = vmatpush1.msra.mxu0 %v7111_v17 }
  0x7a   :  { %488 = vmatpush1.msra.mxu1 %v7271_v29  ;;  %627 = vmatprep.subr.mxu0 %v7114_v19 }
  0x7b   :  { %489 = vmatprep.subr.mxu1 %v7275_v31  ;;  %628 = vmatpush1.msra.mxu0 %v7117_v21 }
  0x7c   :  { %490 = vmatpush1.msra.mxu1 %v7279_v33  ;;  %629 = vmatprep.subr.mxu0 %v7120_v23 }
  0x7d   :  { %491 = vmatprep.subr.mxu1 %v7283_v35  ;;  %630 = vmatpush1.msra.mxu0 %v7123_v25 }
  0x7e   :  { %492 = vmatpush1.msra.mxu1 %v7287_v37  ;;  %631 = vmatprep.subr.mxu0 %v7132_v28 }
  0x7f   :  { %493 = vmatprep.subr.mxu1 %v7291_v39  ;;  %632 = vmatpush1.msra.mxu0 %v7135_v30 }
  0x80   :  { %494 = vmatpush1.msra.mxu1 %v7295_v41  ;;  %633 = vmatprep.subr.mxu0 %v7139_v32 }
  0x81   :  { %495 = vmatprep.subr.mxu1 %v7299_v43  ;;  %634 = vmatpush1.msra.mxu0 %v7142_v34  ;;  %v10354_v34 = vmov 0.0  }
  0x82   :  { %496 = vmatpush1.msra.mxu1 %v7303_v45  ;;  %635 = vmatprep.subr.mxu0 %v7145_v36 }
  0x83   :  { %497 = vmatprep.subr.mxu1 %v7307_v47  ;;  %636 = vmatpush1.msra.mxu0 %v7148_v38 }
  0x84   :  { %498 = vmatpush1.msra.mxu1 %v7311_v49  ;;  %637 = vmatprep.subr.mxu0 %v7151_v40 }
  0x85   :  { %499 = vmatprep.subr.mxu1 %v7315_v50  ;;  %638 = vmatpush1.msra.mxu0 %v7159_v42 }
  0x86   :  { %500 = vmatpush1.msra.mxu1 %v7319_v1  ;;  %639 = vmatprep.subr.mxu0 %v7163_v44 }
  0x87   :  { %534 = vmatmul.mubr.f32.vlgmr.msra.gmra.mxu1 %v10354_v34  ;;  %690 = vmatprep.subr.mxu1 %v7181_v53 }
  0x88   :  { %691 = vmatpush1.msra.mxu1 %v7186_v55  ;;  %640 = vmatpush1.msra.mxu0 %v7166_v46 }
  0x89   :  { %692 = vmatprep.subr.mxu1 %v7193_v57  ;;  %641 = vmatprep.subr.mxu0 %v7171_v48 }
  0x8a   :  { %693 = vmatpush1.msra.mxu1 %v7199_v59  ;;  %642 = vmatpush1.msra.mxu0 %v7175_v51 }
  0x8b   :  { %694 = vmatprep.subr.mxu1 %v7205_v61  ;;  %643 = vmatprep.subr.mxu0 %v7178_v52 }
  0x8c   :  { %695 = vmatpush1.msra.mxu1 %v7211_v63  ;;  %644 = vmatpush1.msra.mxu0 %v7183_v54 }
  0x8d   :  { %696 = vmatprep.subr.mxu1 %v7217_v2  ;;  %645 = vmatprep.subr.mxu0 %v7188_v56 }
  0x8e   :  { %697 = vmatpush1.msra.mxu1 %v7223_v6  ;;  %646 = vmatpush1.msra.mxu0 %v7195_v58 }
  0x8f   :  { %698 = vmatprep.subr.mxu1 %v7227_v8  ;;  %647 = vmatprep.subr.mxu0 %v7201_v60 }
  0x90   :  { %699 = vmatpush1.msra.mxu1 %v7231_v10  ;;  %648 = vmatpush1.msra.mxu0 %v7207_v62  ;;  %v151_v62 = vld [vmem:[%s9948_s3] sm:$0xf] }
  0x91   :  { %700 = vmatprep.subr.mxu1 %v7235_v12  ;;  %649 = vmatprep.subr.mxu0 %v7213_v0 }
  0x92   :  { %701 = vmatpush1.msra.mxu1 %v7238_v14  ;;  %650 = vmatpush1.msra.mxu0 %v7219_v4 }
  0x93   :  { %702 = vmatprep.subr.mxu1 %v7242_v16  ;;  %683 = vmatprep.mubr.f32.mxu0 %v10354_v34 }
  0x94   :  { %703 = vmatpush1.msra.mxu1 %v7246_v18  ;;  %754 = vmatprep.mubr.f32.mxu1 %v10354_v34 }
  0x95   :  { %704 = vmatprep.subr.mxu1 %v7251_v20  ;;  %849 = vmatprep.subr.mxu0 %v7092_v3  ;;  %v153_v3 = vlaneseq }
  0x96   :  { %705 = vmatpush1.msra.mxu1 %v7255_v22 }
  0x97   :  { %706 = vmatprep.subr.mxu1 %v7259_v24  ;;  %v7376_v34 = vshrl.u32 %v153_v3, 7 }
  0x98   :  { %707 = vmatpush1.msra.mxu1 %v7263_v26 }
  0x99   :  { %708 = vmatprep.subr.mxu1 %v7267_v27  ;;  %10355 = vst [vmem:[#allocation44_spill] sm:$0xff] %v7376_v34  ;;  %v7379_v0 = vsub.s32 0, %v7376_v34 }
  0x9a   :  { %709 = vmatpush1.msra.mxu1 %v7271_v29 }
  0x9b   :  { %710 = vmatprep.subr.mxu1 %v7275_v31  ;;  %10356 = vst [vmem:[#allocation45_spill] sm:$0xff] %v7379_v0 }
  0x9c   :  { %711 = vmatpush1.msra.mxu1 %v7279_v33 }
  0x9d   :  { %712 = vmatprep.subr.mxu1 %v7283_v35 }
  0x9e   :  { %713 = vmatpush1.msra.mxu1 %v7287_v37 }
  0x9f   :  { %714 = vmatprep.subr.mxu1 %v7291_v39 }
  0xa0   :  { %715 = vmatpush1.msra.mxu1 %v7295_v41 }
  0xa1   :  { %716 = vmatprep.subr.mxu1 %v7299_v43 }
  0xa2   :  { %717 = vmatpush1.msra.mxu1 %v7303_v45 }
  0xa3   :  { %718 = vmatprep.subr.mxu1 %v7307_v47  ;;  %v7385_v47 = vsub.s32 1, %v7376_v34 }
  0xa4   :  { %719 = vmatpush1.msra.mxu1 %v7311_v49 }
  0xa5   :  { %720 = vmatprep.subr.mxu1 %v7315_v50  ;;  %10357 = vst [vmem:[#allocation46_spill] sm:$0xff] %v7385_v47  ;;  %v156_v50 = vrot.slane %v151_v62, %v7379_v0 }
  0xa6   :  { %721 = vmatpush1.msra.mxu1 %v7319_v1 }
  0xa7   :  { %920 = vmatprep.subr.mxu1 %v7181_v53  ;;  %v160_v53 = vrot.slane %v151_v62, %v7385_v47 }
 0x118   :  { %v246_v4 = vpop.f32.mrf.mxu1 }
 0x119   :  { %v7389_v60 = vadd.f32 %v246_v4, %v156_v50 }
 0x11a   :  { %v248_v49 = vpop.f32.mrf.mxu1 }
 0x11b   :  { %10358 = vst [vmem:[#allocation47_spill] sm:$0xff] %v7389_v60  ;;  %v7391_v58 = vadd.f32 %v248_v49, %v160_v53 }
 0x11d   :  { %10359 = vst [vmem:[#allocation48_spill] sm:$0xff] %v7391_v58 }
 0x120   :  { %v252_v1 = vpop.f32.mrf.mxu1 }
 0x121   :  { %v7393_v43 = vadd.f32 %v252_v1, %v156_v50 }
 0x122   :  { %v254_v3 = vpop.f32.mrf.mxu1 }
 0x123   :  { %10360 = vst [vmem:[#allocation49_spill] sm:$0xff] %v7393_v43  ;;  %v7396_v54 = vadd.f32 %v254_v3, %v160_v53  ;;  %v7402_v53 = vsub.s32 2, %v7376_v34 }
 0x125   :  { %10361 = vst [vmem:[#allocation50_spill] sm:$0xff] %v7396_v54  ;;  %10362 = vst [vmem:[#allocation51_spill] sm:$0xff] %v7402_v53 }
 0x126   :  { %v323_v50 = vpop.f32.mrf.mxu1 }
 0x12e   :  { %v464_v45 = vpop.f32.mrf.mxu0 }
 0x12f   :  { %v544_v56 = vrot.slane %v464_v45, 1  ;;  %v556_v41 = vadd.f32 %v464_v45, %v7389_v60  ;;  %v7405_v45 = vsub.s32 3, %v7376_v34 }
 0x130   :  { %v466_v39 = vpop.f32.mrf.mxu0 }
 0x131   :  { %v560_v52 = vadd.f32 %v544_v56, %v7393_v43  ;;  %v5984_v0 = vmul.f32 -1.442695, %v556_v41  ;;  %v545_v37 = vrot.slane %v466_v39, 1  ;;  %v557_v47 = vadd.f32 %v466_v39, %v7391_v58  ;;  %10363 = vst [vmem:[#allocation52_spill] sm:$0xff] %v7405_v45  ;;  %v325_v56 = vpop.f32.mrf.mxu1 }
 0x133   :  { %6144 = vpow2.f32 %v5984_v0  ;;  %v5987_v4 = vmul.f32 -1.442695, %v560_v52  ;;  %v561_v51 = vadd.f32 %v545_v37, %v7396_v54  ;;  %v5985_v49 = vmul.f32 -1.442695, %v557_v47  ;;  %v329_v3 = vpop.f32.mrf.mxu1 }
 0x134   :  { %v164_v52 = vrot.slane %v151_v62, %v7402_v53  ;;  %v168_v37 = vrot.slane %v151_v62, %v7405_v45 }
 0x135   :  { %6146 = vpow2.f32 %v5987_v4  ;;  %v5988_v1 = vmul.f32 -1.442695, %v561_v51 }
 0x136   :  { %6148 = vpow2.f32 %v5985_v49  ;;  %v7409_v58 = vadd.f32 %v323_v50, %v164_v52  ;;  %v7411_v54 = vadd.f32 %v325_v56, %v168_v37  ;;  %v7413_v43 = vadd.f32 %v329_v3, %v164_v52 }
 0x137   :  { %6150 = vpow2.f32 %v5988_v1  ;;  %v331_v1 = vpop.f32.mrf.mxu1 }
 0x138   :  { %10364 = vst [vmem:[#allocation53_spill] sm:$0xff] %v7409_v58  ;;  %10365 = vst [vmem:[#allocation54_spill] sm:$0xff] %v7411_v54  ;;  %v7416_v62 = vadd.f32 %v331_v1, %v168_v37 }
 0x139   :  { %10366 = vst [vmem:[#allocation55_spill] sm:$0xff] %v7413_v43 }
 0x13a   :  { %10367 = vst [vmem:[#allocation56_spill] sm:$0xff] %v7416_v62 }
 0x140   :  { %v6145_v41 = vpop.eup %6144 }
 0x141   :  { %v582_v47 = vadd.f32 1.0, %v6145_v41 }
 0x142   :  { %v6147_v39 = vpop.eup %6146 }
 0x143   :  { %v6149_v0 = vpop.eup %6148  ;;  %v585_v4 = vadd.f32 1.0, %v6147_v39  ;;  %6152 = vrcp.f32 %v582_v47 }
 0x144   :  { %v6151_v51 = vpop.eup %6150  ;;  %v583_v49 = vadd.f32 1.0, %v6149_v0 }
 0x145   :  { %v586_v34 = vadd.f32 1.0, %v6151_v51  ;;  %6154 = vrcp.f32 %v585_v4 }
 0x146   :  { %6156 = vrcp.f32 %v583_v49 }
 0x147   :  { %v535_v60 = vpop.f32.mrf.mxu1  ;;  %6158 = vrcp.f32 %v586_v34 }
 0x148   :  { %v546_v35 = vrot.slane %v535_v60, 1  ;;  %v558_v53 = vadd.f32 %v535_v60, %v7409_v58 }
 0x149   :  { %v537_v41 = vpop.f32.mrf.mxu1 }
 0x14a   :  { %v562_v39 = vadd.f32 %v546_v35, %v7413_v43  ;;  %v5986_v0 = vmul.f32 -1.442695, %v558_v53  ;;  %v547_v50 = vrot.slane %v537_v41, 1  ;;  %v559_v56 = vadd.f32 %v537_v41, %v7411_v54 }
 0x14c   :  { %6160 = vpow2.f32 %v5986_v0  ;;  %v5989_v47 = vmul.f32 -1.442695, %v562_v39  ;;  %v563_v51 = vadd.f32 %v547_v50, %v7416_v62 }
 0x14d   :  { %6162 = vtanh.f32 %v559_v56 }
 0x14e   :  { %6164 = vpow2.f32 %v5989_v47 }
 0x14f   :  { %6166 = vtanh.f32 %v563_v51 }
 0x150   :  { %v6153_v3 = vpop.eup %6152 }
 0x152   :  { %v6155_v60 = vpop.eup %6154 }
 0x153   :  { %v6157_v52 = vpop.eup %6156 }
 0x154   :  { %v6159_v37 = vpop.eup %6158  ;;  %v602_v35 = vmul.f32 0.0, %v6157_v52 }
 0x155   :  { %v603_v41 = vmul.f32 0.0, %v6159_v37 }
 0x159   :  { %v6161_v4 = vpop.eup %6160 }
 0x15a   :  { %v6163_v49 = vpop.eup %6162  ;;  %v584_v39 = vadd.f32 1.0, %v6161_v4  ;;  %v10370_v4 = vld [vmem:[#allocation22_spill] sm:$0xff] }
 0x15b   :  { %v6165_v1 = vpop.eup %6164  ;;  %v604_v53 = vmul.f32 %v6163_v49, %v6153_v3 }
 0x15c   :  { %v6167_v45 = vpop.eup %6166  ;;  %v587_v58 = vadd.f32 1.0, %v6165_v1  ;;  %v10371_v1 = vld [vmem:[#allocation35_spill] sm:$0xff] }
 0x15d   :  { %v605_v34 = vmul.f32 %v6167_v45, %v6155_v60  ;;  %v7421_v0 = vadd.f32 %v604_v53, %v602_v35  ;;  %v10369_v60 = vld [vmem:[#allocation34_spill] sm:$0xff]  ;;  %v10372_v35 = vld [vmem:[#allocation23_spill] sm:$0xff]  ;;  %v10373_v53 = vld [vmem:[#allocation36_spill] sm:$0xff] }
 0x15e   :  { %6168 = vrcp.f32 %v587_v58  ;;  %v10368_v58 = vld [vmem:[#allocation19_spill] sm:$0xff] }
 0x15f   :  { %v7423_v50 = vadd.f32 %v605_v34, %v603_v41  ;;  %6170 = vtanh.f32 %v7421_v0  ;;  %v10374_v41 = vld [vmem:[#allocation25_spill] sm:$0xff] }
 0x160   :  { %v10375_v34 = vld [vmem:[#allocation37_spill] sm:$0xff] }
 0x161   :  { %6172 = vtanh.f32 %v7423_v50 }
 0x162   :  { %6174 = vrcp.f32 %v584_v39  ;;  %v10376_v39 = vld [vmem:[#allocation26_spill] sm:$0xff] }
 0x16b   :  { %v6169_v56 = vpop.eup %6168 }
 0x16c   :  { %v6171_v47 = vpop.eup %6170 }
 0x16e   :  { %v6173_v51 = vpop.eup %6172 }
 0x16f   :  { %v611_v52 = vmul.f32 %v6173_v51, %v6169_v56  ;;  %v6175_v3 = vpop.eup %6174  ;;  %v10377_v56 = vld [vmem:[#allocation38_spill] sm:$0xff]  ;;  %v10379_v51 = vld [vmem:[#allocation39_spill] sm:$0xff] }
 0x170   :  { %v610_v49 = vmul.f32 %v6175_v3, %v6171_v47  ;;  %v10378_v47 = vld [vmem:[#allocation27_spill] sm:$0xff]  ;;  %v10381_v3 = vld [vmem:[#allocation40_spill] sm:$0xff] }
 0x171   :  { %v614_v37 = vrot.slane %v611_v52, 7  ;;  %v10380_v52 = vld [vmem:[#allocation28_spill] sm:$0xff] }
 0x173   :  { %v616_v45 = vsel %vm615_vm1, %v614_v37, %v610_v49  ;;  %v10382_v49 = vld [vmem:[#allocation29_spill] sm:$0xff] }
 0x174   :  { %618 = vst [vmem:[#allocation2] sm:$0x3] %v616_v45  ;;  %684 = vmatmul.mubr.f32.vlgmr.msra.gmra.mxu0 %v616_v45  ;;  %755 = vmatmul.mubr.f32.vlgmr.msra.gmra.mxu1 %v616_v45  ;;  %v10383_v37 = vld [vmem:[#allocation41_spill] sm:$0xff]  ;;  %v10384_v45 = vld [vmem:[#allocation30_spill] sm:$0xff] }
 0x175   :  { %850 = vmatpush1.msra.mxu0 %v7095_v5  ;;  %921 = vmatpush1.msra.mxu1 %v7186_v55 }
 0x176   :  { %851 = vmatprep.subr.mxu0 %v7097_v7  ;;  %922 = vmatprep.subr.mxu1 %v7193_v57 }
 0x177   :  { %852 = vmatpush1.msra.mxu0 %v7100_v9  ;;  %923 = vmatpush1.msra.mxu1 %v7199_v59 }
 0x178   :  { %853 = vmatprep.subr.mxu0 %v7103_v11  ;;  %924 = vmatprep.subr.mxu1 %v7205_v61 }
 0x179   :  { %854 = vmatpush1.msra.mxu0 %v7105_v13  ;;  %925 = vmatpush1.msra.mxu1 %v7211_v63 }
 0x17a   :  { %855 = vmatprep.subr.mxu0 %v7108_v15  ;;  %926 = vmatprep.subr.mxu1 %v7217_v2 }
 0x17b   :  { %856 = vmatpush1.msra.mxu0 %v7111_v17  ;;  %927 = vmatpush1.msra.mxu1 %v7223_v6 }
 0x17c   :  { %857 = vmatprep.subr.mxu0 %v7114_v19  ;;  %928 = vmatprep.subr.mxu1 %v7227_v8 }
 0x17d   :  { %858 = vmatpush1.msra.mxu0 %v7117_v21  ;;  %929 = vmatpush1.msra.mxu1 %v7231_v10 }
 0x17e   :  { %859 = vmatprep.subr.mxu0 %v7120_v23  ;;  %930 = vmatprep.subr.mxu1 %v7235_v12 }
 0x17f   :  { %860 = vmatpush1.msra.mxu0 %v7123_v25  ;;  %931 = vmatpush1.msra.mxu1 %v7238_v14 }
 0x180   :  { %861 = vmatprep.subr.mxu0 %v7132_v28  ;;  %932 = vmatprep.subr.mxu1 %v7242_v16 }
 0x181   :  { %862 = vmatpush1.msra.mxu0 %v7135_v30  ;;  %933 = vmatpush1.msra.mxu1 %v7246_v18 }
 0x182   :  { %863 = vmatprep.subr.mxu0 %v7139_v32  ;;  %934 = vmatprep.subr.mxu1 %v7251_v20 }
 0x183   :  { %864 = vmatpush1.msra.mxu0 %v10368_v58  ;;  %935 = vmatpush1.msra.mxu1 %v7255_v22 }
 0x184   :  { %865 = vmatprep.subr.mxu0 %v7145_v36  ;;  %936 = vmatprep.subr.mxu1 %v7259_v24 }
 0x185   :  { %866 = vmatpush1.msra.mxu0 %v7148_v38  ;;  %937 = vmatpush1.msra.mxu1 %v7263_v26 }
 0x186   :  { %867 = vmatprep.subr.mxu0 %v7151_v40  ;;  %938 = vmatprep.subr.mxu1 %v7267_v27 }
 0x187   :  { %868 = vmatpush1.msra.mxu0 %v7159_v42  ;;  %939 = vmatpush1.msra.mxu1 %v7271_v29 }
 0x188   :  { %869 = vmatprep.subr.mxu0 %v7163_v44  ;;  %940 = vmatprep.subr.mxu1 %v7275_v31 }
 0x189   :  { %870 = vmatpush1.msra.mxu0 %v7166_v46  ;;  %941 = vmatpush1.msra.mxu1 %v7279_v33 }
 0x18a   :  { %871 = vmatprep.subr.mxu0 %v7171_v48  ;;  %942 = vmatprep.subr.mxu1 %v10369_v60  ;;  %v10394_v48 = vld [vmem:[#allocation48_spill] sm:$0xff] }
 0x18b   :  { %872 = vmatpush1.msra.mxu0 %v10370_v4  ;;  %943 = vmatpush1.msra.mxu1 %v10371_v1 }
 0x18c   :  { %873 = vmatprep.subr.mxu0 %v10372_v35  ;;  %944 = vmatprep.subr.mxu1 %v10373_v53 }
 0x18d   :  { %874 = vmatpush1.msra.mxu0 %v10374_v41  ;;  %945 = vmatpush1.msra.mxu1 %v10375_v34  ;;  %v10385_v41 = vld [vmem:[#allocation42_spill] sm:$0xff]  ;;  %v10386_v34 = vld [vmem:[#allocation31_spill] sm:$0xff] }
 0x18e   :  { %875 = vmatprep.subr.mxu0 %v10376_v39  ;;  %946 = vmatprep.subr.mxu1 %v10377_v56  ;;  %v10387_v39 = vmov 0.0   ;;  %v10388_v56 = vld [vmem:[#allocation43_spill] sm:$0xff] }
 0x18f   :  { %876 = vmatpush1.msra.mxu0 %v10378_v47  ;;  %947 = vmatpush1.msra.mxu1 %v10379_v51  ;;  %v10389_v51 = vld [vmem:[#allocation18_spill] sm:$0xff]  ;;  %v10391_v47 = vld [vmem:[#allocation49_spill] sm:$0xff] }
 0x190   :  { %877 = vmatprep.subr.mxu0 %v10380_v52  ;;  %948 = vmatprep.subr.mxu1 %v10381_v3  ;;  %v10390_v52 = vld [vmem:[#allocation24_spill] sm:$0xff] }
 0x191   :  { %878 = vmatpush1.msra.mxu0 %v10382_v49  ;;  %949 = vmatpush1.msra.mxu1 %v10383_v37 }
 0x192   :  { %879 = vmatprep.subr.mxu0 %v10384_v45  ;;  %950 = vmatprep.subr.mxu1 %v10385_v41  ;;  %v10392_v45 = vld [vmem:[#allocation47_spill] sm:$0xff] }
 0x193   :  { %880 = vmatpush1.msra.mxu0 %v10386_v34  ;;  %913 = vmatprep.mubr.f32.mxu0 %v10387_v39  ;;  %v10393_v34 = vld [vmem:[#allocation50_spill] sm:$0xff] }
 0x194   :  { %951 = vmatpush1.msra.mxu1 %v10388_v56  ;;  %984 = vmatprep.mubr.f32.mxu1 %v10387_v39 }
 0x195   :  { %1084 = vmatprep.subr.mxu0 %v10389_v51  ;;  %1155 = vmatprep.subr.mxu1 %v10390_v52 }
 0x234   :  { %v685_v3 = vpop.f32.mrf.mxu0  ;;  %v756_v56 = vpop.f32.mrf.mxu1 }
 0x235   :  { %v765_v49 = vrot.slane %v685_v3, 7  ;;  %v781_v37 = vadd.f32 %v685_v3, %v10391_v47  ;;  %v767_v51 = vrot.slane %v756_v56, 7  ;;  %v783_v3 = vadd.f32 %v756_v56, %v7413_v43  ;;  %v10395_v47 = vld [vmem:[#allocation53_spill] sm:$0xff] }
 0x236   :  { %v687_v53 = vpop.f32.mrf.mxu0  ;;  %v758_v46 = vpop.f32.mrf.mxu1 }
 0x237   :  { %v777_v35 = vadd.f32 %v765_v49, %v10392_v45  ;;  %v5993_v41 = vmul.f32 -1.442695, %v781_v37  ;;  %v766_v1 = vrot.slane %v687_v53, 7  ;;  %v782_v4 = vadd.f32 %v687_v53, %v10393_v34 }
 0x238   :  { %v779_v49 = vadd.f32 %v767_v51, %v10395_v47  ;;  %v768_v37 = vrot.slane %v758_v46, 7  ;;  %v5995_v45 = vmul.f32 -1.442695, %v783_v3 }
 0x239   :  { %v5990_v60 = vmul.f32 -1.442695, %v777_v35  ;;  %6176 = vpow2.f32 %v5993_v41  ;;  %v778_v39 = vadd.f32 %v766_v1, %v10394_v48  ;;  %v5994_v33 = vmul.f32 -1.442695, %v782_v4 }
 0x23a   :  { %v5992_v31 = vmul.f32 -1.442695, %v779_v49  ;;  %v780_v35 = vadd.f32 %v768_v37, %v7411_v54  ;;  %v784_v41 = vadd.f32 %v758_v46, %v7416_v62 }
 0x23b   :  { %6178 = vpow2.f32 %v5990_v60  ;;  %v5991_v52 = vmul.f32 -1.442695, %v778_v39 }
 0x23c   :  { %6180 = vpow2.f32 %v5994_v33 }
 0x23d   :  { %6182 = vpow2.f32 %v5991_v52 }
 0x23e   :  { %6184 = vpow2.f32 %v5995_v45 }
 0x23f   :  { %6186 = vpow2.f32 %v5992_v31  ;;  %v826_v31 = vrot.slane %v7423_v50, 7 }
 0x240   :  { %6188 = vtanh.f32 %v780_v35  ;;  %v825_v35 = vrot.slane %v7421_v0, 7 }
 0x241   :  { %6190 = vtanh.f32 %v784_v41 }
 0x246   :  { %v6177_v53 = vpop.eup %6176 }
 0x247   :  { %v806_v1 = vadd.f32 1.0, %v6177_v53 }
 0x248   :  { %v6179_v60 = vpop.eup %6178 }
 0x249   :  { %v803_v4 = vadd.f32 1.0, %v6179_v60  ;;  %v6181_v33 = vpop.eup %6180  ;;  %6192 = vrcp.f32 %v806_v1 }
 0x24a   :  { %v6183_v39 = vpop.eup %6182  ;;  %v807_v56 = vadd.f32 1.0, %v6181_v33 }
 0x24b   :  { %6194 = vrcp.f32 %v803_v4  ;;  %v804_v52 = vadd.f32 1.0, %v6183_v39  ;;  %v6185_v51 = vpop.eup %6184 }
 0x24c   :  { %6196 = vrcp.f32 %v807_v56  ;;  %v6187_v3 = vpop.eup %6186  ;;  %v808_v45 = vadd.f32 1.0, %v6185_v51 }
 0x24d   :  { %6198 = vrcp.f32 %v804_v52  ;;  %v6189_v49 = vpop.eup %6188  ;;  %v805_v41 = vadd.f32 1.0, %v6187_v3 }
 0x24e   :  { %v6191_v37 = vpop.eup %6190  ;;  %6200 = vrcp.f32 %v808_v45 }
 0x24f   :  { %6202 = vrcp.f32 %v805_v41 }
 0x256   :  { %v6193_v46 = vpop.eup %6192 }
 0x257   :  { %v832_v33 = vmul.f32 %v6193_v46, %v6191_v37 }
 0x258   :  { %v6195_v53 = vpop.eup %6194 }
 0x259   :  { %v6197_v60 = vpop.eup %6196  ;;  %v831_v39 = vmul.f32 %v6195_v53, %v6189_v49 }
 0x25a   :  { %v6199_v62 = vpop.eup %6198  ;;  %v830_v1 = vmul.f32 %v6197_v60, %v826_v31 }
 0x25b   :  { %v829_v4 = vmul.f32 %v6199_v62, %v825_v35  ;;  %v6201_v50 = vpop.eup %6200 }
 0x25c   :  { %v7504_v56 = vadd.f32 %v832_v33, %v830_v1  ;;  %v6203_v51 = vpop.eup %6202  ;;  %v10424_v1 = vld [vmem:[#allocation55_spill] sm:$0xff] }
 0x25d   :  { %v7506_v52 = vadd.f32 %v831_v39, %v829_v4 }
 0x25e   :  { %6204 = vtanh.f32 %v7504_v56 }
 0x25f   :  { %6206 = vtanh.f32 %v7506_v52 }
 0x26b   :  { %v6205_v54 = vpop.eup %6204 }
 0x26c   :  { %v6207_v0 = vpop.eup %6206  ;;  %v838_v3 = vmul.f32 %v6205_v54, %v6201_v50  ;;  %v10415_v54 = vld [vmem:[#allocation30_spill] sm:$0xff] }
 0x26d   :  { %v837_v43 = vmul.f32 %v6207_v0, %v6203_v51  ;;  %v10425_v0 = vld [vmem:[#allocation54_spill] sm:$0xff] }
 0x26e   :  { %v841_v37 = vrot.slane %v838_v3, 7 }
 0x26f   :  { %v846_v62 = vrot.slane %v837_v43, 1 }
 0x270   :  { %v843_v49 = vsel %vm842_vm2, %v841_v37, %v837_v43 }
 0x271   :  { %845 = vst [vmem:[#allocation2 + $0x1] sm:$0x6] %v843_v49  ;;  %v847_v46 = vsel %vm615_vm1, %v838_v3, %v846_v62  ;;  %v10426_v62 = vld [vmem:[#allocation56_spill] sm:$0xff] }
 0x272   :  { %914 = vmatmul.mubr.f32.vlgmr.msra.gmra.mxu0 %v847_v46  ;;  %985 = vmatmul.mubr.f32.vlgmr.msra.gmra.mxu1 %v847_v46 }
 0x273   :  { %1085 = vmatpush1.msra.mxu0 %v7095_v5  ;;  %1156 = vmatpush1.msra.mxu1 %v7186_v55  ;;  %v10396_v5 = vld [vmem:[#allocation32_spill] sm:$0xff]  ;;  %v10416_v55 = vld [vmem:[#allocation42_spill] sm:$0xff] }
 0x274   :  { %1086 = vmatprep.subr.mxu0 %v7097_v7  ;;  %1157 = vmatprep.subr.mxu1 %v7193_v57  ;;  %v10397_v7 = vld [vmem:[#allocation20_spill] sm:$0xff]  ;;  %v10417_v57 = vld [vmem:[#allocation31_spill] sm:$0xff] }
 0x275   :  { %1087 = vmatpush1.msra.mxu0 %v7100_v9  ;;  %1158 = vmatpush1.msra.mxu1 %v7199_v59  ;;  %v10398_v9 = vld [vmem:[#allocation33_spill] sm:$0xff]  ;;  %v10418_v59 = vmov 0.0  }
 0x276   :  { %1088 = vmatprep.subr.mxu0 %v7103_v11  ;;  %1159 = vmatprep.subr.mxu1 %v7205_v61  ;;  %v10399_v11 = vld [vmem:[#allocation21_spill] sm:$0xff]  ;;  %v10419_v61 = vld [vmem:[#allocation43_spill] sm:$0xff] }
 0x277   :  { %1089 = vmatpush1.msra.mxu0 %v7105_v13  ;;  %1160 = vmatpush1.msra.mxu1 %v7211_v63  ;;  %v10400_v13 = vld [vmem:[#allocation34_spill] sm:$0xff]  ;;  %v7575_v63 = vld [vmem:[#allocation6 + $0x1e8] sm:$0xff] }
 0x278   :  { %1090 = vmatprep.subr.mxu0 %v7108_v15  ;;  %1161 = vmatprep.subr.mxu1 %v7217_v2  ;;  %v10401_v15 = vld [vmem:[#allocation22_spill] sm:$0xff]  ;;  %10420 = vst [vmem:[#allocation19_spill] sm:$0xff] %v7575_v63  ;;  %v10421_v2 = vld [vmem:[#allocation24_spill] sm:$0xff] }
 0x279   :  { %1091 = vmatpush1.msra.mxu0 %v7111_v17  ;;  %1162 = vmatpush1.msra.mxu1 %v7223_v6  ;;  %v10402_v17 = vld [vmem:[#allocation35_spill] sm:$0xff] }
 0x27a   :  { %1092 = vmatprep.subr.mxu0 %v7114_v19  ;;  %1163 = vmatprep.subr.mxu1 %v7227_v8  ;;  %v10403_v19 = vld [vmem:[#allocation23_spill] sm:$0xff] }
 0x27b   :  { %1093 = vmatpush1.msra.mxu0 %v7117_v21  ;;  %1164 = vmatpush1.msra.mxu1 %v7231_v10  ;;  %v10404_v21 = vld [vmem:[#allocation36_spill] sm:$0xff] }
 0x27c   :  { %1094 = vmatprep.subr.mxu0 %v7120_v23  ;;  %1165 = vmatprep.subr.mxu1 %v7235_v12  ;;  %v10405_v23 = vld [vmem:[#allocation25_spill] sm:$0xff] }
 0x27d   :  { %1095 = vmatpush1.msra.mxu0 %v7123_v25  ;;  %1166 = vmatpush1.msra.mxu1 %v7238_v14  ;;  %v10406_v25 = vld [vmem:[#allocation37_spill] sm:$0xff]  ;;  %v10422_v14 = vld [vmem:[#allocation47_spill] sm:$0xff] }
 0x27e   :  { %1096 = vmatprep.subr.mxu0 %v7132_v28  ;;  %1167 = vmatprep.subr.mxu1 %v7242_v16  ;;  %v10407_v28 = vld [vmem:[#allocation26_spill] sm:$0xff] }
 0x27f   :  { %1097 = vmatpush1.msra.mxu0 %v7135_v30  ;;  %1168 = vmatpush1.msra.mxu1 %v7246_v18  ;;  %v10408_v30 = vld [vmem:[#allocation38_spill] sm:$0xff]  ;;  %v10423_v18 = vld [vmem:[#allocation49_spill] sm:$0xff] }
 0x280   :  { %1098 = vmatprep.subr.mxu0 %v7139_v32  ;;  %1169 = vmatprep.subr.mxu1 %v7251_v20  ;;  %v10409_v32 = vld [vmem:[#allocation27_spill] sm:$0xff] }
 0x281   :  { %1099 = vmatpush1.msra.mxu0 %v10368_v58  ;;  %1170 = vmatpush1.msra.mxu1 %v7255_v22 }
 0x282   :  { %1100 = vmatprep.subr.mxu0 %v7145_v36  ;;  %1171 = vmatprep.subr.mxu1 %v7259_v24  ;;  %v10410_v36 = vld [vmem:[#allocation39_spill] sm:$0xff] }
 0x283   :  { %1101 = vmatpush1.msra.mxu0 %v7148_v38  ;;  %1172 = vmatpush1.msra.mxu1 %v7263_v26  ;;  %v10411_v38 = vld [vmem:[#allocation28_spill] sm:$0xff] }
 0x284   :  { %1102 = vmatprep.subr.mxu0 %v7151_v40  ;;  %1173 = vmatprep.subr.mxu1 %v7267_v27  ;;  %v10412_v40 = vld [vmem:[#allocation40_spill] sm:$0xff] }
 0x285   :  { %1103 = vmatpush1.msra.mxu0 %v7159_v42  ;;  %1174 = vmatpush1.msra.mxu1 %v7271_v29  ;;  %v10413_v42 = vld [vmem:[#allocation29_spill] sm:$0xff] }
 0x286   :  { %1104 = vmatprep.subr.mxu0 %v7163_v44  ;;  %1175 = vmatprep.subr.mxu1 %v10396_v5  ;;  %v10414_v44 = vld [vmem:[#allocation41_spill] sm:$0xff] }
 0x287   :  { %1105 = vmatpush1.msra.mxu0 %v10397_v7  ;;  %1176 = vmatpush1.msra.mxu1 %v10398_v9 }
 0x288   :  { %1106 = vmatprep.subr.mxu0 %v10399_v11  ;;  %1177 = vmatprep.subr.mxu1 %v10400_v13 }
 0x289   :  { %1107 = vmatpush1.msra.mxu0 %v10401_v15  ;;  %1178 = vmatpush1.msra.mxu1 %v10402_v17 }
 0x28a   :  { %1108 = vmatprep.subr.mxu0 %v10403_v19  ;;  %1179 = vmatprep.subr.mxu1 %v10404_v21 }
 0x28b   :  { %1109 = vmatpush1.msra.mxu0 %v10405_v23  ;;  %1180 = vmatpush1.msra.mxu1 %v10406_v25 }
 0x28c   :  { %1110 = vmatprep.subr.mxu0 %v10407_v28  ;;  %1181 = vmatprep.subr.mxu1 %v10408_v30  ;;  %v1059_v30 = vrot.slane %v7506_v52, 7 }
 0x28d   :  { %1111 = vmatpush1.msra.mxu0 %v10409_v32  ;;  %1182 = vmatpush1.msra.mxu1 %v10410_v36 }
 0x28e   :  { %1112 = vmatprep.subr.mxu0 %v10411_v38  ;;  %1183 = vmatprep.subr.mxu1 %v10412_v40  ;;  %v1060_v38 = vrot.slane %v7504_v56, 7 }
 0x28f   :  { %1113 = vmatpush1.msra.mxu0 %v10413_v42  ;;  %1184 = vmatpush1.msra.mxu1 %v10414_v44 }
 0x290   :  { %1114 = vmatprep.subr.mxu0 %v10415_v54  ;;  %1185 = vmatprep.subr.mxu1 %v10416_v55 }
 0x291   :  { %1115 = vmatpush1.msra.mxu0 %v10417_v57  ;;  %1148 = vmatprep.mubr.f32.mxu0 %v10418_v59 }
 0x292   :  { %1186 = vmatpush1.msra.mxu1 %v10419_v61  ;;  %1219 = vmatprep.mubr.f32.mxu1 %v10418_v59 }
 0x293   :  { %1319 = vmatprep.subr.mxu0 %v7575_v63  ;;  %1390 = vmatprep.subr.mxu1 %v10421_v2 }
 0x332   :  { %v915_v6 = vpop.f32.mrf.mxu0  ;;  %v986_v29 = vpop.f32.mrf.mxu1 }
 0x333   :  { %v995_v8 = vrot.slane %v915_v6, 6  ;;  %v999_v10 = vrot.slane %v915_v6, 7  ;;  %v997_v31 = vrot.slane %v986_v29, 6  ;;  %v1001_v60 = vrot.slane %v986_v29, 7  ;;  %v7599_v29 = vld [vmem:[#allocation6 + $0x1f0] sm:$0xff] }
 0x334   :  { %v917_v12 = vpop.f32.mrf.mxu0  ;;  %v988_v35 = vpop.f32.mrf.mxu1 }
 0x335   :  { %v1011_v16 = vadd.f32 %v995_v8, %v10422_v14  ;;  %v1015_v20 = vadd.f32 %v999_v10, %v10423_v18  ;;  %v996_v22 = vrot.slane %v917_v12, 6  ;;  %v1000_v24 = vrot.slane %v917_v12, 7 }
 0x336   :  { %v1013_v41 = vadd.f32 %v997_v31, %v10395_v47  ;;  %v1017_v33 = vadd.f32 %v1001_v60, %v10424_v1  ;;  %v998_v4 = vrot.slane %v988_v35, 6  ;;  %v1002_v39 = vrot.slane %v988_v35, 7  ;;  %v7614_v31 = vld [vmem:[#allocation6 + $0x1a8] sm:$0xff]  ;;  %v7617_v60 = vld [vmem:[#allocation6 + $0x1b8] sm:$0xff]  ;;  %v7620_v35 = vld [vmem:[#allocation6 + $0x1a0] sm:$0xff] }
 0x337   :  { %v5996_v26 = vmul.f32 -1.442695, %v1011_v16  ;;  %v5999_v27 = vmul.f32 -1.442695, %v1015_v20  ;;  %v1012_v43 = vadd.f32 %v996_v22, %v10394_v48  ;;  %v1016_v58 = vadd.f32 %v1000_v24, %v10393_v34 }
 0x338   :  { %v5998_v50 = vmul.f32 -1.442695, %v1013_v41  ;;  %v6001_v51 = vmul.f32 -1.442695, %v1017_v33  ;;  %v1014_v3 = vadd.f32 %v998_v4, %v10425_v0  ;;  %v1018_v49 = vadd.f32 %v1002_v39, %v10426_v62  ;;  %v7623_v41 = vld [vmem:[#allocation6 + $0x1b0] sm:$0xff]  ;;  %v7626_v33 = vld [vmem:[#allocation6 + $0x188] sm:$0xff] }
 0x339   :  { %6208 = vpow2.f32 %v5996_v26  ;;  %v5997_v53 = vmul.f32 -1.442695, %v1012_v43  ;;  %v6000_v45 = vmul.f32 -1.442695, %v1016_v58  ;;  %v7602_v43 = vld [vmem:[#allocation6 + $0x1c8] sm:$0xff]  ;;  %v7605_v58 = vld [vmem:[#allocation6 + $0x1d8] sm:$0xff] }
 0x33a   :  { %6210 = vpow2.f32 %v5999_v27  ;;  %v7596_v27 = vld [vmem:[#allocation6 + $0x1e0] sm:$0xff]  ;;  %v7629_v4 = vld [vmem:[#allocation6 + $0x198] sm:$0xff] }
 0x33b   :  { %6212 = vpow2.f32 %v5997_v53  ;;  %v7608_v53 = vld [vmem:[#allocation6 + $0x1c0] sm:$0xff] }
 0x33c   :  { %6214 = vpow2.f32 %v6000_v45  ;;  %v7611_v45 = vld [vmem:[#allocation6 + $0x1d0] sm:$0xff]  ;;  %v7632_v39 = vld [vmem:[#allocation6 + $0x180] sm:$0xff] }
 0x33d   :  { %6216 = vpow2.f32 %v5998_v50  ;;  %v7635_v50 = vld [vmem:[#allocation6 + $0x190] sm:$0xff] }
 0x33e   :  { %6218 = vpow2.f32 %v6001_v51  ;;  %v7638_v51 = vld [vmem:[#allocation6 + $0x168] sm:$0xff] }
 0x33f   :  { %6220 = vtanh.f32 %v1014_v3  ;;  %v7641_v3 = vld [vmem:[#allocation6 + $0x178] sm:$0xff] }
 0x340   :  { %6222 = vtanh.f32 %v1018_v49  ;;  %v7647_v49 = vld [vmem:[#allocation6 + $0x170] sm:$0xff] }
 0x346   :  { %v6209_v37 = vpop.eup %6208 }
 0x347   :  { %v6211_v46 = vpop.eup %6210  ;;  %v1037_v5 = vadd.f32 1.0, %v6209_v37  ;;  %v7644_v37 = vld [vmem:[#allocation6 + $0x160] sm:$0xff] }
 0x348   :  { %v1040_v7 = vadd.f32 1.0, %v6211_v46  ;;  %v6213_v9 = vpop.eup %6212  ;;  %v7650_v46 = vld [vmem:[#allocation6 + $0x148] sm:$0xff] }
 0x349   :  { %v6215_v11 = vpop.eup %6214  ;;  %6224 = vrcp.f32 %v1037_v5  ;;  %v1038_v13 = vadd.f32 1.0, %v6213_v9  ;;  %v7653_v5 = vld [vmem:[#allocation6 + $0x158] sm:$0xff]  ;;  %v7659_v9 = vld [vmem:[#allocation6 + $0x150] sm:$0xff] }
 0x34a   :  { %6226 = vrcp.f32 %v1040_v7  ;;  %v1041_v15 = vadd.f32 1.0, %v6215_v11  ;;  %v6217_v17 = vpop.eup %6216  ;;  %v7656_v7 = vld [vmem:[#allocation6 + $0x140] sm:$0xff]  ;;  %v7662_v11 = vld [vmem:[#allocation6 + $0x128] sm:$0xff] }
 0x34b   :  { %6228 = vrcp.f32 %v1038_v13  ;;  %v6219_v19 = vpop.eup %6218  ;;  %v1039_v32 = vadd.f32 1.0, %v6217_v17  ;;  %v7665_v13 = vld [vmem:[#allocation6 + $0x138] sm:$0xff]  ;;  %v7671_v17 = vld [vmem:[#allocation6 + $0x130] sm:$0xff] }
 0x34c   :  { %6230 = vrcp.f32 %v1041_v15  ;;  %v6221_v21 = vpop.eup %6220  ;;  %v1042_v40 = vadd.f32 1.0, %v6219_v19  ;;  %v7668_v15 = vld [vmem:[#allocation6 + $0x120] sm:$0xff]  ;;  %v7674_v19 = vld [vmem:[#allocation6 + $0x108] sm:$0xff] }
 0x34d   :  { %v6223_v23 = vpop.eup %6222  ;;  %6232 = vrcp.f32 %v1039_v32  ;;  %v7692_v32 = vld [vmem:[#allocation6 + $0xe0] sm:$0xff] }
 0x34e   :  { %6234 = vrcp.f32 %v1042_v40  ;;  %v7701_v40 = vld [vmem:[#allocation6 + $0xd8] sm:$0xff] }
 0x356   :  { %v6225_v25 = vpop.eup %6224 }
 0x357   :  { %v6227_v28 = vpop.eup %6226  ;;  %v1065_v54 = vmul.f32 %v6225_v25, %v6221_v21  ;;  %v7677_v21 = vld [vmem:[#allocation6 + $0x118] sm:$0xff]  ;;  %v7683_v25 = vld [vmem:[#allocation6 + $0x110] sm:$0xff] }
 0x358   :  { %v6229_v36 = vpop.eup %6228  ;;  %v1066_v57 = vmul.f32 %v6227_v28, %v6223_v23  ;;  %v7680_v23 = vld [vmem:[#allocation6 + $0x100] sm:$0xff]  ;;  %v7686_v28 = vld [vmem:[#allocation6 + $0xe8] sm:$0xff] }
 0x359   :  { %v6231_v42 = vpop.eup %6230  ;;  %v1063_v44 = vmul.f32 %v6229_v36, %v1059_v30  ;;  %v7689_v30 = vld [vmem:[#allocation6 + $0xf8] sm:$0xff]  ;;  %v7695_v36 = vld [vmem:[#allocation6 + $0xf0] sm:$0xff] }
 0x35a   :  { %v1064_v55 = vmul.f32 %v6231_v42, %v1060_v38  ;;  %v6233_v52 = vpop.eup %6232  ;;  %v7698_v38 = vld [vmem:[#allocation6 + $0xc8] sm:$0xff]  ;;  %v7704_v42 = vld [vmem:[#allocation6 + $0xc0] sm:$0xff] }
 0x35b   :  { %v7589_v61 = vadd.f32 %v1065_v54, %v1063_v44  ;;  %v6235_v6 = vpop.eup %6234  ;;  %v7707_v44 = vld [vmem:[#allocation6 + $0xd0] sm:$0xff]  ;;  %v7710_v54 = vld [vmem:[#allocation6 + $0xa8] sm:$0xff] }
 0x35c   :  { %v7591_v2 = vadd.f32 %v1066_v57, %v1064_v55  ;;  %10427 = vst [vmem:[#allocation18_spill] sm:$0xff] %v7710_v54  ;;  %v7713_v55 = vld [vmem:[#allocation6 + $0xb8] sm:$0xff]  ;;  %v7716_v57 = vld [vmem:[#allocation6 + $0xa0] sm:$0xff] }
 0x35d   :  { %6236 = vtanh.f32 %v7589_v61  ;;  %10428 = vst [vmem:[#allocation50_spill] sm:$0xff] %v7713_v55  ;;  %10429 = vst [vmem:[#allocation53_spill] sm:$0xff] %v7716_v57 }
 0x35e   :  { %6238 = vtanh.f32 %v7591_v2 }
 0x36a   :  { %v6237_v8 = vpop.eup %6236 }
 0x36b   :  { %v6239_v56 = vpop.eup %6238  ;;  %v1071_v10 = vmul.f32 %v6237_v8, %v6233_v52  ;;  %v7719_v52 = vld [vmem:[#allocation6 + $0xb0] sm:$0xff]  ;;  %v7725_v8 = vld [vmem:[#allocation6 + $0x98] sm:$0xff] }
 0x36c   :  { %v1072_v12 = vmul.f32 %v6239_v56, %v6235_v6  ;;  %10430 = vst [vmem:[#allocation32_spill] sm:$0xff] %v7719_v52  ;;  %v7722_v6 = vld [vmem:[#allocation6 + $0x88] sm:$0xff]  ;;  %10432 = vst [vmem:[#allocation33_spill] sm:$0xff] %v7725_v8  ;;  %v7728_v56 = vld [vmem:[#allocation6 + $0x80] sm:$0xff] }
 0x36d   :  { %v1080_v16 = vrot.slane %v1071_v10, 2  ;;  %10431 = vst [vmem:[#allocation20_spill] sm:$0xff] %v7722_v6  ;;  %10433 = vst [vmem:[#allocation21_spill] sm:$0xff] %v7728_v56 }
 0x36e   :  { %v1075_v20 = vrot.slane %v1072_v12, 7  ;;  %v1081_v22 = vrot.slane %v1072_v12, 1  ;;  %v7734_v12 = vld [vmem:[#allocation6 + $0x68] sm:$0xff] }
 0x36f   :  { %10435 = vst [vmem:[#allocation22_spill] sm:$0xff] %v7734_v12 }
 0x370   :  { %v1077_v24 = vsel %vm1076_vm3, %v1075_v20, %v1071_v10  ;;  %v1082_v26 = vsel %vm615_vm1, %v1081_v22, %v1080_v16  ;;  %v7731_v10 = vld [vmem:[#allocation6 + $0x90] sm:$0xff]  ;;  %v7737_v16 = vld [vmem:[#allocation6 + $0x78] sm:$0xff]  ;;  %v7740_v20 = vld [vmem:[#allocation6 + $0x60] sm:$0xff] }
 0x371   :  { %1079 = vst [vmem:[#allocation2 + $0x2] sm:$0xc] %v1077_v24  ;;  %1149 = vmatmul.mubr.f32.vlgmr.msra.gmra.mxu0 %v1082_v26  ;;  %1220 = vmatmul.mubr.f32.vlgmr.msra.gmra.mxu1 %v1082_v26  ;;  %10434 = vst [vmem:[#allocation34_spill] sm:$0xff] %v7731_v10  ;;  %v7743_v22 = vld [vmem:[#allocation6 + $0x70] sm:$0xff]  ;;  %v7746_v24 = vld [vmem:[#allocation6 + $0x48] sm:$0xff] }
 0x372   :  { %1320 = vmatpush1.msra.mxu0 %v7596_v27  ;;  %1391 = vmatpush1.msra.mxu1 %v7599_v29  ;;  %10436 = vst [vmem:[#allocation35_spill] sm:$0xff] %v7737_v16  ;;  %10437 = vst [vmem:[#allocation23_spill] sm:$0xff] %v7740_v20  ;;  %v7749_v26 = vld [vmem:[#allocation6 + $0x58] sm:$0xff] }
 0x373   :  { %1321 = vmatprep.subr.mxu0 %v7602_v43  ;;  %1392 = vmatprep.subr.mxu1 %v7605_v58  ;;  %10438 = vst [vmem:[#allocation36_spill] sm:$0xff] %v7743_v22  ;;  %10439 = vst [vmem:[#allocation25_spill] sm:$0xff] %v7746_v24 }
 0x374   :  { %1322 = vmatpush1.msra.mxu0 %v7608_v53  ;;  %1393 = vmatpush1.msra.mxu1 %v7611_v45  ;;  %10440 = vst [vmem:[#allocation37_spill] sm:$0xff] %v7749_v26 }
 0x375   :  { %1323 = vmatprep.subr.mxu0 %v7614_v31  ;;  %1394 = vmatprep.subr.mxu1 %v7617_v60 }
 0x376   :  { %1324 = vmatpush1.msra.mxu0 %v7620_v35  ;;  %1395 = vmatpush1.msra.mxu1 %v7623_v41 }
 0x377   :  { %1325 = vmatprep.subr.mxu0 %v7626_v33  ;;  %1396 = vmatprep.subr.mxu1 %v7629_v4 }
 0x378   :  { %1326 = vmatpush1.msra.mxu0 %v7632_v39  ;;  %1397 = vmatpush1.msra.mxu1 %v7635_v50 }
 0x379   :  { %1327 = vmatprep.subr.mxu0 %v7638_v51  ;;  %1398 = vmatprep.subr.mxu1 %v7641_v3 }
 0x37a   :  { %1328 = vmatpush1.msra.mxu0 %v7644_v37  ;;  %1399 = vmatpush1.msra.mxu1 %v7647_v49 }
 0x37b   :  { %1329 = vmatprep.subr.mxu0 %v7650_v46  ;;  %1400 = vmatprep.subr.mxu1 %v7653_v5 }
 0x37c   :  { %1330 = vmatpush1.msra.mxu0 %v7656_v7  ;;  %1401 = vmatpush1.msra.mxu1 %v7659_v9 }
 0x37d   :  { %1331 = vmatprep.subr.mxu0 %v7662_v11  ;;  %1402 = vmatprep.subr.mxu1 %v7665_v13 }
 0x37e   :  { %1332 = vmatpush1.msra.mxu0 %v7668_v15  ;;  %1403 = vmatpush1.msra.mxu1 %v7671_v17 }
 0x37f   :  { %1333 = vmatprep.subr.mxu0 %v7674_v19  ;;  %1404 = vmatprep.subr.mxu1 %v7677_v21 }
 0x380   :  { %1334 = vmatpush1.msra.mxu0 %v7680_v23  ;;  %1405 = vmatpush1.msra.mxu1 %v7683_v25 }
 0x381   :  { %1335 = vmatprep.subr.mxu0 %v7686_v28  ;;  %1406 = vmatprep.subr.mxu1 %v7689_v30 }
 0x382   :  { %1336 = vmatpush1.msra.mxu0 %v7692_v32  ;;  %1407 = vmatpush1.msra.mxu1 %v7695_v36 }
 0x383   :  { %1337 = vmatprep.subr.mxu0 %v7698_v38  ;;  %1408 = vmatprep.subr.mxu1 %v7701_v40 }
 0x384   :  { %1338 = vmatpush1.msra.mxu0 %v7704_v42  ;;  %1409 = vmatpush1.msra.mxu1 %v7707_v44 }
 0x385   :  { %1339 = vmatprep.subr.mxu0 %v7710_v54  ;;  %1410 = vmatprep.subr.mxu1 %v7713_v55 }
 0x386   :  { %1340 = vmatpush1.msra.mxu0 %v7716_v57  ;;  %1411 = vmatpush1.msra.mxu1 %v7719_v52 }
 0x387   :  { %1341 = vmatprep.subr.mxu0 %v7722_v6  ;;  %1412 = vmatprep.subr.mxu1 %v7725_v8 }
 0x388   :  { %1342 = vmatpush1.msra.mxu0 %v7728_v56  ;;  %1413 = vmatpush1.msra.mxu1 %v7731_v10 }
 0x389   :  { %1343 = vmatprep.subr.mxu0 %v7734_v12  ;;  %1414 = vmatprep.subr.mxu1 %v7737_v16  ;;  %v7752_v12 = vld [vmem:[#allocation6 + $0x40] sm:$0xff]  ;;  %v7755_v16 = vld [vmem:[#allocation6 + $0x50] sm:$0xff] }
 0x38a   :  { %1344 = vmatpush1.msra.mxu0 %v7740_v20  ;;  %1415 = vmatpush1.msra.mxu1 %v7743_v22  ;;  %10441 = vst [vmem:[#allocation26_spill] sm:$0xff] %v7752_v12  ;;  %10442 = vst [vmem:[#allocation38_spill] sm:$0xff] %v7755_v16  ;;  %v7758_v20 = vld [vmem:[#allocation6 + $0x28] sm:$0xff]  ;;  %v7761_v22 = vld [vmem:[#allocation6 + $0x38] sm:$0xff] }
 0x38b   :  { %1345 = vmatprep.subr.mxu0 %v7746_v24  ;;  %1416 = vmatprep.subr.mxu1 %v7749_v26  ;;  %10443 = vst [vmem:[#allocation27_spill] sm:$0xff] %v7758_v20  ;;  %10444 = vst [vmem:[#allocation39_spill] sm:$0xff] %v7761_v22  ;;  %v7764_v24 = vld [vmem:[#allocation6 + $0x20] sm:$0xff]  ;;  %v7767_v26 = vld [vmem:[#allocation6 + $0x30] sm:$0xff] }
 0x38c   :  { %1346 = vmatpush1.msra.mxu0 %v7752_v12  ;;  %1417 = vmatpush1.msra.mxu1 %v7755_v16  ;;  %10445 = vst [vmem:[#allocation28_spill] sm:$0xff] %v7764_v24  ;;  %10446 = vst [vmem:[#allocation40_spill] sm:$0xff] %v7767_v26  ;;  %v7770_v12 = vld [vmem:[#allocation6 + $0x8] sm:$0xff]  ;;  %v7773_v16 = vld [vmem:[#allocation6 + $0x18] sm:$0xff] }
 0x38d   :  { %1347 = vmatprep.subr.mxu0 %v7758_v20  ;;  %1418 = vmatprep.subr.mxu1 %v7761_v22  ;;  %10447 = vst [vmem:[#allocation29_spill] sm:$0xff] %v7770_v12  ;;  %10448 = vst [vmem:[#allocation41_spill] sm:$0xff] %v7773_v16  ;;  %v7776_v20 = vld [vmem:[#allocation6] sm:$0xff]  ;;  %v7780_v22 = vld [vmem:[#allocation6 + $0x10] sm:$0xff] }
 0x38e   :  { %1348 = vmatpush1.msra.mxu0 %v7764_v24  ;;  %1419 = vmatpush1.msra.mxu1 %v7767_v26  ;;  %10449 = vst [vmem:[#allocation30_spill] sm:$0xff] %v7776_v20  ;;  %10450 = vst [vmem:[#allocation42_spill] sm:$0xff] %v7780_v22  ;;  %v7785_v26 = vld [vmem:[#allocation6 + $0x1f8] sm:$0xff] }
 0x38f   :  { %1349 = vmatprep.subr.mxu0 %v7770_v12  ;;  %1420 = vmatprep.subr.mxu1 %v7773_v16  ;;  %10451 = vst [vmem:[#allocation31_spill] sm:$0xff] %v7785_v26 }
 0x390   :  { %1350 = vmatpush1.msra.mxu0 %v7776_v20  ;;  %1383 = vmatprep.mubr.f32.mxu0 %v10418_v59 }
 0x391   :  { %1421 = vmatpush1.msra.mxu1 %v7780_v22  ;;  %1454 = vmatprep.mubr.f32.mxu1 %v10418_v59 }
 0x392   :  { %1554 = vmatprep.subr.mxu0 %v7575_v63  ;;  %1625 = vmatprep.subr.mxu1 %v7785_v26 }
 0x431   :  { %v1150_v12 = vpop.f32.mrf.mxu0  ;;  %v1221_v57 = vpop.f32.mrf.mxu1 }
 0x432   :  { %v1230_v16 = vrot.slane %v1150_v12, 5  ;;  %v1234_v24 = vrot.slane %v1150_v12, 6  ;;  %v1232_v54 = vrot.slane %v1221_v57, 5  ;;  %v1236_v12 = vrot.slane %v1221_v57, 6 }
 0x433   :  { %v1152_v10 = vpop.f32.mrf.mxu0 }
 0x434   :  { %v1246_v20 = vadd.f32 %v1230_v16, %v10422_v14  ;;  %v1250_v56 = vadd.f32 %v1234_v24, %v10423_v18  ;;  %v1231_v8 = vrot.slane %v1152_v10, 5  ;;  %v1235_v6 = vrot.slane %v1152_v10, 6  ;;  %v1223_v16 = vpop.f32.mrf.mxu1 }
 0x435   :  { %v1248_v24 = vadd.f32 %v1232_v54, %v10395_v47  ;;  %v1252_v10 = vadd.f32 %v1236_v12, %v10424_v1 }
 0x436   :  { %v6002_v52 = vmul.f32 -1.442695, %v1246_v20  ;;  %v6005_v22 = vmul.f32 -1.442695, %v1250_v56  ;;  %v1247_v59 = vadd.f32 %v1231_v8, %v10394_v48  ;;  %v1251_v63 = vadd.f32 %v1235_v6, %v10393_v34 }
 0x437   :  { %v1233_v20 = vrot.slane %v1223_v16, 5  ;;  %v1237_v56 = vrot.slane %v1223_v16, 6  ;;  %v6004_v18 = vmul.f32 -1.442695, %v1248_v24  ;;  %v6007_v14 = vmul.f32 -1.442695, %v1252_v10 }
 0x438   :  { %6240 = vpow2.f32 %v6002_v52  ;;  %v6003_v26 = vmul.f32 -1.442695, %v1247_v59  ;;  %v6006_v55 = vmul.f32 -1.442695, %v1251_v63 }
 0x439   :  { %6242 = vpow2.f32 %v6005_v22  ;;  %v1249_v8 = vadd.f32 %v1233_v20, %v10425_v0  ;;  %v1253_v52 = vadd.f32 %v1237_v56, %v10426_v62 }
 0x43a   :  { %6244 = vpow2.f32 %v6003_v26 }
 0x43b   :  { %6246 = vpow2.f32 %v6006_v55 }
 0x43c   :  { %6248 = vpow2.f32 %v6004_v18  ;;  %v1294_v18 = vrot.slane %v7589_v61, 7 }
 0x43d   :  { %6250 = vpow2.f32 %v6007_v14 }
 0x43e   :  { %6252 = vtanh.f32 %v1249_v8  ;;  %v1295_v8 = vrot.slane %v7591_v2, 7 }
 0x43f   :  { %6254 = vtanh.f32 %v1253_v52 }
 0x445   :  { %v6241_v6 = vpop.eup %6240 }
 0x446   :  { %v6243_v59 = vpop.eup %6242  ;;  %v1272_v63 = vadd.f32 1.0, %v6241_v6 }
 0x447   :  { %v1275_v57 = vadd.f32 1.0, %v6243_v59  ;;  %v6245_v55 = vpop.eup %6244 }
 0x448   :  { %v6247_v54 = vpop.eup %6246  ;;  %6256 = vrcp.f32 %v1272_v63  ;;  %v1273_v22 = vadd.f32 1.0, %v6245_v55 }
 0x449   :  { %6258 = vrcp.f32 %v1275_v57  ;;  %v1276_v26 = vadd.f32 1.0, %v6247_v54  ;;  %v6249_v12 = vpop.eup %6248 }
 0x44a   :  { %6260 = vrcp.f32 %v1273_v22  ;;  %v6251_v16 = vpop.eup %6250  ;;  %v1274_v6 = vadd.f32 1.0, %v6249_v12 }
 0x44b   :  { %6262 = vrcp.f32 %v1276_v26  ;;  %v6253_v24 = vpop.eup %6252  ;;  %v1277_v52 = vadd.f32 1.0, %v6251_v16 }
 0x44c   :  { %v6255_v10 = vpop.eup %6254  ;;  %6264 = vrcp.f32 %v1274_v6  ;;  %v10454_v6 = vld [vmem:[#allocation53_spill] sm:$0xff] }
 0x44d   :  { %6266 = vrcp.f32 %v1277_v52  ;;  %v10457_v52 = vld [vmem:[#allocation33_spill] sm:$0xff] }
 0x455   :  { %v6257_v20 = vpop.eup %6256 }
 0x456   :  { %v6259_v56 = vpop.eup %6258  ;;  %v1300_v55 = vmul.f32 %v6257_v20, %v6253_v24 }
 0x457   :  { %v6261_v14 = vpop.eup %6260  ;;  %v1301_v54 = vmul.f32 %v6259_v56, %v6255_v10 }
 0x458   :  { %v6263_v59 = vpop.eup %6262  ;;  %v1298_v63 = vmul.f32 %v6261_v14, %v1294_v18  ;;  %v10455_v14 = vld [vmem:[#allocation32_spill] sm:$0xff] }
 0x459   :  { %v1299_v57 = vmul.f32 %v6263_v59, %v1295_v8  ;;  %v6265_v61 = vpop.eup %6264  ;;  %v10456_v8 = vld [vmem:[#allocation20_spill] sm:$0xff]  ;;  %v10458_v59 = vld [vmem:[#allocation21_spill] sm:$0xff] }
 0x45a   :  { %v7798_v22 = vadd.f32 %v1300_v55, %v1298_v63  ;;  %v6267_v12 = vpop.eup %6266  ;;  %v10459_v63 = vld [vmem:[#allocation34_spill] sm:$0xff] }
 0x45b   :  { %v7800_v26 = vadd.f32 %v1301_v54, %v1299_v57  ;;  %v10460_v55 = vld [vmem:[#allocation22_spill] sm:$0xff]  ;;  %v10461_v57 = vld [vmem:[#allocation35_spill] sm:$0xff] }
 0x45c   :  { %6268 = vtanh.f32 %v7798_v22  ;;  %v10462_v54 = vld [vmem:[#allocation23_spill] sm:$0xff] }
 0x45d   :  { %6270 = vtanh.f32 %v7800_v26 }
 0x469   :  { %v6269_v62 = vpop.eup %6268 }
 0x46a   :  { %v6271_v2 = vpop.eup %6270  ;;  %v1306_v16 = vmul.f32 %v6269_v62, %v6265_v61  ;;  %v10453_v62 = vld [vmem:[#allocation50_spill] sm:$0xff]  ;;  %v10463_v61 = vld [vmem:[#allocation36_spill] sm:$0xff] }
 0x46b   :  { %v1307_v0 = vmul.f32 %v6271_v2, %v6267_v12  ;;  %v10464_v12 = vld [vmem:[#allocation25_spill] sm:$0xff] }
 0x46c   :  { %v1315_v24 = vrot.slane %v1306_v16, 3  ;;  %v10465_v2 = vld [vmem:[#allocation37_spill] sm:$0xff] }
 0x46d   :  { %v1310_v20 = vrot.slane %v1307_v0, 7  ;;  %v1316_v10 = vrot.slane %v1307_v0, 2  ;;  %v10452_v0 = vld [vmem:[#allocation18_spill] sm:$0xff] }
 0x46f   :  { %v1312_v56 = vsel %vm1311_vm4, %v1310_v20, %v1306_v16  ;;  %v1317_v18 = vsel %vm615_vm1, %v1316_v10, %v1315_v24  ;;  %v10466_v16 = vld [vmem:[#allocation26_spill] sm:$0xff]  ;;  %v10468_v20 = vld [vmem:[#allocation27_spill] sm:$0xff] }
 0x470   :  { %1314 = vst [vmem:[#allocation2 + $0x3] sm:$0x18] %v1312_v56  ;;  %1384 = vmatmul.mubr.f32.vlgmr.msra.gmra.mxu0 %v1317_v18  ;;  %1455 = vmatmul.mubr.f32.vlgmr.msra.gmra.mxu1 %v1317_v18  ;;  %v10467_v24 = vld [vmem:[#allocation38_spill] sm:$0xff]  ;;  %v10469_v10 = vld [vmem:[#allocation39_spill] sm:$0xff]  ;;  %v10470_v56 = vld [vmem:[#allocation28_spill] sm:$0xff] }
 0x471   :  { %1555 = vmatpush1.msra.mxu0 %v7596_v27  ;;  %1626 = vmatpush1.msra.mxu1 %v7599_v29  ;;  %v10471_v18 = vld [vmem:[#allocation40_spill] sm:$0xff] }
 0x472   :  { %1556 = vmatprep.subr.mxu0 %v7602_v43  ;;  %1627 = vmatprep.subr.mxu1 %v7605_v58 }
 0x473   :  { %1557 = vmatpush1.msra.mxu0 %v7608_v53  ;;  %1628 = vmatpush1.msra.mxu1 %v7611_v45 }
 0x474   :  { %1558 = vmatprep.subr.mxu0 %v7614_v31  ;;  %1629 = vmatprep.subr.mxu1 %v7617_v60 }
 0x475   :  { %1559 = vmatpush1.msra.mxu0 %v7620_v35  ;;  %1630 = vmatpush1.msra.mxu1 %v7623_v41 }
 0x476   :  { %1560 = vmatprep.subr.mxu0 %v7626_v33  ;;  %1631 = vmatprep.subr.mxu1 %v7629_v4 }
 0x477   :  { %1561 = vmatpush1.msra.mxu0 %v7632_v39  ;;  %1632 = vmatpush1.msra.mxu1 %v7635_v50 }
 0x478   :  { %1562 = vmatprep.subr.mxu0 %v7638_v51  ;;  %1633 = vmatprep.subr.mxu1 %v7641_v3 }
 0x479   :  { %1563 = vmatpush1.msra.mxu0 %v7644_v37  ;;  %1634 = vmatpush1.msra.mxu1 %v7647_v49 }
 0x47a   :  { %1564 = vmatprep.subr.mxu0 %v7650_v46  ;;  %1635 = vmatprep.subr.mxu1 %v7653_v5 }
 0x47b   :  { %1565 = vmatpush1.msra.mxu0 %v7656_v7  ;;  %1636 = vmatpush1.msra.mxu1 %v7659_v9 }
 0x47c   :  { %1566 = vmatprep.subr.mxu0 %v7662_v11  ;;  %1637 = vmatprep.subr.mxu1 %v7665_v13 }
 0x47d   :  { %1567 = vmatpush1.msra.mxu0 %v7668_v15  ;;  %1638 = vmatpush1.msra.mxu1 %v7671_v17 }
 0x47e   :  { %1568 = vmatprep.subr.mxu0 %v7674_v19  ;;  %1639 = vmatprep.subr.mxu1 %v7677_v21 }
 0x47f   :  { %1569 = vmatpush1.msra.mxu0 %v7680_v23  ;;  %1640 = vmatpush1.msra.mxu1 %v7683_v25 }
 0x480   :  { %1570 = vmatprep.subr.mxu0 %v7686_v28  ;;  %1641 = vmatprep.subr.mxu1 %v7689_v30 }
 0x481   :  { %1571 = vmatpush1.msra.mxu0 %v7692_v32  ;;  %1642 = vmatpush1.msra.mxu1 %v7695_v36 }
 0x482   :  { %1572 = vmatprep.subr.mxu0 %v7698_v38  ;;  %1643 = vmatprep.subr.mxu1 %v7701_v40 }
 0x483   :  { %1573 = vmatpush1.msra.mxu0 %v7704_v42  ;;  %1644 = vmatpush1.msra.mxu1 %v7707_v44 }
 0x484   :  { %1574 = vmatprep.subr.mxu0 %v10452_v0  ;;  %1645 = vmatprep.subr.mxu1 %v10453_v62 }
 0x485   :  { %1575 = vmatpush1.msra.mxu0 %v10454_v6  ;;  %1646 = vmatpush1.msra.mxu1 %v10455_v14 }
 0x486   :  { %1576 = vmatprep.subr.mxu0 %v10456_v8  ;;  %1647 = vmatprep.subr.mxu1 %v10457_v52 }
 0x487   :  { %1577 = vmatpush1.msra.mxu0 %v10458_v59  ;;  %1648 = vmatpush1.msra.mxu1 %v10459_v63  ;;  %v10480_v63 = vld [vmem:[#allocation49_spill] sm:$0xff] }
 0x488   :  { %1578 = vmatprep.subr.mxu0 %v10460_v55  ;;  %1649 = vmatprep.subr.mxu1 %v10461_v57  ;;  %v10472_v57 = vld [vmem:[#allocation29_spill] sm:$0xff]  ;;  %v10479_v55 = vld [vmem:[#allocation47_spill] sm:$0xff] }
 0x489   :  { %1579 = vmatpush1.msra.mxu0 %v10462_v54  ;;  %1650 = vmatpush1.msra.mxu1 %v10463_v61  ;;  %v10473_v54 = vld [vmem:[#allocation41_spill] sm:$0xff]  ;;  %v10474_v61 = vld [vmem:[#allocation30_spill] sm:$0xff] }
 0x48a   :  { %1580 = vmatprep.subr.mxu0 %v10464_v12  ;;  %1651 = vmatprep.subr.mxu1 %v10465_v2  ;;  %v10475_v12 = vmov 0.0   ;;  %v10476_v2 = vld [vmem:[#allocation42_spill] sm:$0xff] }
 0x48b   :  { %1581 = vmatpush1.msra.mxu0 %v10466_v16  ;;  %1652 = vmatpush1.msra.mxu1 %v10467_v24  ;;  %v10477_v24 = vld [vmem:[#allocation19_spill] sm:$0xff] }
 0x48c   :  { %1582 = vmatprep.subr.mxu0 %v10468_v20  ;;  %1653 = vmatprep.subr.mxu1 %v10469_v10  ;;  %v10478_v20 = vld [vmem:[#allocation31_spill] sm:$0xff] }
 0x48d   :  { %1583 = vmatpush1.msra.mxu0 %v10470_v56  ;;  %1654 = vmatpush1.msra.mxu1 %v10471_v18 }
 0x48e   :  { %1584 = vmatprep.subr.mxu0 %v10472_v57  ;;  %1655 = vmatprep.subr.mxu1 %v10473_v54 }
 0x48f   :  { %1585 = vmatpush1.msra.mxu0 %v10474_v61  ;;  %1618 = vmatprep.mubr.f32.mxu0 %v10475_v12 }
 0x490   :  { %1656 = vmatpush1.msra.mxu1 %v10476_v2  ;;  %1689 = vmatprep.mubr.f32.mxu1 %v10475_v12 }
 0x491   :  { %1789 = vmatprep.subr.mxu0 %v10477_v24  ;;  %1860 = vmatprep.subr.mxu1 %v10478_v20 }
 0x530   :  { %v1385_v10 = vpop.f32.mrf.mxu0  ;;  %v1456_v14 = vpop.f32.mrf.mxu1 }
 0x531   :  { %v1465_v56 = vrot.slane %v1385_v10, 4  ;;  %v1469_v16 = vrot.slane %v1385_v10, 5  ;;  %v1467_v6 = vrot.slane %v1456_v14, 4  ;;  %v1471_v10 = vrot.slane %v1456_v14, 5 }
 0x532   :  { %v1387_v18 = vpop.f32.mrf.mxu0 }
 0x533   :  { %v1481_v57 = vadd.f32 %v1465_v56, %v10479_v55  ;;  %v1485_v54 = vadd.f32 %v1469_v16, %v10480_v63  ;;  %v1466_v59 = vrot.slane %v1387_v18, 4  ;;  %v1470_v61 = vrot.slane %v1387_v18, 5  ;;  %v1458_v56 = vpop.f32.mrf.mxu1 }
 0x534   :  { %v1483_v16 = vadd.f32 %v1467_v6, %v10395_v47  ;;  %v1487_v18 = vadd.f32 %v1471_v10, %v10424_v1 }
 0x535   :  { %v6008_v52 = vmul.f32 -1.442695, %v1481_v57  ;;  %v6011_v8 = vmul.f32 -1.442695, %v1485_v54  ;;  %v1482_v2 = vadd.f32 %v1466_v59, %v10394_v48  ;;  %v1486_v12 = vadd.f32 %v1470_v61, %v10393_v34  ;;  %v10481_v59 = vld [vmem:[#allocation54_spill] sm:$0xff] }
 0x536   :  { %v1468_v57 = vrot.slane %v1458_v56, 4  ;;  %v1472_v54 = vrot.slane %v1458_v56, 5  ;;  %v6010_v63 = vmul.f32 -1.442695, %v1483_v16  ;;  %v6013_v55 = vmul.f32 -1.442695, %v1487_v18 }
 0x537   :  { %6272 = vpow2.f32 %v6008_v52  ;;  %v6009_v20 = vmul.f32 -1.442695, %v1482_v2  ;;  %v6012_v24 = vmul.f32 -1.442695, %v1486_v12  ;;  %v10482_v52 = vld [vmem:[#allocation56_spill] sm:$0xff] }
 0x538   :  { %6274 = vpow2.f32 %v6011_v8  ;;  %v1484_v48 = vadd.f32 %v1468_v57, %v10481_v59  ;;  %v1488_v8 = vadd.f32 %v1472_v54, %v10482_v52 }
 0x539   :  { %6276 = vpow2.f32 %v6009_v20 }
 0x53a   :  { %6278 = vpow2.f32 %v6012_v24 }
 0x53b   :  { %6280 = vpow2.f32 %v6010_v63  ;;  %v1529_v63 = vrot.slane %v7798_v22, 7 }
 0x53c   :  { %6282 = vpow2.f32 %v6013_v55 }
 0x53d   :  { %6284 = vtanh.f32 %v1484_v48  ;;  %v1530_v48 = vrot.slane %v7800_v26, 7 }
 0x53e   :  { %6286 = vtanh.f32 %v1488_v8 }
 0x544   :  { %v6273_v61 = vpop.eup %6272 }
 0x545   :  { %v6275_v2 = vpop.eup %6274  ;;  %v1507_v12 = vadd.f32 1.0, %v6273_v61 }
 0x546   :  { %v1510_v14 = vadd.f32 1.0, %v6275_v2  ;;  %v6277_v24 = vpop.eup %6276 }
 0x547   :  { %v6279_v6 = vpop.eup %6278  ;;  %6288 = vrcp.f32 %v1507_v12  ;;  %v1508_v20 = vadd.f32 1.0, %v6277_v24 }
 0x548   :  { %6290 = vrcp.f32 %v1510_v14  ;;  %v1511_v10 = vadd.f32 1.0, %v6279_v6  ;;  %v6281_v56 = vpop.eup %6280 }
 0x549   :  { %6292 = vrcp.f32 %v1508_v20  ;;  %v6283_v16 = vpop.eup %6282  ;;  %v1509_v61 = vadd.f32 1.0, %v6281_v56 }
 0x54a   :  { %6294 = vrcp.f32 %v1511_v10  ;;  %v6285_v18 = vpop.eup %6284  ;;  %v1512_v8 = vadd.f32 1.0, %v6283_v16 }
 0x54b   :  { %v6287_v57 = vpop.eup %6286  ;;  %6296 = vrcp.f32 %v1509_v61  ;;  %v10485_v61 = vld [vmem:[#allocation20_spill] sm:$0xff] }
 0x54c   :  { %6298 = vrcp.f32 %v1512_v8  ;;  %v10488_v8 = vld [vmem:[#allocation34_spill] sm:$0xff] }
 0x554   :  { %v6289_v54 = vpop.eup %6288 }
 0x555   :  { %v6291_v52 = vpop.eup %6290  ;;  %v1535_v24 = vmul.f32 %v6289_v54, %v6285_v18 }
 0x556   :  { %v6293_v55 = vpop.eup %6292  ;;  %v1536_v6 = vmul.f32 %v6291_v52, %v6287_v57 }
 0x557   :  { %v6295_v2 = vpop.eup %6294  ;;  %v1533_v12 = vmul.f32 %v6293_v55, %v1529_v63  ;;  %v10486_v55 = vld [vmem:[#allocation33_spill] sm:$0xff] }
 0x558   :  { %v1534_v14 = vmul.f32 %v6295_v2, %v1530_v48  ;;  %v6297_v22 = vpop.eup %6296  ;;  %v10487_v48 = vld [vmem:[#allocation21_spill] sm:$0xff]  ;;  %v10489_v2 = vld [vmem:[#allocation22_spill] sm:$0xff] }
 0x559   :  { %v7881_v20 = vadd.f32 %v1535_v24, %v1533_v12  ;;  %v6299_v56 = vpop.eup %6298  ;;  %v10490_v12 = vld [vmem:[#allocation35_spill] sm:$0xff] }
 0x55a   :  { %v7883_v10 = vadd.f32 %v1536_v6, %v1534_v14  ;;  %v10491_v24 = vld [vmem:[#allocation23_spill] sm:$0xff]  ;;  %v10492_v14 = vld [vmem:[#allocation36_spill] sm:$0xff]  ;;  %v10493_v6 = vld [vmem:[#allocation25_spill] sm:$0xff] }
 0x55b   :  { %6300 = vtanh.f32 %v7881_v20 }
 0x55c   :  { %6302 = vtanh.f32 %v7883_v10 }
 0x568   :  { %v6301_v59 = vpop.eup %6300 }
 0x569   :  { %v6303_v26 = vpop.eup %6302  ;;  %v1541_v16 = vmul.f32 %v6301_v59, %v6297_v22  ;;  %v10484_v59 = vld [vmem:[#allocation32_spill] sm:$0xff]  ;;  %v10494_v22 = vld [vmem:[#allocation37_spill] sm:$0xff] }
 0x56a   :  { %v1542_v1 = vmul.f32 %v6303_v26, %v6299_v56  ;;  %v10495_v56 = vld [vmem:[#allocation26_spill] sm:$0xff] }
 0x56b   :  { %v1550_v18 = vrot.slane %v1541_v16, 4  ;;  %v10496_v26 = vld [vmem:[#allocation38_spill] sm:$0xff] }
 0x56c   :  { %v1545_v54 = vrot.slane %v1542_v1, 7  ;;  %v1551_v52 = vrot.slane %v1542_v1, 3  ;;  %v10483_v1 = vld [vmem:[#allocation53_spill] sm:$0xff] }
 0x56e   :  { %v1547_v57 = vsel %vm1546_vm5, %v1545_v54, %v1541_v16  ;;  %v1552_v63 = vsel %vm615_vm1, %v1551_v52, %v1550_v18  ;;  %v10497_v16 = vld [vmem:[#allocation27_spill] sm:$0xff]  ;;  %v10499_v54 = vld [vmem:[#allocation28_spill] sm:$0xff] }
 0x56f   :  { %1549 = vst [vmem:[#allocation2 + $0x4] sm:$0x30] %v1547_v57  ;;  %1619 = vmatmul.mubr.f32.vlgmr.msra.gmra.mxu0 %v1552_v63  ;;  %1690 = vmatmul.mubr.f32.vlgmr.msra.gmra.mxu1 %v1552_v63  ;;  %v10498_v18 = vld [vmem:[#allocation39_spill] sm:$0xff]  ;;  %v10500_v52 = vld [vmem:[#allocation40_spill] sm:$0xff]  ;;  %v10501_v57 = vld [vmem:[#allocation29_spill] sm:$0xff] }
 0x570   :  { %1790 = vmatpush1.msra.mxu0 %v7596_v27  ;;  %1861 = vmatpush1.msra.mxu1 %v7599_v29  ;;  %v10502_v63 = vld [vmem:[#allocation41_spill] sm:$0xff] }
 0x571   :  { %1791 = vmatprep.subr.mxu0 %v7602_v43  ;;  %1862 = vmatprep.subr.mxu1 %v7605_v58 }
 0x572   :  { %1792 = vmatpush1.msra.mxu0 %v7608_v53  ;;  %1863 = vmatpush1.msra.mxu1 %v7611_v45 }
 0x573   :  { %1793 = vmatprep.subr.mxu0 %v7614_v31  ;;  %1864 = vmatprep.subr.mxu1 %v7617_v60 }
 0x574   :  { %1794 = vmatpush1.msra.mxu0 %v7620_v35  ;;  %1865 = vmatpush1.msra.mxu1 %v7623_v41 }
 0x575   :  { %1795 = vmatprep.subr.mxu0 %v7626_v33  ;;  %1866 = vmatprep.subr.mxu1 %v7629_v4 }
 0x576   :  { %1796 = vmatpush1.msra.mxu0 %v7632_v39  ;;  %1867 = vmatpush1.msra.mxu1 %v7635_v50 }
 0x577   :  { %1797 = vmatprep.subr.mxu0 %v7638_v51  ;;  %1868 = vmatprep.subr.mxu1 %v7641_v3 }
 0x578   :  { %1798 = vmatpush1.msra.mxu0 %v7644_v37  ;;  %1869 = vmatpush1.msra.mxu1 %v7647_v49 }
 0x579   :  { %1799 = vmatprep.subr.mxu0 %v7650_v46  ;;  %1870 = vmatprep.subr.mxu1 %v7653_v5 }
 0x57a   :  { %1800 = vmatpush1.msra.mxu0 %v7656_v7  ;;  %1871 = vmatpush1.msra.mxu1 %v7659_v9 }
 0x57b   :  { %1801 = vmatprep.subr.mxu0 %v7662_v11  ;;  %1872 = vmatprep.subr.mxu1 %v7665_v13 }
 0x57c   :  { %1802 = vmatpush1.msra.mxu0 %v7668_v15  ;;  %1873 = vmatpush1.msra.mxu1 %v7671_v17 }
 0x57d   :  { %1803 = vmatprep.subr.mxu0 %v7674_v19  ;;  %1874 = vmatprep.subr.mxu1 %v7677_v21 }
 0x57e   :  { %1804 = vmatpush1.msra.mxu0 %v7680_v23  ;;  %1875 = vmatpush1.msra.mxu1 %v7683_v25 }
 0x57f   :  { %1805 = vmatprep.subr.mxu0 %v7686_v28  ;;  %1876 = vmatprep.subr.mxu1 %v7689_v30 }
 0x580   :  { %1806 = vmatpush1.msra.mxu0 %v7692_v32  ;;  %1877 = vmatpush1.msra.mxu1 %v7695_v36 }
 0x581   :  { %1807 = vmatprep.subr.mxu0 %v7698_v38  ;;  %1878 = vmatprep.subr.mxu1 %v7701_v40 }
 0x582   :  { %1808 = vmatpush1.msra.mxu0 %v7704_v42  ;;  %1879 = vmatpush1.msra.mxu1 %v7707_v44 }
 0x583   :  { %1809 = vmatprep.subr.mxu0 %v10452_v0  ;;  %1880 = vmatprep.subr.mxu1 %v10453_v62 }
 0x584   :  { %1810 = vmatpush1.msra.mxu0 %v10483_v1  ;;  %1881 = vmatpush1.msra.mxu1 %v10484_v59 }
 0x585   :  { %1811 = vmatprep.subr.mxu0 %v10485_v61  ;;  %1882 = vmatprep.subr.mxu1 %v10486_v55 }
 0x586   :  { %1812 = vmatpush1.msra.mxu0 %v10487_v48  ;;  %1883 = vmatpush1.msra.mxu1 %v10488_v8 }
 0x587   :  { %1813 = vmatprep.subr.mxu0 %v10489_v2  ;;  %1884 = vmatprep.subr.mxu1 %v10490_v12  ;;  %v10509_v12 = vld [vmem:[#allocation49_spill] sm:$0xff] }
 0x588   :  { %1814 = vmatpush1.msra.mxu0 %v10491_v24  ;;  %1885 = vmatpush1.msra.mxu1 %v10492_v14  ;;  %v10503_v14 = vld [vmem:[#allocation30_spill] sm:$0xff]  ;;  %v10508_v24 = vld [vmem:[#allocation47_spill] sm:$0xff] }
 0x589   :  { %1815 = vmatprep.subr.mxu0 %v10493_v6  ;;  %1886 = vmatprep.subr.mxu1 %v10494_v22  ;;  %v10504_v6 = vmov 0.0   ;;  %v10505_v22 = vld [vmem:[#allocation42_spill] sm:$0xff] }
 0x58a   :  { %1816 = vmatpush1.msra.mxu0 %v10495_v56  ;;  %1887 = vmatpush1.msra.mxu1 %v10496_v26  ;;  %v10506_v26 = vld [vmem:[#allocation19_spill] sm:$0xff] }
 0x58b   :  { %1817 = vmatprep.subr.mxu0 %v10497_v16  ;;  %1888 = vmatprep.subr.mxu1 %v10498_v18  ;;  %v10507_v16 = vld [vmem:[#allocation31_spill] sm:$0xff] }
 0x58c   :  { %1818 = vmatpush1.msra.mxu0 %v10499_v54  ;;  %1889 = vmatpush1.msra.mxu1 %v10500_v52 }
 0x58d   :  { %1819 = vmatprep.subr.mxu0 %v10501_v57  ;;  %1890 = vmatprep.subr.mxu1 %v10502_v63 }
 0x58e   :  { %1820 = vmatpush1.msra.mxu0 %v10503_v14  ;;  %1853 = vmatprep.mubr.f32.mxu0 %v10504_v6 }
 0x58f   :  { %1891 = vmatpush1.msra.mxu1 %v10505_v22  ;;  %1924 = vmatprep.mubr.f32.mxu1 %v10504_v6  ;;  %v10510_v22 = vld [vmem:[#allocation48_spill] sm:$0xff] }
 0x590   :  { %2024 = vmatprep.subr.mxu0 %v10506_v26  ;;  %2095 = vmatprep.subr.mxu1 %v10507_v16 }
 0x62f   :  { %v1620_v18 = vpop.f32.mrf.mxu0  ;;  %v1691_v55 = vpop.f32.mrf.mxu1 }
 0x630   :  { %v1700_v54 = vrot.slane %v1620_v18, 3  ;;  %v1704_v56 = vrot.slane %v1620_v18, 4  ;;  %v1702_v59 = vrot.slane %v1691_v55, 3  ;;  %v1706_v18 = vrot.slane %v1691_v55, 4 }
 0x631   :  { %v1622_v52 = vpop.f32.mrf.mxu0 }
 0x632   :  { %v1716_v57 = vadd.f32 %v1700_v54, %v10508_v24  ;;  %v1720_v63 = vadd.f32 %v1704_v56, %v10509_v12  ;;  %v1701_v2 = vrot.slane %v1622_v52, 3  ;;  %v1705_v14 = vrot.slane %v1622_v52, 4  ;;  %v1693_v54 = vpop.f32.mrf.mxu1  ;;  %v10511_v12 = vld [vmem:[#allocation55_spill] sm:$0xff] }
 0x633   :  { %v1718_v56 = vadd.f32 %v1702_v59, %v10395_v47  ;;  %v1722_v52 = vadd.f32 %v1706_v18, %v10511_v12 }
 0x634   :  { %v6014_v8 = vmul.f32 -1.442695, %v1716_v57  ;;  %v6017_v48 = vmul.f32 -1.442695, %v1720_v63  ;;  %v1717_v61 = vadd.f32 %v1701_v2, %v10510_v22  ;;  %v1721_v6 = vadd.f32 %v1705_v14, %v10393_v34  ;;  %v10512_v2 = vld [vmem:[#allocation54_spill] sm:$0xff] }
 0x635   :  { %v1703_v57 = vrot.slane %v1693_v54, 3  ;;  %v1707_v63 = vrot.slane %v1693_v54, 4  ;;  %v6016_v24 = vmul.f32 -1.442695, %v1718_v56  ;;  %v6019_v1 = vmul.f32 -1.442695, %v1722_v52 }
 0x636   :  { %6304 = vpow2.f32 %v6014_v8  ;;  %v6015_v26 = vmul.f32 -1.442695, %v1717_v61  ;;  %v6018_v16 = vmul.f32 -1.442695, %v1721_v6  ;;  %v10513_v8 = vld [vmem:[#allocation56_spill] sm:$0xff] }
 0x637   :  { %6306 = vpow2.f32 %v6017_v48  ;;  %v1719_v22 = vadd.f32 %v1703_v57, %v10512_v2  ;;  %v1723_v48 = vadd.f32 %v1707_v63, %v10513_v8 }
 0x638   :  { %6308 = vpow2.f32 %v6015_v26 }
 0x639   :  { %6310 = vpow2.f32 %v6018_v16 }
 0x63a   :  { %6312 = vpow2.f32 %v6016_v24  ;;  %v1764_v24 = vrot.slane %v7881_v20, 7 }
 0x63b   :  { %6314 = vpow2.f32 %v6019_v1 }
 0x63c   :  { %6316 = vtanh.f32 %v1719_v22  ;;  %v1765_v22 = vrot.slane %v7883_v10, 7 }
 0x63d   :  { %6318 = vtanh.f32 %v1723_v48 }
 0x643   :  { %v6305_v14 = vpop.eup %6304 }
 0x644   :  { %v6307_v61 = vpop.eup %6306  ;;  %v1742_v6 = vadd.f32 1.0, %v6305_v14 }
 0x645   :  { %v1745_v55 = vadd.f32 1.0, %v6307_v61  ;;  %v6309_v26 = vpop.eup %6308 }
 0x646   :  { %v6311_v59 = vpop.eup %6310  ;;  %6320 = vrcp.f32 %v1742_v6  ;;  %v1743_v16 = vadd.f32 1.0, %v6309_v26 }
 0x647   :  { %6322 = vrcp.f32 %v1745_v55  ;;  %v1746_v18 = vadd.f32 1.0, %v6311_v59  ;;  %v6313_v54 = vpop.eup %6312 }
 0x648   :  { %6324 = vrcp.f32 %v1743_v16  ;;  %v6315_v56 = vpop.eup %6314  ;;  %v1744_v14 = vadd.f32 1.0, %v6313_v54 }
 0x649   :  { %6326 = vrcp.f32 %v1746_v18  ;;  %v6317_v52 = vpop.eup %6316  ;;  %v1747_v48 = vadd.f32 1.0, %v6315_v56 }
 0x64a   :  { %v6319_v57 = vpop.eup %6318  ;;  %6328 = vrcp.f32 %v1744_v14 }
 0x64b   :  { %6330 = vrcp.f32 %v1747_v48 }
 0x653   :  { %v6321_v63 = vpop.eup %6320 }
 0x654   :  { %v6323_v8 = vpop.eup %6322  ;;  %v1770_v26 = vmul.f32 %v6321_v63, %v6317_v52 }
 0x655   :  { %v6325_v1 = vpop.eup %6324  ;;  %v1771_v59 = vmul.f32 %v6323_v8, %v6319_v57 }
 0x656   :  { %v6327_v61 = vpop.eup %6326  ;;  %v1768_v6 = vmul.f32 %v6325_v1, %v1764_v24 }
 0x657   :  { %v1769_v55 = vmul.f32 %v6327_v61, %v1765_v22  ;;  %v6329_v20 = vpop.eup %6328 }
 0x658   :  { %v7964_v16 = vadd.f32 %v1770_v26, %v1768_v6  ;;  %v6331_v54 = vpop.eup %6330  ;;  %v10540_v6 = vld [vmem:[#allocation55_spill] sm:$0xff] }
 0x659   :  { %v7966_v18 = vadd.f32 %v1771_v59, %v1769_v55 }
 0x65a   :  { %6332 = vtanh.f32 %v7964_v16 }
 0x65b   :  { %6334 = vtanh.f32 %v7966_v18 }
 0x667   :  { %v6333_v2 = vpop.eup %6332 }
 0x668   :  { %v6335_v10 = vpop.eup %6334  ;;  %v1776_v56 = vmul.f32 %v6333_v2, %v6329_v20 }
 0x669   :  { %v1777_v12 = vmul.f32 %v6335_v10, %v6331_v54  ;;  %v10541_v10 = vld [vmem:[#allocation54_spill] sm:$0xff] }
 0x66a   :  { %v1785_v52 = vrot.slane %v1776_v56, 5 }
 0x66b   :  { %v1780_v63 = vrot.slane %v1777_v12, 7  ;;  %v1786_v8 = vrot.slane %v1777_v12, 4 }
 0x66d   :  { %v1782_v57 = vsel %vm1781_vm6, %v1780_v63, %v1776_v56  ;;  %v1787_v24 = vsel %vm615_vm1, %v1786_v8, %v1785_v52  ;;  %v10542_v63 = vld [vmem:[#allocation56_spill] sm:$0xff] }
 0x66e   :  { %1784 = vst [vmem:[#allocation2 + $0x5] sm:$0x60] %v1782_v57  ;;  %1854 = vmatmul.mubr.f32.vlgmr.msra.gmra.mxu0 %v1787_v24  ;;  %1925 = vmatmul.mubr.f32.vlgmr.msra.gmra.mxu1 %v1787_v24 }
 0x66f   :  { %2025 = vmatpush1.msra.mxu0 %v7596_v27  ;;  %2096 = vmatpush1.msra.mxu1 %v7599_v29  ;;  %v10514_v27 = vld [vmem:[#allocation53_spill] sm:$0xff]  ;;  %v10515_v29 = vld [vmem:[#allocation32_spill] sm:$0xff] }
 0x670   :  { %2026 = vmatprep.subr.mxu0 %v7602_v43  ;;  %2097 = vmatprep.subr.mxu1 %v7605_v58  ;;  %v10516_v43 = vld [vmem:[#allocation20_spill] sm:$0xff]  ;;  %v10517_v58 = vld [vmem:[#allocation33_spill] sm:$0xff] }
 0x671   :  { %2027 = vmatpush1.msra.mxu0 %v7608_v53  ;;  %2098 = vmatpush1.msra.mxu1 %v7611_v45  ;;  %v10518_v53 = vld [vmem:[#allocation21_spill] sm:$0xff]  ;;  %v10519_v45 = vld [vmem:[#allocation34_spill] sm:$0xff] }
 0x672   :  { %2028 = vmatprep.subr.mxu0 %v7614_v31  ;;  %2099 = vmatprep.subr.mxu1 %v7617_v60  ;;  %v10520_v31 = vld [vmem:[#allocation22_spill] sm:$0xff]  ;;  %v10521_v60 = vld [vmem:[#allocation35_spill] sm:$0xff] }
 0x673   :  { %2029 = vmatpush1.msra.mxu0 %v7620_v35  ;;  %2100 = vmatpush1.msra.mxu1 %v7623_v41  ;;  %v10522_v35 = vld [vmem:[#allocation23_spill] sm:$0xff]  ;;  %v10523_v41 = vld [vmem:[#allocation36_spill] sm:$0xff] }
 0x674   :  { %2030 = vmatprep.subr.mxu0 %v7626_v33  ;;  %2101 = vmatprep.subr.mxu1 %v7629_v4  ;;  %v10524_v33 = vld [vmem:[#allocation25_spill] sm:$0xff] }
 0x675   :  { %2031 = vmatpush1.msra.mxu0 %v7632_v39  ;;  %2102 = vmatpush1.msra.mxu1 %v7635_v50  ;;  %v10525_v4 = vld [vmem:[#allocation37_spill] sm:$0xff]  ;;  %v10526_v39 = vld [vmem:[#allocation26_spill] sm:$0xff] }
 0x676   :  { %2032 = vmatprep.subr.mxu0 %v7638_v51  ;;  %2103 = vmatprep.subr.mxu1 %v7641_v3  ;;  %v10527_v50 = vld [vmem:[#allocation38_spill] sm:$0xff]  ;;  %v10528_v51 = vld [vmem:[#allocation27_spill] sm:$0xff] }
 0x677   :  { %2033 = vmatpush1.msra.mxu0 %v7644_v37  ;;  %2104 = vmatpush1.msra.mxu1 %v7647_v49  ;;  %v10529_v3 = vld [vmem:[#allocation39_spill] sm:$0xff]  ;;  %v10530_v37 = vld [vmem:[#allocation28_spill] sm:$0xff] }
 0x678   :  { %2034 = vmatprep.subr.mxu0 %v7650_v46  ;;  %2105 = vmatprep.subr.mxu1 %v7653_v5  ;;  %v10531_v49 = vld [vmem:[#allocation40_spill] sm:$0xff]  ;;  %v10532_v46 = vld [vmem:[#allocation29_spill] sm:$0xff] }
 0x679   :  { %2035 = vmatpush1.msra.mxu0 %v7656_v7  ;;  %2106 = vmatpush1.msra.mxu1 %v7659_v9  ;;  %v10533_v5 = vld [vmem:[#allocation41_spill] sm:$0xff]  ;;  %v10534_v7 = vld [vmem:[#allocation30_spill] sm:$0xff] }
 0x67a   :  { %2036 = vmatprep.subr.mxu0 %v7662_v11  ;;  %2107 = vmatprep.subr.mxu1 %v7665_v13  ;;  %v10535_v9 = vld [vmem:[#allocation42_spill] sm:$0xff]  ;;  %v10536_v11 = vmov 0.0   ;;  %v2318_v13 = vld [vmem:[#allocation8 + $0x1e8] sm:$0xff] }
 0x67b   :  { %2037 = vmatpush1.msra.mxu0 %v7668_v15  ;;  %2108 = vmatpush1.msra.mxu1 %v7671_v17  ;;  %v2320_v15 = vld [vmem:[#allocation8 + $0x1f8] sm:$0xff] }
 0x67c   :  { %2038 = vmatprep.subr.mxu0 %v7674_v19  ;;  %2109 = vmatprep.subr.mxu1 %v7677_v21 }
 0x67d   :  { %2039 = vmatpush1.msra.mxu0 %v7680_v23  ;;  %2110 = vmatpush1.msra.mxu1 %v7683_v25  ;;  %v10537_v25 = vld [vmem:[#allocation47_spill] sm:$0xff] }
 0x67e   :  { %2040 = vmatprep.subr.mxu0 %v7686_v28  ;;  %2111 = vmatprep.subr.mxu1 %v7689_v30  ;;  %v10538_v30 = vld [vmem:[#allocation49_spill] sm:$0xff] }
 0x67f   :  { %2041 = vmatpush1.msra.mxu0 %v7692_v32  ;;  %2112 = vmatpush1.msra.mxu1 %v7695_v36 }
 0x680   :  { %2042 = vmatprep.subr.mxu0 %v7698_v38  ;;  %2113 = vmatprep.subr.mxu1 %v7701_v40 }
 0x681   :  { %2043 = vmatpush1.msra.mxu0 %v7704_v42  ;;  %2114 = vmatpush1.msra.mxu1 %v7707_v44 }
 0x682   :  { %2044 = vmatprep.subr.mxu0 %v10452_v0  ;;  %2115 = vmatprep.subr.mxu1 %v10453_v62  ;;  %v10539_v0 = vld [vmem:[#allocation48_spill] sm:$0xff] }
 0x683   :  { %2045 = vmatpush1.msra.mxu0 %v10514_v27  ;;  %2116 = vmatpush1.msra.mxu1 %v10515_v29 }
 0x684   :  { %2046 = vmatprep.subr.mxu0 %v10516_v43  ;;  %2117 = vmatprep.subr.mxu1 %v10517_v58 }
 0x685   :  { %2047 = vmatpush1.msra.mxu0 %v10518_v53  ;;  %2118 = vmatpush1.msra.mxu1 %v10519_v45 }
 0x686   :  { %2048 = vmatprep.subr.mxu0 %v10520_v31  ;;  %2119 = vmatprep.subr.mxu1 %v10521_v60 }
 0x687   :  { %2049 = vmatpush1.msra.mxu0 %v10522_v35  ;;  %2120 = vmatpush1.msra.mxu1 %v10523_v41 }
 0x688   :  { %2050 = vmatprep.subr.mxu0 %v10524_v33  ;;  %2121 = vmatprep.subr.mxu1 %v10525_v4  ;;  %v1999_v4 = vrot.slane %v7964_v16, 7 }
 0x689   :  { %2051 = vmatpush1.msra.mxu0 %v10526_v39  ;;  %2122 = vmatpush1.msra.mxu1 %v10527_v50 }
 0x68a   :  { %2052 = vmatprep.subr.mxu0 %v10528_v51  ;;  %2123 = vmatprep.subr.mxu1 %v10529_v3  ;;  %v2000_v51 = vrot.slane %v7966_v18, 7 }
 0x68b   :  { %2053 = vmatpush1.msra.mxu0 %v10530_v37  ;;  %2124 = vmatpush1.msra.mxu1 %v10531_v49 }
 0x68c   :  { %2054 = vmatprep.subr.mxu0 %v10532_v46  ;;  %2125 = vmatprep.subr.mxu1 %v10533_v5 }
 0x68d   :  { %2055 = vmatpush1.msra.mxu0 %v10534_v7  ;;  %2126 = vmatpush1.msra.mxu1 %v10535_v9 }
 0x68e   :  { %2088 = vmatprep.mubr.f32.mxu0 %v10536_v11  ;;  %2159 = vmatprep.mubr.f32.mxu1 %v10536_v11 }
 0x68f   :  { %2343 = vmatprep.subr.mxu0 %v2318_v13  ;;  %2420 = vmatprep.subr.mxu1 %v2320_v15 }
 0x72e   :  { %v1855_v17 = vpop.f32.mrf.mxu0  ;;  %v1926_v44 = vpop.f32.mrf.mxu1 }
 0x72f   :  { %v1935_v19 = vrot.slane %v1855_v17, 2  ;;  %v1939_v21 = vrot.slane %v1855_v17, 3  ;;  %v1937_v1 = vrot.slane %v1926_v44, 2  ;;  %v1941_v22 = vrot.slane %v1926_v44, 3  ;;  %v2314_v44 = vld [vmem:[#allocation8 + $0x1c8] sm:$0xff] }
 0x730   :  { %v1857_v23 = vpop.f32.mrf.mxu0  ;;  %v1928_v48 = vpop.f32.mrf.mxu1 }
 0x731   :  { %v1951_v28 = vadd.f32 %v1935_v19, %v10537_v25  ;;  %v1955_v32 = vadd.f32 %v1939_v21, %v10538_v30  ;;  %v1936_v36 = vrot.slane %v1857_v23, 2  ;;  %v1940_v38 = vrot.slane %v1857_v23, 3 }
 0x732   :  { %v1953_v61 = vadd.f32 %v1937_v1, %v10395_v47  ;;  %v1957_v26 = vadd.f32 %v1941_v22, %v10540_v6  ;;  %v1938_v55 = vrot.slane %v1928_v48, 2  ;;  %v1942_v59 = vrot.slane %v1928_v48, 3  ;;  %v2312_v1 = vld [vmem:[#allocation8 + $0x1b8] sm:$0xff]  ;;  %v2309_v22 = vld [vmem:[#allocation8 + $0x1a0] sm:$0xff]  ;;  %v2311_v48 = vld [vmem:[#allocation8 + $0x1b0] sm:$0xff] }
 0x733   :  { %v6020_v40 = vmul.f32 -1.442695, %v1951_v28  ;;  %v6023_v42 = vmul.f32 -1.442695, %v1955_v32  ;;  %v1952_v62 = vadd.f32 %v1936_v36, %v10539_v0  ;;  %v1956_v12 = vadd.f32 %v1940_v38, %v10393_v34  ;;  %v2317_v36 = vld [vmem:[#allocation8 + $0x1e0] sm:$0xff]  ;;  %v2319_v38 = vld [vmem:[#allocation8 + $0x1f0] sm:$0xff] }
 0x734   :  { %v6022_v20 = vmul.f32 -1.442695, %v1953_v61  ;;  %v6025_v54 = vmul.f32 -1.442695, %v1957_v26  ;;  %v1954_v56 = vadd.f32 %v1938_v55, %v10541_v10  ;;  %v1958_v8 = vadd.f32 %v1942_v59, %v10542_v63  ;;  %v2306_v61 = vld [vmem:[#allocation8 + $0x188] sm:$0xff]  ;;  %v2308_v26 = vld [vmem:[#allocation8 + $0x198] sm:$0xff] }
 0x735   :  { %6336 = vpow2.f32 %v6020_v40  ;;  %v6021_v2 = vmul.f32 -1.442695, %v1952_v62  ;;  %v6024_v14 = vmul.f32 -1.442695, %v1956_v12  ;;  %v2316_v62 = vld [vmem:[#allocation8 + $0x1d8] sm:$0xff]  ;;  %v2313_v12 = vld [vmem:[#allocation8 + $0x1c0] sm:$0xff] }
 0x736   :  { %6338 = vpow2.f32 %v6023_v42  ;;  %v2305_v55 = vld [vmem:[#allocation8 + $0x180] sm:$0xff]  ;;  %v2307_v59 = vld [vmem:[#allocation8 + $0x190] sm:$0xff] }
 0x737   :  { %6340 = vpow2.f32 %v6021_v2  ;;  %v2315_v2 = vld [vmem:[#allocation8 + $0x1d0] sm:$0xff] }
 0x738   :  { %6342 = vpow2.f32 %v6024_v14  ;;  %v2310_v14 = vld [vmem:[#allocation8 + $0x1a8] sm:$0xff] }
 0x739   :  { %6344 = vpow2.f32 %v6022_v20  ;;  %v2302_v20 = vld [vmem:[#allocation8 + $0x168] sm:$0xff] }
 0x73a   :  { %6346 = vpow2.f32 %v6025_v54  ;;  %v2304_v54 = vld [vmem:[#allocation8 + $0x178] sm:$0xff] }
 0x73b   :  { %6348 = vtanh.f32 %v1954_v56  ;;  %v2301_v56 = vld [vmem:[#allocation8 + $0x160] sm:$0xff] }
 0x73c   :  { %6350 = vtanh.f32 %v1958_v8  ;;  %v2298_v8 = vld [vmem:[#allocation8 + $0x148] sm:$0xff] }
 0x742   :  { %v6337_v52 = vpop.eup %6336 }
 0x743   :  { %v6339_v57 = vpop.eup %6338  ;;  %v1977_v24 = vadd.f32 1.0, %v6337_v52  ;;  %v2303_v52 = vld [vmem:[#allocation8 + $0x170] sm:$0xff] }
 0x744   :  { %v1980_v27 = vadd.f32 1.0, %v6339_v57  ;;  %v6341_v29 = vpop.eup %6340  ;;  %v2300_v57 = vld [vmem:[#allocation8 + $0x158] sm:$0xff] }
 0x745   :  { %v6343_v43 = vpop.eup %6342  ;;  %6352 = vrcp.f32 %v1977_v24  ;;  %v1978_v58 = vadd.f32 1.0, %v6341_v29  ;;  %v2297_v24 = vld [vmem:[#allocation8 + $0x140] sm:$0xff]  ;;  %v2294_v29 = vld [vmem:[#allocation8 + $0x128] sm:$0xff] }
 0x746   :  { %6354 = vrcp.f32 %v1980_v27  ;;  %v1981_v53 = vadd.f32 1.0, %v6343_v43  ;;  %v6345_v45 = vpop.eup %6344  ;;  %v2299_v27 = vld [vmem:[#allocation8 + $0x150] sm:$0xff]  ;;  %v2296_v43 = vld [vmem:[#allocation8 + $0x138] sm:$0xff] }
 0x747   :  { %6356 = vrcp.f32 %v1978_v58  ;;  %v6347_v31 = vpop.eup %6346  ;;  %v1979_v39 = vadd.f32 1.0, %v6345_v45  ;;  %v2293_v58 = vld [vmem:[#allocation8 + $0x120] sm:$0xff]  ;;  %v2290_v45 = vld [vmem:[#allocation8 + $0x108] sm:$0xff] }
 0x748   :  { %6358 = vrcp.f32 %v1981_v53  ;;  %v6349_v60 = vpop.eup %6348  ;;  %v1982_v3 = vadd.f32 1.0, %v6347_v31  ;;  %v2295_v53 = vld [vmem:[#allocation8 + $0x130] sm:$0xff]  ;;  %v2292_v31 = vld [vmem:[#allocation8 + $0x118] sm:$0xff] }
 0x749   :  { %v6351_v35 = vpop.eup %6350  ;;  %6360 = vrcp.f32 %v1979_v39  ;;  %v2287_v39 = vld [vmem:[#allocation8 + $0xf0] sm:$0xff] }
 0x74a   :  { %6362 = vrcp.f32 %v1982_v3  ;;  %v2281_v3 = vld [vmem:[#allocation8 + $0xc0] sm:$0xff] }
 0x752   :  { %v6353_v41 = vpop.eup %6352 }
 0x753   :  { %v6355_v33 = vpop.eup %6354  ;;  %v2005_v46 = vmul.f32 %v6353_v41, %v6349_v60  ;;  %v2289_v60 = vld [vmem:[#allocation8 + $0x100] sm:$0xff]  ;;  %v2286_v41 = vld [vmem:[#allocation8 + $0xe8] sm:$0xff] }
 0x754   :  { %v6357_v50 = vpop.eup %6356  ;;  %v2006_v7 = vmul.f32 %v6355_v33, %v6351_v35  ;;  %v2291_v35 = vld [vmem:[#allocation8 + $0x110] sm:$0xff]  ;;  %v2288_v33 = vld [vmem:[#allocation8 + $0xf8] sm:$0xff] }
 0x755   :  { %v6359_v37 = vpop.eup %6358  ;;  %v2003_v49 = vmul.f32 %v6357_v50, %v1999_v4  ;;  %v2285_v4 = vld [vmem:[#allocation8 + $0xe0] sm:$0xff]  ;;  %v2282_v50 = vld [vmem:[#allocation8 + $0xc8] sm:$0xff] }
 0x756   :  { %v2004_v5 = vmul.f32 %v6359_v37, %v2000_v51  ;;  %v6361_v16 = vpop.eup %6360  ;;  %v2284_v51 = vld [vmem:[#allocation8 + $0xd8] sm:$0xff]  ;;  %v2283_v37 = vld [vmem:[#allocation8 + $0xd0] sm:$0xff] }
 0x757   :  { %v8045_v9 = vadd.f32 %v2005_v46, %v2003_v49  ;;  %v6363_v15 = vpop.eup %6362  ;;  %v2278_v49 = vld [vmem:[#allocation8 + $0xa8] sm:$0xff]  ;;  %v2280_v46 = vld [vmem:[#allocation8 + $0xb8] sm:$0xff] }
 0x758   :  { %v8047_v13 = vadd.f32 %v2006_v7, %v2004_v5  ;;  %v2277_v5 = vld [vmem:[#allocation8 + $0xa0] sm:$0xff]  ;;  %v2279_v7 = vld [vmem:[#allocation8 + $0xb0] sm:$0xff] }
 0x759   :  { %6364 = vtanh.f32 %v8045_v9 }
 0x75a   :  { %6366 = vtanh.f32 %v8047_v13 }
 0x766   :  { %v6365_v17 = vpop.eup %6364 }
 0x767   :  { %v6367_v18 = vpop.eup %6366  ;;  %v2011_v19 = vmul.f32 %v6365_v17, %v6361_v16  ;;  %v2274_v16 = vld [vmem:[#allocation8 + $0x88] sm:$0xff]  ;;  %v2273_v17 = vld [vmem:[#allocation8 + $0x80] sm:$0xff] }
 0x768   :  { %v2012_v21 = vmul.f32 %v6367_v18, %v6363_v15  ;;  %v2276_v15 = vld [vmem:[#allocation8 + $0x98] sm:$0xff]  ;;  %v2275_v18 = vld [vmem:[#allocation8 + $0x90] sm:$0xff] }
 0x769   :  { %v2020_v23 = vrot.slane %v2011_v19, 6 }
 0x76a   :  { %v2015_v28 = vrot.slane %v2012_v21, 7  ;;  %v2021_v32 = vrot.slane %v2012_v21, 5  ;;  %v2272_v21 = vld [vmem:[#allocation8 + $0x78] sm:$0xff] }
 0x76c   :  { %v2017_v40 = vsel %vm2016_vm7, %v2015_v28, %v2011_v19  ;;  %v2022_v42 = vsel %vm615_vm1, %v2021_v32, %v2020_v23  ;;  %v2270_v19 = vld [vmem:[#allocation8 + $0x68] sm:$0xff]  ;;  %v2269_v23 = vld [vmem:[#allocation8 + $0x60] sm:$0xff]  ;;  %v2271_v28 = vld [vmem:[#allocation8 + $0x70] sm:$0xff] }
 0x76d   :  { %2019 = vst [vmem:[#allocation2 + $0x6] sm:$0xc0] %v2017_v40  ;;  %2089 = vmatmul.mubr.f32.vlgmr.msra.gmra.mxu0 %v2022_v42  ;;  %2160 = vmatmul.mubr.f32.vlgmr.msra.gmra.mxu1 %v2022_v42  ;;  %v2266_v32 = vld [vmem:[#allocation8 + $0x48] sm:$0xff]  ;;  %v2267_v40 = vld [vmem:[#allocation8 + $0x50] sm:$0xff] }
 0x76e   :  { %2344 = vmatpush1.msra.mxu0 %v2317_v36  ;;  %2421 = vmatpush1.msra.mxu1 %v2319_v38  ;;  %v2268_v36 = vld [vmem:[#allocation8 + $0x58] sm:$0xff]  ;;  %v2265_v38 = vld [vmem:[#allocation8 + $0x40] sm:$0xff]  ;;  %v2262_v42 = vld [vmem:[#allocation8 + $0x28] sm:$0xff] }
 0x76f   :  { %2345 = vmatprep.subr.mxu0 %v2314_v44  ;;  %2422 = vmatprep.subr.mxu1 %v2316_v62  ;;  %v2264_v44 = vld [vmem:[#allocation8 + $0x38] sm:$0xff]  ;;  %v2261_v62 = vld [vmem:[#allocation8 + $0x20] sm:$0xff] }
 0x770   :  { %2346 = vmatpush1.msra.mxu0 %v2313_v12  ;;  %2423 = vmatpush1.msra.mxu1 %v2315_v2  ;;  %v2263_v12 = vld [vmem:[#allocation8 + $0x30] sm:$0xff]  ;;  %v2258_v2 = vld [vmem:[#allocation8 + $0x8] sm:$0xff] }
 0x771   :  { %2347 = vmatprep.subr.mxu0 %v2310_v14  ;;  %2424 = vmatprep.subr.mxu1 %v2312_v1  ;;  %v2260_v14 = vld [vmem:[#allocation8 + $0x18] sm:$0xff]  ;;  %v2257_v1 = vld [vmem:[#allocation8] sm:$0xff] }
 0x772   :  { %2348 = vmatpush1.msra.mxu0 %v2309_v22  ;;  %2425 = vmatpush1.msra.mxu1 %v2311_v48  ;;  %v2259_v22 = vld [vmem:[#allocation8 + $0x10] sm:$0xff] }
 0x773   :  { %2349 = vmatprep.subr.mxu0 %v2306_v61  ;;  %2426 = vmatprep.subr.mxu1 %v2308_v26  ;;  %v2255_v48 = vld [vmem:[#allocation2] sm:$0xff]  ;;  %v8058_v26 = vld [vmem:[#allocation9 + $0x1f8] sm:$0xff] }
 0x774   :  { %2350 = vmatpush1.msra.mxu0 %v2305_v55  ;;  %2427 = vmatpush1.msra.mxu1 %v2307_v59  ;;  %v8056_v61 = vld [vmem:[#allocation9 + $0x1e8] sm:$0xff]  ;;  %10544 = vst [vmem:[#allocation24_spill] sm:$0xff] %v8058_v26  ;;  %v8062_v55 = vld [vmem:[#allocation9 + $0x1e0] sm:$0xff]  ;;  %v8064_v59 = vld [vmem:[#allocation9 + $0x1f0] sm:$0xff] }
 0x775   :  { %2351 = vmatprep.subr.mxu0 %v2302_v20  ;;  %2428 = vmatprep.subr.mxu1 %v2304_v54  ;;  %10543 = vst [vmem:[#allocation43_spill] sm:$0xff] %v8056_v61  ;;  %v8068_v20 = vld [vmem:[#allocation9 + $0x1c8] sm:$0xff]  ;;  %v8070_v54 = vld [vmem:[#allocation9 + $0x1d8] sm:$0xff] }
 0x776   :  { %2352 = vmatpush1.msra.mxu0 %v2301_v56  ;;  %2429 = vmatpush1.msra.mxu1 %v2303_v52  ;;  %v8074_v56 = vld [vmem:[#allocation9 + $0x1c0] sm:$0xff]  ;;  %v8076_v52 = vld [vmem:[#allocation9 + $0x1d0] sm:$0xff] }
 0x777   :  { %2353 = vmatprep.subr.mxu0 %v2298_v8  ;;  %2430 = vmatprep.subr.mxu1 %v2300_v57  ;;  %v8080_v8 = vld [vmem:[#allocation9 + $0x1a8] sm:$0xff]  ;;  %v8082_v57 = vld [vmem:[#allocation9 + $0x1b8] sm:$0xff] }
 0x778   :  { %2354 = vmatpush1.msra.mxu0 %v2297_v24  ;;  %2431 = vmatpush1.msra.mxu1 %v2299_v27  ;;  %v8086_v24 = vld [vmem:[#allocation9 + $0x1a0] sm:$0xff]  ;;  %v8088_v27 = vld [vmem:[#allocation9 + $0x1b0] sm:$0xff] }
 0x779   :  { %2355 = vmatprep.subr.mxu0 %v2294_v29  ;;  %2432 = vmatprep.subr.mxu1 %v2296_v43  ;;  %v8092_v29 = vld [vmem:[#allocation9 + $0x188] sm:$0xff]  ;;  %v8094_v43 = vld [vmem:[#allocation9 + $0x198] sm:$0xff] }
 0x77a   :  { %2356 = vmatpush1.msra.mxu0 %v2293_v58  ;;  %2433 = vmatpush1.msra.mxu1 %v2295_v53  ;;  %v8098_v58 = vld [vmem:[#allocation9 + $0x180] sm:$0xff]  ;;  %v8100_v53 = vld [vmem:[#allocation9 + $0x190] sm:$0xff] }
 0x77b   :  { %2357 = vmatprep.subr.mxu0 %v2290_v45  ;;  %2434 = vmatprep.subr.mxu1 %v2292_v31  ;;  %v8104_v45 = vld [vmem:[#allocation9 + $0x168] sm:$0xff]  ;;  %v8106_v31 = vld [vmem:[#allocation9 + $0x178] sm:$0xff] }
 0x77c   :  { %2358 = vmatpush1.msra.mxu0 %v2289_v60  ;;  %2435 = vmatpush1.msra.mxu1 %v2291_v35  ;;  %v8110_v60 = vld [vmem:[#allocation9 + $0x160] sm:$0xff]  ;;  %v8112_v35 = vld [vmem:[#allocation9 + $0x170] sm:$0xff] }
 0x77d   :  { %2359 = vmatprep.subr.mxu0 %v2286_v41  ;;  %2436 = vmatprep.subr.mxu1 %v2288_v33  ;;  %v8116_v41 = vld [vmem:[#allocation9 + $0x148] sm:$0xff]  ;;  %v8118_v33 = vld [vmem:[#allocation9 + $0x158] sm:$0xff] }
 0x77e   :  { %2360 = vmatpush1.msra.mxu0 %v2285_v4  ;;  %2437 = vmatpush1.msra.mxu1 %v2287_v39  ;;  %v8122_v4 = vld [vmem:[#allocation9 + $0x140] sm:$0xff]  ;;  %v8124_v39 = vld [vmem:[#allocation9 + $0x150] sm:$0xff] }
 0x77f   :  { %2361 = vmatprep.subr.mxu0 %v2282_v50  ;;  %2438 = vmatprep.subr.mxu1 %v2284_v51  ;;  %v8128_v50 = vld [vmem:[#allocation9 + $0x128] sm:$0xff]  ;;  %v8130_v51 = vld [vmem:[#allocation9 + $0x138] sm:$0xff] }
 0x780   :  { %2362 = vmatpush1.msra.mxu0 %v2281_v3  ;;  %2439 = vmatpush1.msra.mxu1 %v2283_v37  ;;  %v8134_v3 = vld [vmem:[#allocation9 + $0x120] sm:$0xff]  ;;  %v8136_v37 = vld [vmem:[#allocation9 + $0x130] sm:$0xff] }
 0x781   :  { %2363 = vmatprep.subr.mxu0 %v2278_v49  ;;  %2440 = vmatprep.subr.mxu1 %v2280_v46  ;;  %v8140_v49 = vld [vmem:[#allocation9 + $0x108] sm:$0xff]  ;;  %v8142_v46 = vld [vmem:[#allocation9 + $0x118] sm:$0xff] }
 0x782   :  { %2364 = vmatpush1.msra.mxu0 %v2277_v5  ;;  %2441 = vmatpush1.msra.mxu1 %v2279_v7  ;;  %v8146_v5 = vld [vmem:[#allocation9 + $0x100] sm:$0xff]  ;;  %v8148_v7 = vld [vmem:[#allocation9 + $0x110] sm:$0xff] }
 0x783   :  { %2365 = vmatprep.subr.mxu0 %v2274_v16  ;;  %2442 = vmatprep.subr.mxu1 %v2276_v15  ;;  %v8152_v16 = vld [vmem:[#allocation9 + $0xe8] sm:$0xff]  ;;  %v8154_v15 = vld [vmem:[#allocation9 + $0xf8] sm:$0xff] }
 0x784   :  { %2366 = vmatpush1.msra.mxu0 %v2273_v17  ;;  %2443 = vmatpush1.msra.mxu1 %v2275_v18  ;;  %v8158_v17 = vld [vmem:[#allocation9 + $0xe0] sm:$0xff]  ;;  %v8160_v18 = vld [vmem:[#allocation9 + $0xf0] sm:$0xff] }
 0x785   :  { %2367 = vmatprep.subr.mxu0 %v2270_v19  ;;  %2444 = vmatprep.subr.mxu1 %v2272_v21  ;;  %v8162_v19 = vld [vmem:[#allocation9 + $0xc8] sm:$0xff]  ;;  %v8166_v21 = vld [vmem:[#allocation9 + $0xd8] sm:$0xff] }
 0x786   :  { %2368 = vmatpush1.msra.mxu0 %v2269_v23  ;;  %2445 = vmatpush1.msra.mxu1 %v2271_v28  ;;  %v8168_v23 = vld [vmem:[#allocation9 + $0xc0] sm:$0xff]  ;;  %v8170_v28 = vld [vmem:[#allocation9 + $0xd0] sm:$0xff] }
 0x787   :  { %2369 = vmatprep.subr.mxu0 %v2266_v32  ;;  %2446 = vmatprep.subr.mxu1 %v2268_v36  ;;  %10545 = vst [vmem:[#allocation18_spill] sm:$0xff] %v8170_v28  ;;  %v8174_v32 = vld [vmem:[#allocation9 + $0xa8] sm:$0xff]  ;;  %v8176_v36 = vld [vmem:[#allocation9 + $0xb8] sm:$0xff] }
 0x788   :  { %2370 = vmatpush1.msra.mxu0 %v2265_v38  ;;  %2447 = vmatpush1.msra.mxu1 %v2267_v40  ;;  %10546 = vst [vmem:[#allocation50_spill] sm:$0xff] %v8174_v32  ;;  %10547 = vst [vmem:[#allocation19_spill] sm:$0xff] %v8176_v36  ;;  %v8178_v38 = vld [vmem:[#allocation9 + $0xa0] sm:$0xff]  ;;  %v8182_v40 = vld [vmem:[#allocation9 + $0xb0] sm:$0xff] }
 0x789   :  { %2371 = vmatprep.subr.mxu0 %v2262_v42  ;;  %2448 = vmatprep.subr.mxu1 %v2264_v44  ;;  %10548 = vst [vmem:[#allocation31_spill] sm:$0xff] %v8178_v38  ;;  %10549 = vst [vmem:[#allocation53_spill] sm:$0xff] %v8182_v40  ;;  %v8184_v42 = vld [vmem:[#allocation9 + $0x88] sm:$0xff]  ;;  %v8186_v44 = vld [vmem:[#allocation9 + $0x98] sm:$0xff] }
 0x78a   :  { %2372 = vmatpush1.msra.mxu0 %v2261_v62  ;;  %2449 = vmatpush1.msra.mxu1 %v2263_v12  ;;  %10550 = vst [vmem:[#allocation32_spill] sm:$0xff] %v8184_v42  ;;  %10551 = vst [vmem:[#allocation20_spill] sm:$0xff] %v8186_v44  ;;  %v8190_v62 = vld [vmem:[#allocation9 + $0x80] sm:$0xff]  ;;  %v8192_v12 = vld [vmem:[#allocation9 + $0x90] sm:$0xff] }
 0x78b   :  { %2373 = vmatprep.subr.mxu0 %v2258_v2  ;;  %2450 = vmatprep.subr.mxu1 %v2260_v14  ;;  %10552 = vst [vmem:[#allocation33_spill] sm:$0xff] %v8190_v62  ;;  %10553 = vst [vmem:[#allocation21_spill] sm:$0xff] %v8192_v12  ;;  %v8196_v2 = vld [vmem:[#allocation9 + $0x68] sm:$0xff]  ;;  %v8198_v14 = vld [vmem:[#allocation9 + $0x78] sm:$0xff] }
 0x78c   :  { %2374 = vmatpush1.msra.mxu0 %v2257_v1  ;;  %2407 = vmatprep.mubr.f32.mxu0 %v10536_v11  ;;  %10554 = vst [vmem:[#allocation34_spill] sm:$0xff] %v8196_v2  ;;  %10555 = vst [vmem:[#allocation22_spill] sm:$0xff] %v8198_v14  ;;  %v8202_v1 = vld [vmem:[#allocation9 + $0x60] sm:$0xff] }
 0x78d   :  { %2451 = vmatpush1.msra.mxu1 %v2259_v22  ;;  %2484 = vmatprep.mubr.f32.mxu1 %v10536_v11  ;;  %10556 = vst [vmem:[#allocation35_spill] sm:$0xff] %v8202_v1  ;;  %v8204_v22 = vld [vmem:[#allocation9 + $0x70] sm:$0xff] }
 0x78e   :  { %2408 = vmatmul.mubr.f32.vlgmr.msra.gmra.mxu0 %v2255_v48  ;;  %2485 = vmatmul.mubr.f32.vlgmr.msra.gmra.mxu1 %v2255_v48  ;;  %10557 = vst [vmem:[#allocation23_spill] sm:$0xff] %v8204_v22  ;;  %v8208_v48 = vld [vmem:[#allocation9 + $0x48] sm:$0xff] }
 0x78f   :  { %2413 = vmatprep.mubr.f32.mxu0 %v10536_v11  ;;  %2490 = vmatprep.mubr.f32.mxu1 %v10536_v11  ;;  %10558 = vst [vmem:[#allocation36_spill] sm:$0xff] %v8208_v48 }
 0x790   :  { %2561 = vmatprep.subr.mxu0 %v8056_v61  ;;  %2632 = vmatprep.subr.mxu1 %v8058_v26 }
 0x791   :  { %2562 = vmatpush1.msra.mxu0 %v8062_v55  ;;  %2633 = vmatpush1.msra.mxu1 %v8064_v59 }
 0x792   :  { %2563 = vmatprep.subr.mxu0 %v8068_v20  ;;  %2634 = vmatprep.subr.mxu1 %v8070_v54 }
 0x793   :  { %2564 = vmatpush1.msra.mxu0 %v8074_v56  ;;  %2635 = vmatpush1.msra.mxu1 %v8076_v52 }
 0x794   :  { %2565 = vmatprep.subr.mxu0 %v8080_v8  ;;  %2636 = vmatprep.subr.mxu1 %v8082_v57 }
 0x795   :  { %2566 = vmatpush1.msra.mxu0 %v8086_v24  ;;  %2637 = vmatpush1.msra.mxu1 %v8088_v27 }
 0x796   :  { %2567 = vmatprep.subr.mxu0 %v8092_v29  ;;  %2638 = vmatprep.subr.mxu1 %v8094_v43 }
 0x797   :  { %2568 = vmatpush1.msra.mxu0 %v8098_v58  ;;  %2639 = vmatpush1.msra.mxu1 %v8100_v53 }
 0x798   :  { %2569 = vmatprep.subr.mxu0 %v8104_v45  ;;  %2640 = vmatprep.subr.mxu1 %v8106_v31 }
 0x799   :  { %2570 = vmatpush1.msra.mxu0 %v8110_v60  ;;  %2641 = vmatpush1.msra.mxu1 %v8112_v35 }
 0x79a   :  { %2571 = vmatprep.subr.mxu0 %v8116_v41  ;;  %2642 = vmatprep.subr.mxu1 %v8118_v33 }
 0x79b   :  { %2572 = vmatpush1.msra.mxu0 %v8122_v4  ;;  %2643 = vmatpush1.msra.mxu1 %v8124_v39 }
 0x79c   :  { %2573 = vmatprep.subr.mxu0 %v8128_v50  ;;  %2644 = vmatprep.subr.mxu1 %v8130_v51 }
 0x79d   :  { %2574 = vmatpush1.msra.mxu0 %v8134_v3  ;;  %2645 = vmatpush1.msra.mxu1 %v8136_v37 }
 0x79e   :  { %2575 = vmatprep.subr.mxu0 %v8140_v49  ;;  %2646 = vmatprep.subr.mxu1 %v8142_v46 }
 0x79f   :  { %2576 = vmatpush1.msra.mxu0 %v8146_v5  ;;  %2647 = vmatpush1.msra.mxu1 %v8148_v7 }
 0x7a0   :  { %2577 = vmatprep.subr.mxu0 %v8152_v16  ;;  %2648 = vmatprep.subr.mxu1 %v8154_v15 }
 0x7a1   :  { %2578 = vmatpush1.msra.mxu0 %v8158_v17  ;;  %2649 = vmatpush1.msra.mxu1 %v8160_v18 }
 0x7a2   :  { %2579 = vmatprep.subr.mxu0 %v8162_v19  ;;  %2650 = vmatprep.subr.mxu1 %v8166_v21 }
 0x7a3   :  { %2580 = vmatpush1.msra.mxu0 %v8168_v23  ;;  %2651 = vmatpush1.msra.mxu1 %v8170_v28 }
 0x7a4   :  { %2581 = vmatprep.subr.mxu0 %v8174_v32  ;;  %2652 = vmatprep.subr.mxu1 %v8176_v36 }
 0x7a5   :  { %2582 = vmatpush1.msra.mxu0 %v8178_v38  ;;  %2653 = vmatpush1.msra.mxu1 %v8182_v40  ;;  %v8210_v38 = vld [vmem:[#allocation9 + $0x58] sm:$0xff]  ;;  %v8214_v40 = vld [vmem:[#allocation9 + $0x40] sm:$0xff] }
 0x7a6   :  { %2583 = vmatprep.subr.mxu0 %v8184_v42  ;;  %2654 = vmatprep.subr.mxu1 %v8186_v44  ;;  %10559 = vst [vmem:[#allocation25_spill] sm:$0xff] %v8210_v38  ;;  %10560 = vst [vmem:[#allocation37_spill] sm:$0xff] %v8214_v40  ;;  %v8216_v42 = vld [vmem:[#allocation9 + $0x50] sm:$0xff]  ;;  %v8220_v44 = vld [vmem:[#allocation9 + $0x28] sm:$0xff] }
 0x7a7   :  { %2584 = vmatpush1.msra.mxu0 %v8190_v62  ;;  %2655 = vmatpush1.msra.mxu1 %v8192_v12  ;;  %10561 = vst [vmem:[#allocation26_spill] sm:$0xff] %v8216_v42  ;;  %10562 = vst [vmem:[#allocation38_spill] sm:$0xff] %v8220_v44  ;;  %v8222_v62 = vld [vmem:[#allocation9 + $0x38] sm:$0xff]  ;;  %v8226_v12 = vld [vmem:[#allocation9 + $0x20] sm:$0xff] }
 0x7a8   :  { %2585 = vmatprep.subr.mxu0 %v8196_v2  ;;  %2656 = vmatprep.subr.mxu1 %v8198_v14  ;;  %10563 = vst [vmem:[#allocation27_spill] sm:$0xff] %v8222_v62  ;;  %10564 = vst [vmem:[#allocation39_spill] sm:$0xff] %v8226_v12  ;;  %v8228_v2 = vld [vmem:[#allocation9 + $0x30] sm:$0xff]  ;;  %v8232_v14 = vld [vmem:[#allocation9 + $0x8] sm:$0xff] }
 0x7a9   :  { %2586 = vmatpush1.msra.mxu0 %v8202_v1  ;;  %2657 = vmatpush1.msra.mxu1 %v8204_v22  ;;  %10565 = vst [vmem:[#allocation28_spill] sm:$0xff] %v8228_v2  ;;  %10566 = vst [vmem:[#allocation40_spill] sm:$0xff] %v8232_v14  ;;  %v8234_v1 = vld [vmem:[#allocation9 + $0x18] sm:$0xff]  ;;  %v8238_v22 = vld [vmem:[#allocation9] sm:$0xff] }
 0x7aa   :  { %2587 = vmatprep.subr.mxu0 %v8208_v48  ;;  %2658 = vmatprep.subr.mxu1 %v8210_v38  ;;  %10567 = vst [vmem:[#allocation29_spill] sm:$0xff] %v8234_v1  ;;  %10568 = vst [vmem:[#allocation41_spill] sm:$0xff] %v8238_v22  ;;  %v8240_v48 = vld [vmem:[#allocation9 + $0x10] sm:$0xff] }
 0x7ab   :  { %2588 = vmatpush1.msra.mxu0 %v8214_v40  ;;  %2659 = vmatpush1.msra.mxu1 %v8216_v42  ;;  %10569 = vst [vmem:[#allocation30_spill] sm:$0xff] %v8240_v48 }
 0x7ac   :  { %2589 = vmatprep.subr.mxu0 %v8220_v44  ;;  %2660 = vmatprep.subr.mxu1 %v8222_v62 }
 0x7ad   :  { %2590 = vmatpush1.msra.mxu0 %v8226_v12  ;;  %2661 = vmatpush1.msra.mxu1 %v8228_v2 }
 0x7ae   :  { %2591 = vmatprep.subr.mxu0 %v8232_v14  ;;  %2662 = vmatprep.subr.mxu1 %v8234_v1 }
 0x7af   :  { %2592 = vmatpush1.msra.mxu0 %v8238_v22  ;;  %2663 = vmatpush1.msra.mxu1 %v8240_v48 }
 0x7b0   :  { %2732 = vmatprep.subr.mxu0 %v8056_v61  ;;  %2803 = vmatprep.subr.mxu1 %v8058_v26 }
 0x82d   :  { %v2090_v62 = vpop.f32.mrf.mxu0  ;;  %v2161_v32 = vpop.f32.mrf.mxu1 }
 0x82e   :  { %v2170_v44 = vrot.slane %v2090_v62, 1  ;;  %v2174_v42 = vrot.slane %v2090_v62, 2  ;;  %v2172_v28 = vrot.slane %v2161_v32, 1  ;;  %v2176_v62 = vrot.slane %v2161_v32, 2 }
 0x82f   :  { %v2092_v40 = vpop.f32.mrf.mxu0 }
 0x830   :  { %v2186_v12 = vadd.f32 %v2170_v44, %v10537_v25  ;;  %v2190_v2 = vadd.f32 %v2174_v42, %v10538_v30  ;;  %v2171_v38 = vrot.slane %v2092_v40, 1  ;;  %v2175_v14 = vrot.slane %v2092_v40, 2  ;;  %v2163_v25 = vpop.f32.mrf.mxu1 }
 0x831   :  { %v2188_v30 = vadd.f32 %v2172_v28, %v10395_v47  ;;  %v2192_v40 = vadd.f32 %v2176_v62, %v10540_v6  ;;  %v2173_v42 = vrot.slane %v2163_v25, 1  ;;  %v2177_v44 = vrot.slane %v2163_v25, 2 }
 0x832   :  { %v6026_v36 = vmul.f32 -1.442695, %v2186_v12  ;;  %v6029_v1 = vmul.f32 -1.442695, %v2190_v2  ;;  %v2187_v22 = vadd.f32 %v2171_v38, %v10539_v0  ;;  %v2191_v48 = vadd.f32 %v2175_v14, %v10393_v34 }
 0x833   :  { %v6028_v12 = vmul.f32 -1.442695, %v2188_v30  ;;  %v6031_v2 = vmul.f32 -1.442695, %v2192_v40  ;;  %v2189_v0 = vadd.f32 %v2173_v42, %v10541_v10  ;;  %v2234_v62 = vrot.slane %v8045_v9, 7 }
 0x834   :  { %6368 = vpow2.f32 %v6026_v36  ;;  %v6027_v26 = vmul.f32 -1.442695, %v2187_v22  ;;  %v6030_v61 = vmul.f32 -1.442695, %v2191_v48  ;;  %v2193_v36 = vadd.f32 %v2177_v44, %v10542_v63 }
 0x835   :  { %6370 = vpow2.f32 %v6029_v1  ;;  %v2235_v40 = vrot.slane %v8047_v13, 7 }
 0x836   :  { %6372 = vpow2.f32 %v6027_v26 }
 0x837   :  { %6374 = vpow2.f32 %v6030_v61 }
 0x838   :  { %6376 = vpow2.f32 %v6028_v12 }
 0x839   :  { %6378 = vpow2.f32 %v6031_v2 }
 0x83a   :  { %6380 = vtanh.f32 %v2189_v0 }
 0x83b   :  { %6382 = vtanh.f32 %v2193_v36 }
 0x841   :  { %v6369_v34 = vpop.eup %6368 }
 0x842   :  { %v6371_v38 = vpop.eup %6370  ;;  %v2212_v14 = vadd.f32 1.0, %v6369_v34 }
 0x843   :  { %v2215_v32 = vadd.f32 1.0, %v6371_v38  ;;  %v6373_v61 = vpop.eup %6372 }
 0x844   :  { %v6375_v47 = vpop.eup %6374  ;;  %6384 = vrcp.f32 %v2212_v14  ;;  %v2213_v6 = vadd.f32 1.0, %v6373_v61 }
 0x845   :  { %6386 = vrcp.f32 %v2215_v32  ;;  %v2216_v26 = vadd.f32 1.0, %v6375_v47  ;;  %v6377_v28 = vpop.eup %6376 }
 0x846   :  { %6388 = vrcp.f32 %v2213_v6  ;;  %v6379_v10 = vpop.eup %6378  ;;  %v2214_v25 = vadd.f32 1.0, %v6377_v28  ;;  %v10570_v28 = vld [vmem:[#allocation18_spill] sm:$0xff] }
 0x847   :  { %6390 = vrcp.f32 %v2216_v26  ;;  %v6381_v1 = vpop.eup %6380  ;;  %v2217_v42 = vadd.f32 1.0, %v6379_v10  ;;  %v10571_v10 = vld [vmem:[#allocation50_spill] sm:$0xff] }
 0x848   :  { %v6383_v22 = vpop.eup %6382  ;;  %6392 = vrcp.f32 %v2214_v25  ;;  %v10577_v25 = vld [vmem:[#allocation33_spill] sm:$0xff] }
 0x849   :  { %6394 = vrcp.f32 %v2217_v42  ;;  %v10580_v42 = vld [vmem:[#allocation22_spill] sm:$0xff] }
 0x851   :  { %v6385_v63 = vpop.eup %6384 }
 0x852   :  { %v6387_v48 = vpop.eup %6386  ;;  %v2240_v2 = vmul.f32 %v6385_v63, %v6381_v1  ;;  %v10572_v1 = vld [vmem:[#allocation19_spill] sm:$0xff]  ;;  %v10574_v63 = vld [vmem:[#allocation53_spill] sm:$0xff] }
 0x853   :  { %v6389_v30 = vpop.eup %6388  ;;  %v2241_v34 = vmul.f32 %v6387_v48, %v6383_v22  ;;  %v10573_v22 = vld [vmem:[#allocation31_spill] sm:$0xff]  ;;  %v10575_v48 = vld [vmem:[#allocation32_spill] sm:$0xff] }
 0x854   :  { %v6391_v44 = vpop.eup %6390  ;;  %v2238_v12 = vmul.f32 %v6389_v30, %v2234_v62  ;;  %v10576_v62 = vld [vmem:[#allocation20_spill] sm:$0xff]  ;;  %v10578_v30 = vld [vmem:[#allocation21_spill] sm:$0xff] }
 0x855   :  { %v2239_v0 = vmul.f32 %v6391_v44, %v2235_v40  ;;  %v6393_v14 = vpop.eup %6392  ;;  %v10579_v40 = vld [vmem:[#allocation34_spill] sm:$0xff]  ;;  %v10581_v44 = vld [vmem:[#allocation35_spill] sm:$0xff] }
 0x856   :  { %v2242_v36 = vadd.f32 %v2240_v2, %v2238_v12  ;;  %v6395_v32 = vpop.eup %6394  ;;  %v10582_v12 = vld [vmem:[#allocation23_spill] sm:$0xff]  ;;  %v10583_v2 = vld [vmem:[#allocation36_spill] sm:$0xff] }
 0x857   :  { %v2243_v38 = vadd.f32 %v2241_v34, %v2239_v0  ;;  %v10584_v0 = vld [vmem:[#allocation25_spill] sm:$0xff] }
 0x858   :  { %6396 = vtanh.f32 %v2242_v36  ;;  %v10585_v34 = vld [vmem:[#allocation37_spill] sm:$0xff]  ;;  %v10586_v36 = vld [vmem:[#allocation26_spill] sm:$0xff] }
 0x859   :  { %6398 = vtanh.f32 %v2243_v38  ;;  %v10587_v38 = vld [vmem:[#allocation38_spill] sm:$0xff] }
 0x865   :  { %v6397_v61 = vpop.eup %6396 }
 0x866   :  { %v6399_v9 = vpop.eup %6398  ;;  %v2246_v47 = vmul.f32 %v6397_v61, %v6393_v14  ;;  %v10588_v14 = vld [vmem:[#allocation27_spill] sm:$0xff]  ;;  %v10590_v61 = vld [vmem:[#allocation28_spill] sm:$0xff] }
 0x867   :  { %v2247_v6 = vmul.f32 %v6399_v9, %v6395_v32  ;;  %v10589_v32 = vld [vmem:[#allocation39_spill] sm:$0xff]  ;;  %v10591_v9 = vld [vmem:[#allocation40_spill] sm:$0xff] }
 0x868   :  { %2253 = vst [vmem:[#allocation2 + $0x7] sm:$0x80] %v2246_v47  ;;  %v10592_v47 = vld [vmem:[#allocation29_spill] sm:$0xff] }
 0x869   :  { %v2250_v13 = vrot.slane %v2247_v6, 7  ;;  %v10593_v6 = vld [vmem:[#allocation41_spill] sm:$0xff] }
 0x86b   :  { %2254 = vst [vmem:[#allocation2 + $0xf] sm:$0x1] %v2250_v13  ;;  %v10594_v13 = vld [vmem:[#allocation30_spill] sm:$0xff] }
 0x872   :  { %v2256_v26 = vld [vmem:[#allocation2 + $0x8] sm:$0xff] }
 0x873   :  { %2414 = vmatmul.mubr.f32.gmra.mxu0 %v2256_v26  ;;  %2491 = vmatmul.mubr.f32.gmra.mxu1 %v2256_v26  ;;  %v10595_v26 = vld [vmem:[#allocation43_spill] sm:$0xff] }
 0x874   :  { %2625 = vmatprep.mubr.f32.mxu0 %v10536_v11  ;;  %2696 = vmatprep.mubr.f32.mxu1 %v10536_v11 }
 0x877   :  { %2626 = vmatmul.mubr.f32.vlgmr.msra.gmra.mxu0 %v10536_v11  ;;  %2697 = vmatmul.mubr.f32.vlgmr.msra.gmra.mxu1 %v10536_v11 }
 0x878   :  { %2733 = vmatpush1.msra.mxu0 %v8062_v55  ;;  %2804 = vmatpush1.msra.mxu1 %v8064_v59 }
 0x879   :  { %2734 = vmatprep.subr.mxu0 %v8068_v20  ;;  %2805 = vmatprep.subr.mxu1 %v8070_v54 }
 0x87a   :  { %2735 = vmatpush1.msra.mxu0 %v8074_v56  ;;  %2806 = vmatpush1.msra.mxu1 %v8076_v52 }
 0x87b   :  { %2736 = vmatprep.subr.mxu0 %v8080_v8  ;;  %2807 = vmatprep.subr.mxu1 %v8082_v57 }
 0x87c   :  { %2737 = vmatpush1.msra.mxu0 %v8086_v24  ;;  %2808 = vmatpush1.msra.mxu1 %v8088_v27 }
 0x87d   :  { %2738 = vmatprep.subr.mxu0 %v8092_v29  ;;  %2809 = vmatprep.subr.mxu1 %v8094_v43 }
 0x87e   :  { %2739 = vmatpush1.msra.mxu0 %v8098_v58  ;;  %2810 = vmatpush1.msra.mxu1 %v8100_v53 }
 0x87f   :  { %2740 = vmatprep.subr.mxu0 %v8104_v45  ;;  %2811 = vmatprep.subr.mxu1 %v8106_v31 }
 0x880   :  { %2741 = vmatpush1.msra.mxu0 %v8110_v60  ;;  %2812 = vmatpush1.msra.mxu1 %v8112_v35 }
 0x881   :  { %2742 = vmatprep.subr.mxu0 %v8116_v41  ;;  %2813 = vmatprep.subr.mxu1 %v8118_v33 }
 0x882   :  { %2743 = vmatpush1.msra.mxu0 %v8122_v4  ;;  %2814 = vmatpush1.msra.mxu1 %v8124_v39 }
 0x883   :  { %2744 = vmatprep.subr.mxu0 %v8128_v50  ;;  %2815 = vmatprep.subr.mxu1 %v8130_v51 }
 0x884   :  { %2745 = vmatpush1.msra.mxu0 %v8134_v3  ;;  %2816 = vmatpush1.msra.mxu1 %v8136_v37 }
 0x885   :  { %2746 = vmatprep.subr.mxu0 %v8140_v49  ;;  %2817 = vmatprep.subr.mxu1 %v8142_v46 }
 0x886   :  { %2747 = vmatpush1.msra.mxu0 %v8146_v5  ;;  %2818 = vmatpush1.msra.mxu1 %v8148_v7 }
 0x887   :  { %2748 = vmatprep.subr.mxu0 %v8152_v16  ;;  %2819 = vmatprep.subr.mxu1 %v8154_v15 }
 0x888   :  { %2749 = vmatpush1.msra.mxu0 %v8158_v17  ;;  %2820 = vmatpush1.msra.mxu1 %v8160_v18 }
 0x889   :  { %2750 = vmatprep.subr.mxu0 %v8162_v19  ;;  %2821 = vmatprep.subr.mxu1 %v8166_v21 }
 0x88a   :  { %2751 = vmatpush1.msra.mxu0 %v8168_v23  ;;  %2822 = vmatpush1.msra.mxu1 %v10570_v28 }
 0x88b   :  { %2752 = vmatprep.subr.mxu0 %v10571_v10  ;;  %2823 = vmatprep.subr.mxu1 %v10572_v1 }
 0x88c   :  { %2753 = vmatpush1.msra.mxu0 %v10573_v22  ;;  %2824 = vmatpush1.msra.mxu1 %v10574_v63 }
 0x88d   :  { %2754 = vmatprep.subr.mxu0 %v10575_v48  ;;  %2825 = vmatprep.subr.mxu1 %v10576_v62 }
 0x88e   :  { %2755 = vmatpush1.msra.mxu0 %v10577_v25  ;;  %2826 = vmatpush1.msra.mxu1 %v10578_v30 }
 0x88f   :  { %2756 = vmatprep.subr.mxu0 %v10579_v40  ;;  %2827 = vmatprep.subr.mxu1 %v10580_v42  ;;  %v10607_v40 = vld [vmem:[#allocation51_spill] sm:$0xff] }
 0x890   :  { %2757 = vmatpush1.msra.mxu0 %v10581_v44  ;;  %2828 = vmatpush1.msra.mxu1 %v10582_v12 }
 0x891   :  { %2758 = vmatprep.subr.mxu0 %v10583_v2  ;;  %2829 = vmatprep.subr.mxu1 %v10584_v0 }
 0x892   :  { %2759 = vmatpush1.msra.mxu0 %v10585_v34  ;;  %2830 = vmatpush1.msra.mxu1 %v10586_v36  ;;  %v10600_v34 = vld [vmem:[#allocation46_spill] sm:$0xff] }
 0x893   :  { %2760 = vmatprep.subr.mxu0 %v10587_v38  ;;  %2831 = vmatprep.subr.mxu1 %v10588_v14  ;;  %v10596_v38 = vld [vmem:[#allocation24_spill] sm:$0xff]  ;;  %v2409_v14 = vpop.f32.mrf.mxu0 }
 0x894   :  { %2761 = vmatpush1.msra.mxu0 %v10589_v32  ;;  %2832 = vmatpush1.msra.mxu1 %v10590_v61  ;;  %v2321_v61 = vld [vmem:[%s9951_s6] sm:$0xf]  ;;  %v10597_v32 = vld [vmem:[#allocation45_spill] sm:$0xff] }
 0x895   :  { %2762 = vmatprep.subr.mxu0 %v10591_v9  ;;  %2833 = vmatprep.subr.mxu1 %v10592_v47  ;;  %v2411_v9 = vpop.f32.mrf.mxu0  ;;  %v8334_v47 = vrot.slane %v2321_v61, %v10597_v32 }
 0x896   :  { %2763 = vmatpush1.msra.mxu0 %v10593_v6  ;;  %2796 = vmatprep.mubr.f32.mxu0 %v10536_v11  ;;  %v2486_v6 = vpop.f32.mrf.mxu1 }
 0x897   :  { %2834 = vmatpush1.msra.mxu1 %v10594_v13  ;;  %2867 = vmatprep.mubr.f32.mxu1 %v10536_v11  ;;  %10598 = vst [vmem:[#allocation42_spill] sm:$0xff] %v8334_v47  ;;  %v8339_v13 = vrot.slane %v2321_v61, %v10600_v34 }
 0x898   :  { %2921 = vmatprep.subr.mxu0 %v10595_v26  ;;  %2992 = vmatprep.subr.mxu1 %v10596_v38  ;;  %v8344_v26 = vadd.f32 %v2409_v14, %v8334_v47  ;;  %v2488_v38 = vpop.f32.mrf.mxu1  ;;  %v8356_v14 = vrot.slane %v2321_v61, %v10607_v40 }
 0x899   :  { %10601 = vst [vmem:[#allocation49_spill] sm:$0xff] %v8339_v13  ;;  %v8347_v2 = vadd.f32 %v2411_v9, %v8339_v13  ;;  %v10610_v13 = vld [vmem:[#allocation52_spill] sm:$0xff] }
 0x89a   :  { %10603 = vst [vmem:[#allocation55_spill] sm:$0xff] %v8344_v26  ;;  %10608 = vst [vmem:[#allocation50_spill] sm:$0xff] %v8356_v14  ;;  %v8359_v9 = vadd.f32 %v2486_v6, %v8356_v14 }
 0x89b   :  { %10604 = vst [vmem:[#allocation54_spill] sm:$0xff] %v8347_v2 }
 0x89c   :  { %10609 = vst [vmem:[#allocation19_spill] sm:$0xff] %v8359_v9 }
 0x933   :  { %v8336_v36 = vpop.f32.mrf.mxu0  ;;  %v8349_v12 = vpop.f32.mrf.mxu1 }
 0x934   :  { %10599 = vst [vmem:[#allocation47_spill] sm:$0xff] %v8336_v36  ;;  %10605 = vst [vmem:[#allocation56_spill] sm:$0xff] %v8349_v12  ;;  %v8362_v12 = vrot.slane %v2321_v61, %v10610_v13 }
 0x935   :  { %v8341_v11 = vpop.f32.mrf.mxu0  ;;  %v8353_v34 = vpop.f32.mrf.mxu1 }
 0x936   :  { %10602 = vst [vmem:[#allocation48_spill] sm:$0xff] %v8341_v11  ;;  %10606 = vst [vmem:[#allocation18_spill] sm:$0xff] %v8353_v34 }
 0x937   :  { %v2627_v0 = vpop.f32.mrf.mxu0  ;;  %v2698_v47 = vpop.f32.mrf.mxu1  ;;  %10611 = vst [vmem:[#allocation31_spill] sm:$0xff] %v8362_v12 }
 0x938   :  { %v2703_v32 = vadd.f32 %v2627_v0, %v8344_v26  ;;  %v2705_v0 = vadd.f32 %v2698_v47, %v8359_v9 }
 0x939   :  { %v2629_v44 = vpop.f32.mrf.mxu0 }
 0x93a   :  { %v6032_v42 = vmul.f32 -1.442695, %v2703_v32  ;;  %v2704_v36 = vadd.f32 %v2629_v44, %v8347_v2  ;;  %v2700_v32 = vpop.f32.mrf.mxu1  ;;  %v8366_v44 = vadd.f32 %v2488_v38, %v8362_v12  ;;  %v6034_v34 = vmul.f32 -1.442695, %v2705_v0 }
 0x93b   :  { %v10627_v12 = vmov 0.0  }
 0x93c   :  { %6400 = vpow2.f32 %v6032_v42  ;;  %v6033_v11 = vmul.f32 -1.442695, %v2704_v36  ;;  %v2706_v36 = vadd.f32 %v2700_v32, %v8366_v44 }
 0x93e   :  { %6402 = vpow2.f32 %v6033_v11 }
 0x93f   :  { %6404 = vpow2.f32 %v6034_v34  ;;  %v10614_v34 = vld [vmem:[#allocation35_spill] sm:$0xff] }
 0x949   :  { %v6401_v42 = vpop.eup %6400 }
 0x94a   :  { %v2716_v40 = vadd.f32 1.0, %v6401_v42 }
 0x94b   :  { %v6403_v2 = vpop.eup %6402 }
 0x94c   :  { %6406 = vrcp.f32 %v2716_v40  ;;  %v2717_v11 = vadd.f32 1.0, %v6403_v2  ;;  %v6405_v6 = vpop.eup %6404  ;;  %v10612_v40 = vld [vmem:[#allocation34_spill] sm:$0xff] }
 0x94d   :  { %6408 = vtanh.f32 %v2706_v36  ;;  %v2718_v47 = vadd.f32 1.0, %v6405_v6  ;;  %v10613_v2 = vld [vmem:[#allocation22_spill] sm:$0xff]  ;;  %v10621_v6 = vld [vmem:[#allocation27_spill] sm:$0xff] }
 0x94e   :  { %6410 = vrcp.f32 %v2717_v11  ;;  %v10619_v36 = vld [vmem:[#allocation26_spill] sm:$0xff] }
 0x94f   :  { %6412 = vrcp.f32 %v2718_v47  ;;  %v10620_v11 = vld [vmem:[#allocation38_spill] sm:$0xff]  ;;  %v10623_v47 = vld [vmem:[#allocation28_spill] sm:$0xff] }
 0x959   :  { %v6407_v61 = vpop.eup %6406 }
 0x95a   :  { %v6409_v13 = vpop.eup %6408 }
 0x95b   :  { %v6411_v14 = vpop.eup %6410  ;;  %v2727_v26 = vmul.f32 %v6409_v13, %v6407_v61  ;;  %v10615_v13 = vld [vmem:[#allocation23_spill] sm:$0xff] }
 0x95c   :  { %v2726_v9 = vmul.f32 0.0, %v6411_v14  ;;  %v6413_v0 = vpop.eup %6412  ;;  %v10617_v14 = vld [vmem:[#allocation25_spill] sm:$0xff]  ;;  %v10622_v61 = vld [vmem:[#allocation39_spill] sm:$0xff] }
 0x95e   :  { %v8369_v38 = vadd.f32 %v2727_v26, %v2726_v9  ;;  %v10616_v26 = vld [vmem:[#allocation36_spill] sm:$0xff]  ;;  %v10618_v9 = vld [vmem:[#allocation37_spill] sm:$0xff] }
 0x960   :  { %6414 = vtanh.f32 %v8369_v38 }
 0x96d   :  { %v6415_v32 = vpop.eup %6414 }
 0x96e   :  { %v2730_v42 = vmul.f32 %v6415_v32, %v6413_v0  ;;  %v10624_v0 = vld [vmem:[#allocation40_spill] sm:$0xff]  ;;  %v10625_v32 = vld [vmem:[#allocation29_spill] sm:$0xff] }
 0x970   :  { %2731 = vst [vmem:[#allocation2] sm:$0x3] %v2730_v42  ;;  %2797 = vmatmul.mubr.f32.vlgmr.msra.gmra.mxu0 %v2730_v42  ;;  %2868 = vmatmul.mubr.f32.vlgmr.msra.gmra.mxu1 %v2730_v42  ;;  %v10626_v42 = vld [vmem:[#allocation41_spill] sm:$0xff] }
 0x971   :  { %2922 = vmatpush1.msra.mxu0 %v8062_v55  ;;  %2993 = vmatpush1.msra.mxu1 %v8064_v59 }
 0x972   :  { %2923 = vmatprep.subr.mxu0 %v8068_v20  ;;  %2994 = vmatprep.subr.mxu1 %v8070_v54 }
 0x973   :  { %2924 = vmatpush1.msra.mxu0 %v8074_v56  ;;  %2995 = vmatpush1.msra.mxu1 %v8076_v52 }
 0x974   :  { %2925 = vmatprep.subr.mxu0 %v8080_v8  ;;  %2996 = vmatprep.subr.mxu1 %v8082_v57 }
 0x975   :  { %2926 = vmatpush1.msra.mxu0 %v8086_v24  ;;  %2997 = vmatpush1.msra.mxu1 %v8088_v27 }
 0x976   :  { %2927 = vmatprep.subr.mxu0 %v8092_v29  ;;  %2998 = vmatprep.subr.mxu1 %v8094_v43 }
 0x977   :  { %2928 = vmatpush1.msra.mxu0 %v8098_v58  ;;  %2999 = vmatpush1.msra.mxu1 %v8100_v53 }
 0x978   :  { %2929 = vmatprep.subr.mxu0 %v8104_v45  ;;  %3000 = vmatprep.subr.mxu1 %v8106_v31 }
 0x979   :  { %2930 = vmatpush1.msra.mxu0 %v8110_v60  ;;  %3001 = vmatpush1.msra.mxu1 %v8112_v35 }
 0x97a   :  { %2931 = vmatprep.subr.mxu0 %v8116_v41  ;;  %3002 = vmatprep.subr.mxu1 %v8118_v33 }
 0x97b   :  { %2932 = vmatpush1.msra.mxu0 %v8122_v4  ;;  %3003 = vmatpush1.msra.mxu1 %v8124_v39 }
 0x97c   :  { %2933 = vmatprep.subr.mxu0 %v8128_v50  ;;  %3004 = vmatprep.subr.mxu1 %v8130_v51 }
 0x97d   :  { %2934 = vmatpush1.msra.mxu0 %v8134_v3  ;;  %3005 = vmatpush1.msra.mxu1 %v8136_v37 }
 0x97e   :  { %2935 = vmatprep.subr.mxu0 %v8140_v49  ;;  %3006 = vmatprep.subr.mxu1 %v8142_v46 }
 0x97f   :  { %2936 = vmatpush1.msra.mxu0 %v8146_v5  ;;  %3007 = vmatpush1.msra.mxu1 %v8148_v7 }
 0x980   :  { %2937 = vmatprep.subr.mxu0 %v8152_v16  ;;  %3008 = vmatprep.subr.mxu1 %v8154_v15 }
 0x981   :  { %2938 = vmatpush1.msra.mxu0 %v8158_v17  ;;  %3009 = vmatpush1.msra.mxu1 %v8160_v18 }
 0x982   :  { %2939 = vmatprep.subr.mxu0 %v8162_v19  ;;  %3010 = vmatprep.subr.mxu1 %v8166_v21 }
 0x983   :  { %2940 = vmatpush1.msra.mxu0 %v8168_v23  ;;  %3011 = vmatpush1.msra.mxu1 %v10570_v28 }
 0x984   :  { %2941 = vmatprep.subr.mxu0 %v10571_v10  ;;  %3012 = vmatprep.subr.mxu1 %v10572_v1 }
 0x985   :  { %2942 = vmatpush1.msra.mxu0 %v10573_v22  ;;  %3013 = vmatpush1.msra.mxu1 %v10574_v63 }
 0x986   :  { %2943 = vmatprep.subr.mxu0 %v10575_v48  ;;  %3014 = vmatprep.subr.mxu1 %v10576_v62 }
 0x987   :  { %2944 = vmatpush1.msra.mxu0 %v10577_v25  ;;  %3015 = vmatpush1.msra.mxu1 %v10578_v30 }
 0x988   :  { %2945 = vmatprep.subr.mxu0 %v10612_v40  ;;  %3016 = vmatprep.subr.mxu1 %v10613_v2 }
 0x989   :  { %2946 = vmatpush1.msra.mxu0 %v10614_v34  ;;  %3017 = vmatpush1.msra.mxu1 %v10615_v13 }
 0x98a   :  { %2947 = vmatprep.subr.mxu0 %v10616_v26  ;;  %3018 = vmatprep.subr.mxu1 %v10617_v14  ;;  %v10628_v14 = vld [vmem:[#allocation30_spill] sm:$0xff] }
 0x98b   :  { %2948 = vmatpush1.msra.mxu0 %v10618_v9  ;;  %3019 = vmatpush1.msra.mxu1 %v10619_v36  ;;  %v10629_v36 = vld [vmem:[#allocation43_spill] sm:$0xff] }
 0x98c   :  { %2949 = vmatprep.subr.mxu0 %v10620_v11  ;;  %3020 = vmatprep.subr.mxu1 %v10621_v6  ;;  %v10630_v11 = vld [vmem:[#allocation24_spill] sm:$0xff] }
 0x98d   :  { %2950 = vmatpush1.msra.mxu0 %v10622_v61  ;;  %3021 = vmatpush1.msra.mxu1 %v10623_v47  ;;  %v10631_v47 = vld [vmem:[#allocation55_spill] sm:$0xff] }
 0x98e   :  { %2951 = vmatprep.subr.mxu0 %v10624_v0  ;;  %3022 = vmatprep.subr.mxu1 %v10625_v32  ;;  %v10632_v32 = vld [vmem:[#allocation54_spill] sm:$0xff] }
 0x98f   :  { %2952 = vmatpush1.msra.mxu0 %v10626_v42  ;;  %2985 = vmatprep.mubr.f32.mxu0 %v10627_v12 }
 0x990   :  { %3023 = vmatpush1.msra.mxu1 %v10628_v14  ;;  %3056 = vmatprep.mubr.f32.mxu1 %v10627_v12  ;;  %v10633_v12 = vld [vmem:[#allocation19_spill] sm:$0xff] }
 0x991   :  { %3110 = vmatprep.subr.mxu0 %v10629_v36  ;;  %3181 = vmatprep.subr.mxu1 %v10630_v11 }
 0xa30   :  { %v2798_v6 = vpop.f32.mrf.mxu0  ;;  %v2869_v42 = vpop.f32.mrf.mxu1 }
 0xa31   :  { %v2878_v61 = vrot.slane %v2798_v6, 6  ;;  %v2880_v14 = vrot.slane %v2869_v42, 6 }
 0xa32   :  { %v2800_v9 = vpop.f32.mrf.mxu0  ;;  %v2871_v40 = vpop.f32.mrf.mxu1 }
 0xa33   :  { %v2886_v26 = vadd.f32 %v2878_v61, %v10631_v47  ;;  %v2879_v0 = vrot.slane %v2800_v9, 6  ;;  %v2888_v30 = vadd.f32 %v2880_v14, %v10633_v12  ;;  %v2881_v36 = vrot.slane %v2871_v40, 6 }
 0xa35   :  { %v6035_v13 = vmul.f32 -1.442695, %v2886_v26  ;;  %v2887_v34 = vadd.f32 %v2879_v0, %v10632_v32  ;;  %v6037_v25 = vmul.f32 -1.442695, %v2888_v30  ;;  %v2889_v6 = vadd.f32 %v2881_v36, %v8366_v44 }
 0xa37   :  { %6416 = vpow2.f32 %v6035_v13  ;;  %v6036_v2 = vmul.f32 -1.442695, %v2887_v34 }
 0xa39   :  { %6418 = vpow2.f32 %v6036_v2  ;;  %v2910_v2 = vrot.slane %v8369_v38, 6 }
 0xa3a   :  { %6420 = vpow2.f32 %v6037_v25 }
 0xa44   :  { %v6417_v11 = vpop.eup %6416 }
 0xa45   :  { %v2899_v62 = vadd.f32 1.0, %v6417_v11 }
 0xa46   :  { %v6419_v48 = vpop.eup %6418 }
 0xa47   :  { %6422 = vrcp.f32 %v2899_v62  ;;  %v2900_v26 = vadd.f32 1.0, %v6419_v48  ;;  %v6421_v13 = vpop.eup %6420 }
 0xa48   :  { %6424 = vtanh.f32 %v2889_v6  ;;  %v2901_v0 = vadd.f32 1.0, %v6421_v13 }
 0xa49   :  { %6426 = vrcp.f32 %v2900_v26 }
 0xa4a   :  { %6428 = vrcp.f32 %v2901_v0 }
 0xa54   :  { %v6423_v9 = vpop.eup %6422 }
 0xa55   :  { %v6425_v34 = vpop.eup %6424 }
 0xa56   :  { %v6427_v61 = vpop.eup %6426  ;;  %v2913_v40 = vmul.f32 %v6425_v34, %v6423_v9 }
 0xa57   :  { %v2912_v14 = vmul.f32 %v6427_v61, %v2910_v2  ;;  %v6429_v36 = vpop.eup %6428 }
 0xa59   :  { %v8443_v30 = vadd.f32 %v2913_v40, %v2912_v14 }
 0xa5b   :  { %6430 = vtanh.f32 %v8443_v30  ;;  %v3099_v26 = vrot.slane %v8443_v30, 6  ;;  %v8523_v30 = vld [vmem:[#allocation9 + $0x1f0] sm:$0xff] }
 0xa68   :  { %v6431_v25 = vpop.eup %6430 }
 0xa69   :  { %v2916_v62 = vmul.f32 %v6431_v25, %v6429_v36  ;;  %v8520_v25 = vld [vmem:[#allocation9 + $0x1e0] sm:$0xff] }
 0xa6b   :  { %2917 = vst [vmem:[#allocation2] sm:$0xc] %v2916_v62  ;;  %v2919_v48 = vrot.slane %v2916_v62, 2  ;;  %v8526_v62 = vld [vmem:[#allocation9 + $0x1c8] sm:$0xff] }
 0xa6d   :  { %2986 = vmatmul.mubr.f32.vlgmr.msra.gmra.mxu0 %v2919_v48  ;;  %3057 = vmatmul.mubr.f32.vlgmr.msra.gmra.mxu1 %v2919_v48  ;;  %v8529_v48 = vld [vmem:[#allocation9 + $0x1d8] sm:$0xff] }
 0xa6e   :  { %3111 = vmatpush1.msra.mxu0 %v8062_v55  ;;  %3182 = vmatpush1.msra.mxu1 %v8064_v59  ;;  %v10634_v55 = vld [vmem:[#allocation32_spill] sm:$0xff] }
 0xa6f   :  { %3112 = vmatprep.subr.mxu0 %v8068_v20  ;;  %3183 = vmatprep.subr.mxu1 %v8070_v54  ;;  %v10635_v59 = vld [vmem:[#allocation20_spill] sm:$0xff]  ;;  %v10636_v20 = vld [vmem:[#allocation33_spill] sm:$0xff] }
 0xa70   :  { %3113 = vmatpush1.msra.mxu0 %v8074_v56  ;;  %3184 = vmatpush1.msra.mxu1 %v8076_v52  ;;  %v10637_v54 = vld [vmem:[#allocation21_spill] sm:$0xff]  ;;  %v10638_v56 = vld [vmem:[#allocation34_spill] sm:$0xff] }
 0xa71   :  { %3114 = vmatprep.subr.mxu0 %v8080_v8  ;;  %3185 = vmatprep.subr.mxu1 %v8082_v57  ;;  %v10639_v52 = vld [vmem:[#allocation22_spill] sm:$0xff]  ;;  %v10640_v8 = vld [vmem:[#allocation35_spill] sm:$0xff] }
 0xa72   :  { %3115 = vmatpush1.msra.mxu0 %v8086_v24  ;;  %3186 = vmatpush1.msra.mxu1 %v8088_v27  ;;  %v10641_v57 = vld [vmem:[#allocation23_spill] sm:$0xff]  ;;  %v10642_v24 = vld [vmem:[#allocation36_spill] sm:$0xff]  ;;  %v10643_v27 = vld [vmem:[#allocation25_spill] sm:$0xff] }
 0xa73   :  { %3116 = vmatprep.subr.mxu0 %v8092_v29  ;;  %3187 = vmatprep.subr.mxu1 %v8094_v43  ;;  %v10644_v29 = vld [vmem:[#allocation37_spill] sm:$0xff]  ;;  %v10645_v43 = vld [vmem:[#allocation26_spill] sm:$0xff] }
 0xa74   :  { %3117 = vmatpush1.msra.mxu0 %v8098_v58  ;;  %3188 = vmatpush1.msra.mxu1 %v8100_v53  ;;  %v10646_v58 = vld [vmem:[#allocation38_spill] sm:$0xff]  ;;  %v10647_v53 = vld [vmem:[#allocation27_spill] sm:$0xff] }
 0xa75   :  { %3118 = vmatprep.subr.mxu0 %v8104_v45  ;;  %3189 = vmatprep.subr.mxu1 %v8106_v31  ;;  %v10648_v45 = vld [vmem:[#allocation39_spill] sm:$0xff]  ;;  %v10649_v31 = vld [vmem:[#allocation28_spill] sm:$0xff] }
 0xa76   :  { %3119 = vmatpush1.msra.mxu0 %v8110_v60  ;;  %3190 = vmatpush1.msra.mxu1 %v8112_v35  ;;  %v10650_v60 = vld [vmem:[#allocation40_spill] sm:$0xff]  ;;  %v10651_v35 = vld [vmem:[#allocation29_spill] sm:$0xff] }
 0xa77   :  { %3120 = vmatprep.subr.mxu0 %v8116_v41  ;;  %3191 = vmatprep.subr.mxu1 %v8118_v33  ;;  %v10652_v41 = vld [vmem:[#allocation41_spill] sm:$0xff]  ;;  %v10653_v33 = vmov 0.0  }
 0xa78   :  { %3121 = vmatpush1.msra.mxu0 %v8122_v4  ;;  %3192 = vmatpush1.msra.mxu1 %v8124_v39  ;;  %v10654_v4 = vld [vmem:[#allocation30_spill] sm:$0xff]  ;;  %v10655_v39 = vld [vmem:[#allocation43_spill] sm:$0xff] }
 0xa79   :  { %3122 = vmatprep.subr.mxu0 %v8128_v50  ;;  %3193 = vmatprep.subr.mxu1 %v8130_v51  ;;  %v10656_v50 = vld [vmem:[#allocation24_spill] sm:$0xff] }
 0xa7a   :  { %3123 = vmatpush1.msra.mxu0 %v8134_v3  ;;  %3194 = vmatpush1.msra.mxu1 %v8136_v37 }
 0xa7b   :  { %3124 = vmatprep.subr.mxu0 %v8140_v49  ;;  %3195 = vmatprep.subr.mxu1 %v8142_v46 }
 0xa7c   :  { %3125 = vmatpush1.msra.mxu0 %v8146_v5  ;;  %3196 = vmatpush1.msra.mxu1 %v8148_v7 }
 0xa7d   :  { %3126 = vmatprep.subr.mxu0 %v8152_v16  ;;  %3197 = vmatprep.subr.mxu1 %v8154_v15 }
 0xa7e   :  { %3127 = vmatpush1.msra.mxu0 %v8158_v17  ;;  %3198 = vmatpush1.msra.mxu1 %v8160_v18 }
 0xa7f   :  { %3128 = vmatprep.subr.mxu0 %v8162_v19  ;;  %3199 = vmatprep.subr.mxu1 %v8166_v21 }
 0xa80   :  { %3129 = vmatpush1.msra.mxu0 %v8168_v23  ;;  %3200 = vmatpush1.msra.mxu1 %v10570_v28 }
 0xa81   :  { %3130 = vmatprep.subr.mxu0 %v10571_v10  ;;  %3201 = vmatprep.subr.mxu1 %v10572_v1 }
 0xa82   :  { %3131 = vmatpush1.msra.mxu0 %v10573_v22  ;;  %3202 = vmatpush1.msra.mxu1 %v10574_v63 }
 0xa83   :  { %3132 = vmatprep.subr.mxu0 %v10634_v55  ;;  %3203 = vmatprep.subr.mxu1 %v10635_v59 }
 0xa84   :  { %3133 = vmatpush1.msra.mxu0 %v10636_v20  ;;  %3204 = vmatpush1.msra.mxu1 %v10637_v54 }
 0xa85   :  { %3134 = vmatprep.subr.mxu0 %v10638_v56  ;;  %3205 = vmatprep.subr.mxu1 %v10639_v52 }
 0xa86   :  { %3135 = vmatpush1.msra.mxu0 %v10640_v8  ;;  %3206 = vmatpush1.msra.mxu1 %v10641_v57 }
 0xa87   :  { %3136 = vmatprep.subr.mxu0 %v10642_v24  ;;  %3207 = vmatprep.subr.mxu1 %v10643_v27 }
 0xa88   :  { %3137 = vmatpush1.msra.mxu0 %v10644_v29  ;;  %3208 = vmatpush1.msra.mxu1 %v10645_v43 }
 0xa89   :  { %3138 = vmatprep.subr.mxu0 %v10646_v58  ;;  %3209 = vmatprep.subr.mxu1 %v10647_v53 }
 0xa8a   :  { %3139 = vmatpush1.msra.mxu0 %v10648_v45  ;;  %3210 = vmatpush1.msra.mxu1 %v10649_v31 }
 0xa8b   :  { %3140 = vmatprep.subr.mxu0 %v10650_v60  ;;  %3211 = vmatprep.subr.mxu1 %v10651_v35 }
 0xa8c   :  { %3141 = vmatpush1.msra.mxu0 %v10652_v41  ;;  %3174 = vmatprep.mubr.f32.mxu0 %v10653_v33 }
 0xa8d   :  { %3212 = vmatpush1.msra.mxu1 %v10654_v4  ;;  %3245 = vmatprep.mubr.f32.mxu1 %v10653_v33 }
 0xa8e   :  { %3299 = vmatprep.subr.mxu0 %v10655_v39  ;;  %3370 = vmatprep.subr.mxu1 %v10656_v50  ;;  %v8532_v39 = vld [vmem:[#allocation9 + $0x1c0] sm:$0xff]  ;;  %v8535_v50 = vld [vmem:[#allocation9 + $0x1d0] sm:$0xff] }
 0xb2d   :  { %v2987_v51 = vpop.f32.mrf.mxu0  ;;  %v3058_v16 = vpop.f32.mrf.mxu1 }
 0xb2e   :  { %v3067_v3 = vrot.slane %v2987_v51, 4  ;;  %v3069_v17 = vrot.slane %v3058_v16, 4  ;;  %v8538_v51 = vld [vmem:[#allocation9 + $0x1a8] sm:$0xff]  ;;  %v8559_v16 = vld [vmem:[#allocation9 + $0x190] sm:$0xff] }
 0xb2f   :  { %v2989_v37 = vpop.f32.mrf.mxu0  ;;  %v3060_v18 = vpop.f32.mrf.mxu1 }
 0xb30   :  { %v3075_v49 = vadd.f32 %v3067_v3, %v10631_v47  ;;  %v3068_v46 = vrot.slane %v2989_v37, 4  ;;  %v3077_v19 = vadd.f32 %v3069_v17, %v10633_v12  ;;  %v3070_v21 = vrot.slane %v3060_v18, 4  ;;  %v8541_v3 = vld [vmem:[#allocation9 + $0x1b8] sm:$0xff]  ;;  %v8544_v37 = vld [vmem:[#allocation9 + $0x1a0] sm:$0xff] }
 0xb31   :  { %v8565_v17 = vld [vmem:[#allocation9 + $0x178] sm:$0xff]  ;;  %v8568_v18 = vld [vmem:[#allocation9 + $0x160] sm:$0xff] }
 0xb32   :  { %v6038_v5 = vmul.f32 -1.442695, %v3075_v49  ;;  %v3076_v7 = vadd.f32 %v3068_v46, %v10632_v32  ;;  %v6040_v23 = vmul.f32 -1.442695, %v3077_v19  ;;  %v3078_v10 = vadd.f32 %v3070_v21, %v8366_v44  ;;  %v8547_v49 = vld [vmem:[#allocation9 + $0x1b0] sm:$0xff]  ;;  %v8550_v46 = vld [vmem:[#allocation9 + $0x188] sm:$0xff] }
 0xb33   :  { %v8571_v19 = vld [vmem:[#allocation9 + $0x170] sm:$0xff]  ;;  %v8574_v21 = vld [vmem:[#allocation9 + $0x148] sm:$0xff] }
 0xb34   :  { %6432 = vpow2.f32 %v6038_v5  ;;  %v6039_v15 = vmul.f32 -1.442695, %v3076_v7  ;;  %v8553_v5 = vld [vmem:[#allocation9 + $0x198] sm:$0xff]  ;;  %v8556_v7 = vld [vmem:[#allocation9 + $0x180] sm:$0xff] }
 0xb36   :  { %6434 = vpow2.f32 %v6039_v15  ;;  %v8562_v15 = vld [vmem:[#allocation9 + $0x168] sm:$0xff] }
 0xb37   :  { %6436 = vpow2.f32 %v6040_v23  ;;  %v8577_v23 = vld [vmem:[#allocation9 + $0x158] sm:$0xff] }
 0xb41   :  { %v6433_v28 = vpop.eup %6432 }
 0xb42   :  { %v3088_v1 = vadd.f32 1.0, %v6433_v28  ;;  %v8580_v28 = vld [vmem:[#allocation9 + $0x140] sm:$0xff] }
 0xb43   :  { %v6435_v22 = vpop.eup %6434 }
 0xb44   :  { %6438 = vrcp.f32 %v3088_v1  ;;  %v3089_v38 = vadd.f32 1.0, %v6435_v22  ;;  %v6437_v11 = vpop.eup %6436  ;;  %v8586_v1 = vld [vmem:[#allocation9 + $0x128] sm:$0xff]  ;;  %v8589_v22 = vld [vmem:[#allocation9 + $0x138] sm:$0xff] }
 0xb45   :  { %6440 = vtanh.f32 %v3078_v10  ;;  %v3090_v9 = vadd.f32 1.0, %v6437_v11  ;;  %v8583_v10 = vld [vmem:[#allocation9 + $0x150] sm:$0xff] }
 0xb46   :  { %6442 = vrcp.f32 %v3089_v38  ;;  %v8592_v38 = vld [vmem:[#allocation9 + $0x120] sm:$0xff]  ;;  %v8595_v11 = vld [vmem:[#allocation9 + $0x130] sm:$0xff] }
 0xb47   :  { %6444 = vrcp.f32 %v3090_v9  ;;  %v8610_v9 = vld [vmem:[#allocation9 + $0xe8] sm:$0xff] }
 0xb51   :  { %v6439_v42 = vpop.eup %6438 }
 0xb52   :  { %v6441_v6 = vpop.eup %6440 }
 0xb53   :  { %v6443_v13 = vpop.eup %6442  ;;  %v3102_v2 = vmul.f32 %v6441_v6, %v6439_v42  ;;  %v8598_v42 = vld [vmem:[#allocation9 + $0x108] sm:$0xff]  ;;  %v8601_v6 = vld [vmem:[#allocation9 + $0x118] sm:$0xff] }
 0xb54   :  { %v3101_v34 = vmul.f32 %v6443_v13, %v3099_v26  ;;  %v6445_v0 = vpop.eup %6444  ;;  %v8604_v26 = vld [vmem:[#allocation9 + $0x100] sm:$0xff]  ;;  %v8607_v13 = vld [vmem:[#allocation9 + $0x110] sm:$0xff] }
 0xb56   :  { %v8517_v61 = vadd.f32 %v3102_v2, %v3101_v34  ;;  %v8613_v34 = vld [vmem:[#allocation9 + $0xf8] sm:$0xff]  ;;  %v8616_v2 = vld [vmem:[#allocation9 + $0xe0] sm:$0xff] }
 0xb57   :  { %10657 = vst [vmem:[#allocation53_spill] sm:$0xff] %v8613_v34  ;;  %10658 = vst [vmem:[#allocation55_spill] sm:$0xff] %v8616_v2 }
 0xb58   :  { %6446 = vtanh.f32 %v8517_v61 }
 0xb65   :  { %v6447_v14 = vpop.eup %6446 }
 0xb66   :  { %v3105_v40 = vmul.f32 %v6447_v14, %v6445_v0  ;;  %v8619_v0 = vld [vmem:[#allocation9 + $0xf0] sm:$0xff]  ;;  %v8622_v14 = vld [vmem:[#allocation9 + $0xc8] sm:$0xff] }
 0xb67   :  { %10659 = vst [vmem:[#allocation54_spill] sm:$0xff] %v8619_v0  ;;  %10660 = vst [vmem:[#allocation19_spill] sm:$0xff] %v8622_v14 }
 0xb68   :  { %3106 = vst [vmem:[#allocation2] sm:$0x30] %v3105_v40  ;;  %v3108_v36 = vrot.slane %v3105_v40, 4  ;;  %v8625_v40 = vld [vmem:[#allocation9 + $0xd8] sm:$0xff] }
 0xb6a   :  { %3175 = vmatmul.mubr.f32.vlgmr.msra.gmra.mxu0 %v3108_v36  ;;  %3246 = vmatmul.mubr.f32.vlgmr.msra.gmra.mxu1 %v3108_v36  ;;  %v8628_v36 = vld [vmem:[#allocation9 + $0xc0] sm:$0xff] }
 0xb6b   :  { %3300 = vmatpush1.msra.mxu0 %v8520_v25  ;;  %3371 = vmatpush1.msra.mxu1 %v8523_v30 }
 0xb6c   :  { %3301 = vmatprep.subr.mxu0 %v8526_v62  ;;  %3372 = vmatprep.subr.mxu1 %v8529_v48 }
 0xb6d   :  { %3302 = vmatpush1.msra.mxu0 %v8532_v39  ;;  %3373 = vmatpush1.msra.mxu1 %v8535_v50 }
 0xb6e   :  { %3303 = vmatprep.subr.mxu0 %v8538_v51  ;;  %3374 = vmatprep.subr.mxu1 %v8541_v3 }
 0xb6f   :  { %3304 = vmatpush1.msra.mxu0 %v8544_v37  ;;  %3375 = vmatpush1.msra.mxu1 %v8547_v49 }
 0xb70   :  { %3305 = vmatprep.subr.mxu0 %v8550_v46  ;;  %3376 = vmatprep.subr.mxu1 %v8553_v5 }
 0xb71   :  { %3306 = vmatpush1.msra.mxu0 %v8556_v7  ;;  %3377 = vmatpush1.msra.mxu1 %v8559_v16 }
 0xb72   :  { %3307 = vmatprep.subr.mxu0 %v8562_v15  ;;  %3378 = vmatprep.subr.mxu1 %v8565_v17 }
 0xb73   :  { %3308 = vmatpush1.msra.mxu0 %v8568_v18  ;;  %3379 = vmatpush1.msra.mxu1 %v8571_v19 }
 0xb74   :  { %3309 = vmatprep.subr.mxu0 %v8574_v21  ;;  %3380 = vmatprep.subr.mxu1 %v8577_v23 }
 0xb75   :  { %3310 = vmatpush1.msra.mxu0 %v8580_v28  ;;  %3381 = vmatpush1.msra.mxu1 %v8583_v10 }
 0xb76   :  { %3311 = vmatprep.subr.mxu0 %v8586_v1  ;;  %3382 = vmatprep.subr.mxu1 %v8589_v22 }
 0xb77   :  { %3312 = vmatpush1.msra.mxu0 %v8592_v38  ;;  %3383 = vmatpush1.msra.mxu1 %v8595_v11 }
 0xb78   :  { %3313 = vmatprep.subr.mxu0 %v8598_v42  ;;  %3384 = vmatprep.subr.mxu1 %v8601_v6 }
 0xb79   :  { %3314 = vmatpush1.msra.mxu0 %v8604_v26  ;;  %3385 = vmatpush1.msra.mxu1 %v8607_v13 }
 0xb7a   :  { %3315 = vmatprep.subr.mxu0 %v8610_v9  ;;  %3386 = vmatprep.subr.mxu1 %v8613_v34  ;;  %v8631_v34 = vld [vmem:[#allocation9 + $0xd0] sm:$0xff] }
 0xb7b   :  { %3316 = vmatpush1.msra.mxu0 %v8616_v2  ;;  %3387 = vmatpush1.msra.mxu1 %v8619_v0  ;;  %v8634_v2 = vld [vmem:[#allocation9 + $0xa8] sm:$0xff]  ;;  %v8637_v0 = vld [vmem:[#allocation9 + $0xb8] sm:$0xff] }
 0xb7c   :  { %3317 = vmatprep.subr.mxu0 %v8622_v14  ;;  %3388 = vmatprep.subr.mxu1 %v8625_v40  ;;  %v8640_v14 = vld [vmem:[#allocation9 + $0xa0] sm:$0xff] }
 0xb7d   :  { %3318 = vmatpush1.msra.mxu0 %v8628_v36  ;;  %3389 = vmatpush1.msra.mxu1 %v8631_v34 }
 0xb7e   :  { %3319 = vmatprep.subr.mxu0 %v8634_v2  ;;  %3390 = vmatprep.subr.mxu1 %v8637_v0 }
 0xb7f   :  { %3320 = vmatpush1.msra.mxu0 %v8640_v14  ;;  %3391 = vmatpush1.msra.mxu1 %v10574_v63  ;;  %v8666_v63 = vld [vmem:[#allocation9 + $0x1e8] sm:$0xff] }
 0xb80   :  { %3321 = vmatprep.subr.mxu0 %v10634_v55  ;;  %3392 = vmatprep.subr.mxu1 %v10635_v59  ;;  %10661 = vst [vmem:[#allocation32_spill] sm:$0xff] %v8666_v63  ;;  %v8669_v55 = vld [vmem:[#allocation9 + $0x1f8] sm:$0xff] }
 0xb81   :  { %3322 = vmatpush1.msra.mxu0 %v10636_v20  ;;  %3393 = vmatpush1.msra.mxu1 %v10637_v54  ;;  %10662 = vst [vmem:[#allocation20_spill] sm:$0xff] %v8669_v55 }
 0xb82   :  { %3323 = vmatprep.subr.mxu0 %v10638_v56  ;;  %3394 = vmatprep.subr.mxu1 %v10639_v52 }
 0xb83   :  { %3324 = vmatpush1.msra.mxu0 %v10640_v8  ;;  %3395 = vmatpush1.msra.mxu1 %v10641_v57 }
 0xb84   :  { %3325 = vmatprep.subr.mxu0 %v10642_v24  ;;  %3396 = vmatprep.subr.mxu1 %v10643_v27 }
 0xb85   :  { %3326 = vmatpush1.msra.mxu0 %v10644_v29  ;;  %3397 = vmatpush1.msra.mxu1 %v10645_v43 }
 0xb86   :  { %3327 = vmatprep.subr.mxu0 %v10646_v58  ;;  %3398 = vmatprep.subr.mxu1 %v10647_v53 }
 0xb87   :  { %3328 = vmatpush1.msra.mxu0 %v10648_v45  ;;  %3399 = vmatpush1.msra.mxu1 %v10649_v31 }
 0xb88   :  { %3329 = vmatprep.subr.mxu0 %v10650_v60  ;;  %3400 = vmatprep.subr.mxu1 %v10651_v35 }
 0xb89   :  { %3330 = vmatpush1.msra.mxu0 %v10652_v41  ;;  %3363 = vmatprep.mubr.f32.mxu0 %v10653_v33 }
 0xb8a   :  { %3401 = vmatpush1.msra.mxu1 %v10654_v4  ;;  %3434 = vmatprep.mubr.f32.mxu1 %v10653_v33 }
 0xb8b   :  { %3473 = vmatprep.subr.mxu0 %v8666_v63  ;;  %3544 = vmatprep.subr.mxu1 %v8669_v55 }
 0xc2a   :  { %v3176_v59 = vpop.f32.mrf.mxu0  ;;  %v3247_v24 = vpop.f32.mrf.mxu1 }
 0xc2b   :  { %v3256_v20 = vrot.slane %v3176_v59, 2  ;;  %v3258_v29 = vrot.slane %v3247_v24, 2 }
 0xc2c   :  { %v3178_v54 = vpop.f32.mrf.mxu0  ;;  %v3249_v43 = vpop.f32.mrf.mxu1 }
 0xc2d   :  { %v3264_v56 = vadd.f32 %v3256_v20, %v10631_v47  ;;  %v3257_v52 = vrot.slane %v3178_v54, 2  ;;  %v3266_v58 = vadd.f32 %v3258_v29, %v10633_v12  ;;  %v3259_v53 = vrot.slane %v3249_v43, 2  ;;  %v10664_v29 = vld [vmem:[#allocation55_spill] sm:$0xff]  ;;  %v10665_v43 = vld [vmem:[#allocation54_spill] sm:$0xff] }
 0xc2e   :  { %v3288_v20 = vrot.slane %v8517_v61, 6  ;;  %v10663_v61 = vld [vmem:[#allocation53_spill] sm:$0xff] }
 0xc2f   :  { %v6041_v8 = vmul.f32 -1.442695, %v3264_v56  ;;  %v3265_v57 = vadd.f32 %v3257_v52, %v10632_v32  ;;  %v6043_v45 = vmul.f32 -1.442695, %v3266_v58  ;;  %v3267_v60 = vadd.f32 %v3259_v53, %v8366_v44  ;;  %v10666_v58 = vld [vmem:[#allocation19_spill] sm:$0xff]  ;;  %v8721_v53 = vld [vmem:[#allocation9 + $0xb0] sm:$0xff] }
 0xc31   :  { %6448 = vpow2.f32 %v6041_v8  ;;  %v6042_v27 = vmul.f32 -1.442695, %v3265_v57 }
 0xc33   :  { %6450 = vpow2.f32 %v6042_v27 }
 0xc34   :  { %6452 = vpow2.f32 %v6043_v45  ;;  %v8724_v45 = vld [vmem:[#allocation9 + $0x88] sm:$0xff] }
 0xc35   :  { %10667 = vst [vmem:[#allocation33_spill] sm:$0xff] %v8724_v45 }
 0xc3e   :  { %v6449_v31 = vpop.eup %6448 }
 0xc3f   :  { %v3277_v35 = vadd.f32 1.0, %v6449_v31  ;;  %v8727_v31 = vld [vmem:[#allocation9 + $0x98] sm:$0xff] }
 0xc40   :  { %v6451_v41 = vpop.eup %6450  ;;  %10668 = vst [vmem:[#allocation21_spill] sm:$0xff] %v8727_v31 }
 0xc41   :  { %6454 = vrcp.f32 %v3277_v35  ;;  %v3278_v47 = vadd.f32 1.0, %v6451_v41  ;;  %v6453_v32 = vpop.eup %6452  ;;  %v8733_v35 = vld [vmem:[#allocation9 + $0x90] sm:$0xff]  ;;  %v8736_v41 = vld [vmem:[#allocation9 + $0x68] sm:$0xff] }
 0xc42   :  { %6456 = vtanh.f32 %v3267_v60  ;;  %v3279_v56 = vadd.f32 1.0, %v6453_v32  ;;  %v8730_v60 = vld [vmem:[#allocation9 + $0x80] sm:$0xff]  ;;  %10670 = vst [vmem:[#allocation22_spill] sm:$0xff] %v8733_v35  ;;  %10671 = vst [vmem:[#allocation35_spill] sm:$0xff] %v8736_v41 }
 0xc43   :  { %6458 = vrcp.f32 %v3278_v47  ;;  %10669 = vst [vmem:[#allocation34_spill] sm:$0xff] %v8730_v60  ;;  %v8739_v47 = vld [vmem:[#allocation9 + $0x78] sm:$0xff]  ;;  %v8742_v32 = vld [vmem:[#allocation9 + $0x60] sm:$0xff] }
 0xc44   :  { %6460 = vrcp.f32 %v3279_v56  ;;  %10672 = vst [vmem:[#allocation23_spill] sm:$0xff] %v8739_v47  ;;  %10673 = vst [vmem:[#allocation36_spill] sm:$0xff] %v8742_v32  ;;  %v8757_v56 = vld [vmem:[#allocation9 + $0x50] sm:$0xff] }
 0xc45   :  { %10678 = vst [vmem:[#allocation27_spill] sm:$0xff] %v8757_v56 }
 0xc4e   :  { %v6455_v4 = vpop.eup %6454 }
 0xc4f   :  { %v6457_v59 = vpop.eup %6456 }
 0xc50   :  { %v6459_v54 = vpop.eup %6458  ;;  %v3291_v52 = vmul.f32 %v6457_v59, %v6455_v4  ;;  %v8745_v4 = vld [vmem:[#allocation9 + $0x70] sm:$0xff]  ;;  %v8748_v59 = vld [vmem:[#allocation9 + $0x48] sm:$0xff] }
 0xc51   :  { %v3290_v12 = vmul.f32 %v6459_v54, %v3288_v20  ;;  %v6461_v44 = vpop.eup %6460  ;;  %10674 = vst [vmem:[#allocation25_spill] sm:$0xff] %v8745_v4  ;;  %10675 = vst [vmem:[#allocation37_spill] sm:$0xff] %v8748_v59  ;;  %v8751_v20 = vld [vmem:[#allocation9 + $0x58] sm:$0xff]  ;;  %v8754_v54 = vld [vmem:[#allocation9 + $0x40] sm:$0xff] }
 0xc52   :  { %10676 = vst [vmem:[#allocation26_spill] sm:$0xff] %v8751_v20  ;;  %10677 = vst [vmem:[#allocation38_spill] sm:$0xff] %v8754_v54 }
 0xc53   :  { %v8677_v8 = vadd.f32 %v3291_v52, %v3290_v12  ;;  %v8760_v12 = vld [vmem:[#allocation9 + $0x28] sm:$0xff]  ;;  %v8763_v52 = vld [vmem:[#allocation9 + $0x38] sm:$0xff] }
 0xc54   :  { %10679 = vst [vmem:[#allocation39_spill] sm:$0xff] %v8760_v12  ;;  %10680 = vst [vmem:[#allocation28_spill] sm:$0xff] %v8763_v52 }
 0xc55   :  { %6462 = vtanh.f32 %v8677_v8 }
 0xc62   :  { %v6463_v57 = vpop.eup %6462 }
 0xc63   :  { %v3294_v24 = vmul.f32 %v6463_v57, %v6461_v44  ;;  %v8766_v44 = vld [vmem:[#allocation9 + $0x20] sm:$0xff]  ;;  %v8769_v57 = vld [vmem:[#allocation9 + $0x30] sm:$0xff] }
 0xc64   :  { %10681 = vst [vmem:[#allocation40_spill] sm:$0xff] %v8766_v44  ;;  %10682 = vst [vmem:[#allocation29_spill] sm:$0xff] %v8769_v57 }
 0xc65   :  { %3295 = vst [vmem:[#allocation2] sm:$0xc0] %v3294_v24  ;;  %v3297_v27 = vrot.slane %v3294_v24, 6  ;;  %v8772_v24 = vld [vmem:[#allocation9 + $0x8] sm:$0xff] }
 0xc66   :  { %10683 = vst [vmem:[#allocation41_spill] sm:$0xff] %v8772_v24 }
 0xc67   :  { %3364 = vmatmul.mubr.f32.vlgmr.msra.gmra.mxu0 %v3297_v27  ;;  %3435 = vmatmul.mubr.f32.vlgmr.msra.gmra.mxu1 %v3297_v27  ;;  %v8775_v27 = vld [vmem:[#allocation9 + $0x18] sm:$0xff] }
 0xc68   :  { %3474 = vmatpush1.msra.mxu0 %v8520_v25  ;;  %3545 = vmatpush1.msra.mxu1 %v8523_v30  ;;  %10684 = vst [vmem:[#allocation30_spill] sm:$0xff] %v8775_v27 }
 0xc69   :  { %3475 = vmatprep.subr.mxu0 %v8526_v62  ;;  %3546 = vmatprep.subr.mxu1 %v8529_v48 }
 0xc6a   :  { %3476 = vmatpush1.msra.mxu0 %v8532_v39  ;;  %3547 = vmatpush1.msra.mxu1 %v8535_v50 }
 0xc6b   :  { %3477 = vmatprep.subr.mxu0 %v8538_v51  ;;  %3548 = vmatprep.subr.mxu1 %v8541_v3 }
 0xc6c   :  { %3478 = vmatpush1.msra.mxu0 %v8544_v37  ;;  %3549 = vmatpush1.msra.mxu1 %v8547_v49 }
 0xc6d   :  { %3479 = vmatprep.subr.mxu0 %v8550_v46  ;;  %3550 = vmatprep.subr.mxu1 %v8553_v5 }
 0xc6e   :  { %3480 = vmatpush1.msra.mxu0 %v8556_v7  ;;  %3551 = vmatpush1.msra.mxu1 %v8559_v16 }
 0xc6f   :  { %3481 = vmatprep.subr.mxu0 %v8562_v15  ;;  %3552 = vmatprep.subr.mxu1 %v8565_v17 }
 0xc70   :  { %3482 = vmatpush1.msra.mxu0 %v8568_v18  ;;  %3553 = vmatpush1.msra.mxu1 %v8571_v19 }
 0xc71   :  { %3483 = vmatprep.subr.mxu0 %v8574_v21  ;;  %3554 = vmatprep.subr.mxu1 %v8577_v23 }
 0xc72   :  { %3484 = vmatpush1.msra.mxu0 %v8580_v28  ;;  %3555 = vmatpush1.msra.mxu1 %v8583_v10 }
 0xc73   :  { %3485 = vmatprep.subr.mxu0 %v8586_v1  ;;  %3556 = vmatprep.subr.mxu1 %v8589_v22 }
 0xc74   :  { %3486 = vmatpush1.msra.mxu0 %v8592_v38  ;;  %3557 = vmatpush1.msra.mxu1 %v8595_v11 }
 0xc75   :  { %3487 = vmatprep.subr.mxu0 %v8598_v42  ;;  %3558 = vmatprep.subr.mxu1 %v8601_v6 }
 0xc76   :  { %3488 = vmatpush1.msra.mxu0 %v8604_v26  ;;  %3559 = vmatpush1.msra.mxu1 %v8607_v13 }
 0xc77   :  { %3489 = vmatprep.subr.mxu0 %v8610_v9  ;;  %3560 = vmatprep.subr.mxu1 %v10663_v61 }
 0xc78   :  { %3490 = vmatpush1.msra.mxu0 %v10664_v29  ;;  %3561 = vmatpush1.msra.mxu1 %v10665_v43 }
 0xc79   :  { %3491 = vmatprep.subr.mxu0 %v10666_v58  ;;  %3562 = vmatprep.subr.mxu1 %v8625_v40 }
 0xc7a   :  { %3492 = vmatpush1.msra.mxu0 %v8628_v36  ;;  %3563 = vmatpush1.msra.mxu1 %v8631_v34 }
 0xc7b   :  { %3493 = vmatprep.subr.mxu0 %v8634_v2  ;;  %3564 = vmatprep.subr.mxu1 %v8637_v0 }
 0xc7c   :  { %3494 = vmatpush1.msra.mxu0 %v8640_v14  ;;  %3565 = vmatpush1.msra.mxu1 %v8721_v53 }
 0xc7d   :  { %3495 = vmatprep.subr.mxu0 %v8724_v45  ;;  %3566 = vmatprep.subr.mxu1 %v8727_v31 }
 0xc7e   :  { %3496 = vmatpush1.msra.mxu0 %v8730_v60  ;;  %3567 = vmatpush1.msra.mxu1 %v8733_v35 }
 0xc7f   :  { %3497 = vmatprep.subr.mxu0 %v8736_v41  ;;  %3568 = vmatprep.subr.mxu1 %v8739_v47  ;;  %v10696_v41 = vld [vmem:[#allocation31_spill] sm:$0xff] }
 0xc80   :  { %3498 = vmatpush1.msra.mxu0 %v8742_v32  ;;  %3569 = vmatpush1.msra.mxu1 %v8745_v4  ;;  %v10694_v32 = vld [vmem:[#allocation56_spill] sm:$0xff] }
 0xc81   :  { %3499 = vmatprep.subr.mxu0 %v8748_v59  ;;  %3570 = vmatprep.subr.mxu1 %v8751_v20 }
 0xc82   :  { %3500 = vmatpush1.msra.mxu0 %v8754_v54  ;;  %3571 = vmatpush1.msra.mxu1 %v8757_v56  ;;  %v10690_v56 = vld [vmem:[#allocation49_spill] sm:$0xff]  ;;  %v10691_v54 = vld [vmem:[#allocation48_spill] sm:$0xff] }
 0xc83   :  { %3501 = vmatprep.subr.mxu0 %v8760_v12  ;;  %3572 = vmatprep.subr.mxu1 %v8763_v52  ;;  %v8778_v12 = vld [vmem:[#allocation9] sm:$0xff]  ;;  %v8782_v52 = vld [vmem:[#allocation9 + $0x10] sm:$0xff] }
 0xc84   :  { %3502 = vmatpush1.msra.mxu0 %v8766_v44  ;;  %3573 = vmatpush1.msra.mxu1 %v8769_v57  ;;  %10685 = vst [vmem:[#allocation43_spill] sm:$0xff] %v8778_v12  ;;  %10686 = vst [vmem:[#allocation24_spill] sm:$0xff] %v8782_v52  ;;  %v10688_v57 = vld [vmem:[#allocation47_spill] sm:$0xff] }
 0xc85   :  { %3503 = vmatprep.subr.mxu0 %v8772_v24  ;;  %3574 = vmatprep.subr.mxu1 %v8775_v27  ;;  %v10687_v24 = vld [vmem:[#allocation42_spill] sm:$0xff] }
 0xc86   :  { %3504 = vmatpush1.msra.mxu0 %v8778_v12  ;;  %3537 = vmatprep.mubr.f32.mxu0 %v10653_v33  ;;  %v8790_v44 = vadd.f32 %v10688_v57, %v10687_v24  ;;  %v8794_v12 = vadd.f32 %v10691_v54, %v10690_v56  ;;  %v10697_v54 = vld [vmem:[#allocation18_spill] sm:$0xff] }
 0xc87   :  { %3575 = vmatpush1.msra.mxu1 %v8782_v52  ;;  %3608 = vmatprep.mubr.f32.mxu1 %v10653_v33  ;;  %v8805_v56 = vadd.f32 %v10697_v54, %v10696_v41 }
 0xc88   :  { %3662 = vmatprep.subr.mxu0 %v8666_v63  ;;  %3733 = vmatprep.subr.mxu1 %v8669_v55  ;;  %10689 = vst [vmem:[#allocation53_spill] sm:$0xff] %v8790_v44  ;;  %10692 = vst [vmem:[#allocation55_spill] sm:$0xff] %v8794_v12  ;;  %v10693_v55 = vld [vmem:[#allocation50_spill] sm:$0xff] }
 0xc89   :  { %v8800_v47 = vadd.f32 %v10694_v32, %v10693_v55 }
 0xc8b   :  { %10695 = vst [vmem:[#allocation54_spill] sm:$0xff] %v8800_v47 }
 0xd27   :  { %v3365_v27 = vpop.f32.mrf.mxu0  ;;  %v3436_v63 = vpop.f32.mrf.mxu1 }
 0xd28   :  { %v3441_v20 = vadd.f32 %v3365_v27, %v8790_v44  ;;  %v3443_v57 = vadd.f32 %v3436_v63, %v8800_v47  ;;  %v3465_v63 = vrot.slane %v8677_v8, 6  ;;  %v10698_v8 = vld [vmem:[#allocation35_spill] sm:$0xff] }
 0xd29   :  { %v3367_v59 = vpop.f32.mrf.mxu0  ;;  %v3438_v24 = vpop.f32.mrf.mxu1 }
 0xd2a   :  { %v6044_v4 = vmul.f32 -1.442695, %v3441_v20  ;;  %v3442_v52 = vadd.f32 %v3367_v59, %v8794_v12  ;;  %v6046_v27 = vmul.f32 -1.442695, %v3443_v57  ;;  %v3444_v20 = vadd.f32 %v3438_v24, %v8805_v56 }
 0xd2c   :  { %6464 = vpow2.f32 %v6044_v4  ;;  %v6045_v33 = vmul.f32 -1.442695, %v3442_v52 }
 0xd2e   :  { %6466 = vpow2.f32 %v6045_v33 }
 0xd2f   :  { %6468 = vpow2.f32 %v6046_v27 }
 0xd39   :  { %v6465_v44 = vpop.eup %6464 }
 0xd3a   :  { %v3454_v59 = vadd.f32 1.0, %v6465_v44 }
 0xd3b   :  { %v6467_v4 = vpop.eup %6466 }
 0xd3c   :  { %6470 = vrcp.f32 %v3454_v59  ;;  %v3455_v33 = vadd.f32 1.0, %v6467_v4  ;;  %v6469_v55 = vpop.eup %6468  ;;  %v10702_v59 = vld [vmem:[#allocation37_spill] sm:$0xff]  ;;  %v10703_v4 = vld [vmem:[#allocation26_spill] sm:$0xff] }
 0xd3d   :  { %6472 = vtanh.f32 %v3444_v20  ;;  %v3456_v12 = vadd.f32 1.0, %v6469_v55  ;;  %v10701_v20 = vld [vmem:[#allocation25_spill] sm:$0xff]  ;;  %v10705_v55 = vld [vmem:[#allocation27_spill] sm:$0xff] }
 0xd3e   :  { %6474 = vrcp.f32 %v3455_v33  ;;  %v10704_v33 = vld [vmem:[#allocation38_spill] sm:$0xff] }
 0xd3f   :  { %6476 = vrcp.f32 %v3456_v12  ;;  %v10700_v12 = vld [vmem:[#allocation36_spill] sm:$0xff] }
 0xd49   :  { %v6471_v32 = vpop.eup %6470 }
 0xd4a   :  { %v6473_v52 = vpop.eup %6472 }
 0xd4b   :  { %v6475_v47 = vpop.eup %6474  ;;  %v3468_v54 = vmul.f32 %v6473_v52, %v6471_v32  ;;  %v10706_v32 = vld [vmem:[#allocation39_spill] sm:$0xff]  ;;  %v10707_v52 = vld [vmem:[#allocation28_spill] sm:$0xff] }
 0xd4c   :  { %v3467_v41 = vmul.f32 %v6475_v47, %v3465_v63  ;;  %v6477_v44 = vpop.eup %6476  ;;  %v10699_v47 = vld [vmem:[#allocation23_spill] sm:$0xff]  ;;  %v10708_v63 = vld [vmem:[#allocation40_spill] sm:$0xff] }
 0xd4e   :  { %v8809_v57 = vadd.f32 %v3468_v54, %v3467_v41  ;;  %v10709_v41 = vld [vmem:[#allocation29_spill] sm:$0xff] }
 0xd4f   :  { %v10710_v54 = vld [vmem:[#allocation41_spill] sm:$0xff] }
 0xd50   :  { %6478 = vtanh.f32 %v8809_v57 }
 0xd5d   :  { %v6479_v24 = vpop.eup %6478 }
 0xd5e   :  { %v3471_v27 = vmul.f32 %v6479_v24, %v6477_v44  ;;  %v10711_v44 = vld [vmem:[#allocation30_spill] sm:$0xff]  ;;  %v10712_v24 = vld [vmem:[#allocation43_spill] sm:$0xff] }
 0xd60   :  { %3472 = vst [vmem:[#allocation2 + $0x8] sm:$0x3] %v3471_v27  ;;  %3538 = vmatmul.mubr.f32.vlgmr.msra.gmra.mxu0 %v3471_v27  ;;  %3609 = vmatmul.mubr.f32.vlgmr.msra.gmra.mxu1 %v3471_v27  ;;  %v10713_v27 = vmov 0.0  }
 0xd61   :  { %3663 = vmatpush1.msra.mxu0 %v8520_v25  ;;  %3734 = vmatpush1.msra.mxu1 %v8523_v30 }
 0xd62   :  { %3664 = vmatprep.subr.mxu0 %v8526_v62  ;;  %3735 = vmatprep.subr.mxu1 %v8529_v48 }
 0xd63   :  { %3665 = vmatpush1.msra.mxu0 %v8532_v39  ;;  %3736 = vmatpush1.msra.mxu1 %v8535_v50 }
 0xd64   :  { %3666 = vmatprep.subr.mxu0 %v8538_v51  ;;  %3737 = vmatprep.subr.mxu1 %v8541_v3 }
 0xd65   :  { %3667 = vmatpush1.msra.mxu0 %v8544_v37  ;;  %3738 = vmatpush1.msra.mxu1 %v8547_v49 }
 0xd66   :  { %3668 = vmatprep.subr.mxu0 %v8550_v46  ;;  %3739 = vmatprep.subr.mxu1 %v8553_v5 }
 0xd67   :  { %3669 = vmatpush1.msra.mxu0 %v8556_v7  ;;  %3740 = vmatpush1.msra.mxu1 %v8559_v16 }
 0xd68   :  { %3670 = vmatprep.subr.mxu0 %v8562_v15  ;;  %3741 = vmatprep.subr.mxu1 %v8565_v17 }
 0xd69   :  { %3671 = vmatpush1.msra.mxu0 %v8568_v18  ;;  %3742 = vmatpush1.msra.mxu1 %v8571_v19 }
 0xd6a   :  { %3672 = vmatprep.subr.mxu0 %v8574_v21  ;;  %3743 = vmatprep.subr.mxu1 %v8577_v23 }
 0xd6b   :  { %3673 = vmatpush1.msra.mxu0 %v8580_v28  ;;  %3744 = vmatpush1.msra.mxu1 %v8583_v10 }
 0xd6c   :  { %3674 = vmatprep.subr.mxu0 %v8586_v1  ;;  %3745 = vmatprep.subr.mxu1 %v8589_v22 }
 0xd6d   :  { %3675 = vmatpush1.msra.mxu0 %v8592_v38  ;;  %3746 = vmatpush1.msra.mxu1 %v8595_v11 }
 0xd6e   :  { %3676 = vmatprep.subr.mxu0 %v8598_v42  ;;  %3747 = vmatprep.subr.mxu1 %v8601_v6 }
 0xd6f   :  { %3677 = vmatpush1.msra.mxu0 %v8604_v26  ;;  %3748 = vmatpush1.msra.mxu1 %v8607_v13 }
 0xd70   :  { %3678 = vmatprep.subr.mxu0 %v8610_v9  ;;  %3749 = vmatprep.subr.mxu1 %v10663_v61 }
 0xd71   :  { %3679 = vmatpush1.msra.mxu0 %v10664_v29  ;;  %3750 = vmatpush1.msra.mxu1 %v10665_v43 }
 0xd72   :  { %3680 = vmatprep.subr.mxu0 %v10666_v58  ;;  %3751 = vmatprep.subr.mxu1 %v8625_v40 }
 0xd73   :  { %3681 = vmatpush1.msra.mxu0 %v8628_v36  ;;  %3752 = vmatpush1.msra.mxu1 %v8631_v34 }
 0xd74   :  { %3682 = vmatprep.subr.mxu0 %v8634_v2  ;;  %3753 = vmatprep.subr.mxu1 %v8637_v0 }
 0xd75   :  { %3683 = vmatpush1.msra.mxu0 %v8640_v14  ;;  %3754 = vmatpush1.msra.mxu1 %v8721_v53 }
 0xd76   :  { %3684 = vmatprep.subr.mxu0 %v8724_v45  ;;  %3755 = vmatprep.subr.mxu1 %v8727_v31 }
 0xd77   :  { %3685 = vmatpush1.msra.mxu0 %v8730_v60  ;;  %3756 = vmatpush1.msra.mxu1 %v8733_v35 }
 0xd78   :  { %3686 = vmatprep.subr.mxu0 %v10698_v8  ;;  %3757 = vmatprep.subr.mxu1 %v10699_v47 }
 0xd79   :  { %3687 = vmatpush1.msra.mxu0 %v10700_v12  ;;  %3758 = vmatpush1.msra.mxu1 %v10701_v20 }
 0xd7a   :  { %3688 = vmatprep.subr.mxu0 %v10702_v59  ;;  %3759 = vmatprep.subr.mxu1 %v10703_v4  ;;  %v10714_v4 = vld [vmem:[#allocation24_spill] sm:$0xff] }
 0xd7b   :  { %3689 = vmatpush1.msra.mxu0 %v10704_v33  ;;  %3760 = vmatpush1.msra.mxu1 %v10705_v55  ;;  %v10715_v55 = vld [vmem:[#allocation32_spill] sm:$0xff] }
 0xd7c   :  { %3690 = vmatprep.subr.mxu0 %v10706_v32  ;;  %3761 = vmatprep.subr.mxu1 %v10707_v52  ;;  %v10716_v32 = vld [vmem:[#allocation20_spill] sm:$0xff] }
 0xd7d   :  { %3691 = vmatpush1.msra.mxu0 %v10708_v63  ;;  %3762 = vmatpush1.msra.mxu1 %v10709_v41  ;;  %v10717_v41 = vld [vmem:[#allocation53_spill] sm:$0xff] }
 0xd7e   :  { %3692 = vmatprep.subr.mxu0 %v10710_v54  ;;  %3763 = vmatprep.subr.mxu1 %v10711_v44  ;;  %v10718_v44 = vld [vmem:[#allocation55_spill] sm:$0xff] }
 0xd7f   :  { %3693 = vmatpush1.msra.mxu0 %v10712_v24  ;;  %3726 = vmatprep.mubr.f32.mxu0 %v10713_v27 }
 0xd80   :  { %3764 = vmatpush1.msra.mxu1 %v10714_v4  ;;  %3797 = vmatprep.mubr.f32.mxu1 %v10713_v27  ;;  %v10719_v27 = vld [vmem:[#allocation54_spill] sm:$0xff] }
 0xd81   :  { %3851 = vmatprep.subr.mxu0 %v10715_v55  ;;  %3922 = vmatprep.subr.mxu1 %v10716_v32 }
 0xe20   :  { %v3539_v52 = vpop.f32.mrf.mxu0  ;;  %v3610_v24 = vpop.f32.mrf.mxu1 }
 0xe21   :  { %v3619_v63 = vrot.slane %v3539_v52, 6  ;;  %v3621_v4 = vrot.slane %v3610_v24, 6 }
 0xe22   :  { %v3541_v33 = vpop.f32.mrf.mxu0  ;;  %v3612_v8 = vpop.f32.mrf.mxu1 }
 0xe23   :  { %v3627_v59 = vadd.f32 %v3619_v63, %v10717_v41  ;;  %v3620_v54 = vrot.slane %v3541_v33, 6  ;;  %v3629_v35 = vadd.f32 %v3621_v4, %v10719_v27  ;;  %v3622_v55 = vrot.slane %v3612_v8, 6 }
 0xe25   :  { %v6047_v20 = vmul.f32 -1.442695, %v3627_v59  ;;  %v3628_v12 = vadd.f32 %v3620_v54, %v10718_v44  ;;  %v6049_v60 = vmul.f32 -1.442695, %v3629_v35  ;;  %v3630_v52 = vadd.f32 %v3622_v55, %v8805_v56 }
 0xe27   :  { %6480 = vpow2.f32 %v6047_v20  ;;  %v6048_v47 = vmul.f32 -1.442695, %v3628_v12 }
 0xe29   :  { %6482 = vpow2.f32 %v6048_v47  ;;  %v3651_v47 = vrot.slane %v8809_v57, 6 }
 0xe2a   :  { %6484 = vpow2.f32 %v6049_v60 }
 0xe34   :  { %v6481_v32 = vpop.eup %6480 }
 0xe35   :  { %v3640_v31 = vadd.f32 1.0, %v6481_v32 }
 0xe36   :  { %v6483_v45 = vpop.eup %6482 }
 0xe37   :  { %6486 = vrcp.f32 %v3640_v31  ;;  %v3641_v59 = vadd.f32 1.0, %v6483_v45  ;;  %v6485_v20 = vpop.eup %6484 }
 0xe38   :  { %6488 = vtanh.f32 %v3630_v52  ;;  %v3642_v54 = vadd.f32 1.0, %v6485_v20 }
 0xe39   :  { %6490 = vrcp.f32 %v3641_v59 }
 0xe3a   :  { %6492 = vrcp.f32 %v3642_v54 }
 0xe44   :  { %v6487_v33 = vpop.eup %6486 }
 0xe45   :  { %v6489_v12 = vpop.eup %6488 }
 0xe46   :  { %v6491_v63 = vpop.eup %6490  ;;  %v3654_v8 = vmul.f32 %v6489_v12, %v6487_v33 }
 0xe47   :  { %v3653_v4 = vmul.f32 %v6491_v63, %v3651_v47  ;;  %v6493_v24 = vpop.eup %6492 }
 0xe49   :  { %v8883_v35 = vadd.f32 %v3654_v8, %v3653_v4 }
 0xe4b   :  { %6494 = vtanh.f32 %v8883_v35  ;;  %v3840_v52 = vrot.slane %v8883_v35, 6  ;;  %v4095_v35 = vld [vmem:[#allocation11 + $0x1c0] sm:$0xff] }
 0xe58   :  { %v6495_v60 = vpop.eup %6494 }
 0xe59   :  { %v3657_v31 = vmul.f32 %v6495_v60, %v6493_v24  ;;  %v4099_v24 = vld [vmem:[#allocation11 + $0x1e0] sm:$0xff]  ;;  %v4101_v60 = vld [vmem:[#allocation11 + $0x1f0] sm:$0xff] }
 0xe5b   :  { %3658 = vst [vmem:[#allocation2 + $0x8] sm:$0xc] %v3657_v31  ;;  %v3660_v45 = vrot.slane %v3657_v31, 2  ;;  %v4096_v31 = vld [vmem:[#allocation11 + $0x1c8] sm:$0xff] }
 0xe5d   :  { %3727 = vmatmul.mubr.f32.vlgmr.msra.gmra.mxu0 %v3660_v45  ;;  %3798 = vmatmul.mubr.f32.vlgmr.msra.gmra.mxu1 %v3660_v45  ;;  %v4098_v45 = vld [vmem:[#allocation11 + $0x1d8] sm:$0xff] }
 0xe5e   :  { %3852 = vmatpush1.msra.mxu0 %v8520_v25  ;;  %3923 = vmatpush1.msra.mxu1 %v8523_v30  ;;  %v10720_v25 = vld [vmem:[#allocation33_spill] sm:$0xff] }
 0xe5f   :  { %3853 = vmatprep.subr.mxu0 %v8526_v62  ;;  %3924 = vmatprep.subr.mxu1 %v8529_v48  ;;  %v10721_v30 = vld [vmem:[#allocation21_spill] sm:$0xff]  ;;  %v10722_v62 = vld [vmem:[#allocation34_spill] sm:$0xff] }
 0xe60   :  { %3854 = vmatpush1.msra.mxu0 %v8532_v39  ;;  %3925 = vmatpush1.msra.mxu1 %v8535_v50  ;;  %v10723_v48 = vld [vmem:[#allocation22_spill] sm:$0xff]  ;;  %v10724_v39 = vld [vmem:[#allocation35_spill] sm:$0xff] }
 0xe61   :  { %3855 = vmatprep.subr.mxu0 %v8538_v51  ;;  %3926 = vmatprep.subr.mxu1 %v8541_v3  ;;  %v10725_v50 = vld [vmem:[#allocation23_spill] sm:$0xff]  ;;  %v10726_v51 = vld [vmem:[#allocation36_spill] sm:$0xff]  ;;  %v10727_v3 = vld [vmem:[#allocation25_spill] sm:$0xff] }
 0xe62   :  { %3856 = vmatpush1.msra.mxu0 %v8544_v37  ;;  %3927 = vmatpush1.msra.mxu1 %v8547_v49  ;;  %v10728_v37 = vld [vmem:[#allocation37_spill] sm:$0xff]  ;;  %v10729_v49 = vld [vmem:[#allocation26_spill] sm:$0xff] }
 0xe63   :  { %3857 = vmatprep.subr.mxu0 %v8550_v46  ;;  %3928 = vmatprep.subr.mxu1 %v8553_v5  ;;  %v10730_v46 = vld [vmem:[#allocation38_spill] sm:$0xff]  ;;  %v10731_v5 = vld [vmem:[#allocation27_spill] sm:$0xff] }
 0xe64   :  { %3858 = vmatpush1.msra.mxu0 %v8556_v7  ;;  %3929 = vmatpush1.msra.mxu1 %v8559_v16  ;;  %v10732_v7 = vld [vmem:[#allocation39_spill] sm:$0xff]  ;;  %v10733_v16 = vld [vmem:[#allocation28_spill] sm:$0xff] }
 0xe65   :  { %3859 = vmatprep.subr.mxu0 %v8562_v15  ;;  %3930 = vmatprep.subr.mxu1 %v8565_v17  ;;  %v10734_v15 = vld [vmem:[#allocation40_spill] sm:$0xff]  ;;  %v10735_v17 = vld [vmem:[#allocation29_spill] sm:$0xff] }
 0xe66   :  { %3860 = vmatpush1.msra.mxu0 %v8568_v18  ;;  %3931 = vmatpush1.msra.mxu1 %v8571_v19  ;;  %v10736_v18 = vld [vmem:[#allocation41_spill] sm:$0xff]  ;;  %v10737_v19 = vld [vmem:[#allocation30_spill] sm:$0xff] }
 0xe67   :  { %3861 = vmatprep.subr.mxu0 %v8574_v21  ;;  %3932 = vmatprep.subr.mxu1 %v8577_v23  ;;  %v10738_v21 = vld [vmem:[#allocation43_spill] sm:$0xff]  ;;  %v10739_v23 = vld [vmem:[#allocation24_spill] sm:$0xff] }
 0xe68   :  { %3862 = vmatpush1.msra.mxu0 %v8580_v28  ;;  %3933 = vmatpush1.msra.mxu1 %v8583_v10  ;;  %v10740_v28 = vmov 0.0   ;;  %v4100_v10 = vld [vmem:[#allocation11 + $0x1e8] sm:$0xff] }
 0xe69   :  { %3863 = vmatprep.subr.mxu0 %v8586_v1  ;;  %3934 = vmatprep.subr.mxu1 %v8589_v22  ;;  %v4102_v1 = vld [vmem:[#allocation11 + $0x1f8] sm:$0xff] }
 0xe6a   :  { %3864 = vmatpush1.msra.mxu0 %v8592_v38  ;;  %3935 = vmatpush1.msra.mxu1 %v8595_v11 }
 0xe6b   :  { %3865 = vmatprep.subr.mxu0 %v8598_v42  ;;  %3936 = vmatprep.subr.mxu1 %v8601_v6 }
 0xe6c   :  { %3866 = vmatpush1.msra.mxu0 %v8604_v26  ;;  %3937 = vmatpush1.msra.mxu1 %v8607_v13 }
 0xe6d   :  { %3867 = vmatprep.subr.mxu0 %v8610_v9  ;;  %3938 = vmatprep.subr.mxu1 %v10663_v61 }
 0xe6e   :  { %3868 = vmatpush1.msra.mxu0 %v10664_v29  ;;  %3939 = vmatpush1.msra.mxu1 %v10665_v43 }
 0xe6f   :  { %3869 = vmatprep.subr.mxu0 %v10666_v58  ;;  %3940 = vmatprep.subr.mxu1 %v8625_v40 }
 0xe70   :  { %3870 = vmatpush1.msra.mxu0 %v8628_v36  ;;  %3941 = vmatpush1.msra.mxu1 %v8631_v34 }
 0xe71   :  { %3871 = vmatprep.subr.mxu0 %v8634_v2  ;;  %3942 = vmatprep.subr.mxu1 %v8637_v0 }
 0xe72   :  { %3872 = vmatpush1.msra.mxu0 %v8640_v14  ;;  %3943 = vmatpush1.msra.mxu1 %v8721_v53 }
 0xe73   :  { %3873 = vmatprep.subr.mxu0 %v10720_v25  ;;  %3944 = vmatprep.subr.mxu1 %v10721_v30  ;;  %v4097_v25 = vld [vmem:[#allocation11 + $0x1d0] sm:$0xff]  ;;  %v4092_v30 = vld [vmem:[#allocation11 + $0x1a8] sm:$0xff] }
 0xe74   :  { %3874 = vmatpush1.msra.mxu0 %v10722_v62  ;;  %3945 = vmatpush1.msra.mxu1 %v10723_v48  ;;  %v4094_v62 = vld [vmem:[#allocation11 + $0x1b8] sm:$0xff]  ;;  %v4091_v48 = vld [vmem:[#allocation11 + $0x1a0] sm:$0xff] }
 0xe75   :  { %3875 = vmatprep.subr.mxu0 %v10724_v39  ;;  %3946 = vmatprep.subr.mxu1 %v10725_v50  ;;  %v4093_v39 = vld [vmem:[#allocation11 + $0x1b0] sm:$0xff]  ;;  %v4088_v50 = vld [vmem:[#allocation11 + $0x188] sm:$0xff] }
 0xe76   :  { %3876 = vmatpush1.msra.mxu0 %v10726_v51  ;;  %3947 = vmatpush1.msra.mxu1 %v10727_v3  ;;  %v4090_v51 = vld [vmem:[#allocation11 + $0x198] sm:$0xff]  ;;  %v4087_v3 = vld [vmem:[#allocation11 + $0x180] sm:$0xff] }
 0xe77   :  { %3877 = vmatprep.subr.mxu0 %v10728_v37  ;;  %3948 = vmatprep.subr.mxu1 %v10729_v49  ;;  %v4089_v37 = vld [vmem:[#allocation11 + $0x190] sm:$0xff]  ;;  %v4084_v49 = vld [vmem:[#allocation11 + $0x168] sm:$0xff] }
 0xe78   :  { %3878 = vmatpush1.msra.mxu0 %v10730_v46  ;;  %3949 = vmatpush1.msra.mxu1 %v10731_v5  ;;  %v4086_v46 = vld [vmem:[#allocation11 + $0x178] sm:$0xff]  ;;  %v4083_v5 = vld [vmem:[#allocation11 + $0x160] sm:$0xff] }
 0xe79   :  { %3879 = vmatprep.subr.mxu0 %v10732_v7  ;;  %3950 = vmatprep.subr.mxu1 %v10733_v16  ;;  %v4085_v7 = vld [vmem:[#allocation11 + $0x170] sm:$0xff]  ;;  %v4080_v16 = vld [vmem:[#allocation11 + $0x148] sm:$0xff] }
 0xe7a   :  { %3880 = vmatpush1.msra.mxu0 %v10734_v15  ;;  %3951 = vmatpush1.msra.mxu1 %v10735_v17  ;;  %v4082_v15 = vld [vmem:[#allocation11 + $0x158] sm:$0xff]  ;;  %v4079_v17 = vld [vmem:[#allocation11 + $0x140] sm:$0xff] }
 0xe7b   :  { %3881 = vmatprep.subr.mxu0 %v10736_v18  ;;  %3952 = vmatprep.subr.mxu1 %v10737_v19  ;;  %v4081_v18 = vld [vmem:[#allocation11 + $0x150] sm:$0xff]  ;;  %v4076_v19 = vld [vmem:[#allocation11 + $0x128] sm:$0xff] }
 0xe7c   :  { %3882 = vmatpush1.msra.mxu0 %v10738_v21  ;;  %3953 = vmatpush1.msra.mxu1 %v10739_v23  ;;  %v4078_v21 = vld [vmem:[#allocation11 + $0x138] sm:$0xff]  ;;  %v4075_v23 = vld [vmem:[#allocation11 + $0x120] sm:$0xff] }
 0xe7d   :  { %3915 = vmatprep.mubr.f32.mxu0 %v10740_v28  ;;  %3986 = vmatprep.mubr.f32.mxu1 %v10740_v28 }
 0xe7e   :  { %4125 = vmatprep.subr.mxu0 %v4100_v10  ;;  %4202 = vmatprep.subr.mxu1 %v4102_v1  ;;  %v4077_v10 = vld [vmem:[#allocation11 + $0x130] sm:$0xff]  ;;  %v4072_v1 = vld [vmem:[#allocation11 + $0x108] sm:$0xff] }
 0xf1d   :  { %v3728_v22 = vpop.f32.mrf.mxu0  ;;  %v3799_v9 = vpop.f32.mrf.mxu1 }
 0xf1e   :  { %v3808_v38 = vrot.slane %v3728_v22, 4  ;;  %v3810_v2 = vrot.slane %v3799_v9, 4  ;;  %v4074_v22 = vld [vmem:[#allocation11 + $0x118] sm:$0xff]  ;;  %v4064_v9 = vld [vmem:[#allocation11 + $0xc8] sm:$0xff] }
 0xf1f   :  { %v3730_v11 = vpop.f32.mrf.mxu0  ;;  %v3801_v0 = vpop.f32.mrf.mxu1 }
 0xf20   :  { %v3816_v42 = vadd.f32 %v3808_v38, %v10717_v41  ;;  %v3809_v6 = vrot.slane %v3730_v11, 4  ;;  %v3818_v14 = vadd.f32 %v3810_v2, %v10719_v27  ;;  %v3811_v40 = vrot.slane %v3801_v0, 4  ;;  %v4071_v38 = vld [vmem:[#allocation11 + $0x100] sm:$0xff]  ;;  %v4073_v11 = vld [vmem:[#allocation11 + $0x110] sm:$0xff] }
 0xf21   :  { %v4063_v2 = vld [vmem:[#allocation11 + $0xc0] sm:$0xff]  ;;  %v4065_v0 = vld [vmem:[#allocation11 + $0xd0] sm:$0xff] }
 0xf22   :  { %v6050_v26 = vmul.f32 -1.442695, %v3816_v42  ;;  %v3817_v13 = vadd.f32 %v3809_v6, %v10718_v44  ;;  %v6052_v36 = vmul.f32 -1.442695, %v3818_v14  ;;  %v3819_v29 = vadd.f32 %v3811_v40, %v8805_v56  ;;  %v4068_v42 = vld [vmem:[#allocation11 + $0xe8] sm:$0xff]  ;;  %v4070_v6 = vld [vmem:[#allocation11 + $0xf8] sm:$0xff] }
 0xf23   :  { %v4060_v14 = vld [vmem:[#allocation11 + $0xa8] sm:$0xff]  ;;  %v4062_v40 = vld [vmem:[#allocation11 + $0xb8] sm:$0xff] }
 0xf24   :  { %6496 = vpow2.f32 %v6050_v26  ;;  %v6051_v34 = vmul.f32 -1.442695, %v3817_v13  ;;  %v4067_v26 = vld [vmem:[#allocation11 + $0xe0] sm:$0xff]  ;;  %v4069_v13 = vld [vmem:[#allocation11 + $0xf0] sm:$0xff] }
 0xf26   :  { %6498 = vpow2.f32 %v6051_v34  ;;  %v4066_v34 = vld [vmem:[#allocation11 + $0xd8] sm:$0xff] }
 0xf27   :  { %6500 = vpow2.f32 %v6052_v36  ;;  %v4059_v36 = vld [vmem:[#allocation11 + $0xa0] sm:$0xff] }
 0xf31   :  { %v6497_v61 = vpop.eup %6496 }
 0xf32   :  { %v3829_v43 = vadd.f32 1.0, %v6497_v61  ;;  %v4061_v61 = vld [vmem:[#allocation11 + $0xb0] sm:$0xff] }
 0xf33   :  { %v6499_v58 = vpop.eup %6498 }
 0xf34   :  { %6502 = vrcp.f32 %v3829_v43  ;;  %v3830_v53 = vadd.f32 1.0, %v6499_v58  ;;  %v6501_v57 = vpop.eup %6500  ;;  %v4058_v43 = vld [vmem:[#allocation11 + $0x98] sm:$0xff]  ;;  %v4055_v58 = vld [vmem:[#allocation11 + $0x80] sm:$0xff] }
 0xf35   :  { %6504 = vtanh.f32 %v3819_v29  ;;  %v3831_v20 = vadd.f32 1.0, %v6501_v57  ;;  %v4056_v29 = vld [vmem:[#allocation11 + $0x88] sm:$0xff] }
 0xf36   :  { %6506 = vrcp.f32 %v3830_v53  ;;  %v4057_v53 = vld [vmem:[#allocation11 + $0x90] sm:$0xff]  ;;  %v4052_v57 = vld [vmem:[#allocation11 + $0x68] sm:$0xff] }
 0xf37   :  { %6508 = vrcp.f32 %v3831_v20  ;;  %v4050_v20 = vld [vmem:[#allocation11 + $0x58] sm:$0xff] }
 0xf41   :  { %v6503_v55 = vpop.eup %6502 }
 0xf42   :  { %v6505_v32 = vpop.eup %6504 }
 0xf43   :  { %v6507_v59 = vpop.eup %6506  ;;  %v3843_v12 = vmul.f32 %v6505_v32, %v6503_v55  ;;  %v4054_v55 = vld [vmem:[#allocation11 + $0x78] sm:$0xff]  ;;  %v4051_v32 = vld [vmem:[#allocation11 + $0x60] sm:$0xff] }
 0xf44   :  { %v3842_v33 = vmul.f32 %v6507_v59, %v3840_v52  ;;  %v6509_v63 = vpop.eup %6508  ;;  %v4053_v52 = vld [vmem:[#allocation11 + $0x70] sm:$0xff]  ;;  %v4048_v59 = vld [vmem:[#allocation11 + $0x48] sm:$0xff] }
 0xf46   :  { %v8955_v47 = vadd.f32 %v3843_v12, %v3842_v33  ;;  %v4047_v33 = vld [vmem:[#allocation11 + $0x40] sm:$0xff]  ;;  %v4049_v12 = vld [vmem:[#allocation11 + $0x50] sm:$0xff] }
 0xf48   :  { %6510 = vtanh.f32 %v8955_v47 }
 0xf55   :  { %v6511_v54 = vpop.eup %6510 }
 0xf56   :  { %v3846_v4 = vmul.f32 %v6511_v54, %v6509_v63  ;;  %v4044_v63 = vld [vmem:[#allocation11 + $0x28] sm:$0xff]  ;;  %v4046_v54 = vld [vmem:[#allocation11 + $0x38] sm:$0xff] }
 0xf58   :  { %3847 = vst [vmem:[#allocation2 + $0x8] sm:$0x30] %v3846_v4  ;;  %v3849_v8 = vrot.slane %v3846_v4, 4  ;;  %v4043_v4 = vld [vmem:[#allocation11 + $0x20] sm:$0xff] }
 0xf5a   :  { %3916 = vmatmul.mubr.f32.vlgmr.msra.gmra.mxu0 %v3849_v8  ;;  %3987 = vmatmul.mubr.f32.vlgmr.msra.gmra.mxu1 %v3849_v8  ;;  %v4045_v8 = vld [vmem:[#allocation11 + $0x30] sm:$0xff] }
 0xf5b   :  { %4126 = vmatpush1.msra.mxu0 %v4099_v24  ;;  %4203 = vmatpush1.msra.mxu1 %v4101_v60  ;;  %v4040_v24 = vld [vmem:[#allocation11 + $0x8] sm:$0xff]  ;;  %v4042_v60 = vld [vmem:[#allocation11 + $0x18] sm:$0xff] }
 0xf5c   :  { %4127 = vmatprep.subr.mxu0 %v4096_v31  ;;  %4204 = vmatprep.subr.mxu1 %v4098_v45  ;;  %v4039_v31 = vld [vmem:[#allocation11] sm:$0xff]  ;;  %v4041_v45 = vld [vmem:[#allocation11 + $0x10] sm:$0xff] }
 0xf5d   :  { %4128 = vmatpush1.msra.mxu0 %v4095_v35  ;;  %4205 = vmatpush1.msra.mxu1 %v4097_v25  ;;  %v4037_v35 = vld [vmem:[#allocation2] sm:$0xff] }
 0xf5e   :  { %4129 = vmatprep.subr.mxu0 %v4092_v30  ;;  %4206 = vmatprep.subr.mxu1 %v4094_v62  ;;  %v8962_v25 = vld [vmem:[#allocation12 + $0x1e8] sm:$0xff]  ;;  %v8964_v30 = vld [vmem:[#allocation12 + $0x1f8] sm:$0xff]  ;;  %v8968_v62 = vld [vmem:[#allocation12 + $0x1e0] sm:$0xff] }
 0xf5f   :  { %4130 = vmatpush1.msra.mxu0 %v4091_v48  ;;  %4207 = vmatpush1.msra.mxu1 %v4093_v39  ;;  %10741 = vst [vmem:[#allocation19_spill] sm:$0xff] %v8962_v25  ;;  %10742 = vst [vmem:[#allocation42_spill] sm:$0xff] %v8964_v30  ;;  %v8970_v48 = vld [vmem:[#allocation12 + $0x1f0] sm:$0xff]  ;;  %v8974_v39 = vld [vmem:[#allocation12 + $0x1c8] sm:$0xff] }
 0xf60   :  { %4131 = vmatprep.subr.mxu0 %v4088_v50  ;;  %4208 = vmatprep.subr.mxu1 %v4090_v51  ;;  %v8976_v50 = vld [vmem:[#allocation12 + $0x1d8] sm:$0xff]  ;;  %v8980_v51 = vld [vmem:[#allocation12 + $0x1c0] sm:$0xff] }
 0xf61   :  { %4132 = vmatpush1.msra.mxu0 %v4087_v3  ;;  %4209 = vmatpush1.msra.mxu1 %v4089_v37  ;;  %v8982_v3 = vld [vmem:[#allocation12 + $0x1d0] sm:$0xff]  ;;  %v8986_v37 = vld [vmem:[#allocation12 + $0x1a8] sm:$0xff] }
 0xf62   :  { %4133 = vmatprep.subr.mxu0 %v4084_v49  ;;  %4210 = vmatprep.subr.mxu1 %v4086_v46  ;;  %v8988_v49 = vld [vmem:[#allocation12 + $0x1b8] sm:$0xff]  ;;  %v8992_v46 = vld [vmem:[#allocation12 + $0x1a0] sm:$0xff] }
 0xf63   :  { %4134 = vmatpush1.msra.mxu0 %v4083_v5  ;;  %4211 = vmatpush1.msra.mxu1 %v4085_v7  ;;  %v8994_v5 = vld [vmem:[#allocation12 + $0x1b0] sm:$0xff]  ;;  %v8998_v7 = vld [vmem:[#allocation12 + $0x188] sm:$0xff] }
 0xf64   :  { %4135 = vmatprep.subr.mxu0 %v4080_v16  ;;  %4212 = vmatprep.subr.mxu1 %v4082_v15  ;;  %v9000_v16 = vld [vmem:[#allocation12 + $0x198] sm:$0xff]  ;;  %v9004_v15 = vld [vmem:[#allocation12 + $0x180] sm:$0xff] }
 0xf65   :  { %4136 = vmatpush1.msra.mxu0 %v4079_v17  ;;  %4213 = vmatpush1.msra.mxu1 %v4081_v18  ;;  %v9006_v17 = vld [vmem:[#allocation12 + $0x190] sm:$0xff]  ;;  %v9010_v18 = vld [vmem:[#allocation12 + $0x168] sm:$0xff] }
 0xf66   :  { %4137 = vmatprep.subr.mxu0 %v4076_v19  ;;  %4214 = vmatprep.subr.mxu1 %v4078_v21  ;;  %v9012_v19 = vld [vmem:[#allocation12 + $0x178] sm:$0xff]  ;;  %v9016_v21 = vld [vmem:[#allocation12 + $0x160] sm:$0xff] }
 0xf67   :  { %4138 = vmatpush1.msra.mxu0 %v4075_v23  ;;  %4215 = vmatpush1.msra.mxu1 %v4077_v10  ;;  %v9018_v23 = vld [vmem:[#allocation12 + $0x170] sm:$0xff]  ;;  %v9022_v10 = vld [vmem:[#allocation12 + $0x148] sm:$0xff] }
 0xf68   :  { %4139 = vmatprep.subr.mxu0 %v4072_v1  ;;  %4216 = vmatprep.subr.mxu1 %v4074_v22  ;;  %v9024_v1 = vld [vmem:[#allocation12 + $0x158] sm:$0xff]  ;;  %v9028_v22 = vld [vmem:[#allocation12 + $0x140] sm:$0xff] }
 0xf69   :  { %4140 = vmatpush1.msra.mxu0 %v4071_v38  ;;  %4217 = vmatpush1.msra.mxu1 %v4073_v11  ;;  %v9030_v38 = vld [vmem:[#allocation12 + $0x150] sm:$0xff]  ;;  %v9034_v11 = vld [vmem:[#allocation12 + $0x128] sm:$0xff] }
 0xf6a   :  { %4141 = vmatprep.subr.mxu0 %v4068_v42  ;;  %4218 = vmatprep.subr.mxu1 %v4070_v6  ;;  %v9036_v42 = vld [vmem:[#allocation12 + $0x138] sm:$0xff]  ;;  %v9040_v6 = vld [vmem:[#allocation12 + $0x120] sm:$0xff] }
 0xf6b   :  { %4142 = vmatpush1.msra.mxu0 %v4067_v26  ;;  %4219 = vmatpush1.msra.mxu1 %v4069_v13  ;;  %v9042_v26 = vld [vmem:[#allocation12 + $0x130] sm:$0xff]  ;;  %v9046_v13 = vld [vmem:[#allocation12 + $0x108] sm:$0xff] }
 0xf6c   :  { %4143 = vmatprep.subr.mxu0 %v4064_v9  ;;  %4220 = vmatprep.subr.mxu1 %v4066_v34  ;;  %v9048_v9 = vld [vmem:[#allocation12 + $0x118] sm:$0xff]  ;;  %v9052_v34 = vld [vmem:[#allocation12 + $0x100] sm:$0xff] }
 0xf6d   :  { %4144 = vmatpush1.msra.mxu0 %v4063_v2  ;;  %4221 = vmatpush1.msra.mxu1 %v4065_v0  ;;  %v9054_v2 = vld [vmem:[#allocation12 + $0x110] sm:$0xff]  ;;  %v9058_v0 = vld [vmem:[#allocation12 + $0xe8] sm:$0xff] }
 0xf6e   :  { %4145 = vmatprep.subr.mxu0 %v4060_v14  ;;  %4222 = vmatprep.subr.mxu1 %v4062_v40  ;;  %v9060_v14 = vld [vmem:[#allocation12 + $0xf8] sm:$0xff]  ;;  %v9064_v40 = vld [vmem:[#allocation12 + $0xe0] sm:$0xff] }
 0xf6f   :  { %4146 = vmatpush1.msra.mxu0 %v4059_v36  ;;  %4223 = vmatpush1.msra.mxu1 %v4061_v61  ;;  %v9066_v36 = vld [vmem:[#allocation12 + $0xf0] sm:$0xff]  ;;  %v9068_v61 = vld [vmem:[#allocation12 + $0xc8] sm:$0xff] }
 0xf70   :  { %4147 = vmatprep.subr.mxu0 %v4056_v29  ;;  %4224 = vmatprep.subr.mxu1 %v4058_v43  ;;  %v9072_v29 = vld [vmem:[#allocation12 + $0xd8] sm:$0xff]  ;;  %v9074_v43 = vld [vmem:[#allocation12 + $0xc0] sm:$0xff] }
 0xf71   :  { %4148 = vmatpush1.msra.mxu0 %v4055_v58  ;;  %4225 = vmatpush1.msra.mxu1 %v4057_v53  ;;  %v9076_v58 = vld [vmem:[#allocation12 + $0xd0] sm:$0xff]  ;;  %v9080_v53 = vld [vmem:[#allocation12 + $0xa8] sm:$0xff] }
 0xf72   :  { %4149 = vmatprep.subr.mxu0 %v4052_v57  ;;  %4226 = vmatprep.subr.mxu1 %v4054_v55  ;;  %v9082_v57 = vld [vmem:[#allocation12 + $0xb8] sm:$0xff]  ;;  %v9084_v55 = vld [vmem:[#allocation12 + $0xa0] sm:$0xff] }
 0xf73   :  { %4150 = vmatpush1.msra.mxu0 %v4051_v32  ;;  %4227 = vmatpush1.msra.mxu1 %v4053_v52  ;;  %v9088_v32 = vld [vmem:[#allocation12 + $0xb0] sm:$0xff]  ;;  %v9090_v52 = vld [vmem:[#allocation12 + $0x88] sm:$0xff] }
 0xf74   :  { %4151 = vmatprep.subr.mxu0 %v4048_v59  ;;  %4228 = vmatprep.subr.mxu1 %v4050_v20  ;;  %10743 = vst [vmem:[#allocation47_spill] sm:$0xff] %v9088_v32  ;;  %10744 = vst [vmem:[#allocation49_spill] sm:$0xff] %v9090_v52  ;;  %v9092_v59 = vld [vmem:[#allocation12 + $0x98] sm:$0xff]  ;;  %v9096_v20 = vld [vmem:[#allocation12 + $0x80] sm:$0xff] }
 0xf75   :  { %4152 = vmatpush1.msra.mxu0 %v4047_v33  ;;  %4229 = vmatpush1.msra.mxu1 %v4049_v12  ;;  %10745 = vst [vmem:[#allocation48_spill] sm:$0xff] %v9092_v59  ;;  %10746 = vst [vmem:[#allocation50_spill] sm:$0xff] %v9096_v20  ;;  %v9098_v33 = vld [vmem:[#allocation12 + $0x90] sm:$0xff]  ;;  %v9102_v12 = vld [vmem:[#allocation12 + $0x68] sm:$0xff] }
 0xf76   :  { %4153 = vmatprep.subr.mxu0 %v4044_v63  ;;  %4230 = vmatprep.subr.mxu1 %v4046_v54  ;;  %10747 = vst [vmem:[#allocation56_spill] sm:$0xff] %v9098_v33  ;;  %10748 = vst [vmem:[#allocation31_spill] sm:$0xff] %v9102_v12  ;;  %v9104_v63 = vld [vmem:[#allocation12 + $0x78] sm:$0xff]  ;;  %v9108_v54 = vld [vmem:[#allocation12 + $0x60] sm:$0xff] }
 0xf77   :  { %4154 = vmatpush1.msra.mxu0 %v4043_v4  ;;  %4231 = vmatpush1.msra.mxu1 %v4045_v8  ;;  %10749 = vst [vmem:[#allocation18_spill] sm:$0xff] %v9104_v63  ;;  %10750 = vst [vmem:[#allocation32_spill] sm:$0xff] %v9108_v54  ;;  %v9110_v4 = vld [vmem:[#allocation12 + $0x70] sm:$0xff]  ;;  %v9114_v8 = vld [vmem:[#allocation12 + $0x48] sm:$0xff] }
 0xf78   :  { %4155 = vmatprep.subr.mxu0 %v4040_v24  ;;  %4232 = vmatprep.subr.mxu1 %v4042_v60  ;;  %10751 = vst [vmem:[#allocation20_spill] sm:$0xff] %v9110_v4  ;;  %10752 = vst [vmem:[#allocation53_spill] sm:$0xff] %v9114_v8  ;;  %v9116_v24 = vld [vmem:[#allocation12 + $0x58] sm:$0xff]  ;;  %v9120_v60 = vld [vmem:[#allocation12 + $0x40] sm:$0xff] }
 0xf79   :  { %4156 = vmatpush1.msra.mxu0 %v4039_v31  ;;  %4189 = vmatprep.mubr.f32.mxu0 %v10740_v28  ;;  %10753 = vst [vmem:[#allocation55_spill] sm:$0xff] %v9116_v24  ;;  %10754 = vst [vmem:[#allocation54_spill] sm:$0xff] %v9120_v60  ;;  %v9122_v31 = vld [vmem:[#allocation12 + $0x50] sm:$0xff] }
 0xf7a   :  { %4233 = vmatpush1.msra.mxu1 %v4041_v45  ;;  %4266 = vmatprep.mubr.f32.mxu1 %v10740_v28  ;;  %10755 = vst [vmem:[#allocation33_spill] sm:$0xff] %v9122_v31  ;;  %v9126_v45 = vld [vmem:[#allocation12 + $0x28] sm:$0xff] }
 0xf7b   :  { %4190 = vmatmul.mubr.f32.vlgmr.msra.gmra.mxu0 %v4037_v35  ;;  %4267 = vmatmul.mubr.f32.vlgmr.msra.gmra.mxu1 %v4037_v35  ;;  %10756 = vst [vmem:[#allocation21_spill] sm:$0xff] %v9126_v45  ;;  %v9128_v35 = vld [vmem:[#allocation12 + $0x38] sm:$0xff] }
 0xf7c   :  { %4195 = vmatprep.mubr.f32.mxu0 %v10740_v28  ;;  %4272 = vmatprep.mubr.f32.mxu1 %v10740_v28  ;;  %10757 = vst [vmem:[#allocation34_spill] sm:$0xff] %v9128_v35 }
 0xf7d   :  { %4343 = vmatprep.subr.mxu0 %v8962_v25  ;;  %4414 = vmatprep.subr.mxu1 %v8964_v30 }
 0xf7e   :  { %4344 = vmatpush1.msra.mxu0 %v8968_v62  ;;  %4415 = vmatpush1.msra.mxu1 %v8970_v48 }
 0xf7f   :  { %4345 = vmatprep.subr.mxu0 %v8974_v39  ;;  %4416 = vmatprep.subr.mxu1 %v8976_v50 }
 0xf80   :  { %4346 = vmatpush1.msra.mxu0 %v8980_v51  ;;  %4417 = vmatpush1.msra.mxu1 %v8982_v3 }
 0xf81   :  { %4347 = vmatprep.subr.mxu0 %v8986_v37  ;;  %4418 = vmatprep.subr.mxu1 %v8988_v49 }
 0xf82   :  { %4348 = vmatpush1.msra.mxu0 %v8992_v46  ;;  %4419 = vmatpush1.msra.mxu1 %v8994_v5 }
 0xf83   :  { %4349 = vmatprep.subr.mxu0 %v8998_v7  ;;  %4420 = vmatprep.subr.mxu1 %v9000_v16 }
 0xf84   :  { %4350 = vmatpush1.msra.mxu0 %v9004_v15  ;;  %4421 = vmatpush1.msra.mxu1 %v9006_v17 }
 0xf85   :  { %4351 = vmatprep.subr.mxu0 %v9010_v18  ;;  %4422 = vmatprep.subr.mxu1 %v9012_v19 }
 0xf86   :  { %4352 = vmatpush1.msra.mxu0 %v9016_v21  ;;  %4423 = vmatpush1.msra.mxu1 %v9018_v23 }
 0xf87   :  { %4353 = vmatprep.subr.mxu0 %v9022_v10  ;;  %4424 = vmatprep.subr.mxu1 %v9024_v1 }
 0xf88   :  { %4354 = vmatpush1.msra.mxu0 %v9028_v22  ;;  %4425 = vmatpush1.msra.mxu1 %v9030_v38 }
 0xf89   :  { %4355 = vmatprep.subr.mxu0 %v9034_v11  ;;  %4426 = vmatprep.subr.mxu1 %v9036_v42 }
 0xf8a   :  { %4356 = vmatpush1.msra.mxu0 %v9040_v6  ;;  %4427 = vmatpush1.msra.mxu1 %v9042_v26 }
 0xf8b   :  { %4357 = vmatprep.subr.mxu0 %v9046_v13  ;;  %4428 = vmatprep.subr.mxu1 %v9048_v9 }
 0xf8c   :  { %4358 = vmatpush1.msra.mxu0 %v9052_v34  ;;  %4429 = vmatpush1.msra.mxu1 %v9054_v2 }
 0xf8d   :  { %4359 = vmatprep.subr.mxu0 %v9058_v0  ;;  %4430 = vmatprep.subr.mxu1 %v9060_v14 }
 0xf8e   :  { %4360 = vmatpush1.msra.mxu0 %v9064_v40  ;;  %4431 = vmatpush1.msra.mxu1 %v9066_v36 }
 0xf8f   :  { %4361 = vmatprep.subr.mxu0 %v9068_v61  ;;  %4432 = vmatprep.subr.mxu1 %v9072_v29 }
 0xf90   :  { %4362 = vmatpush1.msra.mxu0 %v9074_v43  ;;  %4433 = vmatpush1.msra.mxu1 %v9076_v58 }
 0xf91   :  { %4363 = vmatprep.subr.mxu0 %v9080_v53  ;;  %4434 = vmatprep.subr.mxu1 %v9082_v57 }
 0xf92   :  { %4364 = vmatpush1.msra.mxu0 %v9084_v55  ;;  %4435 = vmatpush1.msra.mxu1 %v9088_v32 }
 0xf93   :  { %4365 = vmatprep.subr.mxu0 %v9090_v52  ;;  %4436 = vmatprep.subr.mxu1 %v9092_v59 }
 0xf94   :  { %4366 = vmatpush1.msra.mxu0 %v9096_v20  ;;  %4437 = vmatpush1.msra.mxu1 %v9098_v33  ;;  %v9132_v33 = vld [vmem:[#allocation12 + $0x20] sm:$0xff] }
 0xf95   :  { %4367 = vmatprep.subr.mxu0 %v9102_v12  ;;  %4438 = vmatprep.subr.mxu1 %v9104_v63  ;;  %10758 = vst [vmem:[#allocation22_spill] sm:$0xff] %v9132_v33  ;;  %v9134_v12 = vld [vmem:[#allocation12 + $0x30] sm:$0xff]  ;;  %v9138_v63 = vld [vmem:[#allocation12 + $0x8] sm:$0xff] }
 0xf96   :  { %4368 = vmatpush1.msra.mxu0 %v9108_v54  ;;  %4439 = vmatpush1.msra.mxu1 %v9110_v4  ;;  %10759 = vst [vmem:[#allocation35_spill] sm:$0xff] %v9134_v12  ;;  %10760 = vst [vmem:[#allocation23_spill] sm:$0xff] %v9138_v63  ;;  %v9140_v54 = vld [vmem:[#allocation12 + $0x18] sm:$0xff]  ;;  %v9144_v4 = vld [vmem:[#allocation12] sm:$0xff] }
 0xf97   :  { %4369 = vmatprep.subr.mxu0 %v9114_v8  ;;  %4440 = vmatprep.subr.mxu1 %v9116_v24  ;;  %10761 = vst [vmem:[#allocation36_spill] sm:$0xff] %v9140_v54  ;;  %10762 = vst [vmem:[#allocation25_spill] sm:$0xff] %v9144_v4  ;;  %v9146_v8 = vld [vmem:[#allocation12 + $0x10] sm:$0xff] }
 0xf98   :  { %4370 = vmatpush1.msra.mxu0 %v9120_v60  ;;  %4441 = vmatpush1.msra.mxu1 %v9122_v31  ;;  %10763 = vst [vmem:[#allocation37_spill] sm:$0xff] %v9146_v8 }
 0xf99   :  { %4371 = vmatprep.subr.mxu0 %v9126_v45  ;;  %4442 = vmatprep.subr.mxu1 %v9128_v35 }
 0xf9a   :  { %4372 = vmatpush1.msra.mxu0 %v9132_v33  ;;  %4443 = vmatpush1.msra.mxu1 %v9134_v12 }
 0xf9b   :  { %4373 = vmatprep.subr.mxu0 %v9138_v63  ;;  %4444 = vmatprep.subr.mxu1 %v9140_v54 }
 0xf9c   :  { %4374 = vmatpush1.msra.mxu0 %v9144_v4  ;;  %4445 = vmatpush1.msra.mxu1 %v9146_v8 }
 0xf9d   :  { %4514 = vmatprep.subr.mxu0 %v8962_v25  ;;  %4585 = vmatprep.subr.mxu1 %v8964_v30 }
0x101a   :  { %v3917_v35 = vpop.f32.mrf.mxu0  ;;  %v3988_v63 = vpop.f32.mrf.mxu1 }
0x101b   :  { %v3997_v45 = vrot.slane %v3917_v35, 2  ;;  %v3999_v4 = vrot.slane %v3988_v63, 2  ;;  %v4029_v63 = vrot.slane %v8955_v47, 6  ;;  %v10764_v47 = vld [vmem:[#allocation47_spill] sm:$0xff] }
0x101c   :  { %v3919_v31 = vpop.f32.mrf.mxu0  ;;  %v3990_v20 = vpop.f32.mrf.mxu1 }
0x101d   :  { %v4005_v60 = vadd.f32 %v3997_v45, %v10717_v41  ;;  %v3998_v33 = vrot.slane %v3919_v31, 2  ;;  %v4007_v8 = vadd.f32 %v3999_v4, %v10719_v27  ;;  %v4000_v25 = vrot.slane %v3990_v20, 2  ;;  %v10769_v31 = vld [vmem:[#allocation31_spill] sm:$0xff]  ;;  %v10770_v45 = vld [vmem:[#allocation18_spill] sm:$0xff] }
0x101f   :  { %v6053_v24 = vmul.f32 -1.442695, %v4005_v60  ;;  %v4006_v12 = vadd.f32 %v3998_v33, %v10718_v44  ;;  %v6055_v59 = vmul.f32 -1.442695, %v4007_v8  ;;  %v4008_v35 = vadd.f32 %v4000_v25, %v8805_v56  ;;  %v10767_v8 = vld [vmem:[#allocation50_spill] sm:$0xff]  ;;  %v10768_v60 = vld [vmem:[#allocation56_spill] sm:$0xff] }
0x1021   :  { %6512 = vpow2.f32 %v6053_v24  ;;  %v6054_v54 = vmul.f32 -1.442695, %v4006_v12 }
0x1023   :  { %6514 = vpow2.f32 %v6054_v54 }
0x1024   :  { %6516 = vpow2.f32 %v6055_v59  ;;  %v10766_v59 = vld [vmem:[#allocation48_spill] sm:$0xff] }
0x102e   :  { %v6513_v30 = vpop.eup %6512 }
0x102f   :  { %v4018_v52 = vadd.f32 1.0, %v6513_v30 }
0x1030   :  { %v6515_v32 = vpop.eup %6514 }
0x1031   :  { %6518 = vrcp.f32 %v4018_v52  ;;  %v4019_v41 = vadd.f32 1.0, %v6515_v32  ;;  %v6517_v44 = vpop.eup %6516  ;;  %v10765_v32 = vld [vmem:[#allocation49_spill] sm:$0xff] }
0x1032   :  { %6520 = vtanh.f32 %v4008_v35  ;;  %v4020_v24 = vadd.f32 1.0, %v6517_v44  ;;  %v10771_v35 = vld [vmem:[#allocation32_spill] sm:$0xff]  ;;  %v10773_v44 = vld [vmem:[#allocation53_spill] sm:$0xff] }
0x1033   :  { %6522 = vrcp.f32 %v4019_v41  ;;  %v10772_v41 = vld [vmem:[#allocation20_spill] sm:$0xff] }
0x1034   :  { %6524 = vrcp.f32 %v4020_v24  ;;  %v10778_v24 = vld [vmem:[#allocation34_spill] sm:$0xff] }
0x103e   :  { %v6519_v33 = vpop.eup %6518 }
0x103f   :  { %v6521_v12 = vpop.eup %6520 }
0x1040   :  { %v6523_v54 = vpop.eup %6522  ;;  %v4032_v20 = vmul.f32 %v6521_v12, %v6519_v33  ;;  %v10774_v33 = vld [vmem:[#allocation55_spill] sm:$0xff]  ;;  %v10775_v12 = vld [vmem:[#allocation54_spill] sm:$0xff] }
0x1041   :  { %v4031_v27 = vmul.f32 %v6523_v54, %v4029_v63  ;;  %v6525_v56 = vpop.eup %6524  ;;  %v10776_v63 = vld [vmem:[#allocation33_spill] sm:$0xff] }
0x1042   :  { %v10777_v54 = vld [vmem:[#allocation21_spill] sm:$0xff] }
0x1043   :  { %v4033_v4 = vadd.f32 %v4032_v20, %v4031_v27  ;;  %v10779_v27 = vld [vmem:[#allocation22_spill] sm:$0xff]  ;;  %v10780_v20 = vld [vmem:[#allocation35_spill] sm:$0xff] }
0x1045   :  { %6526 = vtanh.f32 %v4033_v4  ;;  %v10781_v4 = vld [vmem:[#allocation23_spill] sm:$0xff] }
0x1052   :  { %v6527_v25 = vpop.eup %6526 }
0x1053   :  { %v4035_v30 = vmul.f32 %v6527_v25, %v6525_v56  ;;  %v10782_v56 = vld [vmem:[#allocation36_spill] sm:$0xff]  ;;  %v10783_v25 = vld [vmem:[#allocation25_spill] sm:$0xff] }
0x1055   :  { %4036 = vst [vmem:[#allocation2 + $0x8] sm:$0xc0] %v4035_v30  ;;  %v10784_v30 = vld [vmem:[#allocation37_spill] sm:$0xff] }
0x105c   :  { %v4038_v52 = vld [vmem:[#allocation2 + $0x8] sm:$0xff] }
0x105d   :  { %4196 = vmatmul.mubr.f32.gmra.mxu0 %v4038_v52  ;;  %4273 = vmatmul.mubr.f32.gmra.mxu1 %v4038_v52  ;;  %v10785_v52 = vld [vmem:[#allocation19_spill] sm:$0xff] }
0x105e   :  { %4407 = vmatprep.mubr.f32.mxu0 %v10740_v28  ;;  %4478 = vmatprep.mubr.f32.mxu1 %v10740_v28 }
0x1061   :  { %4408 = vmatmul.mubr.f32.vlgmr.msra.gmra.mxu0 %v10740_v28  ;;  %4479 = vmatmul.mubr.f32.vlgmr.msra.gmra.mxu1 %v10740_v28 }
0x1062   :  { %4515 = vmatpush1.msra.mxu0 %v8968_v62  ;;  %4586 = vmatpush1.msra.mxu1 %v8970_v48 }
0x1063   :  { %4516 = vmatprep.subr.mxu0 %v8974_v39  ;;  %4587 = vmatprep.subr.mxu1 %v8976_v50 }
0x1064   :  { %4517 = vmatpush1.msra.mxu0 %v8980_v51  ;;  %4588 = vmatpush1.msra.mxu1 %v8982_v3 }
0x1065   :  { %4518 = vmatprep.subr.mxu0 %v8986_v37  ;;  %4589 = vmatprep.subr.mxu1 %v8988_v49 }
0x1066   :  { %4519 = vmatpush1.msra.mxu0 %v8992_v46  ;;  %4590 = vmatpush1.msra.mxu1 %v8994_v5 }
0x1067   :  { %4520 = vmatprep.subr.mxu0 %v8998_v7  ;;  %4591 = vmatprep.subr.mxu1 %v9000_v16 }
0x1068   :  { %4521 = vmatpush1.msra.mxu0 %v9004_v15  ;;  %4592 = vmatpush1.msra.mxu1 %v9006_v17 }
0x1069   :  { %4522 = vmatprep.subr.mxu0 %v9010_v18  ;;  %4593 = vmatprep.subr.mxu1 %v9012_v19 }
0x106a   :  { %4523 = vmatpush1.msra.mxu0 %v9016_v21  ;;  %4594 = vmatpush1.msra.mxu1 %v9018_v23 }
0x106b   :  { %4524 = vmatprep.subr.mxu0 %v9022_v10  ;;  %4595 = vmatprep.subr.mxu1 %v9024_v1 }
0x106c   :  { %4525 = vmatpush1.msra.mxu0 %v9028_v22  ;;  %4596 = vmatpush1.msra.mxu1 %v9030_v38 }
0x106d   :  { %4526 = vmatprep.subr.mxu0 %v9034_v11  ;;  %4597 = vmatprep.subr.mxu1 %v9036_v42 }
0x106e   :  { %4527 = vmatpush1.msra.mxu0 %v9040_v6  ;;  %4598 = vmatpush1.msra.mxu1 %v9042_v26 }
0x106f   :  { %4528 = vmatprep.subr.mxu0 %v9046_v13  ;;  %4599 = vmatprep.subr.mxu1 %v9048_v9 }
0x1070   :  { %4529 = vmatpush1.msra.mxu0 %v9052_v34  ;;  %4600 = vmatpush1.msra.mxu1 %v9054_v2 }
0x1071   :  { %4530 = vmatprep.subr.mxu0 %v9058_v0  ;;  %4601 = vmatprep.subr.mxu1 %v9060_v14 }
0x1072   :  { %4531 = vmatpush1.msra.mxu0 %v9064_v40  ;;  %4602 = vmatpush1.msra.mxu1 %v9066_v36 }
0x1073   :  { %4532 = vmatprep.subr.mxu0 %v9068_v61  ;;  %4603 = vmatprep.subr.mxu1 %v9072_v29 }
0x1074   :  { %4533 = vmatpush1.msra.mxu0 %v9074_v43  ;;  %4604 = vmatpush1.msra.mxu1 %v9076_v58 }
0x1075   :  { %4534 = vmatprep.subr.mxu0 %v9080_v53  ;;  %4605 = vmatprep.subr.mxu1 %v9082_v57 }
0x1076   :  { %4535 = vmatpush1.msra.mxu0 %v9084_v55  ;;  %4606 = vmatpush1.msra.mxu1 %v10764_v47 }
0x1077   :  { %4536 = vmatprep.subr.mxu0 %v10765_v32  ;;  %4607 = vmatprep.subr.mxu1 %v10766_v59 }
0x1078   :  { %4537 = vmatpush1.msra.mxu0 %v10767_v8  ;;  %4608 = vmatpush1.msra.mxu1 %v10768_v60 }
0x1079   :  { %4538 = vmatprep.subr.mxu0 %v10769_v31  ;;  %4609 = vmatprep.subr.mxu1 %v10770_v45  ;;  %v10797_v31 = vld [vmem:[#allocation51_spill] sm:$0xff] }
0x107a   :  { %4539 = vmatpush1.msra.mxu0 %v10771_v35  ;;  %4610 = vmatpush1.msra.mxu1 %v10772_v41 }
0x107b   :  { %4540 = vmatprep.subr.mxu0 %v10773_v44  ;;  %4611 = vmatprep.subr.mxu1 %v10774_v33 }
0x107c   :  { %4541 = vmatpush1.msra.mxu0 %v10775_v12  ;;  %4612 = vmatpush1.msra.mxu1 %v10776_v63  ;;  %v10790_v12 = vld [vmem:[#allocation46_spill] sm:$0xff] }
0x107d   :  { %4542 = vmatprep.subr.mxu0 %v10777_v54  ;;  %4613 = vmatprep.subr.mxu1 %v10778_v24  ;;  %v10786_v54 = vld [vmem:[#allocation42_spill] sm:$0xff]  ;;  %v4191_v24 = vpop.f32.mrf.mxu0 }
0x107e   :  { %4543 = vmatpush1.msra.mxu0 %v10779_v27  ;;  %4614 = vmatpush1.msra.mxu1 %v10780_v20  ;;  %v4103_v20 = vld [vmem:[%s9954_s9] sm:$0xf]  ;;  %v10787_v27 = vld [vmem:[#allocation45_spill] sm:$0xff] }
0x107f   :  { %4544 = vmatprep.subr.mxu0 %v10781_v4  ;;  %4615 = vmatprep.subr.mxu1 %v10782_v56  ;;  %v4193_v4 = vpop.f32.mrf.mxu0  ;;  %v9235_v56 = vrot.slane %v4103_v20, %v10787_v27 }
0x1080   :  { %4545 = vmatpush1.msra.mxu0 %v10783_v25  ;;  %4578 = vmatprep.mubr.f32.mxu0 %v10740_v28  ;;  %v4268_v25 = vpop.f32.mrf.mxu1 }
0x1081   :  { %4616 = vmatpush1.msra.mxu1 %v10784_v30  ;;  %4649 = vmatprep.mubr.f32.mxu1 %v10740_v28  ;;  %10788 = vst [vmem:[#allocation26_spill] sm:$0xff] %v9235_v56  ;;  %v9240_v30 = vrot.slane %v4103_v20, %v10790_v12 }
0x1082   :  { %4703 = vmatprep.subr.mxu0 %v10785_v52  ;;  %4774 = vmatprep.subr.mxu1 %v10786_v54  ;;  %v9245_v52 = vadd.f32 %v4191_v24, %v9235_v56  ;;  %v4270_v54 = vpop.f32.mrf.mxu1  ;;  %v9257_v24 = vrot.slane %v4103_v20, %v10797_v31 }
0x1083   :  { %10791 = vst [vmem:[#allocation27_spill] sm:$0xff] %v9240_v30  ;;  %v9248_v44 = vadd.f32 %v4193_v4, %v9240_v30  ;;  %v10800_v30 = vld [vmem:[#allocation52_spill] sm:$0xff] }
0x1084   :  { %10793 = vst [vmem:[#allocation28_spill] sm:$0xff] %v9245_v52  ;;  %10798 = vst [vmem:[#allocation30_spill] sm:$0xff] %v9257_v24  ;;  %v9260_v4 = vadd.f32 %v4268_v25, %v9257_v24 }
0x1085   :  { %10794 = vst [vmem:[#allocation40_spill] sm:$0xff] %v9248_v44 }
0x1086   :  { %10799 = vst [vmem:[#allocation43_spill] sm:$0xff] %v9260_v4 }
0x111d   :  { %v9237_v63 = vpop.f32.mrf.mxu0  ;;  %v9250_v41 = vpop.f32.mrf.mxu1 }
0x111e   :  { %10789 = vst [vmem:[#allocation38_spill] sm:$0xff] %v9237_v63  ;;  %10795 = vst [vmem:[#allocation29_spill] sm:$0xff] %v9250_v41  ;;  %v9263_v41 = vrot.slane %v4103_v20, %v10800_v30 }
0x111f   :  { %v9242_v28 = vpop.f32.mrf.mxu0  ;;  %v9254_v12 = vpop.f32.mrf.mxu1 }
0x1120   :  { %10792 = vst [vmem:[#allocation39_spill] sm:$0xff] %v9242_v28  ;;  %10796 = vst [vmem:[#allocation41_spill] sm:$0xff] %v9254_v12 }
0x1121   :  { %v4409_v33 = vpop.f32.mrf.mxu0  ;;  %v4480_v56 = vpop.f32.mrf.mxu1  ;;  %10801 = vst [vmem:[#allocation24_spill] sm:$0xff] %v9263_v41 }
0x1122   :  { %v4485_v27 = vadd.f32 %v4409_v33, %v9245_v52  ;;  %v4487_v33 = vadd.f32 %v4480_v56, %v9260_v4 }
0x1123   :  { %v4411_v35 = vpop.f32.mrf.mxu0 }
0x1124   :  { %v6056_v45 = vmul.f32 -1.442695, %v4485_v27  ;;  %v4486_v63 = vadd.f32 %v4411_v35, %v9248_v44  ;;  %v4482_v27 = vpop.f32.mrf.mxu1  ;;  %v9267_v35 = vadd.f32 %v4270_v54, %v9263_v41  ;;  %v6058_v12 = vmul.f32 -1.442695, %v4487_v33 }
0x1125   :  { %v10817_v41 = vmov 0.0  }
0x1126   :  { %6528 = vpow2.f32 %v6056_v45  ;;  %v6057_v28 = vmul.f32 -1.442695, %v4486_v63  ;;  %v4488_v63 = vadd.f32 %v4482_v27, %v9267_v35 }
0x1128   :  { %6530 = vpow2.f32 %v6057_v28 }
0x1129   :  { %6532 = vpow2.f32 %v6058_v12  ;;  %v10804_v12 = vld [vmem:[#allocation32_spill] sm:$0xff] }
0x1133   :  { %v6529_v45 = vpop.eup %6528 }
0x1134   :  { %v4498_v31 = vadd.f32 1.0, %v6529_v45 }
0x1135   :  { %v6531_v44 = vpop.eup %6530 }
0x1136   :  { %6534 = vrcp.f32 %v4498_v31  ;;  %v4499_v28 = vadd.f32 1.0, %v6531_v44  ;;  %v6533_v25 = vpop.eup %6532  ;;  %v10802_v44 = vld [vmem:[#allocation31_spill] sm:$0xff]  ;;  %v10808_v31 = vld [vmem:[#allocation54_spill] sm:$0xff] }
0x1137   :  { %6536 = vtanh.f32 %v4488_v63  ;;  %v4500_v56 = vadd.f32 1.0, %v6533_v25  ;;  %v10807_v63 = vld [vmem:[#allocation55_spill] sm:$0xff]  ;;  %v10810_v25 = vld [vmem:[#allocation21_spill] sm:$0xff] }
0x1138   :  { %6538 = vrcp.f32 %v4499_v28  ;;  %v10809_v28 = vld [vmem:[#allocation33_spill] sm:$0xff] }
0x1139   :  { %6540 = vrcp.f32 %v4500_v56  ;;  %v10813_v56 = vld [vmem:[#allocation35_spill] sm:$0xff] }
0x1143   :  { %v6535_v20 = vpop.eup %6534 }
0x1144   :  { %v6537_v30 = vpop.eup %6536 }
0x1145   :  { %v6539_v24 = vpop.eup %6538  ;;  %v4509_v52 = vmul.f32 %v6537_v30, %v6535_v20  ;;  %v10811_v20 = vld [vmem:[#allocation34_spill] sm:$0xff] }
0x1146   :  { %v4508_v4 = vmul.f32 0.0, %v6539_v24  ;;  %v6541_v33 = vpop.eup %6540  ;;  %v10805_v24 = vld [vmem:[#allocation20_spill] sm:$0xff]  ;;  %v10812_v30 = vld [vmem:[#allocation22_spill] sm:$0xff] }
0x1148   :  { %v9270_v54 = vadd.f32 %v4509_v52, %v4508_v4  ;;  %v10803_v52 = vld [vmem:[#allocation18_spill] sm:$0xff]  ;;  %v10806_v4 = vld [vmem:[#allocation53_spill] sm:$0xff] }
0x114a   :  { %6542 = vtanh.f32 %v9270_v54 }
0x1157   :  { %v6543_v27 = vpop.eup %6542 }
0x1158   :  { %v4512_v45 = vmul.f32 %v6543_v27, %v6541_v33  ;;  %v10814_v33 = vld [vmem:[#allocation23_spill] sm:$0xff]  ;;  %v10815_v27 = vld [vmem:[#allocation36_spill] sm:$0xff] }
0x115a   :  { %4513 = vst [vmem:[#allocation2] sm:$0x3] %v4512_v45  ;;  %4579 = vmatmul.mubr.f32.vlgmr.msra.gmra.mxu0 %v4512_v45  ;;  %4650 = vmatmul.mubr.f32.vlgmr.msra.gmra.mxu1 %v4512_v45  ;;  %v10816_v45 = vld [vmem:[#allocation25_spill] sm:$0xff] }
0x115b   :  { %4704 = vmatpush1.msra.mxu0 %v8968_v62  ;;  %4775 = vmatpush1.msra.mxu1 %v8970_v48 }
0x115c   :  { %4705 = vmatprep.subr.mxu0 %v8974_v39  ;;  %4776 = vmatprep.subr.mxu1 %v8976_v50 }
0x115d   :  { %4706 = vmatpush1.msra.mxu0 %v8980_v51  ;;  %4777 = vmatpush1.msra.mxu1 %v8982_v3 }
0x115e   :  { %4707 = vmatprep.subr.mxu0 %v8986_v37  ;;  %4778 = vmatprep.subr.mxu1 %v8988_v49 }
0x115f   :  { %4708 = vmatpush1.msra.mxu0 %v8992_v46  ;;  %4779 = vmatpush1.msra.mxu1 %v8994_v5 }
0x1160   :  { %4709 = vmatprep.subr.mxu0 %v8998_v7  ;;  %4780 = vmatprep.subr.mxu1 %v9000_v16 }
0x1161   :  { %4710 = vmatpush1.msra.mxu0 %v9004_v15  ;;  %4781 = vmatpush1.msra.mxu1 %v9006_v17 }
0x1162   :  { %4711 = vmatprep.subr.mxu0 %v9010_v18  ;;  %4782 = vmatprep.subr.mxu1 %v9012_v19 }
0x1163   :  { %4712 = vmatpush1.msra.mxu0 %v9016_v21  ;;  %4783 = vmatpush1.msra.mxu1 %v9018_v23 }
0x1164   :  { %4713 = vmatprep.subr.mxu0 %v9022_v10  ;;  %4784 = vmatprep.subr.mxu1 %v9024_v1 }
0x1165   :  { %4714 = vmatpush1.msra.mxu0 %v9028_v22  ;;  %4785 = vmatpush1.msra.mxu1 %v9030_v38 }
0x1166   :  { %4715 = vmatprep.subr.mxu0 %v9034_v11  ;;  %4786 = vmatprep.subr.mxu1 %v9036_v42 }
0x1167   :  { %4716 = vmatpush1.msra.mxu0 %v9040_v6  ;;  %4787 = vmatpush1.msra.mxu1 %v9042_v26 }
0x1168   :  { %4717 = vmatprep.subr.mxu0 %v9046_v13  ;;  %4788 = vmatprep.subr.mxu1 %v9048_v9 }
0x1169   :  { %4718 = vmatpush1.msra.mxu0 %v9052_v34  ;;  %4789 = vmatpush1.msra.mxu1 %v9054_v2 }
0x116a   :  { %4719 = vmatprep.subr.mxu0 %v9058_v0  ;;  %4790 = vmatprep.subr.mxu1 %v9060_v14 }
0x116b   :  { %4720 = vmatpush1.msra.mxu0 %v9064_v40  ;;  %4791 = vmatpush1.msra.mxu1 %v9066_v36 }
0x116c   :  { %4721 = vmatprep.subr.mxu0 %v9068_v61  ;;  %4792 = vmatprep.subr.mxu1 %v9072_v29 }
0x116d   :  { %4722 = vmatpush1.msra.mxu0 %v9074_v43  ;;  %4793 = vmatpush1.msra.mxu1 %v9076_v58 }
0x116e   :  { %4723 = vmatprep.subr.mxu0 %v9080_v53  ;;  %4794 = vmatprep.subr.mxu1 %v9082_v57 }
0x116f   :  { %4724 = vmatpush1.msra.mxu0 %v9084_v55  ;;  %4795 = vmatpush1.msra.mxu1 %v10764_v47 }
0x1170   :  { %4725 = vmatprep.subr.mxu0 %v10765_v32  ;;  %4796 = vmatprep.subr.mxu1 %v10766_v59 }
0x1171   :  { %4726 = vmatpush1.msra.mxu0 %v10767_v8  ;;  %4797 = vmatpush1.msra.mxu1 %v10768_v60 }
0x1172   :  { %4727 = vmatprep.subr.mxu0 %v10802_v44  ;;  %4798 = vmatprep.subr.mxu1 %v10803_v52 }
0x1173   :  { %4728 = vmatpush1.msra.mxu0 %v10804_v12  ;;  %4799 = vmatpush1.msra.mxu1 %v10805_v24 }
0x1174   :  { %4729 = vmatprep.subr.mxu0 %v10806_v4  ;;  %4800 = vmatprep.subr.mxu1 %v10807_v63  ;;  %v10818_v63 = vld [vmem:[#allocation37_spill] sm:$0xff] }
0x1175   :  { %4730 = vmatpush1.msra.mxu0 %v10808_v31  ;;  %4801 = vmatpush1.msra.mxu1 %v10809_v28  ;;  %v10819_v28 = vld [vmem:[#allocation19_spill] sm:$0xff] }
0x1176   :  { %4731 = vmatprep.subr.mxu0 %v10810_v25  ;;  %4802 = vmatprep.subr.mxu1 %v10811_v20  ;;  %v10820_v25 = vld [vmem:[#allocation42_spill] sm:$0xff] }
0x1177   :  { %4732 = vmatpush1.msra.mxu0 %v10812_v30  ;;  %4803 = vmatpush1.msra.mxu1 %v10813_v56  ;;  %v10821_v56 = vld [vmem:[#allocation28_spill] sm:$0xff] }
0x1178   :  { %4733 = vmatprep.subr.mxu0 %v10814_v33  ;;  %4804 = vmatprep.subr.mxu1 %v10815_v27  ;;  %v10822_v27 = vld [vmem:[#allocation40_spill] sm:$0xff] }
0x1179   :  { %4734 = vmatpush1.msra.mxu0 %v10816_v45  ;;  %4767 = vmatprep.mubr.f32.mxu0 %v10817_v41 }
0x117a   :  { %4805 = vmatpush1.msra.mxu1 %v10818_v63  ;;  %4838 = vmatprep.mubr.f32.mxu1 %v10817_v41  ;;  %v10823_v41 = vld [vmem:[#allocation43_spill] sm:$0xff] }
0x117b   :  { %4892 = vmatprep.subr.mxu0 %v10819_v28  ;;  %4963 = vmatprep.subr.mxu1 %v10820_v25 }
0x121a   :  { %v4580_v20 = vpop.f32.mrf.mxu0  ;;  %v4651_v45 = vpop.f32.mrf.mxu1 }
0x121b   :  { %v4660_v30 = vrot.slane %v4580_v20, 6  ;;  %v4662_v63 = vrot.slane %v4651_v45, 6  ;;  %v10826_v45 = vld [vmem:[#allocation50_spill] sm:$0xff] }
0x121c   :  { %v4582_v31 = vpop.f32.mrf.mxu0  ;;  %v4653_v44 = vpop.f32.mrf.mxu1 }
0x121d   :  { %v4668_v4 = vadd.f32 %v4660_v30, %v10821_v56  ;;  %v4661_v33 = vrot.slane %v4582_v31, 6  ;;  %v4670_v60 = vadd.f32 %v4662_v63, %v10823_v41  ;;  %v4663_v28 = vrot.slane %v4653_v44, 6 }
0x121f   :  { %v6059_v24 = vmul.f32 -1.442695, %v4668_v4  ;;  %v4669_v12 = vadd.f32 %v4661_v33, %v10822_v27  ;;  %v6061_v8 = vmul.f32 -1.442695, %v4670_v60  ;;  %v4671_v20 = vadd.f32 %v4663_v28, %v9267_v35 }
0x1221   :  { %6544 = vpow2.f32 %v6059_v24  ;;  %v6060_v52 = vmul.f32 -1.442695, %v4669_v12 }
0x1223   :  { %6546 = vpow2.f32 %v6060_v52  ;;  %v4692_v52 = vrot.slane %v9270_v54, 6  ;;  %v10824_v54 = vld [vmem:[#allocation49_spill] sm:$0xff] }
0x1224   :  { %6548 = vpow2.f32 %v6061_v8 }
0x122e   :  { %v6545_v25 = vpop.eup %6544 }
0x122f   :  { %v4681_v59 = vadd.f32 1.0, %v6545_v25  ;;  %v10825_v25 = vld [vmem:[#allocation48_spill] sm:$0xff] }
0x1230   :  { %v6547_v32 = vpop.eup %6546 }
0x1231   :  { %6550 = vrcp.f32 %v4681_v59  ;;  %v4682_v4 = vadd.f32 1.0, %v6547_v32  ;;  %v6549_v24 = vpop.eup %6548 }
0x1232   :  { %6552 = vtanh.f32 %v4671_v20  ;;  %v4683_v33 = vadd.f32 1.0, %v6549_v24  ;;  %v10827_v20 = vld [vmem:[#allocation56_spill] sm:$0xff]  ;;  %v10829_v24 = vld [vmem:[#allocation18_spill] sm:$0xff] }
0x1233   :  { %6554 = vrcp.f32 %v4682_v4  ;;  %v10828_v4 = vld [vmem:[#allocation31_spill] sm:$0xff] }
0x1234   :  { %6556 = vrcp.f32 %v4683_v33  ;;  %v10834_v33 = vld [vmem:[#allocation54_spill] sm:$0xff] }
0x123e   :  { %v6551_v31 = vpop.eup %6550 }
0x123f   :  { %v6553_v12 = vpop.eup %6552 }
0x1240   :  { %v6555_v30 = vpop.eup %6554  ;;  %v4695_v44 = vmul.f32 %v6553_v12, %v6551_v31  ;;  %v10830_v31 = vld [vmem:[#allocation32_spill] sm:$0xff] }
0x1241   :  { %v4694_v63 = vmul.f32 %v6555_v30, %v4692_v52  ;;  %v6557_v28 = vpop.eup %6556  ;;  %v10831_v12 = vld [vmem:[#allocation20_spill] sm:$0xff]  ;;  %v10832_v52 = vld [vmem:[#allocation53_spill] sm:$0xff]  ;;  %v10833_v30 = vld [vmem:[#allocation55_spill] sm:$0xff] }
0x1243   :  { %v9344_v60 = vadd.f32 %v4695_v44, %v4694_v63  ;;  %v10835_v63 = vld [vmem:[#allocation33_spill] sm:$0xff] }
0x1244   :  { %v10836_v44 = vld [vmem:[#allocation21_spill] sm:$0xff] }
0x1245   :  { %6558 = vtanh.f32 %v9344_v60 }
0x1252   :  { %v6559_v8 = vpop.eup %6558 }
0x1253   :  { %v4698_v59 = vmul.f32 %v6559_v8, %v6557_v28  ;;  %v10837_v28 = vld [vmem:[#allocation34_spill] sm:$0xff] }
0x1254   :  { %v10838_v8 = vld [vmem:[#allocation22_spill] sm:$0xff] }
0x1255   :  { %4699 = vst [vmem:[#allocation2] sm:$0xc] %v4698_v59  ;;  %v4701_v32 = vrot.slane %v4698_v59, 2  ;;  %v10839_v59 = vld [vmem:[#allocation35_spill] sm:$0xff] }
0x1257   :  { %4768 = vmatmul.mubr.f32.vlgmr.msra.gmra.mxu0 %v4701_v32  ;;  %4839 = vmatmul.mubr.f32.vlgmr.msra.gmra.mxu1 %v4701_v32  ;;  %v10840_v32 = vld [vmem:[#allocation23_spill] sm:$0xff] }
0x1258   :  { %4893 = vmatpush1.msra.mxu0 %v8968_v62  ;;  %4964 = vmatpush1.msra.mxu1 %v8970_v48 }
0x1259   :  { %4894 = vmatprep.subr.mxu0 %v8974_v39  ;;  %4965 = vmatprep.subr.mxu1 %v8976_v50 }
0x125a   :  { %4895 = vmatpush1.msra.mxu0 %v8980_v51  ;;  %4966 = vmatpush1.msra.mxu1 %v8982_v3 }
0x125b   :  { %4896 = vmatprep.subr.mxu0 %v8986_v37  ;;  %4967 = vmatprep.subr.mxu1 %v8988_v49 }
0x125c   :  { %4897 = vmatpush1.msra.mxu0 %v8992_v46  ;;  %4968 = vmatpush1.msra.mxu1 %v8994_v5 }
0x125d   :  { %4898 = vmatprep.subr.mxu0 %v8998_v7  ;;  %4969 = vmatprep.subr.mxu1 %v9000_v16 }
0x125e   :  { %4899 = vmatpush1.msra.mxu0 %v9004_v15  ;;  %4970 = vmatpush1.msra.mxu1 %v9006_v17 }
0x125f   :  { %4900 = vmatprep.subr.mxu0 %v9010_v18  ;;  %4971 = vmatprep.subr.mxu1 %v9012_v19 }
0x1260   :  { %4901 = vmatpush1.msra.mxu0 %v9016_v21  ;;  %4972 = vmatpush1.msra.mxu1 %v9018_v23 }
0x1261   :  { %4902 = vmatprep.subr.mxu0 %v9022_v10  ;;  %4973 = vmatprep.subr.mxu1 %v9024_v1 }
0x1262   :  { %4903 = vmatpush1.msra.mxu0 %v9028_v22  ;;  %4974 = vmatpush1.msra.mxu1 %v9030_v38 }
0x1263   :  { %4904 = vmatprep.subr.mxu0 %v9034_v11  ;;  %4975 = vmatprep.subr.mxu1 %v9036_v42 }
0x1264   :  { %4905 = vmatpush1.msra.mxu0 %v9040_v6  ;;  %4976 = vmatpush1.msra.mxu1 %v9042_v26 }
0x1265   :  { %4906 = vmatprep.subr.mxu0 %v9046_v13  ;;  %4977 = vmatprep.subr.mxu1 %v9048_v9 }
0x1266   :  { %4907 = vmatpush1.msra.mxu0 %v9052_v34  ;;  %4978 = vmatpush1.msra.mxu1 %v9054_v2 }
0x1267   :  { %4908 = vmatprep.subr.mxu0 %v9058_v0  ;;  %4979 = vmatprep.subr.mxu1 %v9060_v14 }
0x1268   :  { %4909 = vmatpush1.msra.mxu0 %v9064_v40  ;;  %4980 = vmatpush1.msra.mxu1 %v9066_v36 }
0x1269   :  { %4910 = vmatprep.subr.mxu0 %v9068_v61  ;;  %4981 = vmatprep.subr.mxu1 %v9072_v29 }
0x126a   :  { %4911 = vmatpush1.msra.mxu0 %v9074_v43  ;;  %4982 = vmatpush1.msra.mxu1 %v9076_v58 }
0x126b   :  { %4912 = vmatprep.subr.mxu0 %v9080_v53  ;;  %4983 = vmatprep.subr.mxu1 %v9082_v57 }
0x126c   :  { %4913 = vmatpush1.msra.mxu0 %v9084_v55  ;;  %4984 = vmatpush1.msra.mxu1 %v10764_v47 }
0x126d   :  { %4914 = vmatprep.subr.mxu0 %v10824_v54  ;;  %4985 = vmatprep.subr.mxu1 %v10825_v25 }
0x126e   :  { %4915 = vmatpush1.msra.mxu0 %v10826_v45  ;;  %4986 = vmatpush1.msra.mxu1 %v10827_v20 }
0x126f   :  { %4916 = vmatprep.subr.mxu0 %v10828_v4  ;;  %4987 = vmatprep.subr.mxu1 %v10829_v24 }
0x1270   :  { %4917 = vmatpush1.msra.mxu0 %v10830_v31  ;;  %4988 = vmatpush1.msra.mxu1 %v10831_v12  ;;  %v10841_v31 = vld [vmem:[#allocation36_spill] sm:$0xff]  ;;  %v10842_v12 = vld [vmem:[#allocation25_spill] sm:$0xff] }
0x1271   :  { %4918 = vmatprep.subr.mxu0 %v10832_v52  ;;  %4989 = vmatprep.subr.mxu1 %v10833_v30  ;;  %v10843_v52 = vmov 0.0   ;;  %v10844_v30 = vld [vmem:[#allocation37_spill] sm:$0xff] }
0x1272   :  { %4919 = vmatpush1.msra.mxu0 %v10834_v33  ;;  %4990 = vmatpush1.msra.mxu1 %v10835_v63  ;;  %v10845_v63 = vld [vmem:[#allocation19_spill] sm:$0xff] }
0x1273   :  { %4920 = vmatprep.subr.mxu0 %v10836_v44  ;;  %4991 = vmatprep.subr.mxu1 %v10837_v28  ;;  %v10846_v44 = vld [vmem:[#allocation42_spill] sm:$0xff] }
0x1274   :  { %4921 = vmatpush1.msra.mxu0 %v10838_v8  ;;  %4992 = vmatpush1.msra.mxu1 %v10839_v59 }
0x1275   :  { %4922 = vmatprep.subr.mxu0 %v10840_v32  ;;  %4993 = vmatprep.subr.mxu1 %v10841_v31 }
0x1276   :  { %4923 = vmatpush1.msra.mxu0 %v10842_v12  ;;  %4956 = vmatprep.mubr.f32.mxu0 %v10843_v52 }
0x1277   :  { %4994 = vmatpush1.msra.mxu1 %v10844_v30  ;;  %5027 = vmatprep.mubr.f32.mxu1 %v10843_v52 }
0x1278   :  { %5081 = vmatprep.subr.mxu0 %v10845_v63  ;;  %5152 = vmatprep.subr.mxu1 %v10846_v44 }
0x1317   :  { %v4769_v28 = vpop.f32.mrf.mxu0  ;;  %v4840_v12 = vpop.f32.mrf.mxu1 }
0x1318   :  { %v4849_v8 = vrot.slane %v4769_v28, 4  ;;  %v4851_v30 = vrot.slane %v4840_v12, 4 }
0x1319   :  { %v4771_v33 = vpop.f32.mrf.mxu0  ;;  %v4842_v20 = vpop.f32.mrf.mxu1 }
0x131a   :  { %v4857_v59 = vadd.f32 %v4849_v8, %v10821_v56  ;;  %v4850_v32 = vrot.slane %v4771_v33, 4  ;;  %v4859_v52 = vadd.f32 %v4851_v30, %v10823_v41  ;;  %v4852_v63 = vrot.slane %v4842_v20, 4 }
0x131c   :  { %v6062_v24 = vmul.f32 -1.442695, %v4857_v59  ;;  %v4858_v31 = vadd.f32 %v4850_v32, %v10822_v27  ;;  %v6064_v45 = vmul.f32 -1.442695, %v4859_v52  ;;  %v4860_v28 = vadd.f32 %v4852_v63, %v9267_v35 }
0x131e   :  { %6560 = vpow2.f32 %v6062_v24  ;;  %v6063_v4 = vmul.f32 -1.442695, %v4858_v31 }
0x1320   :  { %6562 = vpow2.f32 %v6063_v4  ;;  %v4881_v4 = vrot.slane %v9344_v60, 6 }
0x1321   :  { %6564 = vpow2.f32 %v6064_v45 }
0x132b   :  { %v6561_v44 = vpop.eup %6560 }
0x132c   :  { %v4870_v25 = vadd.f32 1.0, %v6561_v44 }
0x132d   :  { %v6563_v54 = vpop.eup %6562 }
0x132e   :  { %6566 = vrcp.f32 %v4870_v25  ;;  %v4871_v33 = vadd.f32 1.0, %v6563_v54  ;;  %v6565_v24 = vpop.eup %6564 }
0x132f   :  { %6568 = vtanh.f32 %v4860_v28  ;;  %v4872_v59 = vadd.f32 1.0, %v6565_v24 }
0x1330   :  { %6570 = vrcp.f32 %v4871_v33 }
0x1331   :  { %6572 = vrcp.f32 %v4872_v59  ;;  %v9502_v59 = vld [vmem:[#allocation12 + $0x1f0] sm:$0xff] }
0x133b   :  { %v6567_v8 = vpop.eup %6566 }
0x133c   :  { %v6569_v31 = vpop.eup %6568 }
0x133d   :  { %v6571_v12 = vpop.eup %6570  ;;  %v4884_v20 = vmul.f32 %v6569_v31, %v6567_v8 }
0x133e   :  { %v4883_v30 = vmul.f32 %v6571_v12, %v4881_v4  ;;  %v6573_v32 = vpop.eup %6572  ;;  %v9499_v12 = vld [vmem:[#allocation12 + $0x1e0] sm:$0xff] }
0x1340   :  { %v9418_v52 = vadd.f32 %v4884_v20, %v4883_v30  ;;  %v9505_v30 = vld [vmem:[#allocation12 + $0x1c8] sm:$0xff]  ;;  %v9508_v20 = vld [vmem:[#allocation12 + $0x1d8] sm:$0xff] }
0x1342   :  { %6574 = vtanh.f32 %v9418_v52  ;;  %v5070_v63 = vrot.slane %v9418_v52, 6  ;;  %v9511_v52 = vld [vmem:[#allocation12 + $0x1c0] sm:$0xff] }
0x134f   :  { %v6575_v45 = vpop.eup %6574 }
0x1350   :  { %v4887_v25 = vmul.f32 %v6575_v45, %v6573_v32  ;;  %v9514_v32 = vld [vmem:[#allocation12 + $0x1d0] sm:$0xff]  ;;  %v9517_v45 = vld [vmem:[#allocation12 + $0x1a8] sm:$0xff] }
0x1352   :  { %4888 = vst [vmem:[#allocation2] sm:$0x30] %v4887_v25  ;;  %v4890_v54 = vrot.slane %v4887_v25, 4  ;;  %v9520_v25 = vld [vmem:[#allocation12 + $0x1b8] sm:$0xff] }
0x1354   :  { %4957 = vmatmul.mubr.f32.vlgmr.msra.gmra.mxu0 %v4890_v54  ;;  %5028 = vmatmul.mubr.f32.vlgmr.msra.gmra.mxu1 %v4890_v54  ;;  %v9523_v54 = vld [vmem:[#allocation12 + $0x1a0] sm:$0xff] }
0x1355   :  { %5082 = vmatpush1.msra.mxu0 %v8968_v62  ;;  %5153 = vmatpush1.msra.mxu1 %v8970_v48  ;;  %v10847_v62 = vld [vmem:[#allocation49_spill] sm:$0xff]  ;;  %v10848_v48 = vld [vmem:[#allocation48_spill] sm:$0xff] }
0x1356   :  { %5083 = vmatprep.subr.mxu0 %v8974_v39  ;;  %5154 = vmatprep.subr.mxu1 %v8976_v50  ;;  %v10849_v39 = vld [vmem:[#allocation50_spill] sm:$0xff]  ;;  %v10850_v50 = vld [vmem:[#allocation56_spill] sm:$0xff] }
0x1357   :  { %5084 = vmatpush1.msra.mxu0 %v8980_v51  ;;  %5155 = vmatpush1.msra.mxu1 %v8982_v3  ;;  %v10851_v51 = vld [vmem:[#allocation31_spill] sm:$0xff]  ;;  %v10852_v3 = vld [vmem:[#allocation18_spill] sm:$0xff] }
0x1358   :  { %5085 = vmatprep.subr.mxu0 %v8986_v37  ;;  %5156 = vmatprep.subr.mxu1 %v8988_v49  ;;  %v10853_v37 = vld [vmem:[#allocation32_spill] sm:$0xff] }
0x1359   :  { %5086 = vmatpush1.msra.mxu0 %v8992_v46  ;;  %5157 = vmatpush1.msra.mxu1 %v8994_v5  ;;  %v10854_v49 = vld [vmem:[#allocation20_spill] sm:$0xff]  ;;  %v10855_v46 = vld [vmem:[#allocation53_spill] sm:$0xff]  ;;  %v10856_v5 = vld [vmem:[#allocation55_spill] sm:$0xff] }
0x135a   :  { %5087 = vmatprep.subr.mxu0 %v8998_v7  ;;  %5158 = vmatprep.subr.mxu1 %v9000_v16  ;;  %v10857_v7 = vld [vmem:[#allocation54_spill] sm:$0xff]  ;;  %v10858_v16 = vld [vmem:[#allocation33_spill] sm:$0xff] }
0x135b   :  { %5088 = vmatpush1.msra.mxu0 %v9004_v15  ;;  %5159 = vmatpush1.msra.mxu1 %v9006_v17  ;;  %v10859_v15 = vld [vmem:[#allocation21_spill] sm:$0xff]  ;;  %v10860_v17 = vld [vmem:[#allocation34_spill] sm:$0xff] }
0x135c   :  { %5089 = vmatprep.subr.mxu0 %v9010_v18  ;;  %5160 = vmatprep.subr.mxu1 %v9012_v19  ;;  %v10861_v18 = vld [vmem:[#allocation22_spill] sm:$0xff]  ;;  %v10862_v19 = vld [vmem:[#allocation35_spill] sm:$0xff] }
0x135d   :  { %5090 = vmatpush1.msra.mxu0 %v9016_v21  ;;  %5161 = vmatpush1.msra.mxu1 %v9018_v23  ;;  %v10863_v21 = vld [vmem:[#allocation23_spill] sm:$0xff]  ;;  %v10864_v23 = vld [vmem:[#allocation36_spill] sm:$0xff] }
0x135e   :  { %5091 = vmatprep.subr.mxu0 %v9022_v10  ;;  %5162 = vmatprep.subr.mxu1 %v9024_v1  ;;  %v10865_v10 = vld [vmem:[#allocation25_spill] sm:$0xff]  ;;  %v10866_v1 = vmov 0.0  }
0x135f   :  { %5092 = vmatpush1.msra.mxu0 %v9028_v22  ;;  %5163 = vmatpush1.msra.mxu1 %v9030_v38  ;;  %v10867_v22 = vld [vmem:[#allocation37_spill] sm:$0xff]  ;;  %v9485_v38 = vld [vmem:[#allocation12 + $0x1e8] sm:$0xff] }
0x1360   :  { %5093 = vmatprep.subr.mxu0 %v9034_v11  ;;  %5164 = vmatprep.subr.mxu1 %v9036_v42  ;;  %10868 = vst [vmem:[#allocation47_spill] sm:$0xff] %v9485_v38  ;;  %v9488_v11 = vld [vmem:[#allocation12 + $0x1f8] sm:$0xff] }
0x1361   :  { %5094 = vmatpush1.msra.mxu0 %v9040_v6  ;;  %5165 = vmatpush1.msra.mxu1 %v9042_v26  ;;  %10869 = vst [vmem:[#allocation45_spill] sm:$0xff] %v9488_v11 }
0x1362   :  { %5095 = vmatprep.subr.mxu0 %v9046_v13  ;;  %5166 = vmatprep.subr.mxu1 %v9048_v9 }
0x1363   :  { %5096 = vmatpush1.msra.mxu0 %v9052_v34  ;;  %5167 = vmatpush1.msra.mxu1 %v9054_v2 }
0x1364   :  { %5097 = vmatprep.subr.mxu0 %v9058_v0  ;;  %5168 = vmatprep.subr.mxu1 %v9060_v14 }
0x1365   :  { %5098 = vmatpush1.msra.mxu0 %v9064_v40  ;;  %5169 = vmatpush1.msra.mxu1 %v9066_v36 }
0x1366   :  { %5099 = vmatprep.subr.mxu0 %v9068_v61  ;;  %5170 = vmatprep.subr.mxu1 %v9072_v29 }
0x1367   :  { %5100 = vmatpush1.msra.mxu0 %v9074_v43  ;;  %5171 = vmatpush1.msra.mxu1 %v9076_v58 }
0x1368   :  { %5101 = vmatprep.subr.mxu0 %v9080_v53  ;;  %5172 = vmatprep.subr.mxu1 %v9082_v57 }
0x1369   :  { %5102 = vmatpush1.msra.mxu0 %v9084_v55  ;;  %5173 = vmatpush1.msra.mxu1 %v10764_v47 }
0x136a   :  { %5103 = vmatprep.subr.mxu0 %v10847_v62  ;;  %5174 = vmatprep.subr.mxu1 %v10848_v48  ;;  %v9526_v62 = vld [vmem:[#allocation12 + $0x1b0] sm:$0xff]  ;;  %v9529_v48 = vld [vmem:[#allocation12 + $0x188] sm:$0xff] }
0x136b   :  { %5104 = vmatpush1.msra.mxu0 %v10849_v39  ;;  %5175 = vmatpush1.msra.mxu1 %v10850_v50  ;;  %v9532_v39 = vld [vmem:[#allocation12 + $0x198] sm:$0xff]  ;;  %v9535_v50 = vld [vmem:[#allocation12 + $0x180] sm:$0xff] }
0x136c   :  { %5105 = vmatprep.subr.mxu0 %v10851_v51  ;;  %5176 = vmatprep.subr.mxu1 %v10852_v3  ;;  %v9538_v51 = vld [vmem:[#allocation12 + $0x190] sm:$0xff]  ;;  %v9541_v3 = vld [vmem:[#allocation12 + $0x168] sm:$0xff] }
0x136d   :  { %5106 = vmatpush1.msra.mxu0 %v10853_v37  ;;  %5177 = vmatpush1.msra.mxu1 %v10854_v49  ;;  %v9544_v37 = vld [vmem:[#allocation12 + $0x178] sm:$0xff]  ;;  %v9547_v49 = vld [vmem:[#allocation12 + $0x160] sm:$0xff] }
0x136e   :  { %5107 = vmatprep.subr.mxu0 %v10855_v46  ;;  %5178 = vmatprep.subr.mxu1 %v10856_v5  ;;  %v9550_v46 = vld [vmem:[#allocation12 + $0x170] sm:$0xff]  ;;  %v9553_v5 = vld [vmem:[#allocation12 + $0x148] sm:$0xff] }
0x136f   :  { %5108 = vmatpush1.msra.mxu0 %v10857_v7  ;;  %5179 = vmatpush1.msra.mxu1 %v10858_v16  ;;  %v9556_v7 = vld [vmem:[#allocation12 + $0x158] sm:$0xff]  ;;  %v9559_v16 = vld [vmem:[#allocation12 + $0x140] sm:$0xff] }
0x1370   :  { %5109 = vmatprep.subr.mxu0 %v10859_v15  ;;  %5180 = vmatprep.subr.mxu1 %v10860_v17  ;;  %v9562_v15 = vld [vmem:[#allocation12 + $0x150] sm:$0xff]  ;;  %v9565_v17 = vld [vmem:[#allocation12 + $0x128] sm:$0xff] }
0x1371   :  { %5110 = vmatpush1.msra.mxu0 %v10861_v18  ;;  %5181 = vmatpush1.msra.mxu1 %v10862_v19  ;;  %v9568_v18 = vld [vmem:[#allocation12 + $0x138] sm:$0xff]  ;;  %v9571_v19 = vld [vmem:[#allocation12 + $0x120] sm:$0xff] }
0x1372   :  { %5111 = vmatprep.subr.mxu0 %v10863_v21  ;;  %5182 = vmatprep.subr.mxu1 %v10864_v23  ;;  %v9574_v21 = vld [vmem:[#allocation12 + $0x130] sm:$0xff]  ;;  %v9577_v23 = vld [vmem:[#allocation12 + $0x108] sm:$0xff] }
0x1373   :  { %5112 = vmatpush1.msra.mxu0 %v10865_v10  ;;  %5145 = vmatprep.mubr.f32.mxu0 %v10866_v1  ;;  %v9580_v10 = vld [vmem:[#allocation12 + $0x118] sm:$0xff] }
0x1374   :  { %5183 = vmatpush1.msra.mxu1 %v10867_v22  ;;  %5216 = vmatprep.mubr.f32.mxu1 %v10866_v1  ;;  %v9583_v22 = vld [vmem:[#allocation12 + $0x100] sm:$0xff] }
0x1375   :  { %5255 = vmatprep.subr.mxu0 %v9485_v38  ;;  %5326 = vmatprep.subr.mxu1 %v9488_v11 }
0x1414   :  { %v4958_v42 = vpop.f32.mrf.mxu0  ;;  %v5029_v0 = vpop.f32.mrf.mxu1 }
0x1415   :  { %v5038_v6 = vrot.slane %v4958_v42, 2  ;;  %v5040_v40 = vrot.slane %v5029_v0, 2  ;;  %v9586_v42 = vld [vmem:[#allocation12 + $0x110] sm:$0xff]  ;;  %v9607_v0 = vld [vmem:[#allocation12 + $0xc0] sm:$0xff] }
0x1416   :  { %v4960_v26 = vpop.f32.mrf.mxu0  ;;  %v5031_v36 = vpop.f32.mrf.mxu1 }
0x1417   :  { %v5046_v13 = vadd.f32 %v5038_v6, %v10821_v56  ;;  %v5039_v9 = vrot.slane %v4960_v26, 2  ;;  %v5048_v61 = vadd.f32 %v5040_v40, %v10823_v41  ;;  %v5041_v29 = vrot.slane %v5031_v36, 2  ;;  %v9589_v6 = vld [vmem:[#allocation12 + $0xe8] sm:$0xff]  ;;  %v9592_v26 = vld [vmem:[#allocation12 + $0xf8] sm:$0xff] }
0x1418   :  { %v9613_v40 = vld [vmem:[#allocation12 + $0xa8] sm:$0xff]  ;;  %v9616_v36 = vld [vmem:[#allocation12 + $0xb8] sm:$0xff] }
0x1419   :  { %v6065_v34 = vmul.f32 -1.442695, %v5046_v13  ;;  %v5047_v2 = vadd.f32 %v5039_v9, %v10822_v27  ;;  %v6067_v43 = vmul.f32 -1.442695, %v5048_v61  ;;  %v5049_v53 = vadd.f32 %v5041_v29, %v9267_v35  ;;  %v9595_v13 = vld [vmem:[#allocation12 + $0xe0] sm:$0xff]  ;;  %v9598_v9 = vld [vmem:[#allocation12 + $0xf0] sm:$0xff] }
0x141a   :  { %v9619_v61 = vld [vmem:[#allocation12 + $0xa0] sm:$0xff]  ;;  %v9622_v29 = vld [vmem:[#allocation12 + $0xb0] sm:$0xff] }
0x141b   :  { %6576 = vpow2.f32 %v6065_v34  ;;  %v6066_v14 = vmul.f32 -1.442695, %v5047_v2  ;;  %v9601_v34 = vld [vmem:[#allocation12 + $0xc8] sm:$0xff]  ;;  %v9604_v2 = vld [vmem:[#allocation12 + $0xd8] sm:$0xff] }
0x141d   :  { %6578 = vpow2.f32 %v6066_v14  ;;  %v9610_v14 = vld [vmem:[#allocation12 + $0xd0] sm:$0xff] }
0x141e   :  { %6580 = vpow2.f32 %v6067_v43  ;;  %v9625_v43 = vld [vmem:[#allocation12 + $0x88] sm:$0xff] }
0x141f   :  { %10870 = vst [vmem:[#allocation46_spill] sm:$0xff] %v9625_v43 }
0x1428   :  { %v6577_v58 = vpop.eup %6576 }
0x1429   :  { %v5059_v57 = vadd.f32 1.0, %v6577_v58  ;;  %v9628_v58 = vld [vmem:[#allocation12 + $0x98] sm:$0xff] }
0x142a   :  { %v6579_v55 = vpop.eup %6578  ;;  %10871 = vst [vmem:[#allocation51_spill] sm:$0xff] %v9628_v58 }
0x142b   :  { %6582 = vrcp.f32 %v5059_v57  ;;  %v5060_v47 = vadd.f32 1.0, %v6579_v55  ;;  %v6581_v56 = vpop.eup %6580  ;;  %v9634_v57 = vld [vmem:[#allocation12 + $0x90] sm:$0xff]  ;;  %v9637_v55 = vld [vmem:[#allocation12 + $0x68] sm:$0xff] }
0x142c   :  { %6584 = vtanh.f32 %v5049_v53  ;;  %v5061_v28 = vadd.f32 1.0, %v6581_v56  ;;  %v9631_v53 = vld [vmem:[#allocation12 + $0x80] sm:$0xff]  ;;  %10873 = vst [vmem:[#allocation28_spill] sm:$0xff] %v9634_v57  ;;  %10874 = vst [vmem:[#allocation40_spill] sm:$0xff] %v9637_v55 }
0x142d   :  { %6586 = vrcp.f32 %v5060_v47  ;;  %10872 = vst [vmem:[#allocation52_spill] sm:$0xff] %v9631_v53  ;;  %v9640_v47 = vld [vmem:[#allocation12 + $0x78] sm:$0xff]  ;;  %v9643_v56 = vld [vmem:[#allocation12 + $0x60] sm:$0xff] }
0x142e   :  { %6588 = vrcp.f32 %v5061_v28  ;;  %10875 = vst [vmem:[#allocation43_spill] sm:$0xff] %v9640_v47  ;;  %10876 = vst [vmem:[#allocation19_spill] sm:$0xff] %v9643_v56  ;;  %v9658_v28 = vld [vmem:[#allocation12 + $0x50] sm:$0xff] }
0x142f   :  { %10881 = vst [vmem:[#allocation56_spill] sm:$0xff] %v9658_v28 }
0x1438   :  { %v6583_v27 = vpop.eup %6582 }
0x1439   :  { %v6585_v60 = vpop.eup %6584 }
0x143a   :  { %v6587_v44 = vpop.eup %6586  ;;  %v5073_v33 = vmul.f32 %v6585_v60, %v6583_v27  ;;  %v9646_v27 = vld [vmem:[#allocation12 + $0x70] sm:$0xff]  ;;  %v9649_v60 = vld [vmem:[#allocation12 + $0x48] sm:$0xff] }
0x143b   :  { %v5072_v41 = vmul.f32 %v6587_v44, %v5070_v63  ;;  %v6589_v35 = vpop.eup %6588  ;;  %10877 = vst [vmem:[#allocation42_spill] sm:$0xff] %v9646_v27  ;;  %10878 = vst [vmem:[#allocation49_spill] sm:$0xff] %v9649_v60  ;;  %v9652_v63 = vld [vmem:[#allocation12 + $0x58] sm:$0xff]  ;;  %v9655_v44 = vld [vmem:[#allocation12 + $0x40] sm:$0xff] }
0x143c   :  { %10879 = vst [vmem:[#allocation48_spill] sm:$0xff] %v9652_v63  ;;  %10880 = vst [vmem:[#allocation50_spill] sm:$0xff] %v9655_v44 }
0x143d   :  { %v9496_v24 = vadd.f32 %v5073_v33, %v5072_v41  ;;  %v9661_v41 = vld [vmem:[#allocation12 + $0x28] sm:$0xff]  ;;  %v9664_v33 = vld [vmem:[#allocation12 + $0x38] sm:$0xff] }
0x143e   :  { %10882 = vst [vmem:[#allocation31_spill] sm:$0xff] %v9661_v41  ;;  %10883 = vst [vmem:[#allocation18_spill] sm:$0xff] %v9664_v33 }
0x143f   :  { %6590 = vtanh.f32 %v9496_v24 }
0x144c   :  { %v6591_v8 = vpop.eup %6590 }
0x144d   :  { %v5076_v31 = vmul.f32 %v6591_v8, %v6589_v35  ;;  %v9667_v35 = vld [vmem:[#allocation12 + $0x20] sm:$0xff]  ;;  %v9670_v8 = vld [vmem:[#allocation12 + $0x30] sm:$0xff] }
0x144e   :  { %10884 = vst [vmem:[#allocation32_spill] sm:$0xff] %v9667_v35  ;;  %10885 = vst [vmem:[#allocation20_spill] sm:$0xff] %v9670_v8 }
0x144f   :  { %5077 = vst [vmem:[#allocation2] sm:$0xc0] %v5076_v31  ;;  %v5079_v4 = vrot.slane %v5076_v31, 6  ;;  %v9673_v31 = vld [vmem:[#allocation12 + $0x8] sm:$0xff] }
0x1450   :  { %10886 = vst [vmem:[#allocation53_spill] sm:$0xff] %v9673_v31 }
0x1451   :  { %5146 = vmatmul.mubr.f32.vlgmr.msra.gmra.mxu0 %v5079_v4  ;;  %5217 = vmatmul.mubr.f32.vlgmr.msra.gmra.mxu1 %v5079_v4  ;;  %v9676_v4 = vld [vmem:[#allocation12 + $0x18] sm:$0xff] }
0x1452   :  { %5256 = vmatpush1.msra.mxu0 %v9499_v12  ;;  %5327 = vmatpush1.msra.mxu1 %v9502_v59  ;;  %10887 = vst [vmem:[#allocation55_spill] sm:$0xff] %v9676_v4 }
0x1453   :  { %5257 = vmatprep.subr.mxu0 %v9505_v30  ;;  %5328 = vmatprep.subr.mxu1 %v9508_v20 }
0x1454   :  { %5258 = vmatpush1.msra.mxu0 %v9511_v52  ;;  %5329 = vmatpush1.msra.mxu1 %v9514_v32 }
0x1455   :  { %5259 = vmatprep.subr.mxu0 %v9517_v45  ;;  %5330 = vmatprep.subr.mxu1 %v9520_v25 }
0x1456   :  { %5260 = vmatpush1.msra.mxu0 %v9523_v54  ;;  %5331 = vmatpush1.msra.mxu1 %v9526_v62 }
0x1457   :  { %5261 = vmatprep.subr.mxu0 %v9529_v48  ;;  %5332 = vmatprep.subr.mxu1 %v9532_v39 }
0x1458   :  { %5262 = vmatpush1.msra.mxu0 %v9535_v50  ;;  %5333 = vmatpush1.msra.mxu1 %v9538_v51 }
0x1459   :  { %5263 = vmatprep.subr.mxu0 %v9541_v3  ;;  %5334 = vmatprep.subr.mxu1 %v9544_v37 }
0x145a   :  { %5264 = vmatpush1.msra.mxu0 %v9547_v49  ;;  %5335 = vmatpush1.msra.mxu1 %v9550_v46 }
0x145b   :  { %5265 = vmatprep.subr.mxu0 %v9553_v5  ;;  %5336 = vmatprep.subr.mxu1 %v9556_v7 }
0x145c   :  { %5266 = vmatpush1.msra.mxu0 %v9559_v16  ;;  %5337 = vmatpush1.msra.mxu1 %v9562_v15 }
0x145d   :  { %5267 = vmatprep.subr.mxu0 %v9565_v17  ;;  %5338 = vmatprep.subr.mxu1 %v9568_v18 }
0x145e   :  { %5268 = vmatpush1.msra.mxu0 %v9571_v19  ;;  %5339 = vmatpush1.msra.mxu1 %v9574_v21 }
0x145f   :  { %5269 = vmatprep.subr.mxu0 %v9577_v23  ;;  %5340 = vmatprep.subr.mxu1 %v9580_v10 }
0x1460   :  { %5270 = vmatpush1.msra.mxu0 %v9583_v22  ;;  %5341 = vmatpush1.msra.mxu1 %v9586_v42 }
0x1461   :  { %5271 = vmatprep.subr.mxu0 %v9589_v6  ;;  %5342 = vmatprep.subr.mxu1 %v9592_v26 }
0x1462   :  { %5272 = vmatpush1.msra.mxu0 %v9595_v13  ;;  %5343 = vmatpush1.msra.mxu1 %v9598_v9 }
0x1463   :  { %5273 = vmatprep.subr.mxu0 %v9601_v34  ;;  %5344 = vmatprep.subr.mxu1 %v9604_v2 }
0x1464   :  { %5274 = vmatpush1.msra.mxu0 %v9607_v0  ;;  %5345 = vmatpush1.msra.mxu1 %v9610_v14 }
0x1465   :  { %5275 = vmatprep.subr.mxu0 %v9613_v40  ;;  %5346 = vmatprep.subr.mxu1 %v9616_v36 }
0x1466   :  { %5276 = vmatpush1.msra.mxu0 %v9619_v61  ;;  %5347 = vmatpush1.msra.mxu1 %v9622_v29 }
0x1467   :  { %5277 = vmatprep.subr.mxu0 %v9625_v43  ;;  %5348 = vmatprep.subr.mxu1 %v9628_v58 }
0x1468   :  { %5278 = vmatpush1.msra.mxu0 %v9631_v53  ;;  %5349 = vmatpush1.msra.mxu1 %v9634_v57 }
0x1469   :  { %5279 = vmatprep.subr.mxu0 %v9637_v55  ;;  %5350 = vmatprep.subr.mxu1 %v9640_v47  ;;  %v10899_v55 = vld [vmem:[#allocation24_spill] sm:$0xff] }
0x146a   :  { %5280 = vmatpush1.msra.mxu0 %v9643_v56  ;;  %5351 = vmatpush1.msra.mxu1 %v9646_v27  ;;  %v10897_v56 = vld [vmem:[#allocation29_spill] sm:$0xff] }
0x146b   :  { %5281 = vmatprep.subr.mxu0 %v9649_v60  ;;  %5352 = vmatprep.subr.mxu1 %v9652_v63 }
0x146c   :  { %5282 = vmatpush1.msra.mxu0 %v9655_v44  ;;  %5353 = vmatpush1.msra.mxu1 %v9658_v28  ;;  %v10893_v28 = vld [vmem:[#allocation27_spill] sm:$0xff] }
0x146d   :  { %5283 = vmatprep.subr.mxu0 %v9661_v41  ;;  %5354 = vmatprep.subr.mxu1 %v9664_v33  ;;  %v9679_v41 = vld [vmem:[#allocation12] sm:$0xff]  ;;  %v9683_v33 = vld [vmem:[#allocation12 + $0x10] sm:$0xff]  ;;  %v10894_v44 = vld [vmem:[#allocation39_spill] sm:$0xff] }
0x146e   :  { %5284 = vmatpush1.msra.mxu0 %v9667_v35  ;;  %5355 = vmatpush1.msra.mxu1 %v9670_v8  ;;  %10888 = vst [vmem:[#allocation54_spill] sm:$0xff] %v9679_v41  ;;  %10889 = vst [vmem:[#allocation33_spill] sm:$0xff] %v9683_v33  ;;  %v10891_v8 = vld [vmem:[#allocation38_spill] sm:$0xff] }
0x146f   :  { %5285 = vmatprep.subr.mxu0 %v9673_v31  ;;  %5356 = vmatprep.subr.mxu1 %v9676_v4  ;;  %v10890_v31 = vld [vmem:[#allocation26_spill] sm:$0xff] }
0x1470   :  { %5286 = vmatpush1.msra.mxu0 %v9679_v41  ;;  %5319 = vmatprep.mubr.f32.mxu0 %v10866_v1  ;;  %v9691_v35 = vadd.f32 %v10891_v8, %v10890_v31  ;;  %v9695_v41 = vadd.f32 %v10894_v44, %v10893_v28  ;;  %v10900_v44 = vld [vmem:[#allocation41_spill] sm:$0xff] }
0x1471   :  { %5357 = vmatpush1.msra.mxu1 %v9683_v33  ;;  %5390 = vmatprep.mubr.f32.mxu1 %v10866_v1  ;;  %v9706_v28 = vadd.f32 %v10900_v44, %v10899_v55 }
0x1472   :  { %5444 = vmatprep.subr.mxu0 %v9485_v38  ;;  %5515 = vmatprep.subr.mxu1 %v9488_v11  ;;  %10892 = vst [vmem:[#allocation21_spill] sm:$0xff] %v9691_v35  ;;  %10895 = vst [vmem:[#allocation34_spill] sm:$0xff] %v9695_v41  ;;  %v10896_v11 = vld [vmem:[#allocation30_spill] sm:$0xff] }
0x1473   :  { %v9701_v47 = vadd.f32 %v10897_v56, %v10896_v11 }
0x1475   :  { %10898 = vst [vmem:[#allocation22_spill] sm:$0xff] %v9701_v47 }
0x1511   :  { %v5147_v4 = vpop.f32.mrf.mxu0  ;;  %v5218_v38 = vpop.f32.mrf.mxu1 }
0x1512   :  { %v5223_v63 = vadd.f32 %v5147_v4, %v9691_v35  ;;  %v5225_v8 = vadd.f32 %v5218_v38, %v9701_v47  ;;  %v5247_v38 = vrot.slane %v9496_v24, 6  ;;  %v10901_v24 = vld [vmem:[#allocation40_spill] sm:$0xff] }
0x1513   :  { %v5149_v60 = vpop.f32.mrf.mxu0  ;;  %v5220_v31 = vpop.f32.mrf.mxu1 }
0x1514   :  { %v6068_v27 = vmul.f32 -1.442695, %v5223_v63  ;;  %v5224_v33 = vadd.f32 %v5149_v60, %v9695_v41  ;;  %v6070_v4 = vmul.f32 -1.442695, %v5225_v8  ;;  %v5226_v63 = vadd.f32 %v5220_v31, %v9706_v28 }
0x1516   :  { %6592 = vpow2.f32 %v6068_v27  ;;  %v6069_v1 = vmul.f32 -1.442695, %v5224_v33 }
0x1518   :  { %6594 = vpow2.f32 %v6069_v1 }
0x1519   :  { %6596 = vpow2.f32 %v6070_v4 }
0x1523   :  { %v6593_v35 = vpop.eup %6592 }
0x1524   :  { %v5236_v60 = vadd.f32 1.0, %v6593_v35 }
0x1525   :  { %v6595_v27 = vpop.eup %6594 }
0x1526   :  { %6598 = vrcp.f32 %v5236_v60  ;;  %v5237_v1 = vadd.f32 1.0, %v6595_v27  ;;  %v6597_v11 = vpop.eup %6596  ;;  %v10905_v60 = vld [vmem:[#allocation49_spill] sm:$0xff]  ;;  %v10906_v27 = vld [vmem:[#allocation48_spill] sm:$0xff] }
0x1527   :  { %6600 = vtanh.f32 %v5226_v63  ;;  %v5238_v41 = vadd.f32 1.0, %v6597_v11  ;;  %v10904_v63 = vld [vmem:[#allocation42_spill] sm:$0xff]  ;;  %v10908_v11 = vld [vmem:[#allocation56_spill] sm:$0xff] }
0x1528   :  { %6602 = vrcp.f32 %v5237_v1  ;;  %v10907_v1 = vld [vmem:[#allocation50_spill] sm:$0xff] }
0x1529   :  { %6604 = vrcp.f32 %v5238_v41  ;;  %v10903_v41 = vld [vmem:[#allocation19_spill] sm:$0xff] }
0x1533   :  { %v6599_v56 = vpop.eup %6598 }
0x1534   :  { %v6601_v33 = vpop.eup %6600 }
0x1535   :  { %v6603_v47 = vpop.eup %6602  ;;  %v5250_v44 = vmul.f32 %v6601_v33, %v6599_v56  ;;  %v10909_v56 = vld [vmem:[#allocation31_spill] sm:$0xff]  ;;  %v10910_v33 = vld [vmem:[#allocation18_spill] sm:$0xff] }
0x1536   :  { %v5249_v55 = vmul.f32 %v6603_v47, %v5247_v38  ;;  %v6605_v35 = vpop.eup %6604  ;;  %v10902_v47 = vld [vmem:[#allocation43_spill] sm:$0xff]  ;;  %v10911_v38 = vld [vmem:[#allocation32_spill] sm:$0xff] }
0x1538   :  { %v9710_v8 = vadd.f32 %v5250_v44, %v5249_v55  ;;  %v10912_v55 = vld [vmem:[#allocation20_spill] sm:$0xff]  ;;  %v10913_v44 = vld [vmem:[#allocation53_spill] sm:$0xff] }
0x153a   :  { %6606 = vtanh.f32 %v9710_v8 }
0x1547   :  { %v6607_v31 = vpop.eup %6606 }
0x1548   :  { %v5253_v4 = vmul.f32 %v6607_v31, %v6605_v35  ;;  %v10914_v35 = vld [vmem:[#allocation55_spill] sm:$0xff]  ;;  %v10915_v31 = vld [vmem:[#allocation54_spill] sm:$0xff] }
0x154a   :  { %5254 = vst [vmem:[#allocation2 + $0x8] sm:$0x3] %v5253_v4  ;;  %5320 = vmatmul.mubr.f32.vlgmr.msra.gmra.mxu0 %v5253_v4  ;;  %5391 = vmatmul.mubr.f32.vlgmr.msra.gmra.mxu1 %v5253_v4  ;;  %v10916_v4 = vmov 0.0  }
0x154b   :  { %5445 = vmatpush1.msra.mxu0 %v9499_v12  ;;  %5516 = vmatpush1.msra.mxu1 %v9502_v59 }
0x154c   :  { %5446 = vmatprep.subr.mxu0 %v9505_v30  ;;  %5517 = vmatprep.subr.mxu1 %v9508_v20 }
0x154d   :  { %5447 = vmatpush1.msra.mxu0 %v9511_v52  ;;  %5518 = vmatpush1.msra.mxu1 %v9514_v32 }
0x154e   :  { %5448 = vmatprep.subr.mxu0 %v9517_v45  ;;  %5519 = vmatprep.subr.mxu1 %v9520_v25 }
0x154f   :  { %5449 = vmatpush1.msra.mxu0 %v9523_v54  ;;  %5520 = vmatpush1.msra.mxu1 %v9526_v62 }
0x1550   :  { %5450 = vmatprep.subr.mxu0 %v9529_v48  ;;  %5521 = vmatprep.subr.mxu1 %v9532_v39 }
0x1551   :  { %5451 = vmatpush1.msra.mxu0 %v9535_v50  ;;  %5522 = vmatpush1.msra.mxu1 %v9538_v51 }
0x1552   :  { %5452 = vmatprep.subr.mxu0 %v9541_v3  ;;  %5523 = vmatprep.subr.mxu1 %v9544_v37 }
0x1553   :  { %5453 = vmatpush1.msra.mxu0 %v9547_v49  ;;  %5524 = vmatpush1.msra.mxu1 %v9550_v46 }
0x1554   :  { %5454 = vmatprep.subr.mxu0 %v9553_v5  ;;  %5525 = vmatprep.subr.mxu1 %v9556_v7 }
0x1555   :  { %5455 = vmatpush1.msra.mxu0 %v9559_v16  ;;  %5526 = vmatpush1.msra.mxu1 %v9562_v15 }
0x1556   :  { %5456 = vmatprep.subr.mxu0 %v9565_v17  ;;  %5527 = vmatprep.subr.mxu1 %v9568_v18 }
0x1557   :  { %5457 = vmatpush1.msra.mxu0 %v9571_v19  ;;  %5528 = vmatpush1.msra.mxu1 %v9574_v21 }
0x1558   :  { %5458 = vmatprep.subr.mxu0 %v9577_v23  ;;  %5529 = vmatprep.subr.mxu1 %v9580_v10 }
0x1559   :  { %5459 = vmatpush1.msra.mxu0 %v9583_v22  ;;  %5530 = vmatpush1.msra.mxu1 %v9586_v42 }
0x155a   :  { %5460 = vmatprep.subr.mxu0 %v9589_v6  ;;  %5531 = vmatprep.subr.mxu1 %v9592_v26 }
0x155b   :  { %5461 = vmatpush1.msra.mxu0 %v9595_v13  ;;  %5532 = vmatpush1.msra.mxu1 %v9598_v9 }
0x155c   :  { %5462 = vmatprep.subr.mxu0 %v9601_v34  ;;  %5533 = vmatprep.subr.mxu1 %v9604_v2 }
0x155d   :  { %5463 = vmatpush1.msra.mxu0 %v9607_v0  ;;  %5534 = vmatpush1.msra.mxu1 %v9610_v14 }
0x155e   :  { %5464 = vmatprep.subr.mxu0 %v9613_v40  ;;  %5535 = vmatprep.subr.mxu1 %v9616_v36 }
0x155f   :  { %5465 = vmatpush1.msra.mxu0 %v9619_v61  ;;  %5536 = vmatpush1.msra.mxu1 %v9622_v29 }
0x1560   :  { %5466 = vmatprep.subr.mxu0 %v9625_v43  ;;  %5537 = vmatprep.subr.mxu1 %v9628_v58 }
0x1561   :  { %5467 = vmatpush1.msra.mxu0 %v9631_v53  ;;  %5538 = vmatpush1.msra.mxu1 %v9634_v57 }
0x1562   :  { %5468 = vmatprep.subr.mxu0 %v10901_v24  ;;  %5539 = vmatprep.subr.mxu1 %v10902_v47 }
0x1563   :  { %5469 = vmatpush1.msra.mxu0 %v10903_v41  ;;  %5540 = vmatpush1.msra.mxu1 %v10904_v63 }
0x1564   :  { %5470 = vmatprep.subr.mxu0 %v10905_v60  ;;  %5541 = vmatprep.subr.mxu1 %v10906_v27  ;;  %v10917_v27 = vld [vmem:[#allocation33_spill] sm:$0xff] }
0x1565   :  { %5471 = vmatpush1.msra.mxu0 %v10907_v1  ;;  %5542 = vmatpush1.msra.mxu1 %v10908_v11  ;;  %v10918_v11 = vld [vmem:[#allocation47_spill] sm:$0xff] }
0x1566   :  { %5472 = vmatprep.subr.mxu0 %v10909_v56  ;;  %5543 = vmatprep.subr.mxu1 %v10910_v33  ;;  %v10919_v56 = vld [vmem:[#allocation45_spill] sm:$0xff] }
0x1567   :  { %5473 = vmatpush1.msra.mxu0 %v10911_v38  ;;  %5544 = vmatpush1.msra.mxu1 %v10912_v55  ;;  %v10920_v55 = vld [vmem:[#allocation21_spill] sm:$0xff] }
0x1568   :  { %5474 = vmatprep.subr.mxu0 %v10913_v44  ;;  %5545 = vmatprep.subr.mxu1 %v10914_v35  ;;  %v10921_v35 = vld [vmem:[#allocation34_spill] sm:$0xff] }
0x1569   :  { %5475 = vmatpush1.msra.mxu0 %v10915_v31  ;;  %5508 = vmatprep.mubr.f32.mxu0 %v10916_v4 }
0x156a   :  { %5546 = vmatpush1.msra.mxu1 %v10917_v27  ;;  %5579 = vmatprep.mubr.f32.mxu1 %v10916_v4  ;;  %v10922_v4 = vld [vmem:[#allocation22_spill] sm:$0xff] }
0x156b   :  { %5633 = vmatprep.subr.mxu0 %v10918_v11  ;;  %5704 = vmatprep.subr.mxu1 %v10919_v56 }
0x160a   :  { %v5321_v33 = vpop.f32.mrf.mxu0  ;;  %v5392_v31 = vpop.f32.mrf.mxu1 }
0x160b   :  { %v5401_v38 = vrot.slane %v5321_v33, 6  ;;  %v5403_v27 = vrot.slane %v5392_v31, 6 }
0x160c   :  { %v5323_v1 = vpop.f32.mrf.mxu0  ;;  %v5394_v24 = vpop.f32.mrf.mxu1 }
0x160d   :  { %v5409_v60 = vadd.f32 %v5401_v38, %v10920_v55  ;;  %v5402_v44 = vrot.slane %v5323_v1, 6  ;;  %v5411_v57 = vadd.f32 %v5403_v27, %v10922_v4  ;;  %v5404_v11 = vrot.slane %v5394_v24, 6 }
0x160f   :  { %v6071_v63 = vmul.f32 -1.442695, %v5409_v60  ;;  %v5410_v41 = vadd.f32 %v5402_v44, %v10921_v35  ;;  %v6073_v53 = vmul.f32 -1.442695, %v5411_v57  ;;  %v5412_v33 = vadd.f32 %v5404_v11, %v9706_v28 }
0x1611   :  { %6608 = vpow2.f32 %v6071_v63  ;;  %v6072_v47 = vmul.f32 -1.442695, %v5410_v41 }
0x1613   :  { %6610 = vpow2.f32 %v6072_v47  ;;  %v5433_v47 = vrot.slane %v9710_v8, 6 }
0x1614   :  { %6612 = vpow2.f32 %v6073_v53 }
0x161e   :  { %v6609_v56 = vpop.eup %6608 }
0x161f   :  { %v5422_v58 = vadd.f32 1.0, %v6609_v56 }
0x1620   :  { %v6611_v43 = vpop.eup %6610 }
0x1621   :  { %6614 = vrcp.f32 %v5422_v58  ;;  %v5423_v60 = vadd.f32 1.0, %v6611_v43  ;;  %v6613_v63 = vpop.eup %6612 }
0x1622   :  { %6616 = vtanh.f32 %v5412_v33  ;;  %v5424_v44 = vadd.f32 1.0, %v6613_v63 }
0x1623   :  { %6618 = vrcp.f32 %v5423_v60 }
0x1624   :  { %6620 = vrcp.f32 %v5424_v44 }
0x162e   :  { %v6615_v1 = vpop.eup %6614 }
0x162f   :  { %v6617_v41 = vpop.eup %6616 }
0x1630   :  { %v6619_v38 = vpop.eup %6618  ;;  %v5436_v24 = vmul.f32 %v6617_v41, %v6615_v1 }
0x1631   :  { %v5435_v27 = vmul.f32 %v6619_v38, %v5433_v47  ;;  %v6621_v31 = vpop.eup %6620 }
0x1633   :  { %v9784_v57 = vadd.f32 %v5436_v24, %v5435_v27  ;;  %v5819_v27 = vld [vmem:[#allocation2] sm:$0xff]  ;;  %v5836_v24 = vld [vmem:[%s9955_s10 + $0x78] sm:$0xff] }
0x1635   :  { %6622 = vtanh.f32 %v9784_v57  ;;  %v5622_v11 = vrot.slane %v9784_v57, 6  ;;  %v5835_v57 = vld [vmem:[%s9955_s10 + $0x70] sm:$0xff] }
0x1642   :  { %v6623_v53 = vpop.eup %6622 }
0x1643   :  { %v5439_v58 = vmul.f32 %v6623_v53, %v6621_v31  ;;  %v5834_v31 = vld [vmem:[%s9955_s10 + $0x68] sm:$0xff]  ;;  %v5833_v53 = vld [vmem:[%s9955_s10 + $0x60] sm:$0xff] }
0x1645   :  { %5440 = vst [vmem:[#allocation2 + $0x8] sm:$0xc] %v5439_v58  ;;  %v5442_v43 = vrot.slane %v5439_v58, 2  ;;  %v5832_v58 = vld [vmem:[%s9955_s10 + $0x58] sm:$0xff] }
0x1647   :  { %5509 = vmatmul.mubr.f32.vlgmr.msra.gmra.mxu0 %v5442_v43  ;;  %5580 = vmatmul.mubr.f32.vlgmr.msra.gmra.mxu1 %v5442_v43  ;;  %v5831_v43 = vld [vmem:[%s9955_s10 + $0x50] sm:$0xff] }
0x1648   :  { %5634 = vmatpush1.msra.mxu0 %v9499_v12  ;;  %5705 = vmatpush1.msra.mxu1 %v9502_v59  ;;  %v10923_v12 = vld [vmem:[#allocation46_spill] sm:$0xff]  ;;  %v10924_v59 = vld [vmem:[#allocation51_spill] sm:$0xff] }
0x1649   :  { %5635 = vmatprep.subr.mxu0 %v9505_v30  ;;  %5706 = vmatprep.subr.mxu1 %v9508_v20  ;;  %v10925_v30 = vld [vmem:[#allocation52_spill] sm:$0xff] }
0x164a   :  { %5636 = vmatpush1.msra.mxu0 %v9511_v52  ;;  %5707 = vmatpush1.msra.mxu1 %v9514_v32  ;;  %v10926_v20 = vld [vmem:[#allocation28_spill] sm:$0xff]  ;;  %v10928_v32 = vld [vmem:[#allocation43_spill] sm:$0xff] }
0x164b   :  { %5637 = vmatprep.subr.mxu0 %v9517_v45  ;;  %5708 = vmatprep.subr.mxu1 %v9520_v25  ;;  %v10927_v52 = vld [vmem:[#allocation40_spill] sm:$0xff]  ;;  %v10929_v45 = vld [vmem:[#allocation19_spill] sm:$0xff]  ;;  %v10930_v25 = vld [vmem:[#allocation42_spill] sm:$0xff] }
0x164c   :  { %5638 = vmatpush1.msra.mxu0 %v9523_v54  ;;  %5709 = vmatpush1.msra.mxu1 %v9526_v62  ;;  %v10931_v54 = vld [vmem:[#allocation49_spill] sm:$0xff]  ;;  %v10932_v62 = vld [vmem:[#allocation48_spill] sm:$0xff] }
0x164d   :  { %5639 = vmatprep.subr.mxu0 %v9529_v48  ;;  %5710 = vmatprep.subr.mxu1 %v9532_v39  ;;  %v10933_v48 = vld [vmem:[#allocation50_spill] sm:$0xff]  ;;  %v10934_v39 = vld [vmem:[#allocation56_spill] sm:$0xff] }
0x164e   :  { %5640 = vmatpush1.msra.mxu0 %v9535_v50  ;;  %5711 = vmatpush1.msra.mxu1 %v9538_v51  ;;  %v10935_v50 = vld [vmem:[#allocation31_spill] sm:$0xff]  ;;  %v10936_v51 = vld [vmem:[#allocation18_spill] sm:$0xff] }
0x164f   :  { %5641 = vmatprep.subr.mxu0 %v9541_v3  ;;  %5712 = vmatprep.subr.mxu1 %v9544_v37  ;;  %v10937_v3 = vld [vmem:[#allocation32_spill] sm:$0xff] }
0x1650   :  { %5642 = vmatpush1.msra.mxu0 %v9547_v49  ;;  %5713 = vmatpush1.msra.mxu1 %v9550_v46  ;;  %v10938_v37 = vld [vmem:[#allocation20_spill] sm:$0xff]  ;;  %v10939_v49 = vld [vmem:[#allocation53_spill] sm:$0xff]  ;;  %v10940_v46 = vld [vmem:[#allocation55_spill] sm:$0xff] }
0x1651   :  { %5643 = vmatprep.subr.mxu0 %v9553_v5  ;;  %5714 = vmatprep.subr.mxu1 %v9556_v7  ;;  %v10941_v5 = vld [vmem:[#allocation54_spill] sm:$0xff]  ;;  %v10942_v7 = vmov 0.0  }
0x1652   :  { %5644 = vmatpush1.msra.mxu0 %v9559_v16  ;;  %5715 = vmatpush1.msra.mxu1 %v9562_v15  ;;  %v10943_v16 = vld [vmem:[#allocation33_spill] sm:$0xff] }
0x1653   :  { %5645 = vmatprep.subr.mxu0 %v9565_v17  ;;  %5716 = vmatprep.subr.mxu1 %v9568_v18 }
0x1654   :  { %5646 = vmatpush1.msra.mxu0 %v9571_v19  ;;  %5717 = vmatpush1.msra.mxu1 %v9574_v21 }
0x1655   :  { %5647 = vmatprep.subr.mxu0 %v9577_v23  ;;  %5718 = vmatprep.subr.mxu1 %v9580_v10 }
0x1656   :  { %5648 = vmatpush1.msra.mxu0 %v9583_v22  ;;  %5719 = vmatpush1.msra.mxu1 %v9586_v42 }
0x1657   :  { %5649 = vmatprep.subr.mxu0 %v9589_v6  ;;  %5720 = vmatprep.subr.mxu1 %v9592_v26 }
0x1658   :  { %5650 = vmatpush1.msra.mxu0 %v9595_v13  ;;  %5721 = vmatpush1.msra.mxu1 %v9598_v9 }
0x1659   :  { %5651 = vmatprep.subr.mxu0 %v9601_v34  ;;  %5722 = vmatprep.subr.mxu1 %v9604_v2 }
0x165a   :  { %5652 = vmatpush1.msra.mxu0 %v9607_v0  ;;  %5723 = vmatpush1.msra.mxu1 %v9610_v14 }
0x165b   :  { %5653 = vmatprep.subr.mxu0 %v9613_v40  ;;  %5724 = vmatprep.subr.mxu1 %v9616_v36 }
0x165c   :  { %5654 = vmatpush1.msra.mxu0 %v9619_v61  ;;  %5725 = vmatpush1.msra.mxu1 %v9622_v29 }
0x165d   :  { %5655 = vmatprep.subr.mxu0 %v10923_v12  ;;  %5726 = vmatprep.subr.mxu1 %v10924_v59  ;;  %v5830_v12 = vld [vmem:[%s9955_s10 + $0x48] sm:$0xff]  ;;  %v5829_v59 = vld [vmem:[%s9955_s10 + $0x40] sm:$0xff] }
0x165e   :  { %5656 = vmatpush1.msra.mxu0 %v10925_v30  ;;  %5727 = vmatpush1.msra.mxu1 %v10926_v20  ;;  %v5828_v30 = vld [vmem:[%s9955_s10 + $0x38] sm:$0xff]  ;;  %v5827_v20 = vld [vmem:[%s9955_s10 + $0x30] sm:$0xff] }
0x165f   :  { %5657 = vmatprep.subr.mxu0 %v10927_v52  ;;  %5728 = vmatprep.subr.mxu1 %v10928_v32  ;;  %v5826_v52 = vld [vmem:[%s9955_s10 + $0x28] sm:$0xff]  ;;  %v5825_v32 = vld [vmem:[%s9955_s10 + $0x20] sm:$0xff] }
0x1660   :  { %5658 = vmatpush1.msra.mxu0 %v10929_v45  ;;  %5729 = vmatpush1.msra.mxu1 %v10930_v25  ;;  %v5824_v45 = vld [vmem:[%s9955_s10 + $0x18] sm:$0xff]  ;;  %v5823_v25 = vld [vmem:[%s9955_s10 + $0x10] sm:$0xff] }
0x1661   :  { %5659 = vmatprep.subr.mxu0 %v10931_v54  ;;  %5730 = vmatprep.subr.mxu1 %v10932_v62  ;;  %v5822_v54 = vld [vmem:[%s9955_s10 + $0x8] sm:$0xff]  ;;  %v5821_v62 = vld [vmem:[%s9955_s10] sm:$0xff] }
0x1662   :  { %5660 = vmatpush1.msra.mxu0 %v10933_v48  ;;  %5731 = vmatpush1.msra.mxu1 %v10934_v39 }
0x1663   :  { %5661 = vmatprep.subr.mxu0 %v10935_v50  ;;  %5732 = vmatprep.subr.mxu1 %v10936_v51 }
0x1664   :  { %5662 = vmatpush1.msra.mxu0 %v10937_v3  ;;  %5733 = vmatpush1.msra.mxu1 %v10938_v37 }
0x1665   :  { %5663 = vmatprep.subr.mxu0 %v10939_v49  ;;  %5734 = vmatprep.subr.mxu1 %v10940_v46 }
0x1666   :  { %5664 = vmatpush1.msra.mxu0 %v10941_v5  ;;  %5697 = vmatprep.mubr.f32.mxu0 %v10942_v7 }
0x1667   :  { %5735 = vmatpush1.msra.mxu1 %v10943_v16  ;;  %5768 = vmatprep.mubr.f32.mxu1 %v10942_v7 }
0x1668   :  { %6099 = vmatprep.subr.mxu0 %v5836_v24 }
0x1707   :  { %v5510_v15 = vpop.f32.mrf.mxu0  ;;  %v5581_v22 = vpop.f32.mrf.mxu1 }
0x1708   :  { %v5590_v17 = vrot.slane %v5510_v15, 4  ;;  %v5592_v6 = vrot.slane %v5581_v22, 4 }
0x1709   :  { %v5512_v18 = vpop.f32.mrf.mxu0  ;;  %v5583_v26 = vpop.f32.mrf.mxu1 }
0x170a   :  { %v5598_v19 = vadd.f32 %v5590_v17, %v10920_v55  ;;  %v5591_v21 = vrot.slane %v5512_v18, 4  ;;  %v5600_v13 = vadd.f32 %v5592_v6, %v10922_v4  ;;  %v5593_v9 = vrot.slane %v5583_v26, 4 }
0x170c   :  { %v6074_v23 = vmul.f32 -1.442695, %v5598_v19  ;;  %v5599_v10 = vadd.f32 %v5591_v21, %v10921_v35  ;;  %v6076_v34 = vmul.f32 -1.442695, %v5600_v13  ;;  %v5601_v0 = vadd.f32 %v5593_v9, %v9706_v28 }
0x170e   :  { %6624 = vpow2.f32 %v6074_v23  ;;  %v6075_v42 = vmul.f32 -1.442695, %v5599_v10 }
0x1710   :  { %6626 = vpow2.f32 %v6075_v42 }
0x1711   :  { %6628 = vpow2.f32 %v6076_v34 }
0x171b   :  { %v6625_v2 = vpop.eup %6624 }
0x171c   :  { %v5611_v14 = vadd.f32 1.0, %v6625_v2 }
0x171d   :  { %v6627_v40 = vpop.eup %6626 }
0x171e   :  { %6630 = vrcp.f32 %v5611_v14  ;;  %v5612_v36 = vadd.f32 1.0, %v6627_v40  ;;  %v6629_v61 = vpop.eup %6628  ;;  %v6985_v40 = vmov 1983009808  }
0x171f   :  { %6632 = vtanh.f32 %v5601_v0  ;;  %v5613_v33 = vadd.f32 1.0, %v6629_v61 }
0x1720   :  { %6634 = vrcp.f32 %v5612_v36  ;;  %v5923_v36 = vunpack.c.l.s4 %v6985_v40 }
0x1721   :  { %6636 = vrcp.f32 %v5613_v33 }
0x1722   :  { %v5924_v61 = vunpack.c.0.s8 %v5923_v36 }
0x172b   :  { %v6631_v29 = vpop.eup %6630 }
0x172c   :  { %v6633_v8 = vpop.eup %6632 }
0x172d   :  { %v6635_v56 = vpop.eup %6634  ;;  %v5625_v63 = vmul.f32 %v6633_v8, %v6631_v29  ;;  %v6080_v29 = vld [vmem:[#allocation3] ss:$0 sm:$0xff]  ;;  %v10944_v8 = vld [vmem:[#allocation44_spill] sm:$0xff] }
0x172e   :  { %v5624_v60 = vmul.f32 %v6635_v56, %v5622_v11  ;;  %v6637_v41 = vpop.eup %6636  ;;  %v5927_v11 = vsub.s32 %v5924_v61, %v10944_v8 }
0x1730   :  { %v9856_v1 = vadd.f32 %v5625_v63, %v5624_v60 }
0x1732   :  { %6638 = vtanh.f32 %v9856_v1  ;;  %v5811_v6 = vrot.slane %v9856_v1, 6 }
0x173f   :  { %v6639_v47 = vpop.eup %6638 }
0x1740   :  { %v5628_v38 = vmul.f32 %v6639_v47, %v6637_v41 }
0x1742   :  { %5629 = vst [vmem:[#allocation2 + $0x8] sm:$0x30] %v5628_v38  ;;  %v5631_v44 = vrot.slane %v5628_v38, 4 }
0x1744   :  { %5698 = vmatmul.mubr.f32.vlgmr.msra.gmra.mxu0 %v5631_v44  ;;  %5769 = vmatmul.mubr.f32.vlgmr.msra.gmra.mxu1 %v5631_v44 }
0x1745   :  { %6131 = vmatprep.mubr.f32.mxu0 %v5819_v27  ;;  %6100 = vmatpush3.msra.mxu0 %v5836_v24 }
0x1746   :  { %6101 = vmatprep.subr.mxu0 %v5835_v57 }
0x1747   :  { %6102 = vmatpush3.msra.mxu0 %v5835_v57 }
0x1748   :  { %6103 = vmatprep.subr.mxu0 %v5834_v31 }
0x1749   :  { %6104 = vmatpush3.msra.mxu0 %v5834_v31 }
0x174a   :  { %6105 = vmatprep.subr.mxu0 %v5833_v53 }
0x174b   :  { %6106 = vmatpush3.msra.mxu0 %v5833_v53 }
0x174c   :  { %6107 = vmatprep.subr.mxu0 %v5832_v58 }
0x174d   :  { %6108 = vmatpush3.msra.mxu0 %v5832_v58 }
0x174e   :  { %6109 = vmatprep.subr.mxu0 %v5831_v43 }
0x174f   :  { %6110 = vmatpush3.msra.mxu0 %v5831_v43 }
0x1750   :  { %6111 = vmatprep.subr.mxu0 %v5830_v12 }
0x1751   :  { %6112 = vmatpush3.msra.mxu0 %v5830_v12 }
0x1752   :  { %6113 = vmatprep.subr.mxu0 %v5829_v59 }
0x1753   :  { %6114 = vmatpush3.msra.mxu0 %v5829_v59 }
0x1754   :  { %6115 = vmatprep.subr.mxu0 %v5828_v30 }
0x1755   :  { %6116 = vmatpush3.msra.mxu0 %v5828_v30 }
0x1756   :  { %6117 = vmatprep.subr.mxu0 %v5827_v20 }
0x1757   :  { %6118 = vmatpush3.msra.mxu0 %v5827_v20 }
0x1758   :  { %6119 = vmatprep.subr.mxu0 %v5826_v52 }
0x1759   :  { %6120 = vmatpush3.msra.mxu0 %v5826_v52 }
0x175a   :  { %6121 = vmatprep.subr.mxu0 %v5825_v32 }
0x175b   :  { %6122 = vmatpush3.msra.mxu0 %v5825_v32 }
0x175c   :  { %6123 = vmatprep.subr.mxu0 %v5824_v45 }
0x175d   :  { %6124 = vmatpush3.msra.mxu0 %v5824_v45 }
0x175e   :  { %6125 = vmatprep.subr.mxu0 %v5823_v25 }
0x175f   :  { %6126 = vmatpush3.msra.mxu0 %v5823_v25 }
0x1760   :  { %6127 = vmatprep.subr.mxu0 %v5822_v54 }
0x1761   :  { %6128 = vmatpush3.msra.mxu0 %v5822_v54 }
0x1762   :  { %6129 = vmatprep.subr.mxu0 %v5821_v62 }
0x1763   :  { %6130 = vmatpush3.msra.mxu0 %v5821_v62 }
0x1804   :  { %v5699_v48 = vpop.f32.mrf.mxu0  ;;  %v5770_v46 = vpop.f32.mrf.mxu1 }
0x1805   :  { %v5779_v39 = vrot.slane %v5699_v48, 2  ;;  %v5781_v7 = vrot.slane %v5770_v46, 2 }
0x1806   :  { %v5701_v50 = vpop.f32.mrf.mxu0  ;;  %v5772_v16 = vpop.f32.mrf.mxu1 }
0x1807   :  { %v5787_v51 = vadd.f32 %v5779_v39, %v10920_v55  ;;  %v5780_v3 = vrot.slane %v5701_v50, 2  ;;  %v5789_v15 = vadd.f32 %v5781_v7, %v10922_v4  ;;  %v5782_v17 = vrot.slane %v5772_v16, 2 }
0x1809   :  { %v6077_v37 = vmul.f32 -1.442695, %v5787_v51  ;;  %v5788_v49 = vadd.f32 %v5780_v3, %v10921_v35  ;;  %v6079_v18 = vmul.f32 -1.442695, %v5789_v15  ;;  %v5790_v21 = vadd.f32 %v5782_v17, %v9706_v28 }
0x180b   :  { %6640 = vpow2.f32 %v6077_v37  ;;  %v6078_v5 = vmul.f32 -1.442695, %v5788_v49 }
0x180d   :  { %6642 = vpow2.f32 %v6078_v5 }
0x180e   :  { %6644 = vpow2.f32 %v6079_v18 }
0x1818   :  { %v6641_v19 = vpop.eup %6640 }
0x1819   :  { %v5800_v23 = vadd.f32 1.0, %v6641_v19 }
0x181a   :  { %v6643_v10 = vpop.eup %6642 }
0x181b   :  { %6646 = vrcp.f32 %v5800_v23  ;;  %v5801_v55 = vadd.f32 1.0, %v6643_v10  ;;  %v6645_v35 = vpop.eup %6644 }
0x181c   :  { %6648 = vtanh.f32 %v5790_v21  ;;  %v5802_v13 = vadd.f32 1.0, %v6645_v35 }
0x181d   :  { %6650 = vrcp.f32 %v5801_v55 }
0x181e   :  { %6652 = vrcp.f32 %v5802_v13 }
0x1828   :  { %v6647_v22 = vpop.eup %6646 }
0x1829   :  { %v6649_v42 = vpop.eup %6648 }
0x182a   :  { %v6651_v26 = vpop.eup %6650  ;;  %v5814_v9 = vmul.f32 %v6649_v42, %v6647_v22 }
0x182b   :  { %v5813_v4 = vmul.f32 %v6651_v26, %v5811_v6  ;;  %v6653_v28 = vpop.eup %6652 }
0x182d   :  { %v5815_v34 = vadd.f32 %v5814_v9, %v5813_v4 }
0x182f   :  { %6654 = vtanh.f32 %v5815_v34 }
0x183c   :  { %v6655_v2 = vpop.eup %6654 }
0x183d   :  { %v5817_v0 = vmul.f32 %v6655_v2, %v6653_v28 }
0x183f   :  { %5818 = vst [vmem:[#allocation2 + $0x8] sm:$0xc0] %v5817_v0 }
0x1846   :  { %v5820_v14 = vld [vmem:[#allocation2 + $0x8] sm:$0xff] }
0x1847   :  { %6132 = vmatmul.mubr.f32.vlgmr.msra.gmra.mxu0 %v5820_v14 }
0x1907   :  { %v6133_v56 = vpop.f32.mrf.mxu0 }
0x1908   :  { %v5916_v33 = vadd.f32 %v6133_v56, %v6080_v29 }
0x1909   :  { %v5910_v60 = vpop.f32.mrf.mxu0 }
0x190a   :  { %v5938_v63 = vcombine.high %v5916_v33, %v5916_v33  ;;  %v5945_v1 = vrot.slane %v5916_v33, %v5927_v11  ;;  %v5911_v41 = vadd.f32 %v6080_v29, %v5910_v60 }
0x190c   :  { %v5952_v47 = vrot.slane %v5938_v63, %v5927_v11  ;;  %v5953_v38 = vcombine.high %v5945_v1, %v5945_v1  ;;  %5968 = vst.msk [vmem:[%s9957_s12 + $0x8] sm:$0x3] %vm5963_vm8, %v5945_v1  ;;  %v5921_v44 = vcombine.high %v5911_v41, %v5911_v41  ;;  %v5928_v27 = vrot.slane %v5911_v41, %v5927_v11 }
0x190e   :  { %v5954_v24 = vcombine.high %v5952_v47, %v5952_v47  ;;  %5969 = vst.msk [vmem:[%s9957_s12 + $0xa] sm:$0x3] %vm5963_vm8, %v5953_v38  ;;  %5970 = vst.msk [vmem:[%s9957_s12 + $0xc] sm:$0x3] %vm5963_vm8, %v5952_v47  ;;  %v5935_v57 = vrot.slane %v5921_v44, %v5927_v11  ;;  %v5936_v31 = vcombine.high %v5928_v27, %v5928_v27 }
0x190f   :  { %5964 = vst.msk [vmem:[%s9957_s12] sm:$0x3] %vm5963_vm8, %v5928_v27 }
0x1910   :  { %5971 = vst.msk [vmem:[%s9957_s12 + $0xe] sm:$0x3] %vm5963_vm8, %v5954_v24  ;;  %v5937_v53 = vcombine.high %v5935_v57, %v5935_v57  ;;  %5965 = vst.msk [vmem:[%s9957_s12 + $0x2] sm:$0x3] %vm5963_vm8, %v5936_v31 }
0x1911   :  { %5966 = vst.msk [vmem:[%s9957_s12 + $0x4] sm:$0x3] %vm5963_vm8, %v5935_v57 }
0x1912   :  { %5967 = vst.msk [vmem:[%s9957_s12 + $0x6] sm:$0x3] %vm5963_vm8, %v5937_v53 }
0x1913   :  { %5976 = vsyncpa [#allocation5], 1 }
0x1914   :  { %5977 = vsyncpa [#allocation7], 1 }
0x1915   :  { %5978 = vsyncpa [#allocation10], 1 }
0x1916   :  { %5979 = vsyncpa [#allocation13], 1 }

</bundles_post_ra>
